<compile_context>
chip_gen: v7x
topology: tpu7x:2x2x1
jax: 0.10.0
libtpu: 0.0.40
codegen_flags: <defaults>
</compile_context>

<pallas_src>
import functools
import numpy as np
import jax
import jax.numpy as jnp
from jax.experimental import pallas as pl
from jax.experimental.pallas import tpu as pltpu


def _round_up(v, m):
    return ((v + m - 1) // m) * m


# ---------------------------------------------------------------------------
# ROI-Align separable interpolation factors (glue, plain JAX)
# ---------------------------------------------------------------------------
def _axis_interp_weights(coord, size):
    """1-D bilinear weights summed over sampling points.

    coord: (R, P, S) float32 sample coordinates along one spatial axis.
    Returns (R, P, size) dense weights (torchvision roi_align, aligned=False).
    """
    valid = (coord >= -1.0) & (coord <= float(size))
    c = jnp.maximum(coord, 0.0)
    low = jnp.floor(c).astype(jnp.int32)
    at_edge = low >= size - 1
    high = jnp.where(at_edge, size - 1, low + 1)
    low = jnp.where(at_edge, size - 1, low)
    c = jnp.where(at_edge, jnp.float32(size - 1), c)
    frac = c - low.astype(jnp.float32)
    w_low = jnp.where(valid, 1.0 - frac, 0.0)
    w_high = jnp.where(valid, frac, 0.0)
    oh_low = jax.nn.one_hot(low, size, dtype=jnp.float32)
    oh_high = jax.nn.one_hot(high, size, dtype=jnp.float32)
    contrib = w_low[..., None] * oh_low + w_high[..., None] * oh_high  # (R,P,S,size)
    return contrib.sum(axis=2)  # (R, P, size)


def roi_align_axis_weights(rois, H, W, pooled_h, pooled_w, spatial_scale,
                           sampling_ratio):
    """Separable ROI-Align factors: oy (R, Ph, H), ox (R, Pw, W), f32.

    The dense interpolation matrix is oy (x) ox (1/S^2 already folded in)."""
    assert sampling_ratio > 0, "adaptive sampling_ratio<=0 not supported"
    S = int(sampling_ratio)

    x1 = rois[:, 1] * spatial_scale
    y1 = rois[:, 2] * spatial_scale
    x2 = rois[:, 3] * spatial_scale
    y2 = rois[:, 4] * spatial_scale
    roi_w = jnp.maximum(x2 - x1, 1.0)
    roi_h = jnp.maximum(y2 - y1, 1.0)
    bin_w = roi_w / pooled_w
    bin_h = roi_h / pooled_h

    s = jnp.arange(S, dtype=jnp.float32)
    py = jnp.arange(pooled_h, dtype=jnp.float32)
    px = jnp.arange(pooled_w, dtype=jnp.float32)
    y = (y1[:, None, None] + py[None, :, None] * bin_h[:, None, None]
         + (s[None, None, :] + 0.5) * bin_h[:, None, None] / S)        # (R,Ph,S)
    x = (x1[:, None, None] + px[None, :, None] * bin_w[:, None, None]
         + (s[None, None, :] + 0.5) * bin_w[:, None, None] / S)        # (R,Pw,S)

    oy = _axis_interp_weights(y, H) / float(S)   # (R, Ph, H)
    ox = _axis_interp_weights(x, W) / float(S)   # (R, Pw, W)
    return oy, ox


def roi_align_weight_matrix(rois, H, W, pooled_h, pooled_w, spatial_scale,
                            sampling_ratio):
    """Dense (R, Ph*Pw, H*W) interpolation matrix (used only by the reference)."""
    oy, ox = roi_align_axis_weights(rois, H, W, pooled_h, pooled_w,
                                    spatial_scale, sampling_ratio)
    wmat = jnp.einsum('rph,rqw->rpqhw', oy, ox)
    R = rois.shape[0]
    return wmat.reshape(R, pooled_h * pooled_w, H * W)


# ---------------------------------------------------------------------------
# Pallas kernel (per level): build the weight tile in-kernel, one MXU dot/step
# ---------------------------------------------------------------------------
def _pooler_level_kernel(gbid_ref, oy_ref, ox_ref, f_ref, o_ref, *,
                         rows, compute_dtype):
    # grid = (num_groups, num_h_tiles); the h-tile axis is the reduction axis.
    del gbid_ref  # used only by the index_maps (scalar prefetch)
    t = pl.program_id(1)

    @pl.when(t == 0)
    def _():
        o_ref[...] = jnp.zeros_like(o_ref)

    oyb = oy_ref[0, 0]          # (M, rows)   f32: y-weights for this h tile
    oxe = ox_ref[0]             # (M, W_pad)  f32: x-weights (h-invariant)
    f = f_ref[0]                # (rows, W_pad, C_pad) compute_dtype features
    wp = f.shape[1]
    cp = f.shape[2]

    # Dense weight tile generated on the VPU: column h of oyb lane-broadcast
    # against oxe, one (M, W_pad) slab per feature row, concatenated along K.
    wt = jnp.concatenate(
        [(oyb[:, h:h + 1] * oxe).astype(compute_dtype) for h in range(rows)],
        axis=1)                                        # (M, rows*W_pad)
    fk = f.reshape(rows * wp, cp)                      # leading-dim merge (free)

    # Accumulate in f32 directly into the (t-invariant) output block.
    o_ref[0] += jnp.dot(wt, fk, preferred_element_type=jnp.float32)


# ---------------------------------------------------------------------------
# Pooler module
# ---------------------------------------------------------------------------
class Pooler:
    def __init__(self, output_size, scales, sampling_ratio, canonical_level=4,
                 roi_group_size=16, rows_per_step=8,
                 compute_dtype=jnp.bfloat16, vmem_limit_bytes=None):
        self.output_size = output_size
        self.scales = scales
        self.sampling_ratio = sampling_ratio
        self.canonical_level = canonical_level
        # ROIs of one image packed along the matmul M dim: M = G*Ph*Pw.
        # G rounded to a multiple of 8 so M is sublane aligned (no M padding).
        # G=16 -> M=784 feeds the 256-wide MXU; raise to 24-32 on v5e/v6e.
        self.roi_group_size = _round_up(max(1, int(roi_group_size)), 8)
        # Feature rows per reduction step (K tile = rows_per_step * W_pad).
        # 8 keeps per-step VMEM a few MiB (v7x-safe); 16-32 ok on v5e/v6e
        # (set vmem_limit_bytes explicitly when raising it).
        self.rows_per_step = max(1, int(rows_per_step))
        self.compute_dtype = compute_dtype
        self.vmem_limit_bytes = vmem_limit_bytes

    def convert_to_roi_format(self, boxes):
        concat_boxes = jnp.concatenate(list(boxes), axis=0)
        ids = jnp.concatenate(
            [jnp.full((b.shape[0], 1), i, dtype=concat_boxes.dtype)
             for i, b in enumerate(boxes)], axis=0)
        return jnp.concatenate([ids, concat_boxes], axis=1)  # (R, 5)

    def forward(self, x, boxes):
        num_levels = len(self.scales)
        rois = self.convert_to_roi_format(boxes)
        counts = [int(b.shape[0]) for b in boxes]
        num_rois = int(sum(counts))
        B, C = int(x[0].shape[0]), int(x[0].shape[1])
        ph = int(self.output_size[0])
        pw = int(self.output_size[1]) if len(self.output_size) > 1 else ph
        PP = ph * pw
        out_dtype = x[0].dtype

        # PyTorch module: no_grad_level collects every level whose roi_aligned
        # tensor is empty (i.e. num_rois * C * PP == 0).
        no_grad_level = [lvl for lvl in range(num_levels)
                         if num_rois * C * PP == 0]
        if num_rois == 0 or C == 0 or PP == 0:
            return (jnp.zeros((num_rois, C, ph, pw), out_dtype), no_grad_level)

        # ---- group ROIs per image into blocks of G (shared feature slab) ----
        G = self.roi_group_size
        pad_index, out_gather, group_bid = [], [], []
        off = 0
        for b, n in enumerate(counts):
            if n > 0:
                base = len(pad_index)
                m = _round_up(n, G)
                pad_index += list(range(off, off + n)) + [off] * (m - n)
                out_gather += list(range(base, base + n))
                group_bid += [b] * (m // G)
            off += n
        R_pad = len(pad_index)
        num_groups = R_pad // G
        rois_p = jnp.take(rois, jnp.asarray(pad_index, jnp.int32), axis=0)
        gbid = jnp.asarray(group_bid, jnp.int32)            # (num_groups,)

        M = G * PP                                           # multiple of 8
        C_pad = _round_up(C, 128)
        cdt = self.compute_dtype

        cp_kwargs = dict(dimension_semantics=("parallel", "arbitrary"))
        if self.vmem_limit_bytes is not None:
            cp_kwargs["vmem_limit_bytes"] = int(self.vmem_limit_bytes)

        acc = None
        for feat, scale in zip(x, self.scales):
            H, Wd = int(feat.shape[2]), int(feat.shape[3])
            W_pad = _round_up(Wd, 128)
            th = max(1, min(self.rows_per_step, H))
            H_pad = _round_up(H, th)
            n_ht = H_pad // th

            # Features: NCHW -> (B, H_pad, W_pad, C_pad), compute dtype.
            f = jnp.transpose(feat, (0, 2, 3, 1))
            f = jnp.pad(f, ((0, 0), (0, H_pad - H), (0, W_pad - Wd),
                            (0, C_pad - C))).astype(cdt)

            # Separable 1-D ROI-Align factors, expanded to the packed M order
            # m = (r_in_group*Ph + py)*Pw + px (tiny vs. the dense matrix).
            oy, ox = roi_align_axis_weights(rois_p, H, Wd, ph, pw, scale,
                                            self.sampling_ratio)
            oy = jnp.pad(oy, ((0, 0), (0, 0), (0, H_pad - H)))   # (R_pad,Ph,H_pad)
            ox = jnp.pad(ox, ((0, 0), (0, 0), (0, W_pad - Wd)))  # (R_pad,Pw,W_pad)

            oyg = oy.reshape(num_groups, G, ph, H_pad)
            oy_exp = jnp.broadcast_to(
                oyg[:, :, :, None, :],
                (num_groups, G, ph, pw, H_pad)).reshape(num_groups, M, H_pad)
            # Pre-tile the h axis so each block is full in its last two dims.
            oy_exp = oy_exp.reshape(num_groups, M, n_ht, th).transpose(0, 2, 1, 3)

            oxg = ox.reshape(num_groups, G, pw, W_pad)
            ox_exp = jnp.broadcast_to(
                oxg[:, :, None, :, :],
                (num_groups, G, ph, pw, W_pad)).reshape(num_groups, M, W_pad)

            kern = functools.partial(_pooler_level_kernel, rows=th,
                                     compute_dtype=cdt)
            grid_spec = pltpu.PrefetchScalarGridSpec(
                num_scalar_prefetch=1,
                grid=(num_groups, n_ht),
                in_specs=[
                    # y weights of this group's h tile
                    pl.BlockSpec((1, 1, M, th), lambda g, t, gb: (g, t, 0, 0)),
                    # x weights of this group (h-invariant, stays resident)
                    pl.BlockSpec((1, M, W_pad), lambda g, t, gb: (g, 0, 0)),
                    # feature rows of the group's image for this h tile
                    pl.BlockSpec((1, th, W_pad, C_pad),
                                 lambda g, t, gb: (gb[g], t, 0, 0)),
                ],
                out_specs=pl.BlockSpec((1, M, C_pad),
                                       lambda g, t, gb: (g, 0, 0)),
            )
            out_l = pl.pallas_call(
                kern,
                out_shape=jax.ShapeDtypeStruct((num_groups, M, C_pad),
                                               jnp.float32),
                grid_spec=grid_spec,
                compiler_params=pltpu.CompilerParams(**cp_kwargs),
            )(gbid, oy_exp, ox_exp, f)

            acc = out_l if acc is None else acc + out_l

        out = acc.reshape(R_pad, PP, C_pad)[:, :, :C]
        out = jnp.take(out, jnp.asarray(out_gather, jnp.int32), axis=0)
        result = out.transpose(0, 2, 1).reshape(num_rois, C, ph, pw)
        return result.astype(out_dtype), no_grad_level

    __call__ = forward


# ---------------------------------------------------------------------------
# Pure-JAX reference (dense interpolation matrices, no Pallas)
# ---------------------------------------------------------------------------
def reference_forward(x, boxes, output_size, scales, sampling_ratio):
    p = Pooler(output_size, scales, sampling_ratio)
    rois = p.convert_to_roi_format(boxes)
    bid = rois[:, 0].astype(jnp.int32)
    ph = int(output_size[0])
    pw = int(output_size[1]) if len(output_size) > 1 else ph
    C = x[0].shape[1]
    R = rois.shape[0]
    acc = jnp.zeros((R, C, ph * pw), jnp.float32)
    for feat, scale in zip(x, scales):
        H, W = feat.shape[2], feat.shape[3]
        wm = roi_align_weight_matrix(rois, H, W, ph, pw, scale, sampling_ratio)
        f = feat.reshape(feat.shape[0], C, H * W)[bid]          # (R, C, HW)
        acc = acc + jnp.einsum('rpk,rck->rcp', wm, f)
    return acc.reshape(R, C, ph, pw)


if __name__ == "__main__":
    key = jax.random.PRNGKey(0)
    k1, k2, k3, k4 = jax.random.split(key, 4)

    B, C = 2, 4
    # Two FPN levels: 16x16 (stride 4) and 8x8 (stride 8) of a 64x64 image.
    feat0 = jax.random.normal(k1, (B, C, 16, 16), jnp.float32)
    feat1 = jax.random.normal(k2, (B, C, 8, 8), jnp.float32)
    x = [feat0, feat1]

    def make_boxes(k, n, img_size):
        xy = jax.random.uniform(k, (n, 2), minval=0.0, maxval=img_size * 0.6)
        wh = jax.random.uniform(jax.random.fold_in(k, 1), (n, 2),
                                minval=4.0, maxval=img_size * 0.4)
        return jnp.concatenate([xy, xy + wh], axis=1)  # (n, 4) xyxy

    boxes = [make_boxes(k3, 3, 64.0), make_boxes(k4, 3, 64.0)]
    scales = (0.25, 0.125)

    ref = jax.block_until_ready(
        reference_forward(x, boxes, (7, 7), scales, 2))

    # f32 path: tight correctness check.
    pooler_f32 = Pooler((7, 7), scales, 2, compute_dtype=jnp.float32)
    res_f32, ngl = pooler_f32(x, boxes)
    res_f32 = jax.block_until_ready(res_f32)
    assert res_f32.shape == (6, C, 7, 7), res_f32.shape
    assert ngl == []
    err_f32 = float(jnp.max(jnp.abs(res_f32.astype(jnp.float32) - ref)))
    assert np.isfinite(err_f32) and err_f32 < 1e-4, f"f32 max_err={err_f32}"

    # bf16 path (default performance configuration): looser tolerance purely
    # from bf16 operand quantization (accumulation is still f32).
    pooler = Pooler((7, 7), scales, 2)
    res_bf16, ngl2 = pooler(x, boxes)
    res_bf16 = jax.block_until_ready(res_bf16)
    assert res_bf16.shape == (6, C, 7, 7), res_bf16.shape
    assert ngl2 == []
    err_bf16 = float(jnp.max(jnp.abs(res_bf16.astype(jnp.float32) - ref)))
    assert np.isfinite(err_bf16) and err_bf16 < 8e-2, f"bf16 max_err={err_bf16}"

    print("KERNEL_OK")
</pallas_src>

<mosaic_0001>
module attributes {stable_mosaic.version = 11 : i64} {
  func.func @_pooler_level_kernel(%arg0: i32, %arg1: i32, %arg2: memref<2xi32, #tpu.memory_space<smem>>, %arg3: memref<1x1x784x8xf32, #tpu.memory_space<vmem>>, %arg4: memref<1x784x128xf32, #tpu.memory_space<vmem>>, %arg5: memref<1x8x128x128xf32, #tpu.memory_space<vmem>>, %arg6: memref<1x784x128xf32, #tpu.memory_space<vmem>>) attributes {dimension_semantics = [#tpu.dimension_semantics<parallel>, #tpu.dimension_semantics<arbitrary>], iteration_bounds = array<i64: 2, 2>, scalar_prefetch = 1 : i64, scratch_operands = 0 : i64, tpu.core_type = #tpu.core_type<tc>, window_params = [{transform_indices = @transform_0, window_bounds = array<i64: 1, 1, 784, 8>}, {transform_indices = @transform_1, window_bounds = array<i64: 1, 784, 128>}, {transform_indices = @transform_2, window_bounds = array<i64: 1, 8, 128, 128>}, {transform_indices = @transform_3, window_bounds = array<i64: 1, 784, 128>}]} {
    %c0_i32 = arith.constant 0 : i32
    %0 = arith.cmpi eq, %arg1, %c0_i32 : i32
    %1 = arith.extui %0 : i1 to i32
    %c0_i32_0 = arith.constant 0 : i32
    %2 = arith.cmpi ne, %1, %c0_i32_0 : i32
    scf.if %2 {
      %cst_17 = arith.constant 0.000000e+00 : f32
      %42 = vector.broadcast %cst_17 : f32 to vector<1x784x128xf32>
      %c0_18 = arith.constant 0 : index
      %c0_19 = arith.constant 0 : index
      %c0_20 = arith.constant 0 : index
      %43 = vector.load %arg6[%c0_18, %c0_19, %c0_20] : memref<1x784x128xf32, #tpu.memory_space<vmem>>, vector<1x784x128xf32>
      tpu.vector_store %arg6[%c0_18, %c0_19, %c0_20], %42 {strides = array<i32>} : memref<1x784x128xf32, #tpu.memory_space<vmem>>, vector<1x784x128xf32>,
    } else {
    }
    %c0 = arith.constant 0 : index
    %c0_1 = arith.constant 0 : index
    %c0_2 = arith.constant 0 : index
    %c0_3 = arith.constant 0 : index
    %3 = vector.load %arg3[%c0, %c0_1, %c0_2, %c0_3] : memref<1x1x784x8xf32, #tpu.memory_space<vmem>>, vector<1x1x784x8xf32>
    %4 = vector.shape_cast %3 : vector<1x1x784x8xf32> to vector<784x8xf32>
    %c0_4 = arith.constant 0 : index
    %c0_5 = arith.constant 0 : index
    %c0_6 = arith.constant 0 : index
    %5 = vector.load %arg4[%c0_4, %c0_5, %c0_6] : memref<1x784x128xf32, #tpu.memory_space<vmem>>, vector<1x784x128xf32>
    %6 = vector.shape_cast %5 : vector<1x784x128xf32> to vector<784x128xf32>
    %c0_7 = arith.constant 0 : index
    %c0_8 = arith.constant 0 : index
    %c0_9 = arith.constant 0 : index
    %c0_10 = arith.constant 0 : index
    %7 = vector.load %arg5[%c0_7, %c0_8, %c0_9, %c0_10] : memref<1x8x128x128xf32, #tpu.memory_space<vmem>>, vector<1x8x128x128xf32>
    %8 = vector.shape_cast %7 : vector<1x8x128x128xf32> to vector<8x128x128xf32>
    %9 = vector.extract_strided_slice %4 {offsets = [0, 0], sizes = [784, 1], strides = [1, 1]} : vector<784x8xf32> to vector<784x1xf32>
    %10 = vector.broadcast %9 : vector<784x1xf32> to vector<784x128xf32>
    %11 = arith.mulf %10, %6 : vector<784x128xf32>
    %12 = vector.extract_strided_slice %4 {offsets = [0, 1], sizes = [784, 1], strides = [1, 1]} : vector<784x8xf32> to vector<784x1xf32>
    %13 = vector.broadcast %12 : vector<784x1xf32> to vector<784x128xf32>
    %14 = arith.mulf %13, %6 : vector<784x128xf32>
    %15 = vector.extract_strided_slice %4 {offsets = [0, 2], sizes = [784, 1], strides = [1, 1]} : vector<784x8xf32> to vector<784x1xf32>
    %16 = vector.broadcast %15 : vector<784x1xf32> to vector<784x128xf32>
    %17 = arith.mulf %16, %6 : vector<784x128xf32>
    %18 = vector.extract_strided_slice %4 {offsets = [0, 3], sizes = [784, 1], strides = [1, 1]} : vector<784x8xf32> to vector<784x1xf32>
    %19 = vector.broadcast %18 : vector<784x1xf32> to vector<784x128xf32>
    %20 = arith.mulf %19, %6 : vector<784x128xf32>
    %21 = vector.extract_strided_slice %4 {offsets = [0, 4], sizes = [784, 1], strides = [1, 1]} : vector<784x8xf32> to vector<784x1xf32>
    %22 = vector.broadcast %21 : vector<784x1xf32> to vector<784x128xf32>
    %23 = arith.mulf %22, %6 : vector<784x128xf32>
    %24 = vector.extract_strided_slice %4 {offsets = [0, 5], sizes = [784, 1], strides = [1, 1]} : vector<784x8xf32> to vector<784x1xf32>
    %25 = vector.broadcast %24 : vector<784x1xf32> to vector<784x128xf32>
    %26 = arith.mulf %25, %6 : vector<784x128xf32>
    %27 = vector.extract_strided_slice %4 {offsets = [0, 6], sizes = [784, 1], strides = [1, 1]} : vector<784x8xf32> to vector<784x1xf32>
    %28 = vector.broadcast %27 : vector<784x1xf32> to vector<784x128xf32>
    %29 = arith.mulf %28, %6 : vector<784x128xf32>
    %30 = vector.extract_strided_slice %4 {offsets = [0, 7], sizes = [784, 1], strides = [1, 1]} : vector<784x8xf32> to vector<784x1xf32>
    %31 = vector.broadcast %30 : vector<784x1xf32> to vector<784x128xf32>
    %32 = arith.mulf %31, %6 : vector<784x128xf32>
    %33 = tpu.concatenate %11, %14, %17, %20, %23, %26, %29, %32 in 1 : vector<784x128xf32>, vector<784x128xf32>, vector<784x128xf32>, vector<784x128xf32>, vector<784x128xf32>, vector<784x128xf32>, vector<784x128xf32>, vector<784x128xf32> -> vector<784x1024xf32>
    %34 = vector.shape_cast %8 : vector<8x128x128xf32> to vector<1024x128xf32>
    %c0_11 = arith.constant 0 : index
    %c0_12 = arith.constant 0 : index
    %c0_13 = arith.constant 0 : index
    %35 = vector.load %arg6[%c0_11, %c0_12, %c0_13] : memref<1x784x128xf32, #tpu.memory_space<vmem>>, vector<1x784x128xf32>
    %36 = vector.shape_cast %35 : vector<1x784x128xf32> to vector<784x128xf32>
    %cst = arith.constant dense<0.000000e+00> : vector<784x128xf32>
    %37 = tpu.matmul %33, %34, %cst {dimension_numbers = #tpu.dot_dimension_numbers<[1], [0], [0], [1], [0, 0, 1, 1], [], []>} : vector<784x1024xf32>, vector<1024x128xf32>, vector<784x128xf32> -> vector<784x128xf32>
    %38 = arith.addf %36, %37 : vector<784x128xf32>
    %c0_14 = arith.constant 0 : index
    %c0_15 = arith.constant 0 : index
    %c0_16 = arith.constant 0 : index
    %39 = vector.load %arg6[%c0_14, %c0_15, %c0_16] : memref<1x784x128xf32, #tpu.memory_space<vmem>>, vector<1x784x128xf32>
    %40 = vector.shape_cast %39 : vector<1x784x128xf32> to vector<784x128xf32>
    %41 = vector.shape_cast %38 : vector<784x128xf32> to vector<1x784x128xf32>
    tpu.vector_store %arg6[%c0_14, %c0_15, %c0_16], %41 {strides = array<i32>} : memref<1x784x128xf32, #tpu.memory_space<vmem>>, vector<1x784x128xf32>,
    return
  }
  func.func @transform_0(%arg0: i32, %arg1: i32, %arg2: memref<2xi32, #tpu.memory_space<smem>>) -> (i32, i32, i32, i32) {
    %c0_i32 = arith.constant 0 : i32
    %c0_i32_0 = arith.constant 0 : i32
    %c0_i32_1 = arith.constant 0 : i32
    return %arg0, %arg1, %c0_i32, %c0_i32_0 : i32, i32, i32, i32
  }
  func.func @transform_1(%arg0: i32, %arg1: i32, %arg2: memref<2xi32, #tpu.memory_space<smem>>) -> (i32, i32, i32) {
    %c0_i32 = arith.constant 0 : i32
    %c0_i32_0 = arith.constant 0 : i32
    %c0_i32_1 = arith.constant 0 : i32
    return %arg0, %c0_i32, %c0_i32_0 : i32, i32, i32
  }
  func.func @transform_2(%arg0: i32, %arg1: i32, %arg2: memref<2xi32, #tpu.memory_space<smem>>) -> (i32, i32, i32, i32) {
    %0 = arith.index_cast %arg0 : i32 to index
    %1 = memref.load %arg2[%0] : memref<2xi32, #tpu.memory_space<smem>>
    %c0_i32 = arith.constant 0 : i32
    %c0_i32_0 = arith.constant 0 : i32
    %c0_i32_1 = arith.constant 0 : i32
    return %1, %arg1, %c0_i32, %c0_i32_0 : i32, i32, i32, i32
  }
  func.func @transform_3(%arg0: i32, %arg1: i32, %arg2: memref<2xi32, #tpu.memory_space<smem>>) -> (i32, i32, i32) {
    %c0_i32 = arith.constant 0 : i32
    %c0_i32_0 = arith.constant 0 : i32
    %c0_i32_1 = arith.constant 0 : i32
    return %arg0, %c0_i32, %c0_i32_0 : i32, i32, i32
  }
}

</mosaic_0001>

<bundles_post_ra>
// kernel: tpu_custom_call.1
= control target key start
LH: loop header
LB: loop body
LE: loop exit
PB: predicated region body
PF: predicated region fallthrough
CT: control target
= control target key end

     0   :  { %s14159_s0 = inlined_call_operand.hbm [shape: s32[2], index: 0, kind: input, shape index: {}]   ;;  %s14160_s1 = inlined_call_operand.vmem [shape: f32[2,2,784,8], index: 1, kind: input, shape index: {}]   ;;  %s14161_s2 = inlined_call_operand.vmem [shape: f32[2,784,128], index: 2, kind: input, shape index: {}]   ;;  %s14162_s3 = inlined_call_operand.hbm [shape: f32[2,16,128,128], index: 3, kind: input, shape index: {}]   ;;  %s14163_s4 = inlined_call_operand.hbm [shape: f32[2,784,128], index: 4, kind: output, shape index: {}]  }
   0x1   :  { %s8542_s17 = scalar_lea.hbm %s14159_s0, 16 }
   0x2   :  { %p8543_p0 = scmp.ne.s32.totalorder %s14159_s0, %s8542_s17  ;;  %p8546_p1 = scmp.lt.u32.totalorder %s8542_s17, %s14159_s0 }
   0x4   :  { %p8548_p2 = pnand %p8546_p1, %p8543_p0 }
   0x6   :  { %8551 = shalt.err (!%p8548_p2)  }
   0x7   :  { %s8708_s22 = smov [#allocation3]  }
   0x8   :  { %10 = dma.hbm_to_smem %s14159_s0, 16, %s8708_s22, [#allocation2] }
   0x9   :  { %8654 = dma.done.wait [#allocation2], 16 }
   0xa   :  { %8655 = vsyncadd [#allocation2], 4294967280 }
   0xb   :  { %12 = sfence }
   0xc   :  { %13 = vsyncpa [#allocation5], 0 }
   0xd   :  { %15 = vsyncpa [#allocation5 + $0x1], 0 }
   0xe   :  { %16 = vsyncpa [#allocation6], 0 }
   0xf   :  { %18 = vsyncpa [#allocation6 + $0x1], 0  ;;  %s8762_s25 = smov 0   ;;  %s8764_s26 = smov 0  }
  0x10   :  { %s8766_s27 = smov 0   ;;  %s8768_s28 = smov 0  }
  0x11   :  { %s8770_s29 = smov 0   ;;  %s8772_s30 = smov 0  }
  0x12   :  { %s8774_s0 = smov 0   ;;  %s8776_s5 = smov 0  }
  0x13   :  { %s8778_s6 = smov 0   ;;  %s8780_s7 = smov 0  }
  0x14   :  { %s8782_s8 = smov 0  }
  0x15 LB: > { %14242 = sst [smem:[#allocation13_spill]] %s8686_s30  ;;  %s7362_s9 = sadd.s32 4294967295, %s8706_s8   ;;  %s8706_s8 = sphi %s8782_s8, %s24_s8   ;;  %s8702_s7 = sphi %s8780_s7, %s15401_s7   ;;  %s8698_s6 = sphi %s8778_s6, %s15400_s6   ;;  %s8694_s5 = sphi %s8776_s5, %s15391_s5   ;;  %s8690_s0 = sphi %s8774_s0, %s15399_s0   ;;  %s8686_s30 = sphi %s8772_s30, %s15390_s30   ;;  %s8682_s29 = sphi %s8770_s29, %s15398_s29   ;;  %s8678_s28 = sphi %s8768_s28, %s15397_s28   ;;  %s8674_s27 = sphi %s8766_s27, %s15396_s27   ;;  %s8670_s26 = sphi %s8764_s26, %s15395_s26   ;;  %s8666_s25 = sphi %s8762_s25, %s15394_s25  }
  0x16   : > { %14243 = sst [smem:[#allocation14_spill]] %s8702_s7  ;;  %s33_s10 = sadd.s32 1, %s8698_s6 }
  0x17   : > { %p34_p3 = scmp.ge.s32.totalorder %s33_s10, 2  ;;  %s36_s11 = sadd.s32 1, %s8702_s7 }
  0x18   : > { %s7363_s12 = sadd.s32 4294967294, %s8706_s8   ;;  %s94_s13 = sld [smem:[#allocation3 + %s8702_s7]] }
  0x19   : > { %s15403_s10 = smov (%p34_p3, %s33_s10), 0  ;;  %s15405_s11 = smov (!%p34_p3, %s36_s11), %s8702_s7 }
  0x1a   : > { %14244 = sst [smem:[#allocation15_spill]] %s15403_s10  ;;  %s97_s14 = ssub.s32 %s8698_s6, %s15403_s10 }
  0x1b   : > { %p108_p4 = scmp.ne.s32.totalorder %s8686_s30, %s8682_s29  ;;  %p38_p5 = scmp.ge.s32.totalorder %s15405_s11, 2 }
  0x1c   : > { %p114_p6 = scmp.ne.s32.totalorder %s8682_s29, %s8678_s28  ;;  %p109_p7 = scmp.eq.s32.totalorder %s8706_s8, 0 }
  0x1d   : > { %p115_p8 = scmp.eq.s32.totalorder %s7362_s9, 0  ;;  %s15407_s11 = smov (%p38_p5, %s15405_s11), 0 }
  0x1e   : > { %14245 = sst [smem:[#allocation16_spill]] %s15407_s11  ;;  %s127_s16 = sadd.s32 1, %s8674_s27 }
  0x1f   : > { %p8831_p9 = por %p115_p8, %p114_p6  ;;  %s95_s17 = sld [smem:[#allocation3 + %s15407_s11]] }
  0x20   : > { %s124_s18 = ssub.s32 %s8702_s7, %s15407_s11  ;;  %p137_p11 = scmp.ne.s32.totalorder %s8674_s27, %s8670_s26 }
  0x21   : > { %s14246_s15 = scalar_select %p8831_p9, 1, 0 }
  0x22   : > { %p125_p10 = scmp.eq.s32.totalorder %s124_s18, 0  ;;  %p138_p12 = scmp.eq.s32.totalorder %s7362_s9, 3 }
  0x23   : > { %p143_p13 = scmp.ne.s32.totalorder %s8670_s26, %s8666_s25  ;;  %p144_p1 = scmp.eq.s32.totalorder %s7363_s12, 3 }
  0x24   : > { %s8844_s19 = scalar_select %p125_p10, %s8674_s27, %s127_s16  }
  0x25   : > { %p8846_p0 = por %p138_p12, %p137_p11  ;;  %s101_s21 = sadd.s32 1, %s8686_s30 }
  0x26   : > { %14247 = sst [smem:[#allocation17_spill]] %s8844_s19  ;;  %s96_s22 = ssub.s32 %s94_s13, %s95_s17 }
  0x27   : > { %s14248_s20 = scalar_select %p8846_p0, 1, 0 }
  0x28   : > { %p8851_p2 = por %p144_p1, %p143_p13  ;;  %s98_s24 = sor.u32 %s97_s14, %s96_s22 }
  0x29   : > { %s184_s28 = sand.u32 1, %s8686_s30   ;;  %p99_p3 = scmp.eq.s32.totalorder %s98_s24, 0 }
  0x2a   : > { %s14249_s23 = scalar_select %p8851_p2, 1, 0 }
  0x2b   : > { %p110_p5 = por %p109_p7, %p108_p4  ;;  %p7593_p6 = scmp.lt.s32.totalorder %s8706_s8, 4 }
  0x2c   : > { %s7366_s9 = sshll.u32 %s184_s28, 10  ;;  %p7371_p10 = scmp.ge.s32.totalorder %s8706_s8, 1 }
  0x2d   : > { %s8863_s16 = scalar_select %p99_p3, %s8686_s30, %s101_s21  }
  0x2e   : > { %p8865_p8 = pnand %p7593_p6, %p110_p5  ;;  %s188_s18 = scalar_lea.vmem [#allocation4], %s7366_s9 }
  0x2f   : > { %14250 = sst [smem:[#allocation18_spill]] %s8863_s16  ;;  %s199_s22 = sshll.u32 %s188_s18, 4  ;;  %s8877_s22 = int_to_ptr.vmem [resolvable:$true] %s199_s22 }
  0x30   : > { %s7577_s13 = scalar_select %p110_p5, [#allocation3], [#allocation8] }
  0x31   : > { %s7578_s17 = scalar_select %p110_p5, %s8702_s7, 0 }
  0x32   : > { %s15409_s13 = smov (!%p7593_p6, %s7577_s13), [#allocation9]  ;;  %p207_p11 = scmp.lt.s32.totalorder %s8706_s8, 5 }
  0x33   : > { %s15411_s17 = smov (!%p7593_p6, %s7578_s17), 0  ;;  %s7379_s24 = sshll.u32 %s8698_s6, 7 }
  0x34   : > { %s189_s14 = sld [smem:[%s15409_s13 + %s15411_s17]]  ;;  %p8873_p4 = pnand %p7371_p10, %p207_p11 }
  0x35   : > { %s8884_s9 = scalar_lea.sflag [#allocation5], %s184_s28  ;;  %p8554_p12 = pneg %p8865_p8 }
  0x36   : > { %s8557_s30 = scalar_lea.hbm %s14162_s3, 65536 }
  0x3a   : > { %s7369_s21 = sshll.u32 %s189_s14, 8 }
  0x3b   : > { %s196_s10 = sadd.s32 %s7379_s24, %s7369_s21 }
  0x3c   : > { %s7370_s16 = sshll.u32 %s196_s10, 7 }
  0x3d   : > { %s8882_s19 = scalar_lea.hbm %s14162_s3, %s7370_s16 }
  0x3e   : > { %s8552_s13 = scalar_lea.hbm %s8882_s19, 16384  ;;  %p8558_p3 = scmp.lt.u32.totalorder %s8882_s19, %s14162_s3 }
  0x3f   : > { %p8553_p7 = scmp.ne.s32.totalorder %s8882_s19, %s8552_s13  ;;  %p8559_p5 = scmp.lt.u32.totalorder %s8557_s30, %s8552_s13 }
  0x40   : > { %p8561_p10 = scmp.lt.u32.totalorder %s8552_s13, %s8882_s19 }
  0x41   : > { %p8555_p13 = pnand %p8554_p12, %p8553_p7  ;;  %p8560_p6 = por %p8559_p5, %p8558_p3 }
  0x43   : > { %p8556_p1 = pneg %p8555_p13  ;;  %p8562_p11 = por %p8561_p10, %p8560_p6 }
  0x45   : > { %p8563_p2 = pnand %p8562_p11, %p8556_p1 }
  0x47   : > { %8566 = shalt.err (!%p8563_p2)
}
  0x48   : > { %s8567_s28 = scalar_lea.vmem %s8877_s22, 16384  ;;  %s8709_s14 = smov [#allocation4]  }
  0x49   : > { %p8568_p7 = scmp.ne.s32.totalorder %s8877_s22, %s8567_s28  ;;  %s8572_s18 = sshll.u32 %s8709_s14, 4  ;;  %s8573_s18 = int_to_ptr.vmem [resolvable:$false] %s8572_s18 }
  0x4a   : > { %s8574_s24 = scalar_lea.vmem %s8573_s18, 32768  ;;  %p8575_p9 = scmp.lt.s32.totalorder %s8877_s22, %s8573_s18 }
  0x4b   : > { %p8570_p13 = pnand %p8568_p7, %p8554_p12  ;;  %p8576_p3 = scmp.lt.s32.totalorder %s8574_s24, %s8567_s28 }
  0x4d   : > { %p8571_p0 = pneg %p8570_p13  ;;  %p8577_p5 = por %p8576_p3, %p8575_p9 }
  0x4f   : > { %p8578_p6 = pnand %p8577_p5, %p8571_p0 }
  0x51   : > { %8581 = shalt.err (!%p8578_p6)
}
  0x52   : > { %s8710_s21 = smov 128   ;;  %s8711_s13 = smov 8  }
  0x53   : > { %7588 = dma.hbm_to_vmem [thread:$0]  (!%p8865_p8), %s8882_s19, 16384, %s8877_s22, %s8884_s9, %s8710_s21, %s8710_s21, %s8711_s13  }
  0x54   : > { %211 = sbr.rel (%p8873_p4) target bundleno = 2236 (0x8bc), region = 32 }
  0x5b   : > { %s213_s10 = sand.u32 1, %s8682_s29   ;;  %p14253_p9 = scmp.ne.s32.totalorder %s14246_s15, 0 }
  0x5c   : > { %s7372_s17 = sshll.u32 %s213_s10, 10  ;;  %s214_s30 = scalar_lea.sflag [#allocation5], %s213_s10 }
  0x5d   : > { %s8915_s7 = scalar_lea.vmem [#allocation4], %s7372_s17 }
  0x5e   : > { %8657 = dma.done.wait (%p14253_p9), %s214_s30, 16384  }
  0x5f   : > { %8659 = vsyncadd (%p14253_p9), %s214_s30, 4294950912  ;;  %s251_s11 = sand.u32 1, %s8670_s26   ;;  %p254_p0 = scmp.lt.s32.totalorder %s8694_s5, 1 }
  0x60   : > { %s7572_s19 = smul.u32 784, %s251_s11  ;;  %p256_p2 = scmp.lt.s32.totalorder %s8690_s0, 1 }
  0x61   : > { %s255_s12 = scalar_select %p254_p0, %s8694_s5, 1 }
  0x62   : > { %s257_s22 = scalar_select %p256_p2, %s8690_s0, 1 }
  0x63   : > { %s7574_s9 = smul.u32 196, %s255_s12  ;;  %s8938_s30 = scalar_lea.vmem [#allocation7], %s7572_s19 }
  0x64   : > { %s7573_s16 = smul.u32 98, %s257_s22  ;;  %p7375_p8 = scmp.ne.s32.totalorder %s8690_s0, 0 }
  0x65   : > { %s7575_s28 = smul.u32 784, %s255_s12  ;;  %v8712_v0 = vmov (!%p7375_p8), 0.0  }
  0x66   : > { %s260_s14 = sadd.s32 %s7574_s9, %s7573_s16  ;;  %273 = sbr.rel (%p7375_p8) target bundleno = 151 (0x97), region = 40  ;;  %274 = vst [vmem:[%s8938_s30] sm:$0xff] (!%p7375_p8), %v8712_v0  ;;  %275 = vst [vmem:[%s8938_s30 + $0x8] sm:$0xff] (!%p7375_p8), %v8712_v0 }
  0x67   : > { %s7373_s18 = sshll.u32 %s260_s14, 3  ;;  %s8931_s21 = scalar_lea.vmem %s14161_s2, %s7575_s28  ;;  %276 = vst [vmem:[%s8938_s30 + $0x10] sm:$0xff] (!%p7375_p8), %v8712_v0  ;;  %277 = vst [vmem:[%s8938_s30 + $0x18] sm:$0xff] (!%p7375_p8), %v8712_v0 }
  0x68   : > { %s8936_s17 = scalar_lea.vmem %s14160_s1, %s7373_s18  ;;  %278 = vst [vmem:[%s8938_s30 + $0x20] sm:$0xff] (!%p7375_p8), %v8712_v0  ;;  %279 = vst [vmem:[%s8938_s30 + $0x28] sm:$0xff] (!%p7375_p8), %v8712_v0 }
  0x69   : > { %280 = vst [vmem:[%s8938_s30 + $0x30] sm:$0xff] (!%p7375_p8), %v8712_v0  ;;  %281 = vst [vmem:[%s8938_s30 + $0x38] sm:$0xff] (!%p7375_p8), %v8712_v0 }
  0x6a   : > { %282 = vst [vmem:[%s8938_s30 + $0x40] sm:$0xff] (!%p7375_p8), %v8712_v0  ;;  %283 = vst [vmem:[%s8938_s30 + $0x48] sm:$0xff] (!%p7375_p8), %v8712_v0 }
  0x6b   : > { %284 = vst [vmem:[%s8938_s30 + $0x50] sm:$0xff] (!%p7375_p8), %v8712_v0  ;;  %285 = vst [vmem:[%s8938_s30 + $0x58] sm:$0xff] (!%p7375_p8), %v8712_v0 }
  0x6c   : > { %286 = vst [vmem:[%s8938_s30 + $0x60] sm:$0xff] (!%p7375_p8), %v8712_v0  ;;  %287 = vst [vmem:[%s8938_s30 + $0x68] sm:$0xff] (!%p7375_p8), %v8712_v0 }
  0x6d   : > { %288 = vst [vmem:[%s8938_s30 + $0x70] sm:$0xff] %v8712_v0  ;;  %289 = vst [vmem:[%s8938_s30 + $0x78] sm:$0xff] %v8712_v0 }
  0x6e   : > { %290 = vst [vmem:[%s8938_s30 + $0x80] sm:$0xff] %v8712_v0  ;;  %291 = vst [vmem:[%s8938_s30 + $0x88] sm:$0xff] %v8712_v0 }
  0x6f   : > { %292 = vst [vmem:[%s8938_s30 + $0x90] sm:$0xff] %v8712_v0  ;;  %293 = vst [vmem:[%s8938_s30 + $0x98] sm:$0xff] %v8712_v0 }
  0x70   : > { %294 = vst [vmem:[%s8938_s30 + $0xa0] sm:$0xff] %v8712_v0  ;;  %295 = vst [vmem:[%s8938_s30 + $0xa8] sm:$0xff] %v8712_v0 }
  0x71   : > { %296 = vst [vmem:[%s8938_s30 + $0xb0] sm:$0xff] %v8712_v0  ;;  %297 = vst [vmem:[%s8938_s30 + $0xb8] sm:$0xff] %v8712_v0 }
  0x72   : > { %298 = vst [vmem:[%s8938_s30 + $0xc0] sm:$0xff] %v8712_v0  ;;  %299 = vst [vmem:[%s8938_s30 + $0xc8] sm:$0xff] %v8712_v0 }
  0x73   : > { %300 = vst [vmem:[%s8938_s30 + $0xd0] sm:$0xff] %v8712_v0  ;;  %301 = vst [vmem:[%s8938_s30 + $0xd8] sm:$0xff] %v8712_v0 }
  0x74   : > { %302 = vst [vmem:[%s8938_s30 + $0xe0] sm:$0xff] %v8712_v0  ;;  %303 = vst [vmem:[%s8938_s30 + $0xe8] sm:$0xff] %v8712_v0 }
  0x75   : > { %304 = vst [vmem:[%s8938_s30 + $0xf0] sm:$0xff] %v8712_v0  ;;  %305 = vst [vmem:[%s8938_s30 + $0xf8] sm:$0xff] %v8712_v0 }
  0x76   : > { %306 = vst [vmem:[%s8938_s30 + $0x100] sm:$0xff] %v8712_v0  ;;  %307 = vst [vmem:[%s8938_s30 + $0x108] sm:$0xff] %v8712_v0 }
  0x77   : > { %308 = vst [vmem:[%s8938_s30 + $0x110] sm:$0xff] %v8712_v0  ;;  %309 = vst [vmem:[%s8938_s30 + $0x118] sm:$0xff] %v8712_v0 }
  0x78   : > { %310 = vst [vmem:[%s8938_s30 + $0x120] sm:$0xff] %v8712_v0  ;;  %311 = vst [vmem:[%s8938_s30 + $0x128] sm:$0xff] %v8712_v0 }
  0x79   : > { %312 = vst [vmem:[%s8938_s30 + $0x130] sm:$0xff] %v8712_v0  ;;  %313 = vst [vmem:[%s8938_s30 + $0x138] sm:$0xff] %v8712_v0 }
  0x7a   : > { %314 = vst [vmem:[%s8938_s30 + $0x140] sm:$0xff] %v8712_v0  ;;  %315 = vst [vmem:[%s8938_s30 + $0x148] sm:$0xff] %v8712_v0 }
  0x7b   : > { %316 = vst [vmem:[%s8938_s30 + $0x150] sm:$0xff] %v8712_v0  ;;  %317 = vst [vmem:[%s8938_s30 + $0x158] sm:$0xff] %v8712_v0 }
  0x7c   : > { %318 = vst [vmem:[%s8938_s30 + $0x160] sm:$0xff] %v8712_v0  ;;  %319 = vst [vmem:[%s8938_s30 + $0x168] sm:$0xff] %v8712_v0 }
  0x7d   : > { %320 = vst [vmem:[%s8938_s30 + $0x170] sm:$0xff] %v8712_v0  ;;  %321 = vst [vmem:[%s8938_s30 + $0x178] sm:$0xff] %v8712_v0 }
  0x7e   : > { %322 = vst [vmem:[%s8938_s30 + $0x180] sm:$0xff] %v8712_v0  ;;  %323 = vst [vmem:[%s8938_s30 + $0x188] sm:$0xff] %v8712_v0 }
  0x7f   : > { %324 = vst [vmem:[%s8938_s30 + $0x190] sm:$0xff] %v8712_v0  ;;  %325 = vst [vmem:[%s8938_s30 + $0x198] sm:$0xff] %v8712_v0 }
  0x80   : > { %326 = vst [vmem:[%s8938_s30 + $0x1a0] sm:$0xff] %v8712_v0  ;;  %327 = vst [vmem:[%s8938_s30 + $0x1a8] sm:$0xff] %v8712_v0 }
  0x81   : > { %328 = vst [vmem:[%s8938_s30 + $0x1b0] sm:$0xff] %v8712_v0  ;;  %329 = vst [vmem:[%s8938_s30 + $0x1b8] sm:$0xff] %v8712_v0 }
  0x82   : > { %330 = vst [vmem:[%s8938_s30 + $0x1c0] sm:$0xff] %v8712_v0  ;;  %331 = vst [vmem:[%s8938_s30 + $0x1c8] sm:$0xff] %v8712_v0 }
  0x83   : > { %332 = vst [vmem:[%s8938_s30 + $0x1d0] sm:$0xff] %v8712_v0  ;;  %333 = vst [vmem:[%s8938_s30 + $0x1d8] sm:$0xff] %v8712_v0 }
  0x84   : > { %334 = vst [vmem:[%s8938_s30 + $0x1e0] sm:$0xff] %v8712_v0  ;;  %335 = vst [vmem:[%s8938_s30 + $0x1e8] sm:$0xff] %v8712_v0 }
  0x85   : > { %336 = vst [vmem:[%s8938_s30 + $0x1f0] sm:$0xff] %v8712_v0  ;;  %337 = vst [vmem:[%s8938_s30 + $0x1f8] sm:$0xff] %v8712_v0 }
  0x86   : > { %338 = vst [vmem:[%s8938_s30 + $0x200] sm:$0xff] %v8712_v0  ;;  %339 = vst [vmem:[%s8938_s30 + $0x208] sm:$0xff] %v8712_v0 }
  0x87   : > { %340 = vst [vmem:[%s8938_s30 + $0x210] sm:$0xff] %v8712_v0  ;;  %341 = vst [vmem:[%s8938_s30 + $0x218] sm:$0xff] %v8712_v0 }
  0x88   : > { %342 = vst [vmem:[%s8938_s30 + $0x220] sm:$0xff] %v8712_v0  ;;  %343 = vst [vmem:[%s8938_s30 + $0x228] sm:$0xff] %v8712_v0 }
  0x89   : > { %344 = vst [vmem:[%s8938_s30 + $0x230] sm:$0xff] %v8712_v0  ;;  %345 = vst [vmem:[%s8938_s30 + $0x238] sm:$0xff] %v8712_v0 }
  0x8a   : > { %346 = vst [vmem:[%s8938_s30 + $0x240] sm:$0xff] %v8712_v0  ;;  %347 = vst [vmem:[%s8938_s30 + $0x248] sm:$0xff] %v8712_v0 }
  0x8b   : > { %348 = vst [vmem:[%s8938_s30 + $0x250] sm:$0xff] %v8712_v0  ;;  %349 = vst [vmem:[%s8938_s30 + $0x258] sm:$0xff] %v8712_v0 }
  0x8c   : > { %350 = vst [vmem:[%s8938_s30 + $0x260] sm:$0xff] %v8712_v0  ;;  %351 = vst [vmem:[%s8938_s30 + $0x268] sm:$0xff] %v8712_v0 }
  0x8d   : > { %352 = vst [vmem:[%s8938_s30 + $0x270] sm:$0xff] %v8712_v0  ;;  %353 = vst [vmem:[%s8938_s30 + $0x278] sm:$0xff] %v8712_v0 }
  0x8e   : > { %354 = vst [vmem:[%s8938_s30 + $0x280] sm:$0xff] %v8712_v0  ;;  %355 = vst [vmem:[%s8938_s30 + $0x288] sm:$0xff] %v8712_v0 }
  0x8f   : > { %356 = vst [vmem:[%s8938_s30 + $0x290] sm:$0xff] %v8712_v0  ;;  %357 = vst [vmem:[%s8938_s30 + $0x298] sm:$0xff] %v8712_v0 }
  0x90   : > { %358 = vst [vmem:[%s8938_s30 + $0x2a0] sm:$0xff] %v8712_v0  ;;  %359 = vst [vmem:[%s8938_s30 + $0x2a8] sm:$0xff] %v8712_v0 }
  0x91   : > { %360 = vst [vmem:[%s8938_s30 + $0x2b0] sm:$0xff] %v8712_v0  ;;  %361 = vst [vmem:[%s8938_s30 + $0x2b8] sm:$0xff] %v8712_v0 }
  0x92   : > { %362 = vst [vmem:[%s8938_s30 + $0x2c0] sm:$0xff] %v8712_v0  ;;  %363 = vst [vmem:[%s8938_s30 + $0x2c8] sm:$0xff] %v8712_v0 }
  0x93   : > { %364 = vst [vmem:[%s8938_s30 + $0x2d0] sm:$0xff] %v8712_v0  ;;  %365 = vst [vmem:[%s8938_s30 + $0x2d8] sm:$0xff] %v8712_v0 }
  0x94   : > { %366 = vst [vmem:[%s8938_s30 + $0x2e0] sm:$0xff] %v8712_v0  ;;  %367 = vst [vmem:[%s8938_s30 + $0x2e8] sm:$0xff] %v8712_v0 }
  0x95   : > { %368 = vst [vmem:[%s8938_s30 + $0x2f0] sm:$0xff] %v8712_v0  ;;  %369 = vst [vmem:[%s8938_s30 + $0x2f8] sm:$0xff] %v8712_v0 }
  0x96   : > { %370 = vst [vmem:[%s8938_s30 + $0x300] sm:$0xff] %v8712_v0  ;;  %371 = vst [vmem:[%s8938_s30 + $0x308] sm:$0xff] %v8712_v0 }
  0x97 PF: > { %v9138_v1 = vld [vmem:[%s8936_s17 + $0x10] sm:$0xff]  ;;  %v9141_v2 = vld [vmem:[%s8936_s17] sm:$0xff]  ;;  %v8713_v3 = vmov 0   ;;  %v9146_v4 = vld [vmem:[%s8936_s17 + $0x18] sm:$0xff]  ;;  %s7576_s0 = smul.u32 12544, %s8694_s5  ;;  %s14098_s5 = scalar_lea.sflag [#allocation6], %s251_s11 }
  0x98   : > { %7699 = vset.pattern.permute.xlu1 %v8713_v3  ;;  %7698 = vset.pattern.permute.xlu0 %v8713_v3  ;;  %v9149_v5 = vld [vmem:[%s8936_s17 + $0x8] sm:$0xff]  ;;  %v9157_v7 = vld [vmem:[%s8936_s17 + $0x20] sm:$0xff]  ;;  %v9162_v8 = vld [vmem:[%s8936_s17 + $0x38] sm:$0xff]  ;;  %p15386_p12 = scmp.ne.s32.totalorder %s14248_s20, 0  ;;  %s8722_s16 = smov [#allocation7]  }
  0x99   : > { %708 = vperm.xlu1 %7699, %v9138_v1   ;;  %698 = vperm.xlu0 %7698, %v9141_v2   ;;  %v9154_v6 = vld [vmem:[%s8936_s17 + $0x28] sm:$0xff]  ;;  %v9165_v9 = vld [vmem:[%s8936_s17 + $0x30] sm:$0xff]  ;;  %v9173_v11 = vld [vmem:[%s8936_s17 + $0x40] sm:$0xff]  ;;  %s14091_s22 = scalar_lea.hbm %s14163_s4, %s7576_s0  ;;  %s8586_s28 = sshll.u32 %s8722_s16, 4  ;;  %s8587_s28 = int_to_ptr.vmem [resolvable:$false] %s8586_s28 }
  0x9a   : > { %v9170_v10 = vld [vmem:[%s8936_s17 + $0x48] sm:$0xff]  ;;  %v9178_v12 = vld [vmem:[%s8936_s17 + $0x58] sm:$0xff]  ;;  %v9181_v13 = vld [vmem:[%s8936_s17 + $0x50] sm:$0xff]  ;;  %s8588_s14 = scalar_lea.vmem %s8587_s28, 25088 }
  0x9b   : > { %v9186_v14 = vld [vmem:[%s8936_s17 + $0x68] sm:$0xff]  ;;  %v9189_v15 = vld [vmem:[%s8936_s17 + $0x60] sm:$0xff]  ;;  %v9194_v16 = vld [vmem:[%s8936_s17 + $0x78] sm:$0xff] }
  0x9c   : > { %v9197_v17 = vld [vmem:[%s8936_s17 + $0x70] sm:$0xff]  ;;  %v9202_v18 = vld [vmem:[%s8936_s17 + $0x88] sm:$0xff]  ;;  %v9205_v19 = vld [vmem:[%s8936_s17 + $0x80] sm:$0xff] }
  0x9d   : > { %713 = vperm.xlu1 %7699, %v9146_v4   ;;  %703 = vperm.xlu0 %7698, %v9149_v5   ;;  %v9210_v20 = vld [vmem:[%s8936_s17 + $0x98] sm:$0xff]  ;;  %v9213_v21 = vld [vmem:[%s8936_s17 + $0x90] sm:$0xff]  ;;  %v9218_v22 = vld [vmem:[%s8936_s17 + $0xa8] sm:$0xff] }
  0x9e   : > { %v9221_v23 = vld [vmem:[%s8936_s17 + $0xa0] sm:$0xff]  ;;  %v9226_v24 = vld [vmem:[%s8936_s17 + $0xb8] sm:$0xff]  ;;  %v9229_v25 = vld [vmem:[%s8936_s17 + $0xb0] sm:$0xff] }
  0x9f   : > { %v9234_v26 = vld [vmem:[%s8936_s17 + $0xc8] sm:$0xff]  ;;  %v9237_v27 = vld [vmem:[%s8936_s17 + $0xc0] sm:$0xff]  ;;  %v9242_v28 = vld [vmem:[%s8936_s17 + $0xd8] sm:$0xff] }
  0xa0   : > { %v9245_v29 = vld [vmem:[%s8936_s17 + $0xd0] sm:$0xff]  ;;  %v9250_v30 = vld [vmem:[%s8936_s17 + $0xe8] sm:$0xff]  ;;  %v9253_v31 = vld [vmem:[%s8936_s17 + $0xe0] sm:$0xff] }
  0xa1   : > { %723 = vperm.xlu1 %7699, %v9154_v6   ;;  %718 = vperm.xlu0 %7698, %v9157_v7   ;;  %v9258_v32 = vld [vmem:[%s8936_s17 + $0xf8] sm:$0xff]  ;;  %v9261_v33 = vld [vmem:[%s8936_s17 + $0xf0] sm:$0xff]  ;;  %v9266_v34 = vld [vmem:[%s8936_s17 + $0x108] sm:$0xff] }
  0xa2   : > { %v9269_v35 = vld [vmem:[%s8936_s17 + $0x100] sm:$0xff]  ;;  %v9274_v36 = vld [vmem:[%s8936_s17 + $0x118] sm:$0xff]  ;;  %v9277_v37 = vld [vmem:[%s8936_s17 + $0x110] sm:$0xff] }
  0xa3   : > { %v9282_v38 = vld [vmem:[%s8936_s17 + $0x128] sm:$0xff]  ;;  %v9285_v39 = vld [vmem:[%s8936_s17 + $0x120] sm:$0xff]  ;;  %v9290_v40 = vld [vmem:[%s8936_s17 + $0x138] sm:$0xff] }
  0xa4   : > { %v9293_v41 = vld [vmem:[%s8936_s17 + $0x130] sm:$0xff]  ;;  %v9298_v42 = vld [vmem:[%s8936_s17 + $0x148] sm:$0xff]  ;;  %v9301_v43 = vld [vmem:[%s8936_s17 + $0x140] sm:$0xff] }
  0xa5   : > { %733 = vperm.xlu1 %7699, %v9162_v8   ;;  %728 = vperm.xlu0 %7698, %v9165_v9   ;;  %v9306_v44 = vld [vmem:[%s8936_s17 + $0x158] sm:$0xff]  ;;  %v9309_v45 = vld [vmem:[%s8936_s17 + $0x150] sm:$0xff]  ;;  %v9314_v46 = vld [vmem:[%s8936_s17 + $0x168] sm:$0xff] }
  0xa6   : > { %v9317_v47 = vld [vmem:[%s8936_s17 + $0x160] sm:$0xff]  ;;  %v9322_v48 = vld [vmem:[%s8936_s17 + $0x178] sm:$0xff]  ;;  %v9325_v49 = vld [vmem:[%s8936_s17 + $0x170] sm:$0xff] }
  0xa7   : > { %v9330_v50 = vld [vmem:[%s8936_s17 + $0x188] sm:$0xff]  ;;  %v9333_v51 = vld [vmem:[%s8936_s17 + $0x180] sm:$0xff]  ;;  %v9338_v52 = vld [vmem:[%s8936_s17 + $0x198] sm:$0xff] }
  0xa8   : > { %14254 = vst [vmem:[#allocation19_spill] sm:$0xff] %v9338_v52  ;;  %v9341_v53 = vld [vmem:[%s8936_s17 + $0x190] sm:$0xff]  ;;  %v9346_v54 = vld [vmem:[%s8936_s17 + $0x1a8] sm:$0xff]  ;;  %v9349_v55 = vld [vmem:[%s8936_s17 + $0x1a0] sm:$0xff] }
  0xa9   : > { %743 = vperm.xlu1 %7699, %v9170_v10   ;;  %738 = vperm.xlu0 %7698, %v9173_v11   ;;  %14255 = vst [vmem:[#allocation20_spill] sm:$0xff] %v9346_v54  ;;  %14256 = vst [vmem:[#allocation21_spill] sm:$0xff] %v9349_v55  ;;  %v9354_v56 = vld [vmem:[%s8936_s17 + $0x1b8] sm:$0xff]  ;;  %v9357_v57 = vld [vmem:[%s8936_s17 + $0x1b0] sm:$0xff] }
  0xaa   : > { %14257 = vst [vmem:[#allocation22_spill] sm:$0xff] %v9354_v56  ;;  %14258 = vst [vmem:[#allocation23_spill] sm:$0xff] %v9357_v57  ;;  %v9362_v58 = vld [vmem:[%s8936_s17 + $0x1c8] sm:$0xff]  ;;  %v9365_v59 = vld [vmem:[%s8936_s17 + $0x1c0] sm:$0xff] }
  0xab   : > { %14259 = vst [vmem:[#allocation24_spill] sm:$0xff] %v9362_v58  ;;  %14260 = vst [vmem:[#allocation25_spill] sm:$0xff] %v9365_v59  ;;  %v9370_v60 = vld [vmem:[%s8936_s17 + $0x1d8] sm:$0xff]  ;;  %v9373_v61 = vld [vmem:[%s8936_s17 + $0x1d0] sm:$0xff] }
  0xac   : > { %14261 = vst [vmem:[#allocation26_spill] sm:$0xff] %v9370_v60  ;;  %14262 = vst [vmem:[#allocation27_spill] sm:$0xff] %v9373_v61  ;;  %v9378_v62 = vld [vmem:[%s8936_s17 + $0x1e8] sm:$0xff]  ;;  %v9381_v63 = vld [vmem:[%s8936_s17 + $0x1e0] sm:$0xff] }
  0xad   : > { %753 = vperm.xlu1 %7699, %v9178_v12   ;;  %748 = vperm.xlu0 %7698, %v9181_v13   ;;  %14263 = vst [vmem:[#allocation28_spill] sm:$0xff] %v9378_v62  ;;  %14264 = vst [vmem:[#allocation29_spill] sm:$0xff] %v9381_v63  ;;  %v9386_v0 = vld [vmem:[%s8936_s17 + $0x1f8] sm:$0xff]  ;;  %v9389_v3 = vld [vmem:[%s8936_s17 + $0x1f0] sm:$0xff] }
  0xae   : > { %14265 = vst [vmem:[#allocation30_spill] sm:$0xff] %v9386_v0  ;;  %14266 = vst [vmem:[#allocation31_spill] sm:$0xff] %v9389_v3 }
  0xb1   : > { %763 = vperm.xlu1 %7699, %v9186_v14   ;;  %758 = vperm.xlu0 %7698, %v9189_v15  }
  0xb5   : > { %773 = vperm.xlu1 %7699, %v9194_v16   ;;  %768 = vperm.xlu0 %7698, %v9197_v17  }
  0xb9   : > { %783 = vperm.xlu1 %7699, %v9202_v18   ;;  %778 = vperm.xlu0 %7698, %v9205_v19  }
  0xbd   : > { %793 = vperm.xlu1 %7699, %v9210_v20   ;;  %788 = vperm.xlu0 %7698, %v9213_v21  }
  0xc1   : > { %803 = vperm.xlu1 %7699, %v9218_v22   ;;  %798 = vperm.xlu0 %7698, %v9221_v23  }
  0xc5   : > { %813 = vperm.xlu1 %7699, %v9226_v24   ;;  %808 = vperm.xlu0 %7698, %v9229_v25  }
  0xc9   : > { %823 = vperm.xlu1 %7699, %v9234_v26   ;;  %818 = vperm.xlu0 %7698, %v9237_v27  }
  0xcd   : > { %833 = vperm.xlu1 %7699, %v9242_v28   ;;  %828 = vperm.xlu0 %7698, %v9245_v29  }
  0xd1   : > { %843 = vperm.xlu1 %7699, %v9250_v30   ;;  %838 = vperm.xlu0 %7698, %v9253_v31  }
  0xd5   : > { %853 = vperm.xlu1 %7699, %v9258_v32   ;;  %848 = vperm.xlu0 %7698, %v9261_v33  }
  0xd9   : > { %863 = vperm.xlu1 %7699, %v9266_v34   ;;  %858 = vperm.xlu0 %7698, %v9269_v35  }
  0xdd   : > { %873 = vperm.xlu1 %7699, %v9274_v36   ;;  %868 = vperm.xlu0 %7698, %v9277_v37  }
  0xe1   : > { %883 = vperm.xlu1 %7699, %v9282_v38   ;;  %878 = vperm.xlu0 %7698, %v9285_v39  }
  0xe5   : > { %893 = vperm.xlu1 %7699, %v9290_v40   ;;  %888 = vperm.xlu0 %7698, %v9293_v41  }
  0xe9   : > { %903 = vperm.xlu1 %7699, %v9298_v42   ;;  %898 = vperm.xlu0 %7698, %v9301_v43  }
  0xed   : > { %913 = vperm.xlu1 %7699, %v9306_v44   ;;  %908 = vperm.xlu0 %7698, %v9309_v45  }
  0xf1   : > { %923 = vperm.xlu1 %7699, %v9314_v46   ;;  %918 = vperm.xlu0 %7698, %v9317_v47  }
  0xf5   : > { %933 = vperm.xlu1 %7699, %v9322_v48   ;;  %928 = vperm.xlu0 %7698, %v9325_v49  }
  0xf9   : > { %943 = vperm.xlu1 %7699, %v9330_v50   ;;  %938 = vperm.xlu0 %7698, %v9333_v51  }
  0xfd   : > { %953 = vperm.xlu1 %7699, %v9338_v52   ;;  %948 = vperm.xlu0 %7698, %v9341_v53  }
 0x101   : > { %963 = vperm.xlu1 %7699, %v9346_v54   ;;  %958 = vperm.xlu0 %7698, %v9349_v55  }
 0x105   : > { %973 = vperm.xlu1 %7699, %v9354_v56   ;;  %968 = vperm.xlu0 %7698, %v9357_v57  }
 0x109   : > { %983 = vperm.xlu1 %7699, %v9362_v58   ;;  %978 = vperm.xlu0 %7698, %v9365_v59  }
 0x10d   : > { %993 = vperm.xlu1 %7699, %v9370_v60   ;;  %988 = vperm.xlu0 %7698, %v9373_v61   ;;  %v9394_v60 = vld [vmem:[%s8936_s17 + $0x208] sm:$0xff]  ;;  %v9397_v61 = vld [vmem:[%s8936_s17 + $0x200] sm:$0xff] }
 0x10e   : > { %14267 = vst [vmem:[#allocation32_spill] sm:$0xff] %v9394_v60  ;;  %14268 = vst [vmem:[#allocation33_spill] sm:$0xff] %v9397_v61 }
 0x111   : > { %1003 = vperm.xlu1 %7699, %v9378_v62   ;;  %998 = vperm.xlu0 %7698, %v9381_v63   ;;  %v9406_v63 = vld [vmem:[%s8936_s17 + $0x218] sm:$0xff] }
 0x112   : > { %14271 = vst [vmem:[#allocation36_spill] sm:$0xff] %v9406_v63 }
 0x115   : > { %1013 = vperm.xlu1 %7699, %v9386_v0   ;;  %1008 = vperm.xlu0 %7698, %v9389_v3   ;;  %v9409_v0 = vld [vmem:[%s8936_s17 + $0x210] sm:$0xff] }
 0x116   : > { %14272 = vst [vmem:[#allocation37_spill] sm:$0xff] %v9409_v0 }
 0x118   : > { %v9399_v58 = vpop.permute.xlu1 %708  ;;  %v9401_v62 = vpop.permute.xlu0 %698 }
 0x119   : > { %14269 = vst [vmem:[#allocation34_spill] sm:$0xff] %v9399_v58  ;;  %14270 = vst [vmem:[#allocation35_spill] sm:$0xff] %v9401_v62  ;;  %1023 = vperm.xlu1 %7699, %v9394_v60   ;;  %1018 = vperm.xlu0 %7698, %v9397_v61   ;;  %v9418_v58 = vld [vmem:[%s8936_s17 + $0x228] sm:$0xff]  ;;  %v9421_v62 = vld [vmem:[%s8936_s17 + $0x220] sm:$0xff] }
 0x11a   : > { %14275 = vst [vmem:[#allocation40_spill] sm:$0xff] %v9418_v58  ;;  %14276 = vst [vmem:[#allocation41_spill] sm:$0xff] %v9421_v62  ;;  %v568_v60 = vld [vmem:[%s8915_s7] sm:$0xff]  ;;  %v569_v61 = vld [vmem:[%s8915_s7 + $0x8] sm:$0xff] }
 0x11b   : > { %v7381_v54 = vpack.c.bf16 %v569_v61, %v568_v60  ;;  %v571_v60 = vld [vmem:[%s8915_s7 + $0x18] sm:$0xff] }
 0x11c   : > { %v9411_v3 = vpop.permute.xlu1 %713  ;;  %v9413_v59 = vpop.permute.xlu0 %703 }
 0x11d   : > { %14273 = vst [vmem:[#allocation38_spill] sm:$0xff] %v9411_v3  ;;  %14274 = vst [vmem:[#allocation39_spill] sm:$0xff] %v9413_v59  ;;  %1033 = vperm.xlu1 %7699, %v9406_v63   ;;  %1028 = vperm.xlu0 %7698, %v9409_v0   ;;  %v9432_v3 = vld [vmem:[%s8936_s17 + $0x238] sm:$0xff]  ;;  %v9435_v59 = vld [vmem:[%s8936_s17 + $0x230] sm:$0xff]  ;;  %v14215_v63 = vmov 0.0|0.0  }
 0x11e   : > { %14279 = vst [vmem:[#allocation44_spill] sm:$0xff] %v9432_v3  ;;  %14280 = vst [vmem:[#allocation45_spill] sm:$0xff] %v9435_v59  ;;  %7380 = vmatprep.subr.bf16.mxu0 %v14215_v63  ;;  %7428 = vmatprep.subr.bf16.mxu1 %v14215_v63  ;;  %v572_v0 = vld [vmem:[%s8915_s7 + $0x20] sm:$0xff] }
 0x11f   : > { %7382 = vmatpush1.bf16.msra.mxu0 %v7381_v54  ;;  %v9452_v54 = vld [vmem:[%s8936_s17 + $0x240] sm:$0xff] }
 0x120   : > { %v9425_v56 = vpop.permute.xlu1 %723  ;;  %v9427_v57 = vpop.permute.xlu0 %718  ;;  %7383 = vmatprep.subr.bf16.mxu0 %v14215_v63  ;;  %14284 = vst [vmem:[#allocation49_spill] sm:$0xff] %v9452_v54 }
 0x121   : > { %14277 = vst [vmem:[#allocation42_spill] sm:$0xff] %v9425_v56  ;;  %14278 = vst [vmem:[#allocation43_spill] sm:$0xff] %v9427_v57  ;;  %1043 = vperm.xlu1 %7699, %v9418_v58   ;;  %1038 = vperm.xlu0 %7698, %v9421_v62   ;;  %v570_v56 = vld [vmem:[%s8915_s7 + $0x10] sm:$0xff]  ;;  %v9449_v62 = vld [vmem:[%s8936_s17 + $0x248] sm:$0xff] }
 0x122   : > { %v7384_v58 = vpack.c.bf16 %v571_v60, %v570_v56  ;;  %14283 = vst [vmem:[#allocation48_spill] sm:$0xff] %v9449_v62  ;;  %v9464_v60 = vld [vmem:[%s8936_s17 + $0x258] sm:$0xff] }
 0x123   : > { %14287 = vst [vmem:[#allocation52_spill] sm:$0xff] %v9464_v60 }
 0x124   : > { %v9441_v61 = vpop.permute.xlu1 %733  ;;  %v9443_v57 = vpop.permute.xlu0 %728  ;;  %7385 = vmatpush1.bf16.msra.mxu0 %v7384_v58  ;;  %v9467_v58 = vld [vmem:[%s8936_s17 + $0x250] sm:$0xff] }
 0x125   : > { %14281 = vst [vmem:[#allocation46_spill] sm:$0xff] %v9441_v61  ;;  %14282 = vst [vmem:[#allocation47_spill] sm:$0xff] %v9443_v57  ;;  %1053 = vperm.xlu1 %7699, %v9432_v3   ;;  %1048 = vperm.xlu0 %7698, %v9435_v59   ;;  %v573_v61 = vld [vmem:[%s8915_s7 + $0x28] sm:$0xff]  ;;  %v574_v3 = vld [vmem:[%s8915_s7 + $0x30] sm:$0xff] }
 0x126   : > { %7386 = vmatprep.subr.bf16.mxu0 %v14215_v63  ;;  %v7387_v56 = vpack.c.bf16 %v573_v61, %v572_v0  ;;  %14288 = vst [vmem:[#allocation53_spill] sm:$0xff] %v9467_v58  ;;  %v9479_v61 = vld [vmem:[%s8936_s17 + $0x268] sm:$0xff] }
 0x127   : > { %14291 = vst [vmem:[#allocation56_spill] sm:$0xff] %v9479_v61 }
 0x128   : > { %v9456_v55 = vpop.permute.xlu1 %743  ;;  %v9458_v57 = vpop.permute.xlu0 %738  ;;  %7388 = vmatpush1.bf16.msra.mxu0 %v7387_v56  ;;  %v9482_v56 = vld [vmem:[%s8936_s17 + $0x260] sm:$0xff] }
 0x129   : > { %14285 = vst [vmem:[#allocation50_spill] sm:$0xff] %v9456_v55  ;;  %14286 = vst [vmem:[#allocation51_spill] sm:$0xff] %v9458_v57  ;;  %1063 = vperm.xlu1 %7699, %v9449_v62   ;;  %1058 = vperm.xlu0 %7698, %v9452_v54   ;;  %v575_v55 = vld [vmem:[%s8915_s7 + $0x38] sm:$0xff]  ;;  %v576_v62 = vld [vmem:[%s8915_s7 + $0x40] sm:$0xff] }
 0x12a   : > { %7389 = vmatprep.subr.bf16.mxu0 %v14215_v63  ;;  %v7390_v0 = vpack.c.bf16 %v575_v55, %v574_v3  ;;  %14292 = vst [vmem:[#allocation57_spill] sm:$0xff] %v9482_v56  ;;  %v9494_v3 = vld [vmem:[%s8936_s17 + $0x278] sm:$0xff] }
 0x12b   : > { %14295 = vst [vmem:[#allocation60_spill] sm:$0xff] %v9494_v3 }
 0x12c   : > { %v9471_v59 = vpop.permute.xlu1 %753  ;;  %v9473_v57 = vpop.permute.xlu0 %748  ;;  %7391 = vmatpush1.bf16.msra.mxu0 %v7390_v0  ;;  %v9497_v0 = vld [vmem:[%s8936_s17 + $0x270] sm:$0xff] }
 0x12d   : > { %14289 = vst [vmem:[#allocation54_spill] sm:$0xff] %v9471_v59  ;;  %14290 = vst [vmem:[#allocation55_spill] sm:$0xff] %v9473_v57  ;;  %1073 = vperm.xlu1 %7699, %v9464_v60   ;;  %1068 = vperm.xlu0 %7698, %v9467_v58   ;;  %v577_v59 = vld [vmem:[%s8915_s7 + $0x48] sm:$0xff]  ;;  %v578_v60 = vld [vmem:[%s8915_s7 + $0x50] sm:$0xff] }
 0x12e   : > { %7392 = vmatprep.subr.bf16.mxu0 %v14215_v63  ;;  %v7393_v55 = vpack.c.bf16 %v577_v59, %v576_v62  ;;  %14296 = vst [vmem:[#allocation61_spill] sm:$0xff] %v9497_v0  ;;  %v9509_v62 = vld [vmem:[%s8936_s17 + $0x288] sm:$0xff] }
 0x12f   : > { %14299 = vst [vmem:[#allocation64_spill] sm:$0xff] %v9509_v62 }
 0x130   : > { %v9486_v54 = vpop.permute.xlu1 %763  ;;  %v9488_v57 = vpop.permute.xlu0 %758  ;;  %7394 = vmatpush1.bf16.msra.mxu0 %v7393_v55  ;;  %v9512_v55 = vld [vmem:[%s8936_s17 + $0x280] sm:$0xff] }
 0x131   : > { %14293 = vst [vmem:[#allocation58_spill] sm:$0xff] %v9486_v54  ;;  %14294 = vst [vmem:[#allocation59_spill] sm:$0xff] %v9488_v57  ;;  %1083 = vperm.xlu1 %7699, %v9479_v61   ;;  %1078 = vperm.xlu0 %7698, %v9482_v56   ;;  %v579_v54 = vld [vmem:[%s8915_s7 + $0x58] sm:$0xff]  ;;  %v580_v61 = vld [vmem:[%s8915_s7 + $0x60] sm:$0xff] }
 0x132   : > { %7395 = vmatprep.subr.bf16.mxu0 %v14215_v63  ;;  %v7396_v59 = vpack.c.bf16 %v579_v54, %v578_v60  ;;  %14300 = vst [vmem:[#allocation65_spill] sm:$0xff] %v9512_v55  ;;  %v9524_v60 = vld [vmem:[%s8936_s17 + $0x298] sm:$0xff] }
 0x133   : > { %14303 = vst [vmem:[#allocation68_spill] sm:$0xff] %v9524_v60 }
 0x134   : > { %v9501_v58 = vpop.permute.xlu1 %773  ;;  %v9503_v57 = vpop.permute.xlu0 %768  ;;  %7397 = vmatpush1.bf16.msra.mxu0 %v7396_v59  ;;  %v9527_v59 = vld [vmem:[%s8936_s17 + $0x290] sm:$0xff] }
 0x135   : > { %14297 = vst [vmem:[#allocation62_spill] sm:$0xff] %v9501_v58  ;;  %14298 = vst [vmem:[#allocation63_spill] sm:$0xff] %v9503_v57  ;;  %1093 = vperm.xlu1 %7699, %v9494_v3   ;;  %1088 = vperm.xlu0 %7698, %v9497_v0   ;;  %v581_v58 = vld [vmem:[%s8915_s7 + $0x68] sm:$0xff]  ;;  %v582_v3 = vld [vmem:[%s8915_s7 + $0x70] sm:$0xff] }
 0x136   : > { %7398 = vmatprep.subr.bf16.mxu0 %v14215_v63  ;;  %v7399_v54 = vpack.c.bf16 %v581_v58, %v580_v61  ;;  %14304 = vst [vmem:[#allocation69_spill] sm:$0xff] %v9527_v59  ;;  %v9539_v61 = vld [vmem:[%s8936_s17 + $0x2a8] sm:$0xff] }
 0x137   : > { %14307 = vst [vmem:[#allocation72_spill] sm:$0xff] %v9539_v61 }
 0x138   : > { %v9516_v56 = vpop.permute.xlu1 %783  ;;  %v9518_v57 = vpop.permute.xlu0 %778  ;;  %7400 = vmatpush1.bf16.msra.mxu0 %v7399_v54  ;;  %v9542_v54 = vld [vmem:[%s8936_s17 + $0x2a0] sm:$0xff] }
 0x139   : > { %14301 = vst [vmem:[#allocation66_spill] sm:$0xff] %v9516_v56  ;;  %14302 = vst [vmem:[#allocation67_spill] sm:$0xff] %v9518_v57  ;;  %1103 = vperm.xlu1 %7699, %v9509_v62   ;;  %1098 = vperm.xlu0 %7698, %v9512_v55   ;;  %v583_v56 = vld [vmem:[%s8915_s7 + $0x78] sm:$0xff]  ;;  %v584_v62 = vld [vmem:[%s8915_s7 + $0x80] sm:$0xff] }
 0x13a   : > { %7401 = vmatprep.subr.bf16.mxu0 %v14215_v63  ;;  %v7402_v58 = vpack.c.bf16 %v583_v56, %v582_v3  ;;  %14308 = vst [vmem:[#allocation73_spill] sm:$0xff] %v9542_v54  ;;  %v9554_v3 = vld [vmem:[%s8936_s17 + $0x2b8] sm:$0xff] }
 0x13b   : > { %14311 = vst [vmem:[#allocation76_spill] sm:$0xff] %v9554_v3 }
 0x13c   : > { %v9531_v0 = vpop.permute.xlu1 %793  ;;  %v9533_v57 = vpop.permute.xlu0 %788  ;;  %7403 = vmatpush1.bf16.msra.mxu0 %v7402_v58  ;;  %v9557_v58 = vld [vmem:[%s8936_s17 + $0x2b0] sm:$0xff] }
 0x13d   : > { %14305 = vst [vmem:[#allocation70_spill] sm:$0xff] %v9531_v0  ;;  %14306 = vst [vmem:[#allocation71_spill] sm:$0xff] %v9533_v57  ;;  %1113 = vperm.xlu1 %7699, %v9524_v60   ;;  %1108 = vperm.xlu0 %7698, %v9527_v59   ;;  %v585_v0 = vld [vmem:[%s8915_s7 + $0x88] sm:$0xff]  ;;  %v586_v60 = vld [vmem:[%s8915_s7 + $0x90] sm:$0xff] }
 0x13e   : > { %7404 = vmatprep.subr.bf16.mxu0 %v14215_v63  ;;  %v7405_v56 = vpack.c.bf16 %v585_v0, %v584_v62  ;;  %14312 = vst [vmem:[#allocation77_spill] sm:$0xff] %v9557_v58  ;;  %v9569_v62 = vld [vmem:[%s8936_s17 + $0x2c8] sm:$0xff] }
 0x13f   : > { %14315 = vst [vmem:[#allocation80_spill] sm:$0xff] %v9569_v62 }
 0x140   : > { %v9546_v55 = vpop.permute.xlu1 %803  ;;  %v9548_v57 = vpop.permute.xlu0 %798  ;;  %7406 = vmatpush1.bf16.msra.mxu0 %v7405_v56  ;;  %v9572_v56 = vld [vmem:[%s8936_s17 + $0x2c0] sm:$0xff] }
 0x141   : > { %14309 = vst [vmem:[#allocation74_spill] sm:$0xff] %v9546_v55  ;;  %14310 = vst [vmem:[#allocation75_spill] sm:$0xff] %v9548_v57  ;;  %1123 = vperm.xlu1 %7699, %v9539_v61   ;;  %1118 = vperm.xlu0 %7698, %v9542_v54   ;;  %v587_v55 = vld [vmem:[%s8915_s7 + $0x98] sm:$0xff]  ;;  %v588_v61 = vld [vmem:[%s8915_s7 + $0xa0] sm:$0xff] }
 0x142   : > { %7407 = vmatprep.subr.bf16.mxu0 %v14215_v63  ;;  %v7408_v0 = vpack.c.bf16 %v587_v55, %v586_v60  ;;  %14316 = vst [vmem:[#allocation81_spill] sm:$0xff] %v9572_v56  ;;  %v9584_v60 = vld [vmem:[%s8936_s17 + $0x2d8] sm:$0xff] }
 0x143   : > { %14319 = vst [vmem:[#allocation84_spill] sm:$0xff] %v9584_v60 }
 0x144   : > { %v9561_v59 = vpop.permute.xlu1 %813  ;;  %v9563_v57 = vpop.permute.xlu0 %808  ;;  %7409 = vmatpush1.bf16.msra.mxu0 %v7408_v0  ;;  %v9587_v0 = vld [vmem:[%s8936_s17 + $0x2d0] sm:$0xff] }
 0x145   : > { %14313 = vst [vmem:[#allocation78_spill] sm:$0xff] %v9561_v59  ;;  %14314 = vst [vmem:[#allocation79_spill] sm:$0xff] %v9563_v57  ;;  %1133 = vperm.xlu1 %7699, %v9554_v3   ;;  %1128 = vperm.xlu0 %7698, %v9557_v58   ;;  %v589_v59 = vld [vmem:[%s8915_s7 + $0xa8] sm:$0xff]  ;;  %v590_v3 = vld [vmem:[%s8915_s7 + $0xb0] sm:$0xff] }
 0x146   : > { %7410 = vmatprep.subr.bf16.mxu0 %v14215_v63  ;;  %v7411_v55 = vpack.c.bf16 %v589_v59, %v588_v61  ;;  %14320 = vst [vmem:[#allocation85_spill] sm:$0xff] %v9587_v0  ;;  %v9599_v61 = vld [vmem:[%s8936_s17 + $0x2e8] sm:$0xff] }
 0x147   : > { %14323 = vst [vmem:[#allocation88_spill] sm:$0xff] %v9599_v61 }
 0x148   : > { %v9576_v54 = vpop.permute.xlu1 %823  ;;  %v9578_v57 = vpop.permute.xlu0 %818  ;;  %7412 = vmatpush1.bf16.msra.mxu0 %v7411_v55  ;;  %v9602_v55 = vld [vmem:[%s8936_s17 + $0x2e0] sm:$0xff] }
 0x149   : > { %14317 = vst [vmem:[#allocation82_spill] sm:$0xff] %v9576_v54  ;;  %14318 = vst [vmem:[#allocation83_spill] sm:$0xff] %v9578_v57  ;;  %1143 = vperm.xlu1 %7699, %v9569_v62   ;;  %1138 = vperm.xlu0 %7698, %v9572_v56   ;;  %v591_v54 = vld [vmem:[%s8915_s7 + $0xb8] sm:$0xff]  ;;  %v592_v62 = vld [vmem:[%s8915_s7 + $0xc0] sm:$0xff] }
 0x14a   : > { %7413 = vmatprep.subr.bf16.mxu0 %v14215_v63  ;;  %v7414_v59 = vpack.c.bf16 %v591_v54, %v590_v3  ;;  %14324 = vst [vmem:[#allocation89_spill] sm:$0xff] %v9602_v55  ;;  %v9614_v3 = vld [vmem:[%s8936_s17 + $0x2f8] sm:$0xff] }
 0x14b   : > { %14327 = vst [vmem:[#allocation92_spill] sm:$0xff] %v9614_v3 }
 0x14c   : > { %v9591_v58 = vpop.permute.xlu1 %833  ;;  %v9593_v57 = vpop.permute.xlu0 %828  ;;  %7415 = vmatpush1.bf16.msra.mxu0 %v7414_v59  ;;  %v9617_v59 = vld [vmem:[%s8936_s17 + $0x2f0] sm:$0xff] }
 0x14d   : > { %14321 = vst [vmem:[#allocation86_spill] sm:$0xff] %v9591_v58  ;;  %14322 = vst [vmem:[#allocation87_spill] sm:$0xff] %v9593_v57  ;;  %1153 = vperm.xlu1 %7699, %v9584_v60   ;;  %1148 = vperm.xlu0 %7698, %v9587_v0   ;;  %v593_v58 = vld [vmem:[%s8915_s7 + $0xc8] sm:$0xff]  ;;  %v594_v60 = vld [vmem:[%s8915_s7 + $0xd0] sm:$0xff] }
 0x14e   : > { %7416 = vmatprep.subr.bf16.mxu0 %v14215_v63  ;;  %v7417_v54 = vpack.c.bf16 %v593_v58, %v592_v62  ;;  %14328 = vst [vmem:[#allocation93_spill] sm:$0xff] %v9617_v59  ;;  %v9629_v62 = vld [vmem:[%s8936_s17 + $0x308] sm:$0xff] }
 0x150   : > { %v9606_v56 = vpop.permute.xlu1 %843  ;;  %v9608_v57 = vpop.permute.xlu0 %838  ;;  %7418 = vmatpush1.bf16.msra.mxu0 %v7417_v54  ;;  %v596_v54 = vld [vmem:[%s8915_s7 + $0xe0] sm:$0xff] }
 0x151   : > { %14325 = vst [vmem:[#allocation90_spill] sm:$0xff] %v9606_v56  ;;  %14326 = vst [vmem:[#allocation91_spill] sm:$0xff] %v9608_v57  ;;  %1163 = vperm.xlu1 %7699, %v9599_v61   ;;  %1158 = vperm.xlu0 %7698, %v9602_v55   ;;  %v595_v56 = vld [vmem:[%s8915_s7 + $0xd8] sm:$0xff]  ;;  %v9632_v61 = vld [vmem:[%s8936_s17 + $0x300] sm:$0xff] }
 0x152   : > { %7419 = vmatprep.subr.bf16.mxu0 %v14215_v63  ;;  %v7420_v58 = vpack.c.bf16 %v595_v56, %v594_v60  ;;  %v597_v55 = vld [vmem:[%s8915_s7 + $0xe8] sm:$0xff]  ;;  %v598_v56 = vld [vmem:[%s8915_s7 + $0xf0] sm:$0xff]  ;;  %v599_v60 = vld [vmem:[%s8915_s7 + $0xf8] sm:$0xff] }
 0x154   : > { %v9621_v0 = vpop.permute.xlu1 %853  ;;  %v9623_v57 = vpop.permute.xlu0 %848  ;;  %7421 = vmatpush1.bf16.msra.mxu0 %v7420_v58  ;;  %v7426_v58 = vpack.c.bf16 %v599_v60, %v598_v56 }
 0x155   : > { %14329 = vst [vmem:[#allocation94_spill] sm:$0xff] %v9621_v0  ;;  %14330 = vst [vmem:[#allocation95_spill] sm:$0xff] %v9623_v57  ;;  %1173 = vperm.xlu1 %7699, %v9614_v3   ;;  %1168 = vperm.xlu0 %7698, %v9617_v59   ;;  %v7423_v57 = vpack.c.bf16 %v597_v55, %v596_v54 }
 0x156   : > { %7422 = vmatprep.subr.bf16.mxu0 %v14215_v63 }
 0x158   : > { %v9636_v52 = vpop.permute.xlu1 %863  ;;  %v9638_v0 = vpop.permute.xlu0 %858  ;;  %7424 = vmatpush1.bf16.msra.mxu0 %v7423_v57 }
 0x159   : > { %14331 = vst [vmem:[#allocation96_spill] sm:$0xff] %v9636_v52  ;;  %1183 = vperm.xlu1 %7699, %v9629_v62   ;;  %1178 = vperm.xlu0 %7698, %v9632_v61   ;;  %v8715_v52 = vmov 1  }
 0x15a   : > { %7425 = vmatprep.subr.bf16.mxu0 %v14215_v63 }
 0x15c   : > { %v9645_v3 = vpop.permute.xlu1 %873  ;;  %v9647_v59 = vpop.permute.xlu0 %868  ;;  %7427 = vmatpush1.bf16.msra.mxu0 %v7426_v58  ;;  %v14366_v58 = vld [vmem:[#allocation20_spill] sm:$0xff] }
 0x15d   : > { %7701 = vset.pattern.permute.xlu1 %v8715_v52  ;;  %7700 = vset.pattern.permute.xlu0 %v8715_v52 }
 0x15e   : > { %1289 = vperm.xlu1 %7701, %v9149_v5   ;;  %1285 = vperm.xlu0 %7700, %v9141_v2  }
 0x15f   : > { %7476 = vmatprep.subr.bf16.mxu0 %v14215_v63 }
 0x160   : > { %v9652_v55 = vpop.permute.xlu1 %883  ;;  %v9654_v57 = vpop.permute.xlu0 %878 }
 0x162   : > { %1293 = vperm.xlu1 %7701, %v9138_v1   ;;  %1297 = vperm.xlu0 %7700, %v9146_v4  }
 0x164   : > { %v9659_v54 = vpop.permute.xlu1 %893  ;;  %v9661_v56 = vpop.permute.xlu0 %888 }
 0x166   : > { %1301 = vperm.xlu1 %7701, %v9157_v7   ;;  %1305 = vperm.xlu0 %7700, %v9154_v6  }
 0x168   : > { %v9665_v2 = vpop.permute.xlu1 %903  ;;  %v9667_v5 = vpop.permute.xlu0 %898 }
 0x16a   : > { %1309 = vperm.xlu1 %7701, %v9165_v9   ;;  %1313 = vperm.xlu0 %7700, %v9162_v8  }
 0x16c   : > { %v9671_v52 = vpop.permute.xlu1 %913  ;;  %v9673_v1 = vpop.permute.xlu0 %908 }
 0x16e   : > { %1317 = vperm.xlu1 %7701, %v9173_v11   ;;  %1321 = vperm.xlu0 %7700, %v9170_v10  }
 0x170   : > { %v9677_v4 = vpop.permute.xlu1 %923  ;;  %v9679_v7 = vpop.permute.xlu0 %918 }
 0x172   : > { %1325 = vperm.xlu1 %7701, %v9181_v13   ;;  %1329 = vperm.xlu0 %7700, %v9178_v12  }
 0x174   : > { %v9683_v6 = vpop.permute.xlu1 %933  ;;  %v9685_v9 = vpop.permute.xlu0 %928 }
 0x176   : > { %1333 = vperm.xlu1 %7701, %v9189_v15   ;;  %1337 = vperm.xlu0 %7700, %v9186_v14  }
 0x178   : > { %v9689_v8 = vpop.permute.xlu1 %943  ;;  %v9691_v11 = vpop.permute.xlu0 %938 }
 0x17a   : > { %1341 = vperm.xlu1 %7701, %v9197_v17   ;;  %1345 = vperm.xlu0 %7700, %v9194_v16  }
 0x17c   : > { %v9695_v10 = vpop.permute.xlu1 %953  ;;  %v9697_v13 = vpop.permute.xlu0 %948 }
 0x17e   : > { %1349 = vperm.xlu1 %7701, %v9205_v19   ;;  %1353 = vperm.xlu0 %7700, %v9202_v18  }
 0x180   : > { %v9701_v12 = vpop.permute.xlu1 %963  ;;  %v9703_v15 = vpop.permute.xlu0 %958 }
 0x182   : > { %1357 = vperm.xlu1 %7701, %v9213_v21   ;;  %1361 = vperm.xlu0 %7700, %v9210_v20  }
 0x184   : > { %v9707_v14 = vpop.permute.xlu1 %973  ;;  %v9709_v17 = vpop.permute.xlu0 %968 }
 0x186   : > { %1365 = vperm.xlu1 %7701, %v9221_v23   ;;  %1369 = vperm.xlu0 %7700, %v9218_v22  }
 0x188   : > { %v9713_v16 = vpop.permute.xlu1 %983  ;;  %v9715_v19 = vpop.permute.xlu0 %978 }
 0x189   : > { %14332 = vst [vmem:[#allocation97_spill] sm:$0xff] %v9713_v16  ;;  %14333 = vst [vmem:[#allocation98_spill] sm:$0xff] %v9715_v19  ;;  %v498_v16 = vld [vmem:[%s8931_s21 + $0xe0] sm:$0xff]  ;;  %v7810_v19 = vld [vmem:[%s8936_s17 + $0xb8] sm:$0xff] }
 0x18a   : > { %1373 = vperm.xlu1 %7701, %v9229_v25   ;;  %1377 = vperm.xlu0 %7700, %v9226_v24  }
 0x18c   : > { %v9719_v18 = vpop.permute.xlu1 %993  ;;  %v9721_v21 = vpop.permute.xlu0 %988 }
 0x18d   : > { %14334 = vst [vmem:[#allocation99_spill] sm:$0xff] %v9719_v18  ;;  %14335 = vst [vmem:[#allocation100_spill] sm:$0xff] %v9721_v21  ;;  %v496_v18 = vld [vmem:[%s8931_s21 + $0xd0] sm:$0xff] }
 0x18e   : > { %1381 = vperm.xlu1 %7701, %v9237_v27   ;;  %1385 = vperm.xlu0 %7700, %v9234_v26  }
 0x190   : > { %v9725_v20 = vpop.permute.xlu1 %1003  ;;  %v9727_v23 = vpop.permute.xlu0 %998 }
 0x191   : > { %14336 = vst [vmem:[#allocation101_spill] sm:$0xff] %v9725_v20  ;;  %14337 = vst [vmem:[#allocation102_spill] sm:$0xff] %v9727_v23  ;;  %v494_v20 = vld [vmem:[%s8931_s21 + $0xc0] sm:$0xff] }
 0x192   : > { %1389 = vperm.xlu1 %7701, %v9245_v29   ;;  %1393 = vperm.xlu0 %7700, %v9242_v28  }
 0x194   : > { %v9731_v22 = vpop.permute.xlu1 %1013  ;;  %v9733_v25 = vpop.permute.xlu0 %1008 }
 0x195   : > { %14338 = vst [vmem:[#allocation103_spill] sm:$0xff] %v9731_v22  ;;  %14339 = vst [vmem:[#allocation104_spill] sm:$0xff] %v9733_v25  ;;  %v492_v22 = vld [vmem:[%s8931_s21 + $0xb0] sm:$0xff] }
 0x196   : > { %1397 = vperm.xlu1 %7701, %v9253_v31   ;;  %1401 = vperm.xlu0 %7700, %v9250_v30  }
 0x198   : > { %v9737_v24 = vpop.permute.xlu1 %1023  ;;  %v9739_v27 = vpop.permute.xlu0 %1018 }
 0x199   : > { %14340 = vst [vmem:[#allocation105_spill] sm:$0xff] %v9737_v24  ;;  %14341 = vst [vmem:[#allocation106_spill] sm:$0xff] %v9739_v27  ;;  %v490_v24 = vld [vmem:[%s8931_s21 + $0xa0] sm:$0xff] }
 0x19a   : > { %1405 = vperm.xlu1 %7701, %v9261_v33   ;;  %1409 = vperm.xlu0 %7700, %v9258_v32  }
 0x19c   : > { %v9743_v26 = vpop.permute.xlu1 %1033  ;;  %v9745_v29 = vpop.permute.xlu0 %1028 }
 0x19d   : > { %14342 = vst [vmem:[#allocation107_spill] sm:$0xff] %v9743_v26  ;;  %14343 = vst [vmem:[#allocation108_spill] sm:$0xff] %v9745_v29 }
 0x19e   : > { %1413 = vperm.xlu1 %7701, %v9269_v35   ;;  %1417 = vperm.xlu0 %7700, %v9266_v34  }
 0x1a0   : > { %v9749_v28 = vpop.permute.xlu1 %1043  ;;  %v9751_v31 = vpop.permute.xlu0 %1038 }
 0x1a1   : > { %14344 = vst [vmem:[#allocation109_spill] sm:$0xff] %v9749_v28  ;;  %14345 = vst [vmem:[#allocation110_spill] sm:$0xff] %v9751_v31 }
 0x1a2   : > { %1421 = vperm.xlu1 %7701, %v9277_v37   ;;  %1425 = vperm.xlu0 %7700, %v9274_v36  }
 0x1a4   : > { %v9755_v30 = vpop.permute.xlu1 %1053  ;;  %v9757_v33 = vpop.permute.xlu0 %1048 }
 0x1a5   : > { %14346 = vst [vmem:[#allocation111_spill] sm:$0xff] %v9755_v30  ;;  %14347 = vst [vmem:[#allocation112_spill] sm:$0xff] %v9757_v33 }
 0x1a6   : > { %1429 = vperm.xlu1 %7701, %v9285_v39   ;;  %1433 = vperm.xlu0 %7700, %v9282_v38  }
 0x1a8   : > { %v9761_v32 = vpop.permute.xlu1 %1063  ;;  %v9763_v35 = vpop.permute.xlu0 %1058 }
 0x1a9   : > { %14348 = vst [vmem:[#allocation113_spill] sm:$0xff] %v9761_v32  ;;  %14349 = vst [vmem:[#allocation114_spill] sm:$0xff] %v9763_v35  ;;  %v477_v32 = vld [vmem:[%s8931_s21 + $0x38] sm:$0xff] }
 0x1aa   : > { %1437 = vperm.xlu1 %7701, %v9293_v41   ;;  %1441 = vperm.xlu0 %7700, %v9290_v40  }
 0x1ac   : > { %v9767_v34 = vpop.permute.xlu1 %1073  ;;  %v9769_v37 = vpop.permute.xlu0 %1068 }
 0x1ad   : > { %14350 = vst [vmem:[#allocation115_spill] sm:$0xff] %v9767_v34  ;;  %14351 = vst [vmem:[#allocation116_spill] sm:$0xff] %v9769_v37  ;;  %v475_v34 = vld [vmem:[%s8931_s21 + $0x28] sm:$0xff] }
 0x1ae   : > { %1445 = vperm.xlu1 %7701, %v9301_v43   ;;  %1449 = vperm.xlu0 %7700, %v9298_v42  }
 0x1b0   : > { %v9773_v36 = vpop.permute.xlu1 %1083  ;;  %v9775_v39 = vpop.permute.xlu0 %1078 }
 0x1b1   : > { %14352 = vst [vmem:[#allocation117_spill] sm:$0xff] %v9773_v36  ;;  %14353 = vst [vmem:[#allocation118_spill] sm:$0xff] %v9775_v39  ;;  %v474_v36 = vld [vmem:[%s8931_s21 + $0x20] sm:$0xff] }
 0x1b2   : > { %1453 = vperm.xlu1 %7701, %v9309_v45   ;;  %1457 = vperm.xlu0 %7700, %v9306_v44  }
 0x1b4   : > { %v9779_v38 = vpop.permute.xlu1 %1093  ;;  %v9781_v41 = vpop.permute.xlu0 %1088 }
 0x1b5   : > { %14354 = vst [vmem:[#allocation119_spill] sm:$0xff] %v9779_v38  ;;  %14355 = vst [vmem:[#allocation120_spill] sm:$0xff] %v9781_v41 }
 0x1b6   : > { %1461 = vperm.xlu1 %7701, %v9317_v47   ;;  %1465 = vperm.xlu0 %7700, %v9314_v46   ;;  %v14362_v46 = vld [vmem:[#allocation19_spill] sm:$0xff] }
 0x1b8   : > { %v9785_v40 = vpop.permute.xlu1 %1103  ;;  %v9787_v43 = vpop.permute.xlu0 %1098 }
 0x1b9   : > { %14356 = vst [vmem:[#allocation121_spill] sm:$0xff] %v9785_v40  ;;  %14357 = vst [vmem:[#allocation122_spill] sm:$0xff] %v9787_v43  ;;  %v14390_v40 = vld [vmem:[#allocation37_spill] sm:$0xff]  ;;  %v14392_v43 = vld [vmem:[#allocation39_spill] sm:$0xff] }
 0x1ba   : > { %1469 = vperm.xlu1 %7701, %v9325_v49   ;;  %1473 = vperm.xlu0 %7700, %v9322_v48   ;;  %v14365_v48 = vld [vmem:[#allocation21_spill] sm:$0xff] }
 0x1bc   : > { %v9791_v42 = vpop.permute.xlu1 %1113  ;;  %v9793_v45 = vpop.permute.xlu0 %1108 }
 0x1bd   : > { %14358 = vst [vmem:[#allocation123_spill] sm:$0xff] %v9791_v42  ;;  %14359 = vst [vmem:[#allocation124_spill] sm:$0xff] %v9793_v45  ;;  %v14387_v42 = vld [vmem:[#allocation33_spill] sm:$0xff] }
 0x1be   : > { %1477 = vperm.xlu1 %7701, %v9333_v51   ;;  %1481 = vperm.xlu0 %7700, %v9330_v50   ;;  %v14369_v50 = vld [vmem:[#allocation23_spill] sm:$0xff] }
 0x1c0   : > { %v9797_v44 = vpop.permute.xlu1 %1123  ;;  %v9799_v47 = vpop.permute.xlu0 %1118 }
 0x1c1   : > { %14360 = vst [vmem:[#allocation125_spill] sm:$0xff] %v9797_v44  ;;  %14361 = vst [vmem:[#allocation126_spill] sm:$0xff] %v9799_v47  ;;  %v14370_v44 = vld [vmem:[#allocation22_spill] sm:$0xff] }
 0x1c2   : > { %1485 = vperm.xlu1 %7701, %v9341_v53   ;;  %1489 = vperm.xlu0 %7700, %v14362_v46   ;;  %v14373_v46 = vld [vmem:[#allocation25_spill] sm:$0xff] }
 0x1c4   : > { %v9803_v60 = vpop.permute.xlu1 %1133  ;;  %v9805_v49 = vpop.permute.xlu0 %1128 }
 0x1c5   : > { %14363 = vst [vmem:[#allocation19_spill] sm:$0xff] %v9803_v60  ;;  %14364 = vst [vmem:[#allocation127_spill] sm:$0xff] %v9805_v49  ;;  %v14374_v60 = vld [vmem:[#allocation24_spill] sm:$0xff] }
 0x1c6   : > { %1493 = vperm.xlu1 %7701, %v14365_v48   ;;  %1497 = vperm.xlu0 %7700, %v14366_v58  }
 0x1c8   : > { %v9809_v63 = vpop.permute.xlu1 %1143  ;;  %v9811_v51 = vpop.permute.xlu0 %1138 }
 0x1c9   : > { %14367 = vst [vmem:[#allocation21_spill] sm:$0xff] %v9809_v63  ;;  %14368 = vst [vmem:[#allocation20_spill] sm:$0xff] %v9811_v51  ;;  %v14377_v63 = vld [vmem:[#allocation27_spill] sm:$0xff]  ;;  %v14378_v51 = vld [vmem:[#allocation26_spill] sm:$0xff] }
 0x1ca   : > { %1501 = vperm.xlu1 %7701, %v14369_v50   ;;  %1505 = vperm.xlu0 %7700, %v14370_v44  }
 0x1cc   : > { %v9815_v47 = vpop.permute.xlu1 %1153  ;;  %v9817_v53 = vpop.permute.xlu0 %1148 }
 0x1cd   : > { %14371 = vst [vmem:[#allocation23_spill] sm:$0xff] %v9815_v47  ;;  %14372 = vst [vmem:[#allocation22_spill] sm:$0xff] %v9817_v53  ;;  %v14381_v47 = vld [vmem:[#allocation29_spill] sm:$0xff]  ;;  %v14382_v53 = vld [vmem:[#allocation28_spill] sm:$0xff] }
 0x1ce   : > { %1509 = vperm.xlu1 %7701, %v14373_v46   ;;  %1513 = vperm.xlu0 %7700, %v14374_v60  }
 0x1d0   : > { %v9821_v48 = vpop.permute.xlu1 %1163  ;;  %v9823_v58 = vpop.permute.xlu0 %1158 }
 0x1d1   : > { %14375 = vst [vmem:[#allocation25_spill] sm:$0xff] %v9821_v48  ;;  %14376 = vst [vmem:[#allocation24_spill] sm:$0xff] %v9823_v58  ;;  %v14385_v48 = vld [vmem:[#allocation31_spill] sm:$0xff]  ;;  %v14386_v58 = vld [vmem:[#allocation30_spill] sm:$0xff] }
 0x1d2   : > { %1517 = vperm.xlu1 %7701, %v14377_v63   ;;  %1521 = vperm.xlu0 %7700, %v14378_v51   ;;  %v470_v63 = vld [vmem:[%s8931_s21] sm:$0xff] }
 0x1d4   : > { %v9827_v50 = vpop.permute.xlu1 %1173  ;;  %v9829_v44 = vpop.permute.xlu0 %1168 }
 0x1d5   : > { %14379 = vst [vmem:[#allocation27_spill] sm:$0xff] %v9827_v50  ;;  %14380 = vst [vmem:[#allocation26_spill] sm:$0xff] %v9829_v44  ;;  %v14388_v50 = vld [vmem:[#allocation32_spill] sm:$0xff] }
 0x1d6   : > { %1525 = vperm.xlu1 %7701, %v14381_v47   ;;  %1529 = vperm.xlu0 %7700, %v14382_v53   ;;  %v14389_v47 = vld [vmem:[#allocation35_spill] sm:$0xff]  ;;  %v471_v53 = vld [vmem:[%s8931_s21 + $0x8] sm:$0xff] }
 0x1d7   : > { %v1186_v45 = vmul.f32 %v14389_v47, %v470_v63  ;;  %v1187_v38 = vmul.f32 %v14392_v43, %v471_v53  ;;  %v14393_v47 = vld [vmem:[#allocation41_spill] sm:$0xff] }
 0x1d8   : > { %v9833_v46 = vpop.permute.xlu1 %1183  ;;  %v9835_v60 = vpop.permute.xlu0 %1178 }
 0x1d9   : > { %14383 = vst [vmem:[#allocation29_spill] sm:$0xff] %v9833_v46  ;;  %14384 = vst [vmem:[#allocation28_spill] sm:$0xff] %v9835_v60 }
 0x1da   : > { %1533 = vperm.xlu1 %7701, %v14385_v48   ;;  %1537 = vperm.xlu0 %7700, %v14386_v58   ;;  %v14391_v58 = vld [vmem:[#allocation36_spill] sm:$0xff] }
 0x1dd   : > { %v1290_v49 = vpop.permute.xlu1 %1289  ;;  %v1286_v51 = vpop.permute.xlu0 %1285 }
 0x1de   : > { %1541 = vperm.xlu1 %7701, %v14387_v42   ;;  %1545 = vperm.xlu0 %7700, %v14388_v50   ;;  %v1676_v44 = vmul.f32 %v1286_v51, %v470_v63  ;;  %v1677_v46 = vmul.f32 %v1290_v49, %v471_v53  ;;  %v472_v42 = vld [vmem:[%s8931_s21 + $0x10] sm:$0xff]  ;;  %v473_v51 = vld [vmem:[%s8931_s21 + $0x18] sm:$0xff]  ;;  %v14394_v49 = vld [vmem:[#allocation40_spill] sm:$0xff] }
 0x1df   : > { %v14398_v53 = vld [vmem:[#allocation38_spill] sm:$0xff] }
 0x1e0   : > { %4876 = vmatprep.mubr.f32.mxu0 %v1676_v44 }
 0x1e1   : > { %v1294_v60 = vpop.permute.xlu1 %1293  ;;  %4877 = vmatmul.mubr.f32.vlgmr.msra.gmra.mrb[0].mxu0 %v1186_v45  ;;  %v1298_v48 = vpop.permute.xlu0 %1297  ;;  %v14395_v45 = vld [vmem:[#allocation34_spill] sm:$0xff] }
 0x1e2   : > { %1549 = vperm.xlu1 %7701, %v14390_v40   ;;  %1553 = vperm.xlu0 %7700, %v14391_v58   ;;  %v1678_v41 = vmul.f32 %v1294_v60, %v472_v42  ;;  %v1188_v44 = vmul.f32 %v14395_v45, %v472_v42  ;;  %v1679_v40 = vmul.f32 %v1298_v48, %v473_v51  ;;  %v14397_v60 = vld [vmem:[#allocation44_spill] sm:$0xff]  ;;  %v14399_v42 = vld [vmem:[#allocation49_spill] sm:$0xff]  ;;  %v14401_v48 = vld [vmem:[#allocation43_spill] sm:$0xff] }
 0x1e3   : > { %4881 = vmatprep.mubr.f32.mxu0 %v1677_v46  ;;  %v14396_v46 = vld [vmem:[#allocation45_spill] sm:$0xff]  ;;  %v1190_v45 = vmul.f32 %v14401_v48, %v474_v36 }
 0x1e5   : > { %v1302_v50 = vpop.permute.xlu1 %1301  ;;  %4882 = vmatmul.mubr.f32.gmra.mrb[2].mxu0 %v1187_v38  ;;  %v1306_v63 = vpop.permute.xlu0 %1305  ;;  %v1189_v38 = vmul.f32 %v14398_v53, %v473_v51 }
 0x1e6   : > { %1557 = vperm.xlu1 %7701, %v14393_v47   ;;  %1561 = vperm.xlu0 %7700, %v14394_v49   ;;  %v1680_v39 = vmul.f32 %v1302_v50, %v474_v36  ;;  %v14403_v50 = vld [vmem:[#allocation52_spill] sm:$0xff]  ;;  %v14405_v36 = vld [vmem:[#allocation57_spill] sm:$0xff] }
 0x1e7   : > { %4886 = vmatprep.mubr.f32.mxu0 %v1678_v41  ;;  %v14400_v41 = vld [vmem:[#allocation48_spill] sm:$0xff] }
 0x1e9   : > { %v1310_v58 = vpop.permute.xlu1 %1309  ;;  %4887 = vmatmul.mubr.f32.gmra.mrb[4].mxu0 %v1188_v44  ;;  %v1314_v43 = vpop.permute.xlu0 %1313  ;;  %v1681_v44 = vmul.f32 %v1306_v63, %v475_v34  ;;  %v14407_v63 = vld [vmem:[#allocation47_spill] sm:$0xff] }
 0x1ea   : > { %1565 = vperm.xlu1 %7701, %v14396_v46   ;;  %1569 = vperm.xlu0 %7700, %v14397_v60   ;;  %v14404_v60 = vld [vmem:[#allocation42_spill] sm:$0xff] }
 0x1eb   : > { %4891 = vmatprep.mubr.f32.mxu0 %v1679_v40  ;;  %v14402_v40 = vld [vmem:[#allocation53_spill] sm:$0xff]  ;;  %v1191_v53 = vmul.f32 %v14404_v60, %v475_v34 }
 0x1ed   : > { %v1318_v47 = vpop.permute.xlu1 %1317  ;;  %4892 = vmatmul.mubr.f32.gmra.mrb[6].mxu0 %v1189_v38  ;;  %v1322_v49 = vpop.permute.xlu0 %1321  ;;  %v476_v38 = vld [vmem:[%s8931_s21 + $0x30] sm:$0xff] }
 0x1ee   : > { %1573 = vperm.xlu1 %7701, %v14399_v42   ;;  %1577 = vperm.xlu0 %7700, %v14400_v41   ;;  %v1682_v37 = vmul.f32 %v1310_v58, %v476_v38  ;;  %v1192_v48 = vmul.f32 %v14407_v63, %v476_v38  ;;  %v14409_v58 = vld [vmem:[#allocation60_spill] sm:$0xff]  ;;  %v14413_v63 = vld [vmem:[#allocation51_spill] sm:$0xff] }
 0x1ef   : > { %4896 = vmatprep.mubr.f32.mxu0 %v1680_v39  ;;  %v14406_v39 = vld [vmem:[#allocation56_spill] sm:$0xff] }
 0x1f1   : > { %v1326_v46 = vpop.permute.xlu1 %1325  ;;  %4897 = vmatmul.mubr.f32.gmra.mrb[8].mxu0 %v1190_v45  ;;  %v1330_v51 = vpop.permute.xlu0 %1329  ;;  %v1683_v45 = vmul.f32 %v1314_v43, %v477_v32  ;;  %v14411_v43 = vld [vmem:[#allocation65_spill] sm:$0xff] }
 0x1f2   : > { %1581 = vperm.xlu1 %7701, %v14402_v40   ;;  %1585 = vperm.xlu0 %7700, %v14403_v50   ;;  %v14410_v50 = vld [vmem:[#allocation46_spill] sm:$0xff] }
 0x1f3   : > { %4901 = vmatprep.mubr.f32.mxu0 %v1681_v44  ;;  %v14408_v44 = vld [vmem:[#allocation61_spill] sm:$0xff]  ;;  %v1193_v60 = vmul.f32 %v14410_v50, %v477_v32  ;;  %v14416_v50 = vld [vmem:[#allocation50_spill] sm:$0xff] }
 0x1f5   : > { %v1334_v42 = vpop.permute.xlu1 %1333  ;;  %4902 = vmatmul.mubr.f32.gmra.mrb[10].mxu0 %v1191_v53  ;;  %v1338_v41 = vpop.permute.xlu0 %1337  ;;  %v478_v53 = vld [vmem:[%s8931_s21 + $0x40] sm:$0xff] }
 0x1f6   : > { %1589 = vperm.xlu1 %7701, %v14405_v36   ;;  %1593 = vperm.xlu0 %7700, %v14406_v39   ;;  %v1684_v36 = vmul.f32 %v1318_v47, %v478_v53  ;;  %v14412_v39 = vld [vmem:[#allocation64_spill] sm:$0xff] }
 0x1f7   : > { %4906 = vmatprep.mubr.f32.mxu0 %v1682_v37  ;;  %v479_v37 = vld [vmem:[%s8931_s21 + $0x48] sm:$0xff] }
 0x1f9   : > { %v1342_v40 = vpop.permute.xlu1 %1341  ;;  %4907 = vmatmul.mubr.f32.gmra.mrb[12].mxu0 %v1192_v48  ;;  %v9868_v34 = vpop.permute.xlu0 %1345  ;;  %v1194_v48 = vmul.f32 %v14413_v63, %v478_v53  ;;  %v481_v53 = vld [vmem:[%s8931_s21 + $0x58] sm:$0xff]  ;;  %v14418_v63 = vld [vmem:[#allocation72_spill] sm:$0xff] }
 0x1fa   : > { %1597 = vperm.xlu1 %7701, %v14408_v44   ;;  %1601 = vperm.xlu0 %7700, %v14409_v58   ;;  %v1685_v44 = vmul.f32 %v1322_v49, %v479_v37  ;;  %v14415_v58 = vld [vmem:[#allocation68_spill] sm:$0xff] }
 0x1fb   : > { %4911 = vmatprep.mubr.f32.mxu0 %v1683_v45  ;;  %v14414_v45 = vld [vmem:[#allocation69_spill] sm:$0xff] }
 0x1fd   : > { %v9874_v35 = vpop.permute.xlu1 %1349  ;;  %4912 = vmatmul.mubr.f32.gmra.mrb[14].mxu0 %v1193_v60  ;;  %v9876_v38 = vpop.permute.xlu0 %1353  ;;  %v1195_v60 = vmul.f32 %v14416_v50, %v479_v37  ;;  %v14421_v50 = vld [vmem:[#allocation76_spill] sm:$0xff] }
 0x1fe   : > { %1605 = vperm.xlu1 %7701, %v14411_v43   ;;  %1609 = vperm.xlu0 %7700, %v14412_v39   ;;  %v480_v43 = vld [vmem:[%s8931_s21 + $0x50] sm:$0xff] }
 0x1ff   : > { %4916 = vmatprep.mubr.f32.mxu0 %v1684_v36  ;;  %v1686_v30 = vmul.f32 %v1326_v46, %v480_v43  ;;  %v14417_v36 = vld [vmem:[#allocation73_spill] sm:$0xff] }
 0x201   : > { %v9882_v32 = vpop.permute.xlu1 %1357  ;;  %4917 = vmatmul.mubr.f32.gmra.mrb[16].mxu0 %v1194_v48  ;;  %v9884_v47 = vpop.permute.xlu0 %1361  ;;  %v14419_v48 = vld [vmem:[#allocation55_spill] sm:$0xff] }
 0x202   : > { %1613 = vperm.xlu1 %7701, %v14414_v45   ;;  %1617 = vperm.xlu0 %7700, %v14415_v58   ;;  %v1196_v45 = vmul.f32 %v14419_v48, %v480_v43  ;;  %v1687_v58 = vmul.f32 %v1330_v51, %v481_v53  ;;  %v14423_v43 = vld [vmem:[#allocation81_spill] sm:$0xff]  ;;  %v14424_v48 = vld [vmem:[#allocation80_spill] sm:$0xff] }
 0x203   : > { %4921 = vmatprep.mubr.f32.mxu0 %v1685_v44  ;;  %v14420_v44 = vld [vmem:[#allocation77_spill] sm:$0xff] }
 0x205   : > { %v9890_v39 = vpop.permute.xlu1 %1365  ;;  %4922 = vmatmul.mubr.f32.gmra.mrb[18].mxu0 %v1195_v60  ;;  %v9892_v49 = vpop.permute.xlu0 %1369  ;;  %v14422_v60 = vld [vmem:[#allocation54_spill] sm:$0xff] }
 0x206   : > { %1621 = vperm.xlu1 %7701, %v14417_v36   ;;  %1625 = vperm.xlu0 %7700, %v14418_v63   ;;  %v1197_v33 = vmul.f32 %v14422_v60, %v481_v53  ;;  %v482_v36 = vld [vmem:[%s8931_s21 + $0x60] sm:$0xff]  ;;  %v14428_v60 = vld [vmem:[#allocation58_spill] sm:$0xff] }
 0x207   : > { %4926 = vmatprep.mubr.f32.mxu0 %v1686_v30  ;;  %v1688_v28 = vmul.f32 %v1334_v42, %v482_v36  ;;  %v483_v30 = vld [vmem:[%s8931_s21 + $0x68] sm:$0xff] }
 0x208   : > { %v1199_v31 = vmul.f32 %v14428_v60, %v483_v30  ;;  %v14434_v60 = vld [vmem:[#allocation62_spill] sm:$0xff] }
 0x209   : > { %v9898_v37 = vpop.permute.xlu1 %1373  ;;  %4927 = vmatmul.mubr.f32.gmra.mrb[20].mxu0 %v1196_v45  ;;  %v9900_v46 = vpop.permute.xlu0 %1377  ;;  %v14425_v45 = vld [vmem:[#allocation59_spill] sm:$0xff] }
 0x20a   : > { %1629 = vperm.xlu1 %7701, %v14420_v44   ;;  %1633 = vperm.xlu0 %7700, %v14421_v50   ;;  %v1198_v44 = vmul.f32 %v14425_v45, %v482_v36  ;;  %v1689_v50 = vmul.f32 %v1338_v41, %v483_v30  ;;  %v14429_v36 = vld [vmem:[#allocation89_spill] sm:$0xff]  ;;  %v14430_v45 = vld [vmem:[#allocation88_spill] sm:$0xff] }
 0x20b   : > { %4931 = vmatprep.mubr.f32.mxu0 %v1687_v58  ;;  %v14426_v58 = vld [vmem:[#allocation85_spill] sm:$0xff] }
 0x20d   : > { %v9906_v63 = vpop.permute.xlu1 %1381  ;;  %4932 = vmatmul.mubr.f32.gmra.mrb[22].mxu0 %v1197_v33  ;;  %v9908_v51 = vpop.permute.xlu0 %1385  ;;  %v14427_v33 = vld [vmem:[#allocation84_spill] sm:$0xff] }
 0x20e   : > { %1637 = vperm.xlu1 %7701, %v14423_v43   ;;  %1641 = vperm.xlu0 %7700, %v14424_v48   ;;  %v484_v43 = vld [vmem:[%s8931_s21 + $0x70] sm:$0xff] }
 0x20f   : > { %4936 = vmatprep.mubr.f32.mxu0 %v1688_v28  ;;  %v1690_v26 = vmul.f32 %v1342_v40, %v484_v43  ;;  %v485_v28 = vld [vmem:[%s8931_s21 + $0x78] sm:$0xff] }
 0x210   : > { %v1201_v29 = vmul.f32 %v14434_v60, %v485_v28  ;;  %v7787_v60 = vld [vmem:[%s8936_s17 + $0x8] sm:$0xff] }
 0x211   : > { %v9914_v53 = vpop.permute.xlu1 %1389  ;;  %4937 = vmatmul.mubr.f32.gmra.mrb[24].mxu0 %v1198_v44  ;;  %v9916_v42 = vpop.permute.xlu0 %1393  ;;  %v14431_v44 = vld [vmem:[#allocation63_spill] sm:$0xff] }
 0x212   : > { %1645 = vperm.xlu1 %7701, %v14426_v58   ;;  %1649 = vperm.xlu0 %7700, %v14427_v33   ;;  %v1200_v58 = vmul.f32 %v14431_v44, %v484_v43  ;;  %v1691_v33 = vmul.f32 %v9868_v34, %v485_v28  ;;  %v487_v34 = vld [vmem:[%s8931_s21 + $0x88] sm:$0xff]  ;;  %v14435_v44 = vld [vmem:[#allocation67_spill] sm:$0xff] }
 0x213   : > { %4941 = vmatprep.mubr.f32.mxu0 %v1689_v50  ;;  %v14432_v50 = vld [vmem:[#allocation93_spill] sm:$0xff]  ;;  %v1693_v28 = vmul.f32 %v9876_v38, %v487_v34  ;;  %v489_v38 = vld [vmem:[%s8931_s21 + $0x98] sm:$0xff] }
 0x215   : > { %v9922_v48 = vpop.permute.xlu1 %1397  ;;  %4942 = vmatmul.mubr.f32.gmra.mrb[26].mxu0 %v1199_v31  ;;  %v9924_v41 = vpop.permute.xlu0 %1401  ;;  %v14433_v31 = vld [vmem:[#allocation92_spill] sm:$0xff] }
 0x216   : > { %1653 = vperm.xlu1 %7701, %v14429_v36   ;;  %1657 = vperm.xlu0 %7700, %v14430_v45   ;;  %v486_v36 = vld [vmem:[%s8931_s21 + $0x80] sm:$0xff] }
 0x217   : > { %4946 = vmatprep.mubr.f32.mxu0 %v1690_v26  ;;  %v1692_v45 = vmul.f32 %v9874_v35, %v486_v36 }
 0x219   : > { %v9931_v30 = vpop.permute.xlu1 %1405  ;;  %4947 = vmatmul.mubr.f32.gmra.mrb[28].mxu0 %v1200_v58  ;;  %v9933_v40 = vpop.permute.xlu0 %1409  ;;  %v1202_v58 = vmul.f32 %v14435_v44, %v486_v36 }
 0x21a   : > { %1661 = vperm.xlu1 %7701, %v14432_v50   ;;  %1665 = vperm.xlu0 %7700, %v14433_v31   ;;  %v14436_v50 = vld [vmem:[#allocation66_spill] sm:$0xff]  ;;  %v488_v31 = vld [vmem:[%s8931_s21 + $0x90] sm:$0xff] }
 0x21b   : > { %4951 = vmatprep.mubr.f32.mxu0 %v1691_v33  ;;  %v1694_v36 = vmul.f32 %v9882_v32, %v488_v31 }
 0x21d   : > { %v9940_v43 = vpop.permute.xlu1 %1413  ;;  %4952 = vmatmul.mubr.f32.gmra.mrb[30].mxu0 %v1201_v29  ;;  %v9942_v26 = vpop.permute.xlu0 %1417  ;;  %v8716_v29 = vmov 2  }
 0x21e   : > { %1669 = vperm.xlu1 %7701, %v9632_v61   ;;  %1673 = vperm.xlu0 %7700, %v9629_v62   ;;  %v1203_v61 = vmul.f32 %v14436_v50, %v487_v34  ;;  %v7786_v62 = vld [vmem:[%s8936_s17] sm:$0xff]  ;;  %v1695_v34 = vmul.f32 %v9884_v47, %v489_v38  ;;  %v7788_v50 = vld [vmem:[%s8936_s17 + $0x10] sm:$0xff]  ;;  %v7790_v47 = vld [vmem:[%s8936_s17 + $0x18] sm:$0xff] }
 0x21f   : > { %4956 = vmatprep.mubr.f32.mxu0 %v1692_v45 }
 0x221   : > { %v9949_v35 = vpop.permute.xlu1 %1421  ;;  %4957 = vmatmul.mubr.f32.gmra.mrb[32].mxu0 %v1202_v58  ;;  %v9951_v33 = vpop.permute.xlu0 %1425  ;;  %v14437_v58 = vld [vmem:[#allocation71_spill] sm:$0xff] }
 0x222   : > { %7702 = vset.pattern.permute.xlu1 %v8716_v29  ;;  %7703 = vset.pattern.permute.xlu0 %v8716_v29  ;;  %v1204_v29 = vmul.f32 %v14437_v58, %v488_v31  ;;  %v1696_v31 = vmul.f32 %v9890_v39, %v490_v24  ;;  %v491_v58 = vld [vmem:[%s8931_s21 + $0xa8] sm:$0xff] }
 0x223   : > { %1775 = vperm.xlu1 %7702, %v7786_v62   ;;  %1779 = vperm.xlu0 %7703, %v7787_v60   ;;  %v7789_v62 = vld [vmem:[%s8936_s17 + $0x20] sm:$0xff] }
 0x224   : > { %4961 = vmatprep.mubr.f32.mxu0 %v1693_v28 }
 0x225   : > { %v9959_v45 = vpop.permute.xlu1 %1429  ;;  %4962 = vmatmul.mubr.f32.gmra.mrb[34].mxu0 %v1203_v61  ;;  %v9961_v44 = vpop.permute.xlu0 %1433  ;;  %v14438_v61 = vld [vmem:[#allocation70_spill] sm:$0xff] }
 0x226   : > { %4966 = vmatprep.mubr.f32.mxu0 %v1694_v36  ;;  %v1205_v60 = vmul.f32 %v14438_v61, %v489_v38  ;;  %v7791_v36 = vld [vmem:[%s8936_s17 + $0x30] sm:$0xff]  ;;  %v14439_v38 = vld [vmem:[#allocation75_spill] sm:$0xff]  ;;  %v7792_v61 = vld [vmem:[%s8936_s17 + $0x28] sm:$0xff] }
 0x227   : > { %1783 = vperm.xlu1 %7702, %v7788_v50   ;;  %1791 = vperm.xlu0 %7703, %v7789_v62   ;;  %v1206_v62 = vmul.f32 %v14439_v38, %v490_v24  ;;  %v1698_v24 = vmul.f32 %v9898_v37, %v492_v22  ;;  %v493_v38 = vld [vmem:[%s8931_s21 + $0xb8] sm:$0xff] }
 0x229   : > { %v9967_v32 = vpop.permute.xlu1 %1437  ;;  %4967 = vmatmul.mubr.f32.gmra.mrb[36].mxu0 %v1204_v29  ;;  %v9969_v28 = vpop.permute.xlu0 %1441 }
 0x22a   : > { %4971 = vmatprep.mubr.f32.mxu0 %v1695_v34  ;;  %v1697_v34 = vmul.f32 %v9892_v49, %v491_v58  ;;  %v7794_v49 = vld [vmem:[%s8936_s17 + $0x38] sm:$0xff] }
 0x22b   : > { %1787 = vperm.xlu1 %7702, %v7790_v47   ;;  %1799 = vperm.xlu0 %7703, %v7791_v36   ;;  %v7793_v47 = vld [vmem:[%s8936_s17 + $0x40] sm:$0xff] }
 0x22d   : > { %v9977_v50 = vpop.permute.xlu1 %1445  ;;  %4972 = vmatmul.mubr.f32.gmra.mrb[38].mxu0 %v1205_v60  ;;  %v9979_v29 = vpop.permute.xlu0 %1449  ;;  %v14440_v60 = vld [vmem:[#allocation74_spill] sm:$0xff] }
 0x22e   : > { %4976 = vmatprep.mubr.f32.mxu0 %v1696_v31  ;;  %v1207_v27 = vmul.f32 %v14440_v60, %v491_v58  ;;  %v7795_v31 = vld [vmem:[%s8936_s17 + $0x50] sm:$0xff]  ;;  %v14441_v58 = vld [vmem:[#allocation79_spill] sm:$0xff]  ;;  %v7796_v60 = vld [vmem:[%s8936_s17 + $0x48] sm:$0xff] }
 0x22f   : > { %1795 = vperm.xlu1 %7702, %v7792_v61   ;;  %1807 = vperm.xlu0 %7703, %v7793_v47   ;;  %v1208_v47 = vmul.f32 %v14441_v58, %v492_v22  ;;  %v1700_v22 = vmul.f32 %v9906_v63, %v494_v20  ;;  %v495_v58 = vld [vmem:[%s8931_s21 + $0xc8] sm:$0xff] }
 0x231   : > { %v9985_v39 = vpop.permute.xlu1 %1453  ;;  %4977 = vmatmul.mubr.f32.gmra.mrb[40].mxu0 %v1206_v62  ;;  %v9987_v36 = vpop.permute.xlu0 %1457 }
 0x232   : > { %4981 = vmatprep.mubr.f32.mxu0 %v1697_v34  ;;  %v1699_v34 = vmul.f32 %v9900_v46, %v493_v38  ;;  %v7798_v46 = vld [vmem:[%s8936_s17 + $0x58] sm:$0xff] }
 0x233   : > { %1803 = vperm.xlu1 %7702, %v7794_v49   ;;  %1815 = vperm.xlu0 %7703, %v7795_v31   ;;  %v7797_v49 = vld [vmem:[%s8936_s17 + $0x60] sm:$0xff] }
 0x235   : > { %v9995_v61 = vpop.permute.xlu1 %1461  ;;  %4982 = vmatmul.mubr.f32.gmra.mrb[42].mxu0 %v1207_v27  ;;  %v9997_v62 = vpop.permute.xlu0 %1465  ;;  %v14442_v27 = vld [vmem:[#allocation78_spill] sm:$0xff] }
 0x236   : > { %4986 = vmatprep.mubr.f32.mxu0 %v1698_v24  ;;  %v1209_v25 = vmul.f32 %v14442_v27, %v493_v38  ;;  %v7799_v24 = vld [vmem:[%s8936_s17 + $0x70] sm:$0xff]  ;;  %v14443_v38 = vld [vmem:[#allocation83_spill] sm:$0xff]  ;;  %v7800_v27 = vld [vmem:[%s8936_s17 + $0x68] sm:$0xff] }
 0x237   : > { %1811 = vperm.xlu1 %7702, %v7796_v60   ;;  %1823 = vperm.xlu0 %7703, %v7797_v49   ;;  %v1210_v49 = vmul.f32 %v14443_v38, %v494_v20  ;;  %v1702_v20 = vmul.f32 %v9914_v53, %v496_v18  ;;  %v497_v38 = vld [vmem:[%s8931_s21 + $0xd8] sm:$0xff] }
 0x239   : > { %v10003_v37 = vpop.permute.xlu1 %1469  ;;  %4987 = vmatmul.mubr.f32.gmra.mrb[44].mxu0 %v1208_v47  ;;  %v10005_v31 = vpop.permute.xlu0 %1473 }
 0x23a   : > { %4991 = vmatprep.mubr.f32.mxu0 %v1699_v34  ;;  %v1701_v34 = vmul.f32 %v9908_v51, %v495_v58  ;;  %v7802_v51 = vld [vmem:[%s8936_s17 + $0x78] sm:$0xff] }
 0x23b   : > { %1819 = vperm.xlu1 %7702, %v7798_v46   ;;  %1831 = vperm.xlu0 %7703, %v7799_v24   ;;  %v7801_v46 = vld [vmem:[%s8936_s17 + $0x80] sm:$0xff] }
 0x23d   : > { %v10013_v60 = vpop.permute.xlu1 %1477  ;;  %4992 = vmatmul.mubr.f32.gmra.mrb[46].mxu0 %v1209_v25  ;;  %v10015_v47 = vpop.permute.xlu0 %1481  ;;  %v14444_v25 = vld [vmem:[#allocation82_spill] sm:$0xff] }
 0x23e   : > { %4996 = vmatprep.mubr.f32.mxu0 %v1700_v22  ;;  %v1211_v23 = vmul.f32 %v14444_v25, %v495_v58  ;;  %v7803_v22 = vld [vmem:[%s8936_s17 + $0x90] sm:$0xff]  ;;  %v14445_v58 = vld [vmem:[#allocation87_spill] sm:$0xff]  ;;  %v7804_v25 = vld [vmem:[%s8936_s17 + $0x88] sm:$0xff] }
 0x23f   : > { %1827 = vperm.xlu1 %7702, %v7800_v27   ;;  %1839 = vperm.xlu0 %7703, %v7801_v46   ;;  %v1212_v46 = vmul.f32 %v14445_v58, %v496_v18  ;;  %v1704_v18 = vmul.f32 %v9922_v48, %v498_v16 }
 0x241   : > { %v10021_v63 = vpop.permute.xlu1 %1485  ;;  %4997 = vmatmul.mubr.f32.gmra.mrb[48].mxu0 %v1210_v49  ;;  %v10023_v24 = vpop.permute.xlu0 %1489 }
 0x242   : > { %5001 = vmatprep.mubr.f32.mxu0 %v1701_v34  ;;  %v1703_v34 = vmul.f32 %v9916_v42, %v497_v38  ;;  %v7806_v42 = vld [vmem:[%s8936_s17 + $0x98] sm:$0xff] }
 0x243   : > { %1835 = vperm.xlu1 %7702, %v7802_v51   ;;  %1847 = vperm.xlu0 %7703, %v7803_v22   ;;  %v7805_v51 = vld [vmem:[%s8936_s17 + $0xa0] sm:$0xff] }
 0x245   : > { %v10031_v27 = vpop.permute.xlu1 %1493  ;;  %5002 = vmatmul.mubr.f32.gmra.mrb[50].mxu0 %v1211_v23  ;;  %v10033_v49 = vpop.permute.xlu0 %1497  ;;  %v14446_v23 = vld [vmem:[#allocation86_spill] sm:$0xff] }
 0x246   : > { %5006 = vmatprep.mubr.f32.mxu0 %v1702_v20  ;;  %v1213_v21 = vmul.f32 %v14446_v23, %v497_v38  ;;  %v7807_v20 = vld [vmem:[%s8936_s17 + $0xb0] sm:$0xff]  ;;  %v7808_v38 = vld [vmem:[%s8936_s17 + $0xa8] sm:$0xff]  ;;  %v7809_v23 = vld [vmem:[%s8936_s17 + $0xc0] sm:$0xff] }
 0x247   : > { %1843 = vperm.xlu1 %7702, %v7804_v25   ;;  %1855 = vperm.xlu0 %7703, %v7805_v51   ;;  %v14448_v25 = vld [vmem:[#allocation91_spill] sm:$0xff] }
 0x248   : > { %v1214_v51 = vmul.f32 %v14448_v25, %v498_v16  ;;  %v7811_v16 = vld [vmem:[%s8936_s17 + $0xd0] sm:$0xff] }
 0x249   : > { %v10039_v53 = vpop.permute.xlu1 %1501  ;;  %5007 = vmatmul.mubr.f32.gmra.mrb[52].mxu0 %v1212_v46  ;;  %v10041_v22 = vpop.permute.xlu0 %1505 }
 0x24a   : > { %5011 = vmatprep.mubr.f32.mxu0 %v1703_v34  ;;  %v499_v34 = vld [vmem:[%s8931_s21 + $0xe8] sm:$0xff] }
 0x24b   : > { %1851 = vperm.xlu1 %7702, %v7806_v42   ;;  %1863 = vperm.xlu0 %7703, %v7807_v20   ;;  %v1705_v42 = vmul.f32 %v9924_v41, %v499_v34  ;;  %v14449_v20 = vld [vmem:[#allocation90_spill] sm:$0xff] }
 0x24d   : > { %v10048_v58 = vpop.permute.xlu1 %1509  ;;  %5012 = vmatmul.mubr.f32.gmra.mrb[54].mxu0 %v1213_v21  ;;  %v10050_v46 = vpop.permute.xlu0 %1513 }
 0x24e   : > { %14447 = vst [vmem:[#allocation31_spill] sm:$0xff] %v10050_v46  ;;  %5016 = vmatprep.mubr.f32.mxu0 %v1704_v18  ;;  %v1215_v18 = vmul.f32 %v14449_v20, %v499_v34  ;;  %v500_v46 = vld [vmem:[%s8931_s21 + $0xf0] sm:$0xff]  ;;  %v7812_v34 = vld [vmem:[%s8936_s17 + $0xc8] sm:$0xff]  ;;  %v7813_v20 = vld [vmem:[%s8936_s17 + $0xe0] sm:$0xff] }
 0x24f   : > { %1859 = vperm.xlu1 %7702, %v7808_v38   ;;  %1871 = vperm.xlu0 %7703, %v7809_v23   ;;  %v1706_v25 = vmul.f32 %v9931_v30, %v500_v46  ;;  %v14452_v23 = vld [vmem:[#allocation95_spill] sm:$0xff] }
 0x251   : > { %v10057_v48 = vpop.permute.xlu1 %1517  ;;  %5017 = vmatmul.mubr.f32.gmra.mrb[56].mxu0 %v1214_v51  ;;  %v10059_v21 = vpop.permute.xlu0 %1521  ;;  %v501_v51 = vld [vmem:[%s8931_s21 + $0xf8] sm:$0xff] }
 0x252   : > { %5021 = vmatprep.mubr.f32.mxu0 %v1705_v42  ;;  %v1216_v42 = vmul.f32 %v14452_v23, %v500_v46  ;;  %v7815_v46 = vld [vmem:[%s8936_s17 + $0xf0] sm:$0xff] }
 0x253   : > { %1867 = vperm.xlu1 %7702, %v7810_v19   ;;  %1879 = vperm.xlu0 %7703, %v7811_v16   ;;  %v1707_v19 = vmul.f32 %v9933_v40, %v501_v51  ;;  %v14453_v16 = vld [vmem:[#allocation94_spill] sm:$0xff] }
 0x255   : > { %v10066_v38 = vpop.permute.xlu1 %1525  ;;  %5022 = vmatmul.mubr.f32.gmra.mrb[58].mxu0 %v1215_v18  ;;  %v10068_v41 = vpop.permute.xlu0 %1529 }
 0x256   : > { %14450 = vst [vmem:[#allocation30_spill] sm:$0xff] %v10066_v38  ;;  %14451 = vst [vmem:[#allocation33_spill] sm:$0xff] %v10068_v41  ;;  %5026 = vmatprep.mubr.f32.mxu0 %v1706_v25  ;;  %v1217_v25 = vmul.f32 %v14453_v16, %v501_v51  ;;  %v502_v41 = vld [vmem:[%s8931_s21 + $0x100] sm:$0xff]  ;;  %v7814_v38 = vld [vmem:[%s8936_s17 + $0xd8] sm:$0xff] }
 0x257   : > { %1875 = vperm.xlu1 %7702, %v7812_v34   ;;  %1887 = vperm.xlu0 %7703, %v7813_v20   ;;  %v1708_v23 = vmul.f32 %v9940_v43, %v502_v41  ;;  %v1218_v20 = vmul.f32 %v9638_v0, %v502_v41  ;;  %v7816_v51 = vld [vmem:[%s8936_s17 + $0xe8] sm:$0xff]  ;;  %v7819_v0 = vld [vmem:[%s8936_s17 + $0x110] sm:$0xff] }
 0x259   : > { %v10075_v30 = vpop.permute.xlu1 %1533  ;;  %5027 = vmatmul.mubr.f32.gmra.mrb[60].mxu0 %v1216_v42  ;;  %v10077_v18 = vpop.permute.xlu0 %1537  ;;  %v503_v42 = vld [vmem:[%s8931_s21 + $0x108] sm:$0xff] }
 0x25a   : > { %5031 = vmatprep.mubr.f32.mxu0 %v1707_v19  ;;  %v7817_v19 = vld [vmem:[%s8936_s17 + $0x100] sm:$0xff] }
 0x25b   : > { %1883 = vperm.xlu1 %7702, %v7814_v38   ;;  %1895 = vperm.xlu0 %7703, %v7815_v46   ;;  %v1709_v38 = vmul.f32 %v9942_v26, %v503_v42 }
 0x25d   : > { %v10084_v34 = vpop.permute.xlu1 %1541  ;;  %5032 = vmatmul.mubr.f32.gmra.mrb[62].mxu0 %v1217_v25  ;;  %v10086_v40 = vpop.permute.xlu0 %1545  ;;  %v14455_v25 = vld [vmem:[#allocation96_spill] sm:$0xff] }
 0x25e   : > { %14454 = vst [vmem:[#allocation32_spill] sm:$0xff] %v10086_v40  ;;  %5036 = vmatprep.mubr.f32.mxu0 %v1708_v23  ;;  %v1219_v46 = vmul.f32 %v14455_v25, %v503_v42  ;;  %v504_v23 = vld [vmem:[%s8931_s21 + $0x110] sm:$0xff]  ;;  %v7818_v40 = vld [vmem:[%s8936_s17 + $0xf8] sm:$0xff]  ;;  %v7820_v42 = vld [vmem:[%s8936_s17 + $0x108] sm:$0xff] }
 0x25f   : > { %1891 = vperm.xlu1 %7702, %v7816_v51   ;;  %1903 = vperm.xlu0 %7703, %v7817_v19   ;;  %v1710_v41 = vmul.f32 %v9949_v35, %v504_v23  ;;  %v1220_v19 = vmul.f32 %v9647_v59, %v504_v23  ;;  %v7823_v59 = vld [vmem:[%s8936_s17 + $0x130] sm:$0xff] }
 0x261   : > { %v10093_v43 = vpop.permute.xlu1 %1549  ;;  %5037 = vmatmul.mubr.f32.gmra.mrb[64].mxu0 %v1218_v20  ;;  %v10095_v16 = vpop.permute.xlu0 %1553  ;;  %v505_v20 = vld [vmem:[%s8931_s21 + $0x118] sm:$0xff] }
 0x262   : > { %5041 = vmatprep.mubr.f32.mxu0 %v1709_v38  ;;  %v7821_v38 = vld [vmem:[%s8936_s17 + $0x120] sm:$0xff] }
 0x263   : > { %1899 = vperm.xlu1 %7702, %v7818_v40   ;;  %1911 = vperm.xlu0 %7703, %v7819_v0   ;;  %v1711_v40 = vmul.f32 %v9951_v33, %v505_v20  ;;  %v506_v0 = vld [vmem:[%s8931_s21 + $0x120] sm:$0xff] }
 0x264   : > { %v1712_v23 = vmul.f32 %v9959_v45, %v506_v0 }
 0x265   : > { %v10102_v51 = vpop.permute.xlu1 %1557  ;;  %5042 = vmatmul.mubr.f32.gmra.mrb[66].mxu0 %v1219_v46  ;;  %v10104_v26 = vpop.permute.xlu0 %1561  ;;  %v1221_v46 = vmul.f32 %v9645_v3, %v505_v20  ;;  %v7824_v3 = vld [vmem:[%s8936_s17 + $0x128] sm:$0xff]  ;;  %v7825_v20 = vld [vmem:[%s8936_s17 + $0x140] sm:$0xff] }
 0x266   : > { %5046 = vmatprep.mubr.f32.mxu0 %v1710_v41  ;;  %v7822_v41 = vld [vmem:[%s8936_s17 + $0x118] sm:$0xff] }
 0x267   : > { %1907 = vperm.xlu1 %7702, %v7820_v42   ;;  %1919 = vperm.xlu0 %7703, %v7821_v38   ;;  %v1222_v38 = vmul.f32 %v9654_v57, %v506_v0  ;;  %v7827_v57 = vld [vmem:[%s8936_s17 + $0x150] sm:$0xff] }
 0x269   : > { %v10111_v35 = vpop.permute.xlu1 %1565  ;;  %5047 = vmatmul.mubr.f32.gmra.mrb[68].mxu0 %v1220_v19  ;;  %v10113_v25 = vpop.permute.xlu0 %1569  ;;  %v507_v19 = vld [vmem:[%s8931_s21 + $0x128] sm:$0xff] }
 0x26a   : > { %5051 = vmatprep.mubr.f32.mxu0 %v1711_v40  ;;  %v1713_v40 = vmul.f32 %v9961_v44, %v507_v19 }
 0x26b   : > { %1915 = vperm.xlu1 %7702, %v7822_v41   ;;  %1927 = vperm.xlu0 %7703, %v7823_v59   ;;  %v1223_v41 = vmul.f32 %v9652_v55, %v507_v19  ;;  %v508_v59 = vld [vmem:[%s8931_s21 + $0x130] sm:$0xff]  ;;  %v7828_v55 = vld [vmem:[%s8936_s17 + $0x148] sm:$0xff]  ;;  %v7829_v19 = vld [vmem:[%s8936_s17 + $0x160] sm:$0xff] }
 0x26c   : > { %v1714_v0 = vmul.f32 %v9967_v32, %v508_v59 }
 0x26d   : > { %v10120_v42 = vpop.permute.xlu1 %1573  ;;  %5052 = vmatmul.mubr.f32.gmra.mrb[70].mxu0 %v1221_v46  ;;  %v10122_v33 = vpop.permute.xlu0 %1577 }
 0x26e   : > { %5056 = vmatprep.mubr.f32.mxu0 %v1712_v23  ;;  %v7826_v23 = vld [vmem:[%s8936_s17 + $0x138] sm:$0xff] }
 0x26f   : > { %1923 = vperm.xlu1 %7702, %v7824_v3   ;;  %1935 = vperm.xlu0 %7703, %v7825_v20   ;;  %v1224_v20 = vmul.f32 %v9661_v56, %v508_v59  ;;  %v7831_v56 = vld [vmem:[%s8936_s17 + $0x170] sm:$0xff] }
 0x271   : > { %v10129_v45 = vpop.permute.xlu1 %1581  ;;  %5057 = vmatmul.mubr.f32.gmra.mrb[72].mxu0 %v1222_v38  ;;  %v10131_v46 = vpop.permute.xlu0 %1585  ;;  %v509_v38 = vld [vmem:[%s8931_s21 + $0x138] sm:$0xff] }
 0x272   : > { %5061 = vmatprep.mubr.f32.mxu0 %v1713_v40  ;;  %v1715_v40 = vmul.f32 %v9969_v28, %v509_v38 }
 0x273   : > { %1931 = vperm.xlu1 %7702, %v7826_v23   ;;  %1943 = vperm.xlu0 %7703, %v7827_v57   ;;  %v1225_v23 = vmul.f32 %v9659_v54, %v509_v38  ;;  %v510_v57 = vld [vmem:[%s8931_s21 + $0x140] sm:$0xff]  ;;  %v7832_v54 = vld [vmem:[%s8936_s17 + $0x168] sm:$0xff] }
 0x274   : > { %v1716_v59 = vmul.f32 %v9977_v50, %v510_v57  ;;  %v7833_v38 = vld [vmem:[%s8936_s17 + $0x180] sm:$0xff] }
 0x275   : > { %v10138_v3 = vpop.permute.xlu1 %1589  ;;  %5062 = vmatmul.mubr.f32.gmra.mrb[74].mxu0 %v1223_v41  ;;  %v10140_v44 = vpop.permute.xlu0 %1593 }
 0x276   : > { %5066 = vmatprep.mubr.f32.mxu0 %v1714_v0  ;;  %v7830_v0 = vld [vmem:[%s8936_s17 + $0x158] sm:$0xff] }
 0x277   : > { %1939 = vperm.xlu1 %7702, %v7828_v55   ;;  %1951 = vperm.xlu0 %7703, %v7829_v19   ;;  %v1226_v19 = vmul.f32 %v9667_v5, %v510_v57  ;;  %v7835_v5 = vld [vmem:[%s8936_s17 + $0x190] sm:$0xff] }
 0x279   : > { %v10147_v32 = vpop.permute.xlu1 %1597  ;;  %5067 = vmatmul.mubr.f32.gmra.mrb[76].mxu0 %v1224_v20  ;;  %v10149_v41 = vpop.permute.xlu0 %1601  ;;  %v511_v20 = vld [vmem:[%s8931_s21 + $0x148] sm:$0xff] }
 0x27a   : > { %5071 = vmatprep.mubr.f32.mxu0 %v1715_v40  ;;  %v1717_v40 = vmul.f32 %v9979_v29, %v511_v20 }
 0x27b   : > { %1947 = vperm.xlu1 %7702, %v7830_v0   ;;  %1959 = vperm.xlu0 %7703, %v7831_v56   ;;  %v1227_v0 = vmul.f32 %v9665_v2, %v511_v20  ;;  %v512_v56 = vld [vmem:[%s8931_s21 + $0x150] sm:$0xff]  ;;  %v7836_v2 = vld [vmem:[%s8936_s17 + $0x188] sm:$0xff]  ;;  %v7837_v20 = vld [vmem:[%s8936_s17 + $0x1a0] sm:$0xff] }
 0x27c   : > { %v1718_v57 = vmul.f32 %v9985_v39, %v512_v56 }
 0x27d   : > { %v10156_v55 = vpop.permute.xlu1 %1605  ;;  %5072 = vmatmul.mubr.f32.gmra.mrb[78].mxu0 %v1225_v23  ;;  %v10158_v28 = vpop.permute.xlu0 %1609 }
 0x27e   : > { %5076 = vmatprep.mubr.f32.mxu0 %v1716_v59  ;;  %v7834_v59 = vld [vmem:[%s8936_s17 + $0x178] sm:$0xff] }
 0x27f   : > { %1955 = vperm.xlu1 %7702, %v7832_v54   ;;  %1967 = vperm.xlu0 %7703, %v7833_v38   ;;  %v1228_v38 = vmul.f32 %v9673_v1, %v512_v56  ;;  %v7839_v1 = vld [vmem:[%s8936_s17 + $0x1b0] sm:$0xff] }
 0x281   : > { %v10165_v50 = vpop.permute.xlu1 %1613  ;;  %5077 = vmatmul.mubr.f32.gmra.mrb[80].mxu0 %v1226_v19  ;;  %v10167_v23 = vpop.permute.xlu0 %1617  ;;  %v513_v19 = vld [vmem:[%s8931_s21 + $0x158] sm:$0xff] }
 0x282   : > { %5081 = vmatprep.mubr.f32.mxu0 %v1717_v40  ;;  %v1719_v40 = vmul.f32 %v9987_v36, %v513_v19 }
 0x283   : > { %1963 = vperm.xlu1 %7702, %v7834_v59   ;;  %1975 = vperm.xlu0 %7703, %v7835_v5   ;;  %v1229_v59 = vmul.f32 %v9671_v52, %v513_v19  ;;  %v514_v5 = vld [vmem:[%s8931_s21 + $0x160] sm:$0xff]  ;;  %v7840_v52 = vld [vmem:[%s8936_s17 + $0x1a8] sm:$0xff] }
 0x284   : > { %v1720_v56 = vmul.f32 %v9995_v61, %v514_v5  ;;  %v7841_v19 = vld [vmem:[%s8936_s17 + $0x1c0] sm:$0xff] }
 0x285   : > { %v10174_v54 = vpop.permute.xlu1 %1621  ;;  %5082 = vmatmul.mubr.f32.gmra.mrb[82].mxu0 %v1227_v0  ;;  %v10176_v29 = vpop.permute.xlu0 %1625 }
 0x286   : > { %5086 = vmatprep.mubr.f32.mxu0 %v1718_v57  ;;  %v7838_v57 = vld [vmem:[%s8936_s17 + $0x198] sm:$0xff] }
 0x287   : > { %1971 = vperm.xlu1 %7702, %v7836_v2   ;;  %1983 = vperm.xlu0 %7703, %v7837_v20   ;;  %v1230_v20 = vmul.f32 %v9679_v7, %v514_v5  ;;  %v7843_v7 = vld [vmem:[%s8936_s17 + $0x1d0] sm:$0xff] }
 0x289   : > { %v10183_v39 = vpop.permute.xlu1 %1629  ;;  %5087 = vmatmul.mubr.f32.gmra.mrb[84].mxu0 %v1228_v38  ;;  %v10185_v0 = vpop.permute.xlu0 %1633  ;;  %v515_v38 = vld [vmem:[%s8931_s21 + $0x168] sm:$0xff] }
 0x28a   : > { %5091 = vmatprep.mubr.f32.mxu0 %v1719_v40  ;;  %v1721_v40 = vmul.f32 %v9997_v62, %v515_v38 }
 0x28b   : > { %1979 = vperm.xlu1 %7702, %v7838_v57   ;;  %1991 = vperm.xlu0 %7703, %v7839_v1   ;;  %v1231_v57 = vmul.f32 %v9677_v4, %v515_v38  ;;  %v516_v1 = vld [vmem:[%s8931_s21 + $0x170] sm:$0xff]  ;;  %v7844_v4 = vld [vmem:[%s8936_s17 + $0x1c8] sm:$0xff]  ;;  %v7845_v38 = vld [vmem:[%s8936_s17 + $0x1e0] sm:$0xff] }
 0x28c   : > { %v1722_v5 = vmul.f32 %v10003_v37, %v516_v1 }
 0x28d   : > { %v10192_v2 = vpop.permute.xlu1 %1637  ;;  %5092 = vmatmul.mubr.f32.gmra.mrb[86].mxu0 %v1229_v59  ;;  %v10194_v36 = vpop.permute.xlu0 %1641 }
 0x28e   : > { %5096 = vmatprep.mubr.f32.mxu0 %v1720_v56  ;;  %v7842_v56 = vld [vmem:[%s8936_s17 + $0x1b8] sm:$0xff] }
 0x28f   : > { %1987 = vperm.xlu1 %7702, %v7840_v52   ;;  %1999 = vperm.xlu0 %7703, %v7841_v19   ;;  %v1232_v19 = vmul.f32 %v9685_v9, %v516_v1  ;;  %v7847_v9 = vld [vmem:[%s8936_s17 + $0x1f0] sm:$0xff] }
 0x291   : > { %v10201_v61 = vpop.permute.xlu1 %1645  ;;  %5097 = vmatmul.mubr.f32.gmra.mrb[88].mxu0 %v1230_v20  ;;  %v10203_v59 = vpop.permute.xlu0 %1649  ;;  %v517_v20 = vld [vmem:[%s8931_s21 + $0x178] sm:$0xff] }
 0x292   : > { %5101 = vmatprep.mubr.f32.mxu0 %v1721_v40  ;;  %v1723_v40 = vmul.f32 %v10005_v31, %v517_v20 }
 0x293   : > { %1995 = vperm.xlu1 %7702, %v7842_v56   ;;  %2007 = vperm.xlu0 %7703, %v7843_v7   ;;  %v1233_v56 = vmul.f32 %v9683_v6, %v517_v20  ;;  %v518_v7 = vld [vmem:[%s8931_s21 + $0x180] sm:$0xff]  ;;  %v7848_v6 = vld [vmem:[%s8936_s17 + $0x1e8] sm:$0xff] }
 0x294   : > { %v1724_v1 = vmul.f32 %v10013_v60, %v518_v7  ;;  %v7849_v20 = vld [vmem:[%s8936_s17 + $0x200] sm:$0xff] }
 0x295   : > { %v10210_v52 = vpop.permute.xlu1 %1653  ;;  %5102 = vmatmul.mubr.f32.gmra.mrb[90].mxu0 %v1231_v57  ;;  %v10212_v62 = vpop.permute.xlu0 %1657 }
 0x296   : > { %5106 = vmatprep.mubr.f32.mxu0 %v1722_v5  ;;  %v7846_v5 = vld [vmem:[%s8936_s17 + $0x1d8] sm:$0xff] }
 0x297   : > { %2003 = vperm.xlu1 %7702, %v7844_v4   ;;  %2015 = vperm.xlu0 %7703, %v7845_v38   ;;  %v1234_v38 = vmul.f32 %v9691_v11, %v518_v7  ;;  %v7850_v11 = vld [vmem:[%s8936_s17 + $0x1f8] sm:$0xff]  ;;  %v7851_v7 = vld [vmem:[%s8936_s17 + $0x210] sm:$0xff] }
 0x299   : > { %v10219_v37 = vpop.permute.xlu1 %1661  ;;  %5107 = vmatmul.mubr.f32.gmra.mrb[92].mxu0 %v1232_v19  ;;  %v10221_v57 = vpop.permute.xlu0 %1665  ;;  %v519_v19 = vld [vmem:[%s8931_s21 + $0x188] sm:$0xff] }
 0x29a   : > { %5111 = vmatprep.mubr.f32.mxu0 %v1723_v40  ;;  %v1725_v40 = vmul.f32 %v10015_v47, %v519_v19 }
 0x29b   : > { %2011 = vperm.xlu1 %7702, %v7846_v5   ;;  %2023 = vperm.xlu0 %7703, %v7847_v9   ;;  %v1235_v5 = vmul.f32 %v9689_v8, %v519_v19  ;;  %v520_v9 = vld [vmem:[%s8931_s21 + $0x190] sm:$0xff]  ;;  %v7852_v19 = vld [vmem:[%s8936_s17 + $0x208] sm:$0xff] }
 0x29c   : > { %v1726_v47 = vmul.f32 %v10021_v63, %v520_v9  ;;  %v1236_v8 = vmul.f32 %v9697_v13, %v520_v9  ;;  %v602_v13 = vld [vmem:[%s8915_s7 + $0x110] sm:$0xff]  ;;  %v603_v9 = vld [vmem:[%s8915_s7 + $0x118] sm:$0xff] }
 0x29d   : > { %v10228_v4 = vpop.permute.xlu1 %1669  ;;  %5112 = vmatmul.mubr.f32.gmra.mrb[94].mxu0 %v1233_v56  ;;  %v10230_v31 = vpop.permute.xlu0 %1673 }
 0x29e   : > { %5116 = vmatprep.mubr.f32.mxu0 %v1724_v1 }
 0x29f   : > { %2019 = vperm.xlu1 %7702, %v7848_v6   ;;  %2031 = vperm.xlu0 %7703, %v7849_v20   ;;  %v600_v6 = vld [vmem:[%s8915_s7 + $0x100] sm:$0xff]  ;;  %v601_v20 = vld [vmem:[%s8915_s7 + $0x108] sm:$0xff] }
 0x2a0   : > { %v7429_v63 = vpack.c.bf16 %v601_v20, %v600_v6  ;;  %v7854_v6 = vld [vmem:[%s8936_s17 + $0x218] sm:$0xff]  ;;  %v7432_v20 = vpack.c.bf16 %v603_v9, %v602_v13  ;;  %v7856_v13 = vld [vmem:[%s8936_s17 + $0x228] sm:$0xff] }
 0x2a1   : > { %5117 = vmatmul.mubr.f32.gmra.mrb[96].mxu0 %v1234_v38 }
 0x2a2   : > { %v10237_v60 = vpop.permute.xlu1 %1775  ;;  %5121 = vmatprep.mubr.f32.mxu0 %v1725_v40  ;;  %v10239_v56 = vpop.permute.xlu0 %1779  ;;  %v521_v40 = vld [vmem:[%s8931_s21 + $0x198] sm:$0xff]  ;;  %7430 = vmatpush1.bf16.msra.mxu1 %v7429_v63 }
 0x2a3   : > { %2027 = vperm.xlu1 %7702, %v7850_v11   ;;  %2039 = vperm.xlu0 %7703, %v7851_v7   ;;  %v7853_v11 = vld [vmem:[%s8936_s17 + $0x220] sm:$0xff] }
 0x2a5   : > { %5122 = vmatmul.mubr.f32.gmra.mrb[98].mxu0 %v1235_v5  ;;  %v1727_v5 = vmul.f32 %v10023_v24, %v521_v40  ;;  %v7855_v24 = vld [vmem:[%s8936_s17 + $0x230] sm:$0xff] }
 0x2a6   : > { %v10246_v1 = vpop.permute.xlu1 %1783  ;;  %5126 = vmatprep.mubr.f32.mxu0 %v1726_v47  ;;  %v10248_v38 = vpop.permute.xlu0 %1791 }
 0x2a7   : > { %14456 = vst [vmem:[#allocation35_spill] sm:$0xff] %v10248_v38  ;;  %2035 = vperm.xlu1 %7702, %v7852_v19   ;;  %2047 = vperm.xlu0 %7703, %v7853_v11   ;;  %v14458_v38 = vmov 0.0|0.0   ;;  %v1237_v19 = vmul.f32 %v9695_v10, %v521_v40  ;;  %v522_v11 = vld [vmem:[%s8931_s21 + $0x1a0] sm:$0xff]  ;;  %v605_v40 = vld [vmem:[%s8915_s7 + $0x128] sm:$0xff] }
 0x2a8   : > { %7431 = vmatprep.subr.bf16.mxu1 %v14458_v38  ;;  %v604_v10 = vld [vmem:[%s8915_s7 + $0x120] sm:$0xff] }
 0x2a9   : > { %5127 = vmatmul.mubr.f32.gmra.mrb[100].mxu0 %v1236_v8  ;;  %v1728_v8 = vmul.f32 %v10031_v27, %v522_v11  ;;  %7433 = vmatpush1.bf16.msra.mxu1 %v7432_v20  ;;  %v7857_v27 = vld [vmem:[%s8936_s17 + $0x240] sm:$0xff]  ;;  %v7435_v9 = vpack.c.bf16 %v605_v40, %v604_v10 }
 0x2aa   : > { %v10257_v7 = vpop.permute.xlu1 %1787  ;;  %5131 = vmatprep.mubr.f32.mxu0 %v1727_v5  ;;  %v10259_v47 = vpop.permute.xlu0 %1799  ;;  %7434 = vmatprep.subr.bf16.mxu1 %v14458_v38 }
 0x2ab   : > { %14457 = vst [vmem:[#allocation37_spill] sm:$0xff] %v10259_v47  ;;  %2043 = vperm.xlu1 %7702, %v7854_v6   ;;  %2055 = vperm.xlu0 %7703, %v7855_v24   ;;  %v523_v6 = vld [vmem:[%s8931_s21 + $0x1a8] sm:$0xff]  ;;  %v1238_v47 = vmul.f32 %v9703_v15, %v522_v11  ;;  %v606_v15 = vld [vmem:[%s8915_s7 + $0x130] sm:$0xff]  ;;  %v607_v11 = vld [vmem:[%s8915_s7 + $0x138] sm:$0xff] }
 0x2ad   : > { %5132 = vmatmul.mubr.f32.gmra.mrb[102].mxu0 %v1237_v19  ;;  %v1729_v19 = vmul.f32 %v10033_v49, %v523_v6  ;;  %7436 = vmatpush1.bf16.msra.mxu1 %v7435_v9  ;;  %v7859_v49 = vld [vmem:[%s8936_s17 + $0x250] sm:$0xff] }
 0x2ae   : > { %v10269_v63 = vpop.permute.xlu1 %1795  ;;  %5136 = vmatprep.mubr.f32.mxu0 %v1728_v8  ;;  %v10271_v5 = vpop.permute.xlu0 %1807  ;;  %7437 = vmatprep.subr.bf16.mxu1 %v14458_v38  ;;  %v1239_v8 = vmul.f32 %v9701_v12, %v523_v6  ;;  %v608_v6 = vld [vmem:[%s8915_s7 + $0x140] sm:$0xff] }
 0x2af   : > { %2051 = vperm.xlu1 %7702, %v7856_v13   ;;  %2063 = vperm.xlu0 %7703, %v7857_v27   ;;  %v524_v13 = vld [vmem:[%s8931_s21 + $0x1b0] sm:$0xff]  ;;  %v7858_v27 = vld [vmem:[%s8936_s17 + $0x238] sm:$0xff] }
 0x2b0   : > { %v1730_v10 = vmul.f32 %v10039_v53, %v524_v13  ;;  %v7860_v53 = vld [vmem:[%s8936_s17 + $0x248] sm:$0xff] }
 0x2b1   : > { %5137 = vmatmul.mubr.f32.gmra.mrb[104].mxu0 %v1238_v47  ;;  %v7438_v47 = vpack.c.bf16 %v607_v11, %v606_v15  ;;  %v1240_v15 = vmul.f32 %v9709_v17, %v524_v13  ;;  %v7861_v11 = vld [vmem:[%s8936_s17 + $0x260] sm:$0xff]  ;;  %v610_v13 = vld [vmem:[%s8915_s7 + $0x150] sm:$0xff] }
 0x2b2   : > { %v10281_v24 = vpop.permute.xlu1 %1803  ;;  %5141 = vmatprep.mubr.f32.mxu0 %v1729_v19  ;;  %v10283_v20 = vpop.permute.xlu0 %1815 }
 0x2b3   : > { %14459 = vst [vmem:[#allocation36_spill] sm:$0xff] %v10283_v20  ;;  %2059 = vperm.xlu1 %7702, %v7858_v27   ;;  %2071 = vperm.xlu0 %7703, %v7859_v49   ;;  %v609_v27 = vld [vmem:[%s8915_s7 + $0x148] sm:$0xff]  ;;  %v525_v20 = vld [vmem:[%s8931_s21 + $0x1b8] sm:$0xff] }
 0x2b4   : > { %v10293_v40 = vpop.f32.mrb[0].mxu0  ;;  %7439 = vmatpush1.bf16.msra.mxu1 %v7438_v47  ;;  %v1731_v49 = vmul.f32 %v10041_v22, %v525_v20  ;;  %v7862_v22 = vld [vmem:[%s8936_s17 + $0x258] sm:$0xff] }
 0x2b5   : > { %14460 = vst [vmem:[#allocation39_spill] sm:$0xff] %v10293_v40  ;;  %v4880_v9 = vpop.f32.mrb[1].mxu0  ;;  %5142 = vmatmul.mubr.f32.gmra.mrb[106].mxu0 %v1239_v8  ;;  %7440 = vmatprep.subr.bf16.mxu1 %v14458_v38  ;;  %v7441_v8 = vpack.c.bf16 %v609_v27, %v608_v6  ;;  %v526_v6 = vld [vmem:[%s8931_s21 + $0x1c0] sm:$0xff]  ;;  %v7863_v27 = vld [vmem:[%s8936_s17 + $0x270] sm:$0xff]  ;;  %v527_v40 = vld [vmem:[%s8931_s21 + $0x1c8] sm:$0xff] }
 0x2b6   : > { %v10295_v19 = vpop.permute.xlu1 %1811  ;;  %5146 = vmatprep.mubr.f32.mxu0 %v1730_v10  ;;  %v10297_v12 = vpop.permute.xlu0 %1823 }
 0x2b7   : > { %2067 = vperm.xlu1 %7702, %v7860_v53   ;;  %2079 = vperm.xlu0 %7703, %v7861_v11   ;;  %v611_v53 = vld [vmem:[%s8915_s7 + $0x158] sm:$0xff]  ;;  %v1241_v11 = vmul.f32 %v9707_v14, %v525_v20  ;;  %v612_v20 = vld [vmem:[%s8915_s7 + $0x160] sm:$0xff] }
 0x2b8   : > { %v10307_v47 = vpop.f32.mrb[2].mxu0  ;;  %7442 = vmatpush1.bf16.msra.mxu1 %v7441_v8  ;;  %v1732_v8 = vmul.f32 %v10048_v58, %v526_v6  ;;  %v7864_v58 = vld [vmem:[%s8936_s17 + $0x268] sm:$0xff] }
 0x2b9   : > { %14461 = vst [vmem:[#allocation41_spill] sm:$0xff] %v10307_v47  ;;  %v4885_v10 = vpop.f32.mrb[3].mxu0  ;;  %5147 = vmatmul.mubr.f32.gmra.mrb[108].mxu0 %v1240_v15  ;;  %7443 = vmatprep.subr.bf16.mxu1 %v14458_v38  ;;  %v7444_v15 = vpack.c.bf16 %v611_v53, %v610_v13  ;;  %v7865_v53 = vld [vmem:[%s8936_s17 + $0x280] sm:$0xff] }
 0x2ba   : > { %v10309_v9 = vpop.permute.xlu1 %1819  ;;  %5151 = vmatprep.mubr.f32.mxu0 %v1731_v49  ;;  %v10311_v17 = vpop.permute.xlu0 %1831 }
 0x2bb   : > { %14462 = vst [vmem:[#allocation40_spill] sm:$0xff] %v10311_v17  ;;  %2075 = vperm.xlu1 %7702, %v7862_v22   ;;  %2087 = vperm.xlu0 %7703, %v7863_v27   ;;  %v613_v22 = vld [vmem:[%s8915_s7 + $0x168] sm:$0xff]  ;;  %v14465_v27 = vld [vmem:[#allocation98_spill] sm:$0xff]  ;;  %v14469_v17 = vld [vmem:[#allocation97_spill] sm:$0xff] }
 0x2bc   : > { %v10321_v49 = vpop.f32.mrb[4].mxu0  ;;  %7445 = vmatpush1.bf16.msra.mxu1 %v7444_v15  ;;  %v1242_v13 = vmul.f32 %v14465_v27, %v526_v6  ;;  %v14466_v15 = vld [vmem:[#allocation31_spill] sm:$0xff]  ;;  %v614_v27 = vld [vmem:[%s8915_s7 + $0x170] sm:$0xff] }
 0x2bd   : > { %14463 = vst [vmem:[#allocation34_spill] sm:$0xff] %v10321_v49  ;;  %v4890_v10 = vpop.f32.mrb[5].mxu0  ;;  %5152 = vmatmul.mubr.f32.gmra.mrb[110].mxu0 %v1241_v11  ;;  %7446 = vmatprep.subr.bf16.mxu1 %v14458_v38  ;;  %v7447_v11 = vpack.c.bf16 %v613_v22, %v612_v20  ;;  %v528_v20 = vld [vmem:[%s8931_s21 + $0x1d0] sm:$0xff]  ;;  %v7866_v22 = vld [vmem:[%s8936_s17 + $0x278] sm:$0xff] }
 0x2be   : > { %v10323_v47 = vpop.permute.xlu1 %1827  ;;  %5156 = vmatprep.mubr.f32.mxu0 %v1732_v8  ;;  %v10325_v14 = vpop.permute.xlu0 %1839  ;;  %v1733_v8 = vmul.f32 %v14466_v15, %v527_v40 }
 0x2bf   : > { %14464 = vst [vmem:[#allocation45_spill] sm:$0xff] %v10325_v14  ;;  %2083 = vperm.xlu1 %7702, %v7864_v58   ;;  %2095 = vperm.xlu0 %7703, %v7865_v53   ;;  %v615_v58 = vld [vmem:[%s8915_s7 + $0x178] sm:$0xff]  ;;  %v1243_v53 = vmul.f32 %v14469_v17, %v527_v40  ;;  %v616_v17 = vld [vmem:[%s8915_s7 + $0x180] sm:$0xff] }
 0x2c0   : > { %v10335_v10 = vpop.f32.mrb[6].mxu0  ;;  %7448 = vmatpush1.bf16.msra.mxu1 %v7447_v11  ;;  %v1734_v11 = vmul.f32 %v10057_v48, %v528_v20  ;;  %v7868_v48 = vld [vmem:[%s8936_s17 + $0x288] sm:$0xff] }
 0x2c1   : > { %14467 = vst [vmem:[#allocation44_spill] sm:$0xff] %v10335_v10  ;;  %v4895_v49 = vpop.f32.mrb[7].mxu0  ;;  %5157 = vmatmul.mubr.f32.gmra.mrb[112].mxu0 %v1242_v13  ;;  %7449 = vmatprep.subr.bf16.mxu1 %v14458_v38  ;;  %v7450_v13 = vpack.c.bf16 %v615_v58, %v614_v27  ;;  %v7869_v58 = vld [vmem:[%s8936_s17 + $0x2a0] sm:$0xff] }
 0x2c2   : > { %v10337_v14 = vpop.permute.xlu1 %1835  ;;  %5161 = vmatprep.mubr.f32.mxu0 %v1733_v8  ;;  %v10339_v6 = vpop.permute.xlu0 %1847  ;;  %v7867_v49 = vld [vmem:[%s8936_s17 + $0x290] sm:$0xff] }
 0x2c3   : > { %14468 = vst [vmem:[#allocation38_spill] sm:$0xff] %v10339_v6  ;;  %2091 = vperm.xlu1 %7702, %v7866_v22   ;;  %2103 = vperm.xlu0 %7703, %v7867_v49   ;;  %v617_v22 = vld [vmem:[%s8915_s7 + $0x188] sm:$0xff]  ;;  %v529_v6 = vld [vmem:[%s8931_s21 + $0x1d8] sm:$0xff] }
 0x2c4   : > { %v10349_v15 = vpop.f32.mrb[8].mxu0  ;;  %7451 = vmatpush1.bf16.msra.mxu1 %v7450_v13  ;;  %v14472_v49 = vld [vmem:[#allocation100_spill] sm:$0xff]  ;;  %v1735_v13 = vmul.f32 %v10059_v21, %v529_v6  ;;  %v7870_v21 = vld [vmem:[%s8936_s17 + $0x298] sm:$0xff] }
 0x2c5   : > { %14470 = vst [vmem:[#allocation49_spill] sm:$0xff] %v10349_v15  ;;  %v4900_v8 = vpop.f32.mrb[9].mxu0  ;;  %5162 = vmatmul.mubr.f32.gmra.mrb[114].mxu0 %v1243_v53  ;;  %7452 = vmatprep.subr.bf16.mxu1 %v14458_v38  ;;  %v1244_v27 = vmul.f32 %v14472_v49, %v528_v20  ;;  %v7453_v53 = vpack.c.bf16 %v617_v22, %v616_v17  ;;  %v618_v49 = vld [vmem:[%s8915_s7 + $0x190] sm:$0xff]  ;;  %v530_v17 = vld [vmem:[%s8931_s21 + $0x1e0] sm:$0xff] }
 0x2c6   : > { %v10351_v10 = vpop.permute.xlu1 %1843  ;;  %5166 = vmatprep.mubr.f32.mxu0 %v1734_v11  ;;  %v10353_v40 = vpop.permute.xlu0 %1855  ;;  %v7871_v22 = vld [vmem:[%s8936_s17 + $0x2b0] sm:$0xff] }
 0x2c7   : > { %14471 = vst [vmem:[#allocation48_spill] sm:$0xff] %v10353_v40  ;;  %2099 = vperm.xlu1 %7702, %v7868_v48   ;;  %2111 = vperm.xlu0 %7703, %v7869_v58   ;;  %v619_v48 = vld [vmem:[%s8915_s7 + $0x198] sm:$0xff]  ;;  %v14476_v40 = vld [vmem:[#allocation99_spill] sm:$0xff] }
 0x2c8   : > { %v10363_v11 = vpop.f32.mrb[10].mxu0  ;;  %7454 = vmatpush1.bf16.msra.mxu1 %v7453_v53  ;;  %v1245_v58 = vmul.f32 %v14476_v40, %v529_v6  ;;  %v14477_v53 = vld [vmem:[#allocation30_spill] sm:$0xff]  ;;  %v620_v40 = vld [vmem:[%s8915_s7 + $0x1a0] sm:$0xff] }
 0x2c9   : > { %14473 = vst [vmem:[#allocation43_spill] sm:$0xff] %v10363_v11  ;;  %v4905_v8 = vpop.f32.mrb[11].mxu0  ;;  %5167 = vmatmul.mubr.f32.gmra.mrb[116].mxu0 %v1244_v27  ;;  %7455 = vmatprep.subr.bf16.mxu1 %v14458_v38  ;;  %v7456_v27 = vpack.c.bf16 %v619_v48, %v618_v49  ;;  %v7872_v48 = vld [vmem:[%s8936_s17 + $0x2a8] sm:$0xff] }
 0x2ca   : > { %v10365_v15 = vpop.permute.xlu1 %1851  ;;  %5171 = vmatprep.mubr.f32.mxu0 %v1735_v13  ;;  %v10367_v20 = vpop.permute.xlu0 %1863  ;;  %v1736_v13 = vmul.f32 %v14477_v53, %v530_v17 }
 0x2cb   : > { %14474 = vst [vmem:[#allocation53_spill] sm:$0xff] %v10365_v15  ;;  %14475 = vst [vmem:[#allocation52_spill] sm:$0xff] %v10367_v20  ;;  %2107 = vperm.xlu1 %7702, %v7870_v21   ;;  %2119 = vperm.xlu0 %7703, %v7871_v22   ;;  %v621_v21 = vld [vmem:[%s8915_s7 + $0x1a8] sm:$0xff]  ;;  %v14481_v22 = vld [vmem:[#allocation102_spill] sm:$0xff] }
 0x2cc   : > { %v10377_v8 = vpop.f32.mrb[12].mxu0  ;;  %7457 = vmatpush1.bf16.msra.mxu1 %v7456_v27  ;;  %v531_v15 = vld [vmem:[%s8931_s21 + $0x1e8] sm:$0xff]  ;;  %v1246_v49 = vmul.f32 %v14481_v22, %v530_v17  ;;  %v14482_v27 = vld [vmem:[#allocation33_spill] sm:$0xff] }
 0x2cd   : > { %14478 = vst [vmem:[#allocation42_spill] sm:$0xff] %v10377_v8  ;;  %v4910_v11 = vpop.f32.mrb[13].mxu0  ;;  %5172 = vmatmul.mubr.f32.gmra.mrb[118].mxu0 %v1245_v58  ;;  %7458 = vmatprep.subr.bf16.mxu1 %v14458_v38  ;;  %v7459_v58 = vpack.c.bf16 %v621_v21, %v620_v40  ;;  %v1737_v53 = vmul.f32 %v14482_v27, %v531_v15  ;;  %v622_v22 = vld [vmem:[%s8915_s7 + $0x1b0] sm:$0xff]  ;;  %v7874_v21 = vld [vmem:[%s8936_s17 + $0x2b8] sm:$0xff] }
 0x2ce   : > { %v10379_v20 = vpop.permute.xlu1 %1859  ;;  %5176 = vmatprep.mubr.f32.mxu0 %v1736_v13  ;;  %v10381_v6 = vpop.permute.xlu0 %1871  ;;  %v7873_v11 = vld [vmem:[%s8936_s17 + $0x2c0] sm:$0xff]  ;;  %v532_v40 = vld [vmem:[%s8931_s21 + $0x1f0] sm:$0xff] }
 0x2cf   : > { %14479 = vst [vmem:[#allocation57_spill] sm:$0xff] %v10379_v20  ;;  %14480 = vst [vmem:[#allocation56_spill] sm:$0xff] %v10381_v6  ;;  %2115 = vperm.xlu1 %7702, %v7872_v48   ;;  %2127 = vperm.xlu0 %7703, %v7873_v11   ;;  %v623_v48 = vld [vmem:[%s8915_s7 + $0x1b8] sm:$0xff]  ;;  %v14485_v20 = vld [vmem:[#allocation101_spill] sm:$0xff] }
 0x2d0   : > { %v10391_v13 = vpop.f32.mrb[14].mxu0  ;;  %7460 = vmatpush1.bf16.msra.mxu1 %v7459_v58  ;;  %v1247_v11 = vmul.f32 %v14485_v20, %v531_v15  ;;  %v1738_v58 = vmul.f32 %v10075_v30, %v532_v40  ;;  %v624_v20 = vld [vmem:[%s8915_s7 + $0x1c0] sm:$0xff]  ;;  %v7876_v30 = vld [vmem:[%s8936_s17 + $0x2c8] sm:$0xff] }
 0x2d1   : > { %14483 = vst [vmem:[#allocation47_spill] sm:$0xff] %v10391_v13  ;;  %v4915_v8 = vpop.f32.mrb[15].mxu0  ;;  %5177 = vmatmul.mubr.f32.gmra.mrb[120].mxu0 %v1246_v49  ;;  %7461 = vmatprep.subr.bf16.mxu1 %v14458_v38  ;;  %v7462_v49 = vpack.c.bf16 %v623_v48, %v622_v22  ;;  %v7877_v48 = vld [vmem:[%s8936_s17 + $0x2e0] sm:$0xff] }
 0x2d2   : > { %v10393_v6 = vpop.permute.xlu1 %1867  ;;  %5181 = vmatprep.mubr.f32.mxu0 %v1737_v53  ;;  %v10395_v17 = vpop.permute.xlu0 %1879  ;;  %v7875_v8 = vld [vmem:[%s8936_s17 + $0x2d0] sm:$0xff] }
 0x2d3   : > { %14484 = vst [vmem:[#allocation61_spill] sm:$0xff] %v10395_v17  ;;  %2123 = vperm.xlu1 %7702, %v7874_v21   ;;  %2135 = vperm.xlu0 %7703, %v7875_v8   ;;  %v625_v21 = vld [vmem:[%s8915_s7 + $0x1c8] sm:$0xff]  ;;  %v533_v17 = vld [vmem:[%s8931_s21 + $0x1f8] sm:$0xff] }
 0x2d4   : > { %v10405_v27 = vpop.f32.mrb[16].mxu0  ;;  %7463 = vmatpush1.bf16.msra.mxu1 %v7462_v49  ;;  %v14488_v8 = vld [vmem:[#allocation104_spill] sm:$0xff]  ;;  %v1739_v49 = vmul.f32 %v10077_v18, %v533_v17  ;;  %v7878_v18 = vld [vmem:[%s8936_s17 + $0x2d8] sm:$0xff] }
 0x2d5   : > { %14486 = vst [vmem:[#allocation60_spill] sm:$0xff] %v10405_v27  ;;  %v4920_v53 = vpop.f32.mrb[17].mxu0  ;;  %5182 = vmatmul.mubr.f32.gmra.mrb[122].mxu0 %v1247_v11  ;;  %7464 = vmatprep.subr.bf16.mxu1 %v14458_v38  ;;  %v1248_v22 = vmul.f32 %v14488_v8, %v532_v40  ;;  %v7465_v11 = vpack.c.bf16 %v625_v21, %v624_v20  ;;  %v626_v8 = vld [vmem:[%s8915_s7 + $0x1d0] sm:$0xff]  ;;  %v534_v20 = vld [vmem:[%s8931_s21 + $0x200] sm:$0xff] }
 0x2d6   : > { %v10407_v13 = vpop.permute.xlu1 %1875  ;;  %5186 = vmatprep.mubr.f32.mxu0 %v1738_v58  ;;  %v10409_v15 = vpop.permute.xlu0 %1887  ;;  %v7879_v21 = vld [vmem:[%s8936_s17 + $0x2f0] sm:$0xff] }
 0x2d7   : > { %14487 = vst [vmem:[#allocation46_spill] sm:$0xff] %v10409_v15  ;;  %2131 = vperm.xlu1 %7702, %v7876_v30   ;;  %2143 = vperm.xlu0 %7703, %v7877_v48   ;;  %v627_v30 = vld [vmem:[%s8915_s7 + $0x1d8] sm:$0xff]  ;;  %v14491_v15 = vld [vmem:[#allocation103_spill] sm:$0xff] }
 0x2d8   : > { %v10419_v58 = vpop.f32.mrb[18].mxu0  ;;  %7466 = vmatpush1.bf16.msra.mxu1 %v7465_v11  ;;  %v1249_v48 = vmul.f32 %v14491_v15, %v533_v17  ;;  %v1740_v11 = vmul.f32 %v10084_v34, %v534_v20  ;;  %v628_v15 = vld [vmem:[%s8915_s7 + $0x1e0] sm:$0xff]  ;;  %v7880_v34 = vld [vmem:[%s8936_s17 + $0x2e8] sm:$0xff] }
 0x2d9   : > { %14489 = vst [vmem:[#allocation65_spill] sm:$0xff] %v10419_v58  ;;  %v4925_v53 = vpop.f32.mrb[19].mxu0  ;;  %5187 = vmatmul.mubr.f32.gmra.mrb[124].mxu0 %v1248_v22  ;;  %7467 = vmatprep.subr.bf16.mxu1 %v14458_v38  ;;  %v7468_v22 = vpack.c.bf16 %v627_v30, %v626_v8  ;;  %v7881_v30 = vld [vmem:[%s8936_s17 + $0x300] sm:$0xff] }
 0x2da   : > { %v10421_v27 = vpop.permute.xlu1 %1883  ;;  %5191 = vmatprep.mubr.f32.mxu0 %v1739_v49  ;;  %v10423_v40 = vpop.permute.xlu0 %1895 }
 0x2db   : > { %14490 = vst [vmem:[#allocation64_spill] sm:$0xff] %v10423_v40  ;;  %2139 = vperm.xlu1 %7702, %v7878_v18   ;;  %2151 = vperm.xlu0 %7703, %v7879_v21   ;;  %v629_v18 = vld [vmem:[%s8915_s7 + $0x1e8] sm:$0xff]  ;;  %v14495_v21 = vld [vmem:[#allocation106_spill] sm:$0xff] }
 0x2dc   : > { %v10433_v49 = vpop.f32.mrb[20].mxu0  ;;  %7469 = vmatpush1.bf16.msra.mxu1 %v7468_v22  ;;  %v535_v40 = vld [vmem:[%s8931_s21 + $0x208] sm:$0xff]  ;;  %v1250_v8 = vmul.f32 %v14495_v21, %v534_v20  ;;  %v630_v21 = vld [vmem:[%s8915_s7 + $0x1f0] sm:$0xff] }
 0x2dd   : > { %14492 = vst [vmem:[#allocation51_spill] sm:$0xff] %v10433_v49  ;;  %v4930_v53 = vpop.f32.mrb[21].mxu0  ;;  %5192 = vmatmul.mubr.f32.gmra.mrb[126].mxu0 %v1249_v48  ;;  %7470 = vmatprep.subr.bf16.mxu1 %v14458_v38  ;;  %v7471_v48 = vpack.c.bf16 %v629_v18, %v628_v15  ;;  %v14496_v22 = vld [vmem:[#allocation32_spill] sm:$0xff]  ;;  %v536_v15 = vld [vmem:[%s8931_s21 + $0x210] sm:$0xff]  ;;  %v10459_v18 = vld [vmem:[%s8936_s17 + $0x2f8] sm:$0xff] }
 0x2de   : > { %v10435_v58 = vpop.permute.xlu1 %1891  ;;  %5196 = vmatprep.mubr.f32.mxu0 %v1740_v11  ;;  %v10437_v17 = vpop.permute.xlu0 %1903  ;;  %v1741_v11 = vmul.f32 %v14496_v22, %v535_v40 }
 0x2df   : > { %14493 = vst [vmem:[#allocation69_spill] sm:$0xff] %v10435_v58  ;;  %14494 = vst [vmem:[#allocation68_spill] sm:$0xff] %v10437_v17  ;;  %2147 = vperm.xlu1 %7702, %v7880_v34   ;;  %2159 = vperm.xlu0 %7703, %v7881_v30   ;;  %v631_v34 = vld [vmem:[%s8915_s7 + $0x1f8] sm:$0xff]  ;;  %v14499_v58 = vld [vmem:[#allocation105_spill] sm:$0xff] }
 0x2e0   : > { %v10447_v53 = vpop.f32.mrb[22].mxu0  ;;  %7472 = vmatpush1.bf16.msra.mxu1 %v7471_v48  ;;  %v1251_v30 = vmul.f32 %v14499_v58, %v535_v40  ;;  %v1742_v48 = vmul.f32 %v10093_v43, %v536_v15  ;;  %v10474_v43 = vld [vmem:[%s8936_s17 + $0x308] sm:$0xff] }
 0x2e1   : > { %14497 = vst [vmem:[#allocation50_spill] sm:$0xff] %v10447_v53  ;;  %v4935_v49 = vpop.f32.mrb[23].mxu0  ;;  %5197 = vmatmul.mubr.f32.gmra.mrb[128].mxu0 %v1250_v8  ;;  %7473 = vmatprep.subr.bf16.mxu1 %v14458_v38  ;;  %v7474_v8 = vpack.c.bf16 %v631_v34, %v630_v21  ;;  %v14502_v21 = vld [vmem:[#allocation108_spill] sm:$0xff] }
 0x2e2   : > { %v10449_v17 = vpop.permute.xlu1 %1899  ;;  %5201 = vmatprep.mubr.f32.mxu0 %v1741_v11  ;;  %v10451_v20 = vpop.permute.xlu0 %1911  ;;  %v8717_v49 = vmov 3   ;;  %v7883_v11 = vld [vmem:[%s8936_s17] sm:$0xff]  ;;  %v1252_v34 = vmul.f32 %v14502_v21, %v536_v15 }
 0x2e3   : > { %14498 = vst [vmem:[#allocation73_spill] sm:$0xff] %v10451_v20  ;;  %2155 = vperm.xlu1 %7702, %v10459_v18   ;;  %7704 = vset.pattern.permute.xlu0 %v8717_v49  ;;  %v537_v20 = vld [vmem:[%s8931_s21 + $0x218] sm:$0xff]  ;;  %v14505_v15 = vld [vmem:[#allocation107_spill] sm:$0xff] }
 0x2e4   : > { %v10463_v22 = vpop.f32.mrb[24].mxu0  ;;  %2265 = vperm.xlu0 %7704, %v7883_v11   ;;  %7475 = vmatpush1.bf16.msra.mxu1 %v7474_v8  ;;  %v7885_v8 = vld [vmem:[%s8936_s17 + $0x18] sm:$0xff]  ;;  %v1253_v21 = vmul.f32 %v14505_v15, %v537_v20 }
 0x2e5   : > { %14500 = vst [vmem:[#allocation72_spill] sm:$0xff] %v10463_v22  ;;  %v4940_v53 = vpop.f32.mrb[25].mxu0  ;;  %5202 = vmatmul.mubr.f32.gmra.mrb[130].mxu0 %v1251_v30  ;;  %7524 = vmatprep.subr.bf16.mxu1 %v14458_v38  ;;  %v538_v38 = vld [vmem:[%s8931_s21 + $0x220] sm:$0xff]  ;;  %v14509_v15 = vld [vmem:[#allocation110_spill] sm:$0xff] }
 0x2e6   : > { %v10466_v58 = vpop.permute.xlu1 %1907  ;;  %5206 = vmatprep.mubr.f32.mxu0 %v1742_v48  ;;  %v10468_v40 = vpop.permute.xlu0 %1919  ;;  %v1743_v53 = vmul.f32 %v10095_v16, %v537_v20  ;;  %v1744_v16 = vmul.f32 %v10102_v51, %v538_v38  ;;  %v1254_v51 = vmul.f32 %v14509_v15, %v538_v38  ;;  %v540_v38 = vld [vmem:[%s8931_s21 + $0x230] sm:$0xff]  ;;  %v10514_v15 = vld [vmem:[%s8936_s17 + $0x20] sm:$0xff] }
 0x2e7   : > { %14501 = vst [vmem:[#allocation55_spill] sm:$0xff] %v10468_v40  ;;  %2163 = vperm.xlu1 %7702, %v10474_v43   ;;  %v10489_v40 = vld [vmem:[%s8936_s17 + $0x8] sm:$0xff] }
 0x2e8   : > { %v10478_v30 = vpop.f32.mrb[26].mxu0  ;;  %2277 = vperm.xlu0 %7704, %v7885_v8  }
 0x2e9   : > { %14503 = vst [vmem:[#allocation77_spill] sm:$0xff] %v10478_v30  ;;  %v4945_v48 = vpop.f32.mrb[27].mxu0  ;;  %5207 = vmatmul.mubr.f32.gmra.mrb[132].mxu0 %v1252_v34  ;;  %v7887_v34 = vld [vmem:[%s8936_s17 + $0x28] sm:$0xff] }
 0x2ea   : > { %v10481_v11 = vpop.permute.xlu1 %1915  ;;  %5211 = vmatprep.mubr.f32.mxu0 %v1743_v53  ;;  %v10483_v22 = vpop.permute.xlu0 %1927 }
 0x2eb   : > { %14504 = vst [vmem:[#allocation76_spill] sm:$0xff] %v10483_v22  ;;  %7705 = vset.pattern.permute.xlu1 %v8717_v49  ;;  %v539_v49 = vld [vmem:[%s8931_s21 + $0x228] sm:$0xff]  ;;  %v7888_v22 = vld [vmem:[%s8936_s17 + $0x10] sm:$0xff] }
 0x2ec   : > { %2269 = vperm.xlu1 %7705, %v10489_v40   ;;  %v10492_v8 = vpop.f32.mrb[28].mxu0  ;;  %2285 = vperm.xlu0 %7704, %v7887_v34   ;;  %v1745_v30 = vmul.f32 %v10104_v26, %v539_v49  ;;  %v7889_v34 = vld [vmem:[%s8936_s17 + $0x38] sm:$0xff]  ;;  %v1746_v26 = vmul.f32 %v10111_v35, %v540_v38 }
 0x2ed   : > { %14506 = vst [vmem:[#allocation54_spill] sm:$0xff] %v10492_v8  ;;  %v4950_v53 = vpop.f32.mrb[29].mxu0  ;;  %5212 = vmatmul.mubr.f32.gmra.mrb[134].mxu0 %v1253_v21 }
 0x2ee   : > { %v10495_v48 = vpop.permute.xlu1 %1923  ;;  %5216 = vmatprep.mubr.f32.mxu0 %v1744_v16  ;;  %v10497_v20 = vpop.permute.xlu0 %1935 }
 0x2ef   : > { %14507 = vst [vmem:[#allocation81_spill] sm:$0xff] %v10495_v48  ;;  %14508 = vst [vmem:[#allocation80_spill] sm:$0xff] %v10497_v20  ;;  %v14512_v20 = vld [vmem:[#allocation109_spill] sm:$0xff] }
 0x2f0   : > { %2273 = vperm.xlu1 %7705, %v7888_v22   ;;  %v10503_v8 = vpop.f32.mrb[30].mxu0  ;;  %2293 = vperm.xlu0 %7704, %v7889_v34   ;;  %v1255_v48 = vmul.f32 %v14512_v20, %v539_v49  ;;  %v541_v49 = vld [vmem:[%s8931_s21 + $0x238] sm:$0xff] }
 0x2f1   : > { %14510 = vst [vmem:[#allocation59_spill] sm:$0xff] %v10503_v8  ;;  %v4955_v21 = vpop.f32.mrb[31].mxu0  ;;  %5217 = vmatmul.mubr.f32.gmra.mrb[136].mxu0 %v1254_v51  ;;  %v7891_v51 = vld [vmem:[%s8936_s17 + $0x48] sm:$0xff]  ;;  %v1747_v8 = vmul.f32 %v10113_v25, %v541_v49  ;;  %v542_v25 = vld [vmem:[%s8931_s21 + $0x240] sm:$0xff] }
 0x2f2   : > { %v10506_v53 = vpop.permute.xlu1 %1931  ;;  %5221 = vmatprep.mubr.f32.mxu0 %v1745_v30  ;;  %v10508_v16 = vpop.permute.xlu0 %1943  ;;  %v14516_v21 = vld [vmem:[#allocation112_spill] sm:$0xff] }
 0x2f3   : > { %14511 = vst [vmem:[#allocation85_spill] sm:$0xff] %v10508_v16  ;;  %v1256_v35 = vmul.f32 %v14516_v21, %v540_v38  ;;  %v10528_v16 = vld [vmem:[%s8936_s17 + $0x30] sm:$0xff]  ;;  %v14520_v38 = vld [vmem:[#allocation111_spill] sm:$0xff] }
 0x2f4   : > { %2281 = vperm.xlu1 %7705, %v10514_v15   ;;  %v10517_v22 = vpop.f32.mrb[32].mxu0  ;;  %2301 = vperm.xlu0 %7704, %v7891_v51   ;;  %v1257_v21 = vmul.f32 %v14520_v38, %v541_v49  ;;  %v543_v38 = vld [vmem:[%s8931_s21 + $0x248] sm:$0xff] }
 0x2f5   : > { %14513 = vst [vmem:[#allocation84_spill] sm:$0xff] %v10517_v22  ;;  %v4960_v34 = vpop.f32.mrb[33].mxu0  ;;  %5222 = vmatmul.mubr.f32.gmra.mrb[138].mxu0 %v1255_v48  ;;  %v7893_v48 = vld [vmem:[%s8936_s17 + $0x58] sm:$0xff] }
 0x2f6   : > { %v10520_v30 = vpop.permute.xlu1 %1939  ;;  %5226 = vmatprep.mubr.f32.mxu0 %v1746_v26  ;;  %v10522_v20 = vpop.permute.xlu0 %1951 }
 0x2f7   : > { %14514 = vst [vmem:[#allocation58_spill] sm:$0xff] %v10520_v30  ;;  %14515 = vst [vmem:[#allocation89_spill] sm:$0xff] %v10522_v20  ;;  %v1748_v20 = vmul.f32 %v10120_v42, %v542_v25  ;;  %v10542_v30 = vld [vmem:[%s8936_s17 + $0x40] sm:$0xff] }
 0x2f8   : > { %2289 = vperm.xlu1 %7705, %v10528_v16   ;;  %v10531_v51 = vpop.f32.mrb[34].mxu0  ;;  %2309 = vperm.xlu0 %7704, %v7893_v48  }
 0x2f9   : > { %14517 = vst [vmem:[#allocation88_spill] sm:$0xff] %v10531_v51  ;;  %v4965_v34 = vpop.f32.mrb[35].mxu0  ;;  %5227 = vmatmul.mubr.f32.gmra.mrb[140].mxu0 %v1256_v35  ;;  %v7895_v35 = vld [vmem:[%s8936_s17 + $0x68] sm:$0xff]  ;;  %v14524_v51 = vld [vmem:[#allocation114_spill] sm:$0xff] }
 0x2fa   : > { %v10534_v26 = vpop.permute.xlu1 %1947  ;;  %5231 = vmatprep.mubr.f32.mxu0 %v1747_v8  ;;  %v10536_v22 = vpop.permute.xlu0 %1959  ;;  %v1258_v42 = vmul.f32 %v14524_v51, %v542_v25  ;;  %v14528_v51 = vld [vmem:[#allocation113_spill] sm:$0xff] }
 0x2fb   : > { %14518 = vst [vmem:[#allocation63_spill] sm:$0xff] %v10534_v26  ;;  %14519 = vst [vmem:[#allocation93_spill] sm:$0xff] %v10536_v22  ;;  %v1749_v22 = vmul.f32 %v10122_v33, %v543_v38  ;;  %v10556_v26 = vld [vmem:[%s8936_s17 + $0x50] sm:$0xff]  ;;  %v1259_v25 = vmul.f32 %v14528_v51, %v543_v38  ;;  %v545_v51 = vld [vmem:[%s8931_s21 + $0x258] sm:$0xff] }
 0x2fc   : > { %2297 = vperm.xlu1 %7705, %v10542_v30   ;;  %v10545_v48 = vpop.f32.mrb[36].mxu0  ;;  %2317 = vperm.xlu0 %7704, %v7895_v35   ;;  %v544_v33 = vld [vmem:[%s8931_s21 + $0x250] sm:$0xff] }
 0x2fd   : > { %14521 = vst [vmem:[#allocation92_spill] sm:$0xff] %v10545_v48  ;;  %v4970_v34 = vpop.f32.mrb[37].mxu0  ;;  %5232 = vmatmul.mubr.f32.gmra.mrb[142].mxu0 %v1257_v21  ;;  %v7897_v21 = vld [vmem:[%s8936_s17 + $0x78] sm:$0xff] }
 0x2fe   : > { %v10548_v8 = vpop.permute.xlu1 %1955  ;;  %5236 = vmatprep.mubr.f32.mxu0 %v1748_v20  ;;  %v10550_v49 = vpop.permute.xlu0 %1967 }
 0x2ff   : > { %14522 = vst [vmem:[#allocation62_spill] sm:$0xff] %v10548_v8  ;;  %14523 = vst [vmem:[#allocation67_spill] sm:$0xff] %v10550_v49  ;;  %v1750_v49 = vmul.f32 %v10129_v45, %v544_v33  ;;  %v10570_v8 = vld [vmem:[%s8936_s17 + $0x60] sm:$0xff] }
 0x300   : > { %2305 = vperm.xlu1 %7705, %v10556_v26   ;;  %v10559_v35 = vpop.f32.mrb[38].mxu0  ;;  %2325 = vperm.xlu0 %7704, %v7897_v21  }
 0x301   : > { %14525 = vst [vmem:[#allocation66_spill] sm:$0xff] %v10559_v35  ;;  %v4975_v34 = vpop.f32.mrb[39].mxu0  ;;  %5237 = vmatmul.mubr.f32.gmra.mrb[144].mxu0 %v1258_v42  ;;  %v7899_v42 = vld [vmem:[%s8936_s17 + $0x88] sm:$0xff] }
 0x302   : > { %v10562_v20 = vpop.permute.xlu1 %1963  ;;  %5241 = vmatprep.mubr.f32.mxu0 %v1749_v22  ;;  %v10564_v48 = vpop.permute.xlu0 %1975  ;;  %v14532_v35 = vld [vmem:[#allocation116_spill] sm:$0xff] }
 0x303   : > { %14526 = vst [vmem:[#allocation71_spill] sm:$0xff] %v10562_v20  ;;  %14527 = vst [vmem:[#allocation70_spill] sm:$0xff] %v10564_v48  ;;  %v1260_v45 = vmul.f32 %v14532_v35, %v544_v33  ;;  %v1751_v48 = vmul.f32 %v10131_v46, %v545_v51  ;;  %v10584_v20 = vld [vmem:[%s8936_s17 + $0x70] sm:$0xff]  ;;  %v14536_v35 = vld [vmem:[#allocation115_spill] sm:$0xff] }
 0x304   : > { %2313 = vperm.xlu1 %7705, %v10570_v8   ;;  %v10573_v21 = vpop.f32.mrb[40].mxu0  ;;  %2333 = vperm.xlu0 %7704, %v7899_v42   ;;  %v1261_v33 = vmul.f32 %v14536_v35, %v545_v51  ;;  %v546_v46 = vld [vmem:[%s8931_s21 + $0x260] sm:$0xff]  ;;  %v547_v35 = vld [vmem:[%s8931_s21 + $0x268] sm:$0xff] }
 0x305   : > { %14529 = vst [vmem:[#allocation75_spill] sm:$0xff] %v10573_v21  ;;  %v4980_v34 = vpop.f32.mrb[41].mxu0  ;;  %5242 = vmatmul.mubr.f32.gmra.mrb[146].mxu0 %v1259_v25  ;;  %v7901_v25 = vld [vmem:[%s8936_s17 + $0x98] sm:$0xff] }
 0x306   : > { %v10576_v22 = vpop.permute.xlu1 %1971  ;;  %5246 = vmatprep.mubr.f32.mxu0 %v1750_v49  ;;  %v10578_v38 = vpop.permute.xlu0 %1983 }
 0x307   : > { %14530 = vst [vmem:[#allocation74_spill] sm:$0xff] %v10576_v22  ;;  %14531 = vst [vmem:[#allocation79_spill] sm:$0xff] %v10578_v38  ;;  %v1752_v38 = vmul.f32 %v10138_v3, %v546_v46  ;;  %v10598_v22 = vld [vmem:[%s8936_s17 + $0x80] sm:$0xff] }
 0x308   : > { %2321 = vperm.xlu1 %7705, %v10584_v20   ;;  %v10587_v42 = vpop.f32.mrb[42].mxu0  ;;  %2341 = vperm.xlu0 %7704, %v7901_v25  }
 0x309   : > { %14533 = vst [vmem:[#allocation78_spill] sm:$0xff] %v10587_v42  ;;  %v4985_v34 = vpop.f32.mrb[43].mxu0  ;;  %5247 = vmatmul.mubr.f32.gmra.mrb[148].mxu0 %v1260_v45  ;;  %v7903_v45 = vld [vmem:[%s8936_s17 + $0xa8] sm:$0xff]  ;;  %v14540_v42 = vld [vmem:[#allocation118_spill] sm:$0xff] }
 0x30a   : > { %v10590_v49 = vpop.permute.xlu1 %1979  ;;  %5251 = vmatprep.mubr.f32.mxu0 %v1751_v48  ;;  %v10592_v21 = vpop.permute.xlu0 %1991  ;;  %v1262_v3 = vmul.f32 %v14540_v42, %v546_v46  ;;  %v14544_v42 = vld [vmem:[#allocation117_spill] sm:$0xff] }
 0x30b   : > { %14534 = vst [vmem:[#allocation83_spill] sm:$0xff] %v10590_v49  ;;  %14535 = vst [vmem:[#allocation82_spill] sm:$0xff] %v10592_v21  ;;  %v1753_v21 = vmul.f32 %v10140_v44, %v547_v35  ;;  %v10612_v49 = vld [vmem:[%s8936_s17 + $0x90] sm:$0xff]  ;;  %v1263_v46 = vmul.f32 %v14544_v42, %v547_v35  ;;  %v549_v42 = vld [vmem:[%s8931_s21 + $0x278] sm:$0xff] }
 0x30c   : > { %2329 = vperm.xlu1 %7705, %v10598_v22   ;;  %v10601_v25 = vpop.f32.mrb[44].mxu0  ;;  %2349 = vperm.xlu0 %7704, %v7903_v45   ;;  %v548_v44 = vld [vmem:[%s8931_s21 + $0x270] sm:$0xff] }
 0x30d   : > { %14537 = vst [vmem:[#allocation87_spill] sm:$0xff] %v10601_v25  ;;  %v4990_v34 = vpop.f32.mrb[45].mxu0  ;;  %5252 = vmatmul.mubr.f32.gmra.mrb[150].mxu0 %v1261_v33  ;;  %v7905_v33 = vld [vmem:[%s8936_s17 + $0xb8] sm:$0xff] }
 0x30e   : > { %v10604_v48 = vpop.permute.xlu1 %1987  ;;  %5256 = vmatprep.mubr.f32.mxu0 %v1752_v38  ;;  %v10606_v51 = vpop.permute.xlu0 %1999 }
 0x30f   : > { %14538 = vst [vmem:[#allocation86_spill] sm:$0xff] %v10604_v48  ;;  %14539 = vst [vmem:[#allocation91_spill] sm:$0xff] %v10606_v51  ;;  %v1754_v51 = vmul.f32 %v10147_v32, %v548_v44  ;;  %v10626_v48 = vld [vmem:[%s8936_s17 + $0xa0] sm:$0xff] }
 0x310   : > { %2337 = vperm.xlu1 %7705, %v10612_v49   ;;  %v10615_v45 = vpop.f32.mrb[46].mxu0  ;;  %2357 = vperm.xlu0 %7704, %v7905_v33  }
 0x311   : > { %14541 = vst [vmem:[#allocation90_spill] sm:$0xff] %v10615_v45  ;;  %v4995_v34 = vpop.f32.mrb[47].mxu0  ;;  %5257 = vmatmul.mubr.f32.gmra.mrb[152].mxu0 %v1262_v3  ;;  %v7907_v3 = vld [vmem:[%s8936_s17 + $0xc8] sm:$0xff] }
 0x312   : > { %v10618_v38 = vpop.permute.xlu1 %1995  ;;  %5261 = vmatprep.mubr.f32.mxu0 %v1753_v21  ;;  %v10620_v25 = vpop.permute.xlu0 %2007  ;;  %v14548_v45 = vld [vmem:[#allocation120_spill] sm:$0xff] }
 0x313   : > { %14542 = vst [vmem:[#allocation95_spill] sm:$0xff] %v10618_v38  ;;  %14543 = vst [vmem:[#allocation94_spill] sm:$0xff] %v10620_v25  ;;  %v1264_v32 = vmul.f32 %v14548_v45, %v548_v44  ;;  %v1755_v25 = vmul.f32 %v10149_v41, %v549_v42  ;;  %v10640_v38 = vld [vmem:[%s8936_s17 + $0xb0] sm:$0xff]  ;;  %v14552_v45 = vld [vmem:[#allocation119_spill] sm:$0xff] }
 0x314   : > { %2345 = vperm.xlu1 %7705, %v10626_v48   ;;  %v10629_v33 = vpop.f32.mrb[48].mxu0  ;;  %2365 = vperm.xlu0 %7704, %v7907_v3   ;;  %v1265_v44 = vmul.f32 %v14552_v45, %v549_v42  ;;  %v550_v41 = vld [vmem:[%s8931_s21 + $0x280] sm:$0xff]  ;;  %v551_v45 = vld [vmem:[%s8931_s21 + $0x288] sm:$0xff] }
 0x315   : > { %14545 = vst [vmem:[#allocation96_spill] sm:$0xff] %v10629_v33  ;;  %v5000_v34 = vpop.f32.mrb[49].mxu0  ;;  %5262 = vmatmul.mubr.f32.gmra.mrb[154].mxu0 %v1263_v46  ;;  %v7909_v46 = vld [vmem:[%s8936_s17 + $0xd8] sm:$0xff] }
 0x316   : > { %v10632_v21 = vpop.permute.xlu1 %2003  ;;  %5266 = vmatprep.mubr.f32.mxu0 %v1754_v51  ;;  %v10634_v35 = vpop.permute.xlu0 %2015 }
 0x317   : > { %14546 = vst [vmem:[#allocation98_spill] sm:$0xff] %v10632_v21  ;;  %14547 = vst [vmem:[#allocation31_spill] sm:$0xff] %v10634_v35  ;;  %v1756_v35 = vmul.f32 %v10156_v55, %v550_v41  ;;  %v10654_v21 = vld [vmem:[%s8936_s17 + $0xc0] sm:$0xff] }
 0x318   : > { %2353 = vperm.xlu1 %7705, %v10640_v38   ;;  %v10643_v3 = vpop.f32.mrb[50].mxu0  ;;  %2373 = vperm.xlu0 %7704, %v7909_v46  }
 0x319   : > { %14549 = vst [vmem:[#allocation97_spill] sm:$0xff] %v10643_v3  ;;  %v5005_v34 = vpop.f32.mrb[51].mxu0  ;;  %5267 = vmatmul.mubr.f32.gmra.mrb[156].mxu0 %v1264_v32  ;;  %v7911_v32 = vld [vmem:[%s8936_s17 + $0xe8] sm:$0xff]  ;;  %v14556_v3 = vld [vmem:[#allocation122_spill] sm:$0xff] }
 0x31a   : > { %v10646_v51 = vpop.permute.xlu1 %2011  ;;  %5271 = vmatprep.mubr.f32.mxu0 %v1755_v25  ;;  %v10648_v33 = vpop.permute.xlu0 %2023  ;;  %v1266_v55 = vmul.f32 %v14556_v3, %v550_v41  ;;  %v14560_v3 = vld [vmem:[#allocation121_spill] sm:$0xff] }
 0x31b   : > { %14550 = vst [vmem:[#allocation100_spill] sm:$0xff] %v10646_v51  ;;  %14551 = vst [vmem:[#allocation99_spill] sm:$0xff] %v10648_v33  ;;  %v1757_v33 = vmul.f32 %v10158_v28, %v551_v45  ;;  %v10668_v51 = vld [vmem:[%s8936_s17 + $0xd0] sm:$0xff]  ;;  %v1267_v41 = vmul.f32 %v14560_v3, %v551_v45  ;;  %v553_v3 = vld [vmem:[%s8931_s21 + $0x298] sm:$0xff] }
 0x31c   : > { %2361 = vperm.xlu1 %7705, %v10654_v21   ;;  %v10657_v46 = vpop.f32.mrb[52].mxu0  ;;  %2381 = vperm.xlu0 %7704, %v7911_v32   ;;  %v552_v28 = vld [vmem:[%s8931_s21 + $0x290] sm:$0xff] }
 0x31d   : > { %14553 = vst [vmem:[#allocation30_spill] sm:$0xff] %v10657_v46  ;;  %v5010_v34 = vpop.f32.mrb[53].mxu0  ;;  %5272 = vmatmul.mubr.f32.gmra.mrb[158].mxu0 %v1265_v44  ;;  %v7913_v44 = vld [vmem:[%s8936_s17 + $0xf8] sm:$0xff] }
 0x31e   : > { %v10660_v25 = vpop.permute.xlu1 %2019  ;;  %5276 = vmatprep.mubr.f32.mxu0 %v1756_v35  ;;  %v10662_v42 = vpop.permute.xlu0 %2031 }
 0x31f   : > { %14554 = vst [vmem:[#allocation102_spill] sm:$0xff] %v10660_v25  ;;  %14555 = vst [vmem:[#allocation33_spill] sm:$0xff] %v10662_v42  ;;  %v1758_v42 = vmul.f32 %v10165_v50, %v552_v28  ;;  %v10682_v25 = vld [vmem:[%s8936_s17 + $0xe0] sm:$0xff] }
 0x320   : > { %2369 = vperm.xlu1 %7705, %v10668_v51   ;;  %v10671_v32 = vpop.f32.mrb[54].mxu0  ;;  %2389 = vperm.xlu0 %7704, %v7913_v44  }
 0x321   : > { %14557 = vst [vmem:[#allocation101_spill] sm:$0xff] %v10671_v32  ;;  %v5015_v34 = vpop.f32.mrb[55].mxu0  ;;  %5277 = vmatmul.mubr.f32.gmra.mrb[160].mxu0 %v1266_v55  ;;  %v7915_v55 = vld [vmem:[%s8936_s17 + $0x108] sm:$0xff] }
 0x322   : > { %v10674_v35 = vpop.permute.xlu1 %2027  ;;  %5281 = vmatprep.mubr.f32.mxu0 %v1757_v33  ;;  %v10676_v46 = vpop.permute.xlu0 %2039  ;;  %v14564_v32 = vld [vmem:[#allocation124_spill] sm:$0xff] }
 0x323   : > { %14558 = vst [vmem:[#allocation104_spill] sm:$0xff] %v10674_v35  ;;  %14559 = vst [vmem:[#allocation103_spill] sm:$0xff] %v10676_v46  ;;  %v1268_v50 = vmul.f32 %v14564_v32, %v552_v28  ;;  %v1759_v46 = vmul.f32 %v10167_v23, %v553_v3  ;;  %v10696_v35 = vld [vmem:[%s8936_s17 + $0xf0] sm:$0xff]  ;;  %v14568_v32 = vld [vmem:[#allocation123_spill] sm:$0xff] }
 0x324   : > { %2377 = vperm.xlu1 %7705, %v10682_v25   ;;  %v10685_v44 = vpop.f32.mrb[56].mxu0  ;;  %2397 = vperm.xlu0 %7704, %v7915_v55   ;;  %v1269_v28 = vmul.f32 %v14568_v32, %v553_v3  ;;  %v554_v23 = vld [vmem:[%s8931_s21 + $0x2a0] sm:$0xff]  ;;  %v555_v32 = vld [vmem:[%s8931_s21 + $0x2a8] sm:$0xff] }
 0x325   : > { %14561 = vst [vmem:[#allocation106_spill] sm:$0xff] %v10685_v44  ;;  %v5020_v34 = vpop.f32.mrb[57].mxu0  ;;  %5282 = vmatmul.mubr.f32.gmra.mrb[162].mxu0 %v1267_v41  ;;  %v7917_v41 = vld [vmem:[%s8936_s17 + $0x118] sm:$0xff] }
 0x326   : > { %v10688_v33 = vpop.permute.xlu1 %2035  ;;  %5286 = vmatprep.mubr.f32.mxu0 %v1758_v42  ;;  %v10690_v45 = vpop.permute.xlu0 %2047 }
 0x327   : > { %14562 = vst [vmem:[#allocation32_spill] sm:$0xff] %v10688_v33  ;;  %14563 = vst [vmem:[#allocation105_spill] sm:$0xff] %v10690_v45  ;;  %v1760_v45 = vmul.f32 %v10174_v54, %v554_v23  ;;  %v10710_v33 = vld [vmem:[%s8936_s17 + $0x100] sm:$0xff] }
 0x328   : > { %2385 = vperm.xlu1 %7705, %v10696_v35   ;;  %v10699_v55 = vpop.f32.mrb[58].mxu0  ;;  %2405 = vperm.xlu0 %7704, %v7917_v41  }
 0x329   : > { %14565 = vst [vmem:[#allocation108_spill] sm:$0xff] %v10699_v55  ;;  %v5025_v34 = vpop.f32.mrb[59].mxu0  ;;  %5287 = vmatmul.mubr.f32.gmra.mrb[164].mxu0 %v1268_v50  ;;  %v7919_v50 = vld [vmem:[%s8936_s17 + $0x128] sm:$0xff]  ;;  %v14572_v55 = vld [vmem:[#allocation126_spill] sm:$0xff] }
 0x32a   : > { %v10702_v42 = vpop.permute.xlu1 %2043  ;;  %5291 = vmatprep.mubr.f32.mxu0 %v1759_v46  ;;  %v10704_v44 = vpop.permute.xlu0 %2055  ;;  %v1270_v54 = vmul.f32 %v14572_v55, %v554_v23  ;;  %v14576_v55 = vld [vmem:[#allocation125_spill] sm:$0xff] }
 0x32b   : > { %14566 = vst [vmem:[#allocation107_spill] sm:$0xff] %v10702_v42  ;;  %14567 = vst [vmem:[#allocation110_spill] sm:$0xff] %v10704_v44  ;;  %v1761_v44 = vmul.f32 %v10176_v29, %v555_v32  ;;  %v10724_v42 = vld [vmem:[%s8936_s17 + $0x110] sm:$0xff]  ;;  %v1271_v23 = vmul.f32 %v14576_v55, %v555_v32  ;;  %v557_v55 = vld [vmem:[%s8931_s21 + $0x2b8] sm:$0xff] }
 0x32c   : > { %2393 = vperm.xlu1 %7705, %v10710_v33   ;;  %v10713_v41 = vpop.f32.mrb[60].mxu0  ;;  %2413 = vperm.xlu0 %7704, %v7919_v50   ;;  %v556_v29 = vld [vmem:[%s8931_s21 + $0x2b0] sm:$0xff] }
 0x32d   : > { %14569 = vst [vmem:[#allocation109_spill] sm:$0xff] %v10713_v41  ;;  %v5030_v34 = vpop.f32.mrb[61].mxu0  ;;  %5292 = vmatmul.mubr.f32.gmra.mrb[166].mxu0 %v1269_v28  ;;  %v7921_v28 = vld [vmem:[%s8936_s17 + $0x138] sm:$0xff] }
 0x32e   : > { %v10716_v46 = vpop.permute.xlu1 %2051  ;;  %5296 = vmatprep.mubr.f32.mxu0 %v1760_v45  ;;  %v10718_v3 = vpop.permute.xlu0 %2063 }
 0x32f   : > { %14570 = vst [vmem:[#allocation112_spill] sm:$0xff] %v10716_v46  ;;  %14571 = vst [vmem:[#allocation111_spill] sm:$0xff] %v10718_v3  ;;  %v1762_v3 = vmul.f32 %v10183_v39, %v556_v29  ;;  %v10738_v46 = vld [vmem:[%s8936_s17 + $0x120] sm:$0xff] }
 0x330   : > { %2401 = vperm.xlu1 %7705, %v10724_v42   ;;  %v10727_v50 = vpop.f32.mrb[62].mxu0  ;;  %2421 = vperm.xlu0 %7704, %v7921_v28  }
 0x331   : > { %14573 = vst [vmem:[#allocation114_spill] sm:$0xff] %v10727_v50  ;;  %v5035_v34 = vpop.f32.mrb[63].mxu0  ;;  %5297 = vmatmul.mubr.f32.gmra.mrb[168].mxu0 %v1270_v54  ;;  %v7923_v54 = vld [vmem:[%s8936_s17 + $0x148] sm:$0xff]  ;;  %v14580_v50 = vld [vmem:[#allocation127_spill] sm:$0xff] }
 0x332   : > { %v10730_v45 = vpop.permute.xlu1 %2059  ;;  %5301 = vmatprep.mubr.f32.mxu0 %v1761_v44  ;;  %v10732_v41 = vpop.permute.xlu0 %2071  ;;  %v1272_v39 = vmul.f32 %v14580_v50, %v556_v29  ;;  %v14584_v50 = vld [vmem:[#allocation19_spill] sm:$0xff] }
 0x333   : > { %14574 = vst [vmem:[#allocation113_spill] sm:$0xff] %v10730_v45  ;;  %14575 = vst [vmem:[#allocation116_spill] sm:$0xff] %v10732_v41  ;;  %v1763_v41 = vmul.f32 %v10185_v0, %v557_v55  ;;  %v10752_v45 = vld [vmem:[%s8936_s17 + $0x130] sm:$0xff]  ;;  %v1273_v29 = vmul.f32 %v14584_v50, %v557_v55  ;;  %v558_v0 = vld [vmem:[%s8931_s21 + $0x2c0] sm:$0xff] }
 0x334   : > { %2409 = vperm.xlu1 %7705, %v10738_v46   ;;  %v10741_v28 = vpop.f32.mrb[64].mxu0  ;;  %2429 = vperm.xlu0 %7704, %v7923_v54   ;;  %v559_v50 = vld [vmem:[%s8931_s21 + $0x2c8] sm:$0xff] }
 0x335   : > { %14577 = vst [vmem:[#allocation115_spill] sm:$0xff] %v10741_v28  ;;  %v5040_v34 = vpop.f32.mrb[65].mxu0  ;;  %5302 = vmatmul.mubr.f32.gmra.mrb[170].mxu0 %v1271_v23  ;;  %v7925_v23 = vld [vmem:[%s8936_s17 + $0x158] sm:$0xff] }
 0x336   : > { %v10744_v44 = vpop.permute.xlu1 %2067  ;;  %5306 = vmatprep.mubr.f32.mxu0 %v1762_v3  ;;  %v10746_v32 = vpop.permute.xlu0 %2079 }
 0x337   : > { %14578 = vst [vmem:[#allocation118_spill] sm:$0xff] %v10744_v44  ;;  %14579 = vst [vmem:[#allocation117_spill] sm:$0xff] %v10746_v32  ;;  %v1764_v32 = vmul.f32 %v10192_v2, %v558_v0  ;;  %v10766_v44 = vld [vmem:[%s8936_s17 + $0x140] sm:$0xff] }
 0x338   : > { %2417 = vperm.xlu1 %7705, %v10752_v45   ;;  %v10755_v54 = vpop.f32.mrb[66].mxu0  ;;  %2437 = vperm.xlu0 %7704, %v7925_v23  }
 0x339   : > { %14581 = vst [vmem:[#allocation120_spill] sm:$0xff] %v10755_v54  ;;  %v5045_v34 = vpop.f32.mrb[67].mxu0  ;;  %5307 = vmatmul.mubr.f32.gmra.mrb[172].mxu0 %v1272_v39  ;;  %v7927_v39 = vld [vmem:[%s8936_s17 + $0x168] sm:$0xff] }
 0x33a   : > { %v10758_v3 = vpop.permute.xlu1 %2075  ;;  %5311 = vmatprep.mubr.f32.mxu0 %v1763_v41  ;;  %v10760_v28 = vpop.permute.xlu0 %2087  ;;  %v14588_v54 = vld [vmem:[#allocation20_spill] sm:$0xff] }
 0x33b   : > { %14582 = vst [vmem:[#allocation119_spill] sm:$0xff] %v10758_v3  ;;  %14583 = vst [vmem:[#allocation122_spill] sm:$0xff] %v10760_v28  ;;  %v1274_v2 = vmul.f32 %v14588_v54, %v558_v0  ;;  %v1765_v28 = vmul.f32 %v10194_v36, %v559_v50  ;;  %v10780_v3 = vld [vmem:[%s8936_s17 + $0x150] sm:$0xff] }
 0x33c   : > { %2425 = vperm.xlu1 %7705, %v10766_v44   ;;  %v10769_v23 = vpop.f32.mrb[68].mxu0  ;;  %2445 = vperm.xlu0 %7704, %v7927_v39   ;;  %v14592_v54 = vld [vmem:[#allocation21_spill] sm:$0xff] }
 0x33d   : > { %14585 = vst [vmem:[#allocation121_spill] sm:$0xff] %v10769_v23  ;;  %v5050_v34 = vpop.f32.mrb[69].mxu0  ;;  %5312 = vmatmul.mubr.f32.gmra.mrb[174].mxu0 %v1273_v29  ;;  %v7929_v29 = vld [vmem:[%s8936_s17 + $0x178] sm:$0xff]  ;;  %v1275_v0 = vmul.f32 %v14592_v54, %v559_v50  ;;  %v560_v36 = vld [vmem:[%s8931_s21 + $0x2d0] sm:$0xff] }
 0x33e   : > { %v10772_v41 = vpop.permute.xlu1 %2083  ;;  %5316 = vmatprep.mubr.f32.mxu0 %v1764_v32  ;;  %v10774_v55 = vpop.permute.xlu0 %2095  ;;  %v561_v54 = vld [vmem:[%s8931_s21 + $0x2d8] sm:$0xff] }
 0x33f   : > { %14586 = vst [vmem:[#allocation124_spill] sm:$0xff] %v10772_v41  ;;  %14587 = vst [vmem:[#allocation123_spill] sm:$0xff] %v10774_v55  ;;  %v1766_v55 = vmul.f32 %v10201_v61, %v560_v36  ;;  %v10794_v41 = vld [vmem:[%s8936_s17 + $0x160] sm:$0xff] }
 0x340   : > { %2433 = vperm.xlu1 %7705, %v10780_v3   ;;  %v10783_v39 = vpop.f32.mrb[70].mxu0  ;;  %2453 = vperm.xlu0 %7704, %v7929_v29  }
 0x341   : > { %14589 = vst [vmem:[#allocation126_spill] sm:$0xff] %v10783_v39  ;;  %v5055_v34 = vpop.f32.mrb[71].mxu0  ;;  %5317 = vmatmul.mubr.f32.gmra.mrb[176].mxu0 %v1274_v2  ;;  %v7931_v2 = vld [vmem:[%s8936_s17 + $0x188] sm:$0xff]  ;;  %v14596_v39 = vld [vmem:[#allocation22_spill] sm:$0xff] }
 0x342   : > { %v10786_v32 = vpop.permute.xlu1 %2091  ;;  %5321 = vmatprep.mubr.f32.mxu0 %v1765_v28  ;;  %v10788_v23 = vpop.permute.xlu0 %2103  ;;  %v1276_v61 = vmul.f32 %v14596_v39, %v560_v36  ;;  %v14600_v39 = vld [vmem:[#allocation23_spill] sm:$0xff] }
 0x343   : > { %14590 = vst [vmem:[#allocation125_spill] sm:$0xff] %v10786_v32  ;;  %14591 = vst [vmem:[#allocation127_spill] sm:$0xff] %v10788_v23  ;;  %v1767_v23 = vmul.f32 %v10203_v59, %v561_v54  ;;  %v10808_v32 = vld [vmem:[%s8936_s17 + $0x170] sm:$0xff]  ;;  %v1277_v36 = vmul.f32 %v14600_v39, %v561_v54  ;;  %v562_v59 = vld [vmem:[%s8931_s21 + $0x2e0] sm:$0xff] }
 0x344   : > { %2441 = vperm.xlu1 %7705, %v10794_v41   ;;  %v10797_v29 = vpop.f32.mrb[72].mxu0  ;;  %2461 = vperm.xlu0 %7704, %v7931_v2   ;;  %v563_v39 = vld [vmem:[%s8931_s21 + $0x2e8] sm:$0xff] }
 0x345   : > { %14593 = vst [vmem:[#allocation19_spill] sm:$0xff] %v10797_v29  ;;  %v5060_v34 = vpop.f32.mrb[73].mxu0  ;;  %5322 = vmatmul.mubr.f32.gmra.mrb[178].mxu0 %v1275_v0  ;;  %v7933_v0 = vld [vmem:[%s8936_s17 + $0x198] sm:$0xff] }
 0x346   : > { %v10800_v28 = vpop.permute.xlu1 %2099  ;;  %5326 = vmatprep.mubr.f32.mxu0 %v1766_v55  ;;  %v10802_v50 = vpop.permute.xlu0 %2111 }
 0x347   : > { %14594 = vst [vmem:[#allocation20_spill] sm:$0xff] %v10800_v28  ;;  %14595 = vst [vmem:[#allocation21_spill] sm:$0xff] %v10802_v50  ;;  %v1768_v50 = vmul.f32 %v10210_v52, %v562_v59  ;;  %v10822_v28 = vld [vmem:[%s8936_s17 + $0x180] sm:$0xff] }
 0x348   : > { %2449 = vperm.xlu1 %7705, %v10808_v32   ;;  %v10811_v2 = vpop.f32.mrb[74].mxu0  ;;  %2469 = vperm.xlu0 %7704, %v7933_v0  }
 0x349   : > { %14597 = vst [vmem:[#allocation22_spill] sm:$0xff] %v10811_v2  ;;  %v5065_v34 = vpop.f32.mrb[75].mxu0  ;;  %5327 = vmatmul.mubr.f32.gmra.mrb[180].mxu0 %v1276_v61  ;;  %v7935_v61 = vld [vmem:[%s8936_s17 + $0x1a8] sm:$0xff] }
 0x34a   : > { %v10814_v55 = vpop.permute.xlu1 %2107  ;;  %5331 = vmatprep.mubr.f32.mxu0 %v1767_v23  ;;  %v10816_v29 = vpop.permute.xlu0 %2119  ;;  %v14604_v2 = vld [vmem:[#allocation24_spill] sm:$0xff] }
 0x34b   : > { %14598 = vst [vmem:[#allocation128_spill] sm:$0xff] %v10814_v55  ;;  %14599 = vst [vmem:[#allocation129_spill] sm:$0xff] %v10816_v29  ;;  %v1278_v52 = vmul.f32 %v14604_v2, %v562_v59  ;;  %v1769_v29 = vmul.f32 %v10212_v62, %v563_v39  ;;  %v10836_v55 = vld [vmem:[%s8936_s17 + $0x190] sm:$0xff] }
 0x34c   : > { %2457 = vperm.xlu1 %7705, %v10822_v28   ;;  %v10825_v0 = vpop.f32.mrb[76].mxu0  ;;  %2477 = vperm.xlu0 %7704, %v7935_v61   ;;  %v14608_v2 = vld [vmem:[#allocation25_spill] sm:$0xff] }
 0x34d   : > { %14601 = vst [vmem:[#allocation23_spill] sm:$0xff] %v10825_v0  ;;  %v5070_v34 = vpop.f32.mrb[77].mxu0  ;;  %5332 = vmatmul.mubr.f32.gmra.mrb[182].mxu0 %v1277_v36  ;;  %v7937_v36 = vld [vmem:[%s8936_s17 + $0x1b8] sm:$0xff]  ;;  %v1279_v59 = vmul.f32 %v14608_v2, %v563_v39  ;;  %v564_v62 = vld [vmem:[%s8931_s21 + $0x2f0] sm:$0xff] }
 0x34e   : > { %v10828_v23 = vpop.permute.xlu1 %2115  ;;  %5336 = vmatprep.mubr.f32.mxu0 %v1768_v50  ;;  %v10830_v54 = vpop.permute.xlu0 %2127  ;;  %v565_v2 = vld [vmem:[%s8931_s21 + $0x2f8] sm:$0xff] }
 0x34f   : > { %14602 = vst [vmem:[#allocation130_spill] sm:$0xff] %v10828_v23  ;;  %14603 = vst [vmem:[#allocation131_spill] sm:$0xff] %v10830_v54  ;;  %v1770_v54 = vmul.f32 %v10219_v37, %v564_v62  ;;  %v10850_v23 = vld [vmem:[%s8936_s17 + $0x1a0] sm:$0xff] }
 0x350   : > { %2465 = vperm.xlu1 %7705, %v10836_v55   ;;  %v10839_v61 = vpop.f32.mrb[78].mxu0  ;;  %2485 = vperm.xlu0 %7704, %v7937_v36  }
 0x351   : > { %14605 = vst [vmem:[#allocation24_spill] sm:$0xff] %v10839_v61  ;;  %v5075_v34 = vpop.f32.mrb[79].mxu0  ;;  %5337 = vmatmul.mubr.f32.gmra.mrb[184].mxu0 %v1278_v52  ;;  %v7939_v52 = vld [vmem:[%s8936_s17 + $0x1c8] sm:$0xff]  ;;  %v14612_v61 = vld [vmem:[#allocation26_spill] sm:$0xff] }
 0x352   : > { %v10842_v50 = vpop.permute.xlu1 %2123  ;;  %5341 = vmatprep.mubr.f32.mxu0 %v1769_v29  ;;  %v10844_v0 = vpop.permute.xlu0 %2135  ;;  %v1280_v37 = vmul.f32 %v14612_v61, %v564_v62  ;;  %v14617_v61 = vld [vmem:[#allocation27_spill] sm:$0xff] }
 0x353   : > { %14606 = vst [vmem:[#allocation132_spill] sm:$0xff] %v10842_v50  ;;  %14607 = vst [vmem:[#allocation133_spill] sm:$0xff] %v10844_v0  ;;  %v1771_v0 = vmul.f32 %v10221_v57, %v565_v2  ;;  %v10864_v50 = vld [vmem:[%s8936_s17 + $0x1b0] sm:$0xff]  ;;  %v1281_v62 = vmul.f32 %v14617_v61, %v565_v2  ;;  %v566_v57 = vld [vmem:[%s8931_s21 + $0x300] sm:$0xff] }
 0x354   : > { %2473 = vperm.xlu1 %7705, %v10850_v23   ;;  %v10853_v36 = vpop.f32.mrb[80].mxu0  ;;  %2493 = vperm.xlu0 %7704, %v7939_v52   ;;  %14613 = vst [vmem:[#allocation26_spill] sm:$0xff] %v10864_v50  ;;  %v567_v61 = vld [vmem:[%s8931_s21 + $0x308] sm:$0xff] }
 0x355   : > { %14609 = vst [vmem:[#allocation25_spill] sm:$0xff] %v10853_v36  ;;  %v5080_v34 = vpop.f32.mrb[81].mxu0  ;;  %5342 = vmatmul.mubr.f32.gmra.mrb[186].mxu0 %v1279_v59  ;;  %v7941_v59 = vld [vmem:[%s8936_s17 + $0x1d8] sm:$0xff] }
 0x356   : > { %v10856_v29 = vpop.permute.xlu1 %2131  ;;  %5346 = vmatprep.mubr.f32.mxu0 %v1770_v54  ;;  %v10858_v39 = vpop.permute.xlu0 %2143 }
 0x357   : > { %14610 = vst [vmem:[#allocation134_spill] sm:$0xff] %v10856_v29  ;;  %14611 = vst [vmem:[#allocation135_spill] sm:$0xff] %v10858_v39  ;;  %v1772_v39 = vmul.f32 %v10228_v4, %v566_v57  ;;  %v10878_v29 = vld [vmem:[%s8936_s17 + $0x1c0] sm:$0xff] }
 0x358   : > { %2481 = vperm.xlu1 %7705, %v10864_v50   ;;  %v10867_v52 = vpop.f32.mrb[82].mxu0  ;;  %2501 = vperm.xlu0 %7704, %v7941_v59   ;;  %14618 = vst [vmem:[#allocation27_spill] sm:$0xff] %v10878_v29  ;;  %v7982_v50 = vld [vmem:[%s8936_s17 + $0x2a0] sm:$0xff] }
 0x359   : > { %14614 = vst [vmem:[#allocation136_spill] sm:$0xff] %v10867_v52  ;;  %v5085_v34 = vpop.f32.mrb[83].mxu0  ;;  %5347 = vmatmul.mubr.f32.gmra.mrb[188].mxu0 %v1280_v37  ;;  %v7943_v37 = vld [vmem:[%s8936_s17 + $0x1e8] sm:$0xff] }
 0x35a   : > { %v10870_v54 = vpop.permute.xlu1 %2139  ;;  %5351 = vmatprep.mubr.f32.mxu0 %v1771_v0  ;;  %v10872_v36 = vpop.permute.xlu0 %2151  ;;  %v14622_v52 = vld [vmem:[#allocation28_spill] sm:$0xff] }
 0x35b   : > { %14615 = vst [vmem:[#allocation137_spill] sm:$0xff] %v10870_v54  ;;  %14616 = vst [vmem:[#allocation138_spill] sm:$0xff] %v10872_v36  ;;  %v1282_v4 = vmul.f32 %v14622_v52, %v566_v57  ;;  %v1773_v36 = vmul.f32 %v10230_v31, %v567_v61  ;;  %v10892_v54 = vld [vmem:[%s8936_s17 + $0x1d0] sm:$0xff]  ;;  %v10902_v57 = vld [vmem:[%s8936_s17 + $0x1e0] sm:$0xff] }
 0x35c   : > { %2489 = vperm.xlu1 %7705, %v10878_v29   ;;  %v10881_v59 = vpop.f32.mrb[84].mxu0  ;;  %2509 = vperm.xlu0 %7704, %v7943_v37   ;;  %14623 = vst [vmem:[#allocation28_spill] sm:$0xff] %v10892_v54  ;;  %v10987_v29 = vld [vmem:[%s8936_s17 + $0x260] sm:$0xff] }
 0x35d   : > { %14619 = vst [vmem:[#allocation139_spill] sm:$0xff] %v10881_v59  ;;  %v5090_v34 = vpop.f32.mrb[85].mxu0  ;;  %5352 = vmatmul.mubr.f32.gmra.mrb[190].mxu0 %v1281_v62  ;;  %v7945_v62 = vld [vmem:[%s8936_s17 + $0x1f8] sm:$0xff] }
 0x35e   : > { %v10884_v0 = vpop.permute.xlu1 %2147  ;;  %5356 = vmatprep.mubr.f32.mxu0 %v1772_v39  ;;  %v10886_v2 = vpop.permute.xlu0 %2159 }
 0x35f   : > { %14620 = vst [vmem:[#allocation140_spill] sm:$0xff] %v10884_v0  ;;  %14621 = vst [vmem:[#allocation141_spill] sm:$0xff] %v10886_v2  ;;  %v14626_v2 = vld [vmem:[#allocation29_spill] sm:$0xff]  ;;  %v7947_v0 = vld [vmem:[%s8936_s17 + $0x208] sm:$0xff] }
 0x360   : > { %2497 = vperm.xlu1 %7705, %v10892_v54   ;;  %v10895_v37 = vpop.f32.mrb[86].mxu0  ;;  %2517 = vperm.xlu0 %7704, %v7945_v62   ;;  %v1283_v59 = vmul.f32 %v14626_v2, %v567_v61  ;;  %14627 = vst [vmem:[#allocation29_spill] sm:$0xff] %v10902_v57  ;;  %v10913_v61 = vld [vmem:[%s8936_s17 + $0x1f0] sm:$0xff]  ;;  %v10963_v54 = vld [vmem:[%s8936_s17 + $0x240] sm:$0xff] }
 0x361   : > { %14624 = vst [vmem:[#allocation142_spill] sm:$0xff] %v10895_v37  ;;  %v5095_v34 = vpop.f32.mrb[87].mxu0  ;;  %5357 = vmatmul.mubr.f32.gmra.mrb[192].mxu0 %v1282_v4  ;;  %v7948_v37 = vld [vmem:[%s8931_s21] sm:$0xff]  ;;  %14630 = vst [vmem:[#allocation146_spill] sm:$0xff] %v10913_v61 }
 0x362   : > { %v10898_v39 = vpop.permute.xlu1 %2155  ;;  %5361 = vmatprep.mubr.f32.mxu0 %v1773_v36  ;;  %v2166_v4 = vmul.f32 %v7948_v37, %v10237_v60 }
 0x363   : > { %14625 = vst [vmem:[#allocation143_spill] sm:$0xff] %v10898_v39  ;;  %v2266_v52 = vpop.permute.xlu0 %2265 }
 0x364   : > { %2505 = vperm.xlu1 %7705, %v10902_v57   ;;  %v10905_v31 = vpop.f32.mrb[88].mxu0  ;;  %2525 = vperm.xlu0 %7704, %v7947_v0   ;;  %v2656_v62 = vmul.f32 %v7948_v37, %v2266_v52  ;;  %v7950_v0 = vld [vmem:[%s8936_s17 + $0x218] sm:$0xff]  ;;  %v10930_v57 = vld [vmem:[%s8936_s17 + $0x210] sm:$0xff] }
 0x365   : > { %14628 = vst [vmem:[#allocation144_spill] sm:$0xff] %v10905_v31  ;;  %v5100_v34 = vpop.f32.mrb[89].mxu0  ;;  %5362 = vmatmul.mubr.f32.gmra.mrb[194].mxu0 %v1283_v59  ;;  %v7951_v59 = vld [vmem:[%s8931_s21 + $0x8] sm:$0xff]  ;;  %14634 = vst [vmem:[#allocation150_spill] sm:$0xff] %v10930_v57 }
 0x366   : > { %v10910_v36 = vpop.permute.xlu1 %2163  ;;  %5431 = vmatprep.mubr.f32.mxu1 %v2656_v62 }
 0x367   : > { %14629 = vst [vmem:[#allocation145_spill] sm:$0xff] %v10910_v36  ;;  %5432 = vmatmul.mubr.f32.vlgmr.msra.gmra.mrb[0].mxu1 %v2166_v4  ;;  %v2278_v2 = vpop.permute.xlu0 %2277  ;;  %v10921_v36 = vld [vmem:[%s8936_s17 + $0x200] sm:$0xff]  ;;  %v7953_v4 = vld [vmem:[%s8936_s17 + $0x228] sm:$0xff] }
 0x368   : > { %2513 = vperm.xlu1 %7705, %v10913_v61   ;;  %v10916_v31 = vpop.f32.mrb[90].mxu0  ;;  %2533 = vperm.xlu0 %7704, %v7950_v0   ;;  %14632 = vst [vmem:[#allocation148_spill] sm:$0xff] %v10921_v36  ;;  %v7954_v61 = vld [vmem:[%s8931_s21 + $0x10] sm:$0xff] }
 0x369   : > { %14631 = vst [vmem:[#allocation147_spill] sm:$0xff] %v10916_v31  ;;  %v5105_v52 = vpop.f32.mrb[91].mxu0  ;;  %v2167_v31 = vmul.f32 %v7951_v59, %v10239_v56  ;;  %v7957_v56 = vld [vmem:[%s8931_s21 + $0x18] sm:$0xff] }
 0x36b   : > { %v2270_v60 = vpop.permute.xlu1 %2269  ;;  %v2286_v37 = vpop.permute.xlu0 %2285 }
 0x36c   : > { %v2657_v34 = vmul.f32 %v7951_v59, %v2270_v60  ;;  %2521 = vperm.xlu1 %7705, %v10921_v36   ;;  %v10924_v62 = vpop.f32.mrb[92].mxu0  ;;  %2541 = vperm.xlu0 %7704, %v7953_v4   ;;  %v2168_v4 = vmul.f32 %v7954_v61, %v10246_v1  ;;  %v2659_v59 = vmul.f32 %v7957_v56, %v2278_v2 }
 0x36d   : > { %14633 = vst [vmem:[#allocation149_spill] sm:$0xff] %v10924_v62  ;;  %v5110_v0 = vpop.f32.mrb[93].mxu0  ;;  %v7956_v62 = vld [vmem:[%s8936_s17 + $0x238] sm:$0xff]  ;;  %v2169_v1 = vmul.f32 %v7957_v56, %v10257_v7  ;;  %v7963_v56 = vld [vmem:[%s8931_s21 + $0x28] sm:$0xff] }
 0x36e   : > { %5436 = vmatprep.mubr.f32.mxu1 %v2657_v34 }
 0x36f   : > { %v2274_v52 = vpop.permute.xlu1 %2273  ;;  %5437 = vmatmul.mubr.f32.gmra.mrb[2].mxu1 %v2167_v31  ;;  %v2294_v39 = vpop.permute.xlu0 %2293 }
 0x370   : > { %v2658_v60 = vmul.f32 %v7954_v61, %v2274_v52  ;;  %2529 = vperm.xlu1 %7705, %v10930_v57   ;;  %v10933_v36 = vpop.f32.mrb[94].mxu0  ;;  %2549 = vperm.xlu0 %7704, %v7956_v62   ;;  %v10941_v52 = vld [vmem:[%s8936_s17 + $0x220] sm:$0xff]  ;;  %v7959_v62 = vld [vmem:[%s8936_s17 + $0x248] sm:$0xff]  ;;  %v10952_v57 = vld [vmem:[%s8936_s17 + $0x230] sm:$0xff] }
 0x371   : > { %14635 = vst [vmem:[#allocation151_spill] sm:$0xff] %v10933_v36  ;;  %v5115_v34 = vpop.f32.mrb[95].mxu0  ;;  %14636 = vst [vmem:[#allocation152_spill] sm:$0xff] %v10941_v52  ;;  %v7960_v61 = vld [vmem:[%s8931_s21 + $0x20] sm:$0xff] }
 0x372   : > { %5441 = vmatprep.mubr.f32.mxu1 %v2658_v60  ;;  %14638 = vst [vmem:[#allocation154_spill] sm:$0xff] %v10952_v57 }
 0x373   : > { %v2282_v31 = vpop.permute.xlu1 %2281  ;;  %5442 = vmatmul.mubr.f32.gmra.mrb[4].mxu1 %v2168_v4  ;;  %v10938_v0 = vpop.permute.xlu0 %2301 }
 0x374   : > { %2537 = vperm.xlu1 %7705, %v10941_v52   ;;  %v10944_v36 = vpop.f32.mrb[96].mxu0  ;;  %2557 = vperm.xlu0 %7704, %v7959_v62   ;;  %v2660_v60 = vmul.f32 %v7960_v61, %v2282_v31  ;;  %v7962_v52 = vld [vmem:[%s8936_s17 + $0x258] sm:$0xff]  ;;  %v14640_v62 = vld [vmem:[#allocation35_spill] sm:$0xff] }
 0x375   : > { %14637 = vst [vmem:[#allocation153_spill] sm:$0xff] %v10944_v36  ;;  %v5120_v2 = vpop.f32.mrb[97].mxu0  ;;  %5446 = vmatprep.mubr.f32.mxu1 %v2659_v59  ;;  %v2170_v7 = vmul.f32 %v7960_v61, %v14640_v62  ;;  %v2661_v59 = vmul.f32 %v7963_v56, %v2286_v37  ;;  %14641 = vst [vmem:[#allocation35_spill] sm:$0xff] %v10963_v54  ;;  %v2171_v61 = vmul.f32 %v7963_v56, %v10269_v63  ;;  %v7969_v56 = vld [vmem:[%s8931_s21 + $0x38] sm:$0xff] }
 0x377   : > { %v2290_v34 = vpop.permute.xlu1 %2289  ;;  %5447 = vmatmul.mubr.f32.gmra.mrb[6].mxu1 %v2169_v1  ;;  %v10949_v4 = vpop.permute.xlu0 %2309 }
 0x378   : > { %2545 = vperm.xlu1 %7705, %v10952_v57   ;;  %v10955_v36 = vpop.f32.mrb[98].mxu0  ;;  %2565 = vperm.xlu0 %7704, %v7962_v52   ;;  %v7965_v52 = vld [vmem:[%s8936_s17 + $0x268] sm:$0xff]  ;;  %v10974_v57 = vld [vmem:[%s8936_s17 + $0x250] sm:$0xff] }
 0x379   : > { %14639 = vst [vmem:[#allocation155_spill] sm:$0xff] %v10955_v36  ;;  %5451 = vmatprep.mubr.f32.mxu1 %v2660_v60  ;;  %v5125_v31 = vpop.f32.mrb[99].mxu0  ;;  %v7966_v60 = vld [vmem:[%s8931_s21 + $0x30] sm:$0xff]  ;;  %14643 = vst [vmem:[#allocation157_spill] sm:$0xff] %v10974_v57 }
 0x37a   : > { %v2662_v62 = vmul.f32 %v7966_v60, %v2290_v34 }
 0x37b   : > { %v2298_v2 = vpop.permute.xlu1 %2297  ;;  %5452 = vmatmul.mubr.f32.gmra.mrb[8].mxu1 %v2170_v7  ;;  %v10960_v1 = vpop.permute.xlu0 %2317 }
 0x37c   : > { %2553 = vperm.xlu1 %7705, %v10963_v54   ;;  %v10966_v36 = vpop.f32.mrb[100].mxu0  ;;  %2573 = vperm.xlu0 %7704, %v7965_v52   ;;  %v7968_v54 = vld [vmem:[%s8936_s17 + $0x278] sm:$0xff]  ;;  %v14645_v52 = vld [vmem:[#allocation37_spill] sm:$0xff] }
 0x37d   : > { %14642 = vst [vmem:[#allocation156_spill] sm:$0xff] %v10966_v36  ;;  %v5130_v37 = vpop.f32.mrb[101].mxu0  ;;  %5456 = vmatprep.mubr.f32.mxu1 %v2661_v59  ;;  %v2172_v63 = vmul.f32 %v7966_v60, %v14645_v52  ;;  %v2663_v59 = vmul.f32 %v7969_v56, %v2294_v39  ;;  %14646 = vst [vmem:[#allocation37_spill] sm:$0xff] %v10987_v29  ;;  %v2173_v39 = vmul.f32 %v7969_v56, %v10281_v24  ;;  %v7975_v56 = vld [vmem:[%s8931_s21 + $0x48] sm:$0xff] }
 0x37f   : > { %v2306_v31 = vpop.permute.xlu1 %2305  ;;  %5457 = vmatmul.mubr.f32.gmra.mrb[10].mxu1 %v2171_v61  ;;  %v10971_v7 = vpop.permute.xlu0 %2325 }
 0x380   : > { %2561 = vperm.xlu1 %7705, %v10974_v57   ;;  %v10977_v36 = vpop.f32.mrb[102].mxu0  ;;  %2581 = vperm.xlu0 %7704, %v7968_v54   ;;  %v7971_v54 = vld [vmem:[%s8936_s17 + $0x288] sm:$0xff]  ;;  %v11000_v57 = vld [vmem:[%s8936_s17 + $0x270] sm:$0xff] }
 0x381   : > { %14644 = vst [vmem:[#allocation158_spill] sm:$0xff] %v10977_v36  ;;  %5461 = vmatprep.mubr.f32.mxu1 %v2662_v62  ;;  %v5135_v34 = vpop.f32.mrb[103].mxu0  ;;  %v7972_v62 = vld [vmem:[%s8931_s21 + $0x40] sm:$0xff]  ;;  %14648 = vst [vmem:[#allocation160_spill] sm:$0xff] %v11000_v57 }
 0x382   : > { %v2664_v52 = vmul.f32 %v7972_v62, %v2298_v2  ;;  %v2174_v24 = vmul.f32 %v7972_v62, %v10271_v5  ;;  %v2665_v2 = vmul.f32 %v7975_v56, %v10938_v0  ;;  %v7977_v5 = vld [vmem:[%s8936_s17 + $0x2a8] sm:$0xff]  ;;  %v2175_v0 = vmul.f32 %v7975_v56, %v10295_v19 }
 0x383   : > { %v10982_v37 = vpop.permute.xlu1 %2313  ;;  %5462 = vmatmul.mubr.f32.gmra.mrb[12].mxu1 %v2172_v63  ;;  %v10984_v61 = vpop.permute.xlu0 %2333  ;;  %v14654_v19 = vld [vmem:[#allocation36_spill] sm:$0xff] }
 0x384   : > { %2569 = vperm.xlu1 %7705, %v10987_v29   ;;  %v10990_v36 = vpop.f32.mrb[104].mxu0  ;;  %2589 = vperm.xlu0 %7704, %v7971_v54   ;;  %v7974_v54 = vld [vmem:[%s8936_s17 + $0x298] sm:$0xff]  ;;  %v11014_v29 = vld [vmem:[%s8936_s17 + $0x280] sm:$0xff] }
 0x385   : > { %14647 = vst [vmem:[#allocation159_spill] sm:$0xff] %v10990_v36  ;;  %v5140_v60 = vpop.f32.mrb[105].mxu0  ;;  %5466 = vmatprep.mubr.f32.mxu1 %v2663_v59  ;;  %14650 = vst [vmem:[#allocation162_spill] sm:$0xff] %v11014_v29 }
 0x387   : > { %v10995_v34 = vpop.permute.xlu1 %2321  ;;  %5467 = vmatmul.mubr.f32.gmra.mrb[14].mxu1 %v2173_v39  ;;  %v10997_v63 = vpop.permute.xlu0 %2341 }
 0x388   : > { %2577 = vperm.xlu1 %7705, %v11000_v57   ;;  %v11003_v36 = vpop.f32.mrb[106].mxu0  ;;  %2597 = vperm.xlu0 %7704, %v7974_v54   ;;  %v11027_v57 = vld [vmem:[%s8936_s17 + $0x290] sm:$0xff] }
 0x389   : > { %14649 = vst [vmem:[#allocation161_spill] sm:$0xff] %v11003_v36  ;;  %5471 = vmatprep.mubr.f32.mxu1 %v2664_v52  ;;  %v5145_v59 = vpop.f32.mrb[107].mxu0  ;;  %v7978_v52 = vld [vmem:[%s8931_s21 + $0x50] sm:$0xff]  ;;  %14652 = vst [vmem:[#allocation164_spill] sm:$0xff] %v11027_v57 }
 0x38a   : > { %v2666_v59 = vmul.f32 %v7978_v52, %v2306_v31  ;;  %v2176_v56 = vmul.f32 %v7978_v52, %v14654_v19 }
 0x38b   : > { %v11009_v39 = vpop.permute.xlu1 %2329  ;;  %5472 = vmatmul.mubr.f32.gmra.mrb[16].mxu1 %v2174_v24  ;;  %v11011_v60 = vpop.permute.xlu0 %2349 }
 0x38c   : > { %2585 = vperm.xlu1 %7705, %v11014_v29   ;;  %v11017_v54 = vpop.f32.mrb[108].mxu0  ;;  %2605 = vperm.xlu0 %7704, %v7977_v5   ;;  %v7980_v5 = vld [vmem:[%s8936_s17 + $0x2b8] sm:$0xff] }
 0x38d   : > { %14651 = vst [vmem:[#allocation163_spill] sm:$0xff] %v11017_v54  ;;  %v5150_v62 = vpop.f32.mrb[109].mxu0  ;;  %5476 = vmatprep.mubr.f32.mxu1 %v2665_v2  ;;  %v7981_v2 = vld [vmem:[%s8931_s21 + $0x58] sm:$0xff] }
 0x38e   : > { %v2667_v31 = vmul.f32 %v7981_v2, %v10949_v4  ;;  %v2177_v52 = vmul.f32 %v7981_v2, %v10309_v9  ;;  %v7984_v4 = vld [vmem:[%s8931_s21 + $0x60] sm:$0xff]  ;;  %v7987_v2 = vld [vmem:[%s8931_s21 + $0x68] sm:$0xff] }
 0x38f   : > { %v11022_v36 = vpop.permute.xlu1 %2337  ;;  %5477 = vmatmul.mubr.f32.gmra.mrb[18].mxu1 %v2175_v0  ;;  %v11024_v24 = vpop.permute.xlu0 %2357  ;;  %v2178_v9 = vmul.f32 %v7984_v4, %v10297_v12  ;;  %v2179_v12 = vmul.f32 %v7987_v2, %v10323_v47 }
 0x390   : > { %2593 = vperm.xlu1 %7705, %v11027_v57   ;;  %v11030_v54 = vpop.f32.mrb[110].mxu0  ;;  %2613 = vperm.xlu0 %7704, %v7980_v5   ;;  %v7983_v5 = vld [vmem:[%s8936_s17 + $0x2c8] sm:$0xff]  ;;  %v7985_v57 = vld [vmem:[%s8936_s17 + $0x2b0] sm:$0xff] }
 0x391   : > { %14653 = vst [vmem:[#allocation165_spill] sm:$0xff] %v11030_v54  ;;  %5481 = vmatprep.mubr.f32.mxu1 %v2666_v59  ;;  %v5155_v62 = vpop.f32.mrb[111].mxu0  ;;  %v2668_v59 = vmul.f32 %v7984_v4, %v10982_v37 }
 0x393   : > { %v11036_v0 = vpop.permute.xlu1 %2345  ;;  %5482 = vmatmul.mubr.f32.gmra.mrb[20].mxu1 %v2176_v56  ;;  %v11038_v29 = vpop.permute.xlu0 %2365 }
 0x394   : > { %2601 = vperm.xlu1 %7705, %v7982_v50   ;;  %v11041_v54 = vpop.f32.mrb[112].mxu0  ;;  %2621 = vperm.xlu0 %7704, %v7983_v5  }
 0x395   : > { %14655 = vst [vmem:[#allocation36_spill] sm:$0xff] %v11041_v54  ;;  %v5160_v19 = vpop.f32.mrb[113].mxu0  ;;  %5486 = vmatprep.mubr.f32.mxu1 %v2667_v31  ;;  %v7986_v54 = vld [vmem:[%s8936_s17 + $0x2d8] sm:$0xff]  ;;  %v2669_v31 = vmul.f32 %v7987_v2, %v10960_v1  ;;  %v7990_v1 = vld [vmem:[%s8931_s21 + $0x70] sm:$0xff] }
 0x396   : > { %v7988_v19 = vld [vmem:[%s8936_s17 + $0x2c0] sm:$0xff]  ;;  %v7992_v2 = vld [vmem:[%s8931_s21 + $0x78] sm:$0xff] }
 0x397   : > { %v11047_v62 = vpop.permute.xlu1 %2353  ;;  %5487 = vmatmul.mubr.f32.gmra.mrb[22].mxu1 %v2177_v52  ;;  %v11049_v56 = vpop.permute.xlu0 %2373 }
 0x398   : > { %2609 = vperm.xlu1 %7705, %v7985_v57   ;;  %v11052_v50 = vpop.f32.mrb[114].mxu0  ;;  %2629 = vperm.xlu0 %7704, %v7986_v54   ;;  %v7989_v54 = vld [vmem:[%s8936_s17 + $0x2e8] sm:$0xff] }
 0x399   : > { %14656 = vst [vmem:[#allocation166_spill] sm:$0xff] %v11052_v50  ;;  %5491 = vmatprep.mubr.f32.mxu1 %v2668_v59  ;;  %v5165_v37 = vpop.f32.mrb[115].mxu0  ;;  %v2670_v59 = vmul.f32 %v7990_v1, %v10995_v34  ;;  %v7991_v50 = vld [vmem:[%s8936_s17 + $0x2d0] sm:$0xff] }
 0x39b   : > { %v11058_v5 = vpop.permute.xlu1 %2361  ;;  %5492 = vmatmul.mubr.f32.gmra.mrb[24].mxu1 %v2178_v9  ;;  %v11060_v52 = vpop.permute.xlu0 %2381 }
 0x39c   : > { %2617 = vperm.xlu1 %7705, %v7988_v19   ;;  %v11063_v57 = vpop.f32.mrb[116].mxu0  ;;  %2637 = vperm.xlu0 %7704, %v7989_v54   ;;  %v14659_v54 = vld [vmem:[#allocation40_spill] sm:$0xff] }
 0x39d   : > { %14657 = vst [vmem:[#allocation167_spill] sm:$0xff] %v11063_v57  ;;  %v5170_v4 = vpop.f32.mrb[117].mxu0  ;;  %5496 = vmatprep.mubr.f32.mxu1 %v2669_v31  ;;  %v2180_v47 = vmul.f32 %v7990_v1, %v14659_v54  ;;  %v2671_v31 = vmul.f32 %v7992_v2, %v10971_v7  ;;  %v7994_v7 = vld [vmem:[%s8931_s21 + $0x80] sm:$0xff]  ;;  %v7996_v57 = vld [vmem:[%s8936_s17 + $0x2f0] sm:$0xff] }
 0x39f   : > { %v11069_v37 = vpop.permute.xlu1 %2369  ;;  %5497 = vmatmul.mubr.f32.gmra.mrb[26].mxu1 %v2179_v12  ;;  %v11071_v9 = vpop.permute.xlu0 %2389 }
 0x3a0   : > { %2625 = vperm.xlu1 %7705, %v7991_v50   ;;  %v11074_v19 = vpop.f32.mrb[118].mxu0  ;;  %2645 = vperm.xlu0 %7704, %v10459_v18   ;;  %v7993_v50 = vld [vmem:[%s8936_s17 + $0x2e0] sm:$0xff]  ;;  %v2181_v18 = vmul.f32 %v7992_v2, %v10337_v14  ;;  %v14662_v14 = vld [vmem:[#allocation45_spill] sm:$0xff] }
 0x3a1   : > { %14658 = vst [vmem:[#allocation168_spill] sm:$0xff] %v11074_v19  ;;  %5501 = vmatprep.mubr.f32.mxu1 %v2670_v59  ;;  %v5175_v34 = vpop.f32.mrb[119].mxu0  ;;  %v2672_v59 = vmul.f32 %v7994_v7, %v11009_v39  ;;  %v2182_v2 = vmul.f32 %v7994_v7, %v14662_v14  ;;  %v7998_v7 = vld [vmem:[%s8931_s21 + $0x90] sm:$0xff] }
 0x3a2   : > { %v7995_v34 = vld [vmem:[%s8931_s21 + $0x88] sm:$0xff] }
 0x3a3   : > { %v11080_v4 = vpop.permute.xlu1 %2377  ;;  %5502 = vmatmul.mubr.f32.gmra.mrb[28].mxu1 %v2180_v47  ;;  %v11082_v12 = vpop.permute.xlu0 %2397 }
 0x3a4   : > { %2633 = vperm.xlu1 %7705, %v7993_v50   ;;  %v11085_v19 = vpop.f32.mrb[120].mxu0  ;;  %2653 = vperm.xlu0 %7704, %v10474_v43   ;;  %v2673_v50 = vmul.f32 %v7995_v34, %v10984_v61  ;;  %v8718_v43 = vmov 4   ;;  %v7997_v61 = vld [vmem:[%s8936_s17 + $0x300] sm:$0xff] }
 0x3a5   : > { %14660 = vst [vmem:[#allocation40_spill] sm:$0xff] %v11085_v19  ;;  %v5180_v1 = vpop.f32.mrb[121].mxu0  ;;  %5506 = vmatprep.mubr.f32.mxu1 %v2671_v31 }
 0x3a6   : > { %v2183_v1 = vmul.f32 %v7995_v34, %v10351_v10  ;;  %v14665_v10 = vld [vmem:[#allocation38_spill] sm:$0xff] }
 0x3a7   : > { %v11091_v54 = vpop.permute.xlu1 %2385  ;;  %5507 = vmatmul.mubr.f32.gmra.mrb[30].mxu1 %v2181_v18  ;;  %v11093_v47 = vpop.permute.xlu0 %2405 }
 0x3a8   : > { %2641 = vperm.xlu1 %7705, %v7996_v57   ;;  %v11098_v19 = vpop.f32.mrb[122].mxu0  ;;  %7707 = vset.pattern.permute.xlu0 %v8718_v43 }
 0x3a9   : > { %14661 = vst [vmem:[#allocation169_spill] sm:$0xff] %v11098_v19  ;;  %5511 = vmatprep.mubr.f32.mxu1 %v2672_v59  ;;  %v5185_v39 = vpop.f32.mrb[123].mxu0  ;;  %2759 = vperm.xlu0 %7707, %v10489_v40   ;;  %v2674_v40 = vmul.f32 %v7998_v7, %v11022_v36 }
 0x3ab   : > { %v11102_v31 = vpop.permute.xlu1 %2393  ;;  %5512 = vmatmul.mubr.f32.gmra.mrb[32].mxu1 %v2182_v2  ;;  %v11104_v18 = vpop.permute.xlu0 %2413  ;;  %v7999_v2 = vld [vmem:[%s8931_s21 + $0x98] sm:$0xff] }
 0x3ac   : > { %2649 = vperm.xlu1 %7705, %v7997_v61   ;;  %v11107_v57 = vpop.f32.mrb[124].mxu0  ;;  %5516 = vmatprep.mubr.f32.mxu1 %v2673_v50  ;;  %v2675_v39 = vmul.f32 %v7999_v2, %v10997_v63  ;;  %v14667_v63 = vld [vmem:[#allocation53_spill] sm:$0xff] }
 0x3ad   : > { %14663 = vst [vmem:[#allocation45_spill] sm:$0xff] %v11107_v57  ;;  %v5190_v19 = vpop.f32.mrb[125].mxu0  ;;  %2771 = vperm.xlu0 %7707, %v10514_v15   ;;  %v8000_v15 = vld [vmem:[%s8936_s17] sm:$0xff]  ;;  %v14731_v57 = vmov 0.0|0.0  }
 0x3ae   : > { %v2184_v19 = vmul.f32 %v7998_v7, %v14665_v10  ;;  %v8002_v10 = vld [vmem:[%s8931_s21 + $0xa0] sm:$0xff] }
 0x3af   : > { %v11113_v59 = vpop.permute.xlu1 %2401  ;;  %5517 = vmatmul.mubr.f32.gmra.mrb[34].mxu1 %v2183_v1  ;;  %v11115_v14 = vpop.permute.xlu0 %2421 }
 0x3b0   : > { %7706 = vset.pattern.permute.xlu1 %v8718_v43  ;;  %v11119_v61 = vpop.f32.mrb[126].mxu0  ;;  %5521 = vmatprep.mubr.f32.mxu1 %v2674_v40  ;;  %v2185_v43 = vmul.f32 %v7999_v2, %v14667_v63  ;;  %v8001_v40 = vld [vmem:[%s8936_s17 + $0x10] sm:$0xff]  ;;  %v14669_v2 = vld [vmem:[#allocation48_spill] sm:$0xff] }
 0x3b1   : > { %14664 = vst [vmem:[#allocation170_spill] sm:$0xff] %v11119_v61  ;;  %2755 = vperm.xlu1 %7706, %v8000_v15   ;;  %v5195_v34 = vpop.f32.mrb[127].mxu0  ;;  %2779 = vperm.xlu0 %7707, %v10528_v16   ;;  %v2676_v16 = vmul.f32 %v8002_v10, %v11036_v0  ;;  %v2186_v63 = vmul.f32 %v8002_v10, %v14669_v2  ;;  %v8006_v2 = vld [vmem:[%s8931_s21 + $0xb0] sm:$0xff] }
 0x3b2   : > { %v8003_v34 = vld [vmem:[%s8931_s21 + $0xa8] sm:$0xff]  ;;  %v8062_v61 = vld [vmem:[%s8931_s21 + $0x190] sm:$0xff] }
 0x3b3   : > { %v11124_v36 = vpop.permute.xlu1 %2409  ;;  %5522 = vmatmul.mubr.f32.gmra.mrb[36].mxu1 %v2184_v19  ;;  %v11126_v50 = vpop.permute.xlu0 %2429 }
 0x3b4   : > { %v11128_v1 = vpop.f32.mrb[128].mxu0  ;;  %5526 = vmatprep.mubr.f32.mxu1 %v2675_v39  ;;  %v2677_v39 = vmul.f32 %v8003_v34, %v11011_v60  ;;  %v14671_v60 = vld [vmem:[#allocation57_spill] sm:$0xff] }
 0x3b5   : > { %14666 = vst [vmem:[#allocation38_spill] sm:$0xff] %v11128_v1  ;;  %2763 = vperm.xlu1 %7706, %v8001_v40   ;;  %v5200_v7 = vpop.f32.mrb[129].mxu0  ;;  %2787 = vperm.xlu0 %7707, %v10542_v30   ;;  %v8004_v40 = vld [vmem:[%s8936_s17 + $0x18] sm:$0xff] }
 0x3b7   : > { %v11135_v15 = vpop.permute.xlu1 %2417  ;;  %5527 = vmatmul.mubr.f32.gmra.mrb[38].mxu1 %v2185_v43  ;;  %v11137_v19 = vpop.permute.xlu0 %2437 }
 0x3b8   : > { %v11141_v1 = vpop.f32.mrb[130].mxu0  ;;  %5531 = vmatprep.mubr.f32.mxu1 %v2676_v16  ;;  %v2187_v16 = vmul.f32 %v8003_v34, %v14671_v60  ;;  %v14673_v34 = vld [vmem:[#allocation52_spill] sm:$0xff]  ;;  %v8008_v60 = vld [vmem:[%s8936_s17 + $0x38] sm:$0xff] }
 0x3b9   : > { %14668 = vst [vmem:[#allocation53_spill] sm:$0xff] %v11141_v1  ;;  %2767 = vperm.xlu1 %7706, %v8004_v40   ;;  %v5205_v30 = vpop.f32.mrb[131].mxu0  ;;  %2795 = vperm.xlu0 %7707, %v10556_v26   ;;  %v8005_v1 = vld [vmem:[%s8936_s17 + $0x28] sm:$0xff]  ;;  %v2678_v26 = vmul.f32 %v8006_v2, %v11047_v62 }
 0x3ba   : > { %v8007_v30 = vld [vmem:[%s8931_s21 + $0xb8] sm:$0xff] }
 0x3bb   : > { %v11146_v0 = vpop.permute.xlu1 %2425  ;;  %5532 = vmatmul.mubr.f32.gmra.mrb[40].mxu1 %v2186_v63  ;;  %v11148_v43 = vpop.permute.xlu0 %2445 }
 0x3bc   : > { %v11150_v7 = vpop.f32.mrb[132].mxu0  ;;  %5536 = vmatprep.mubr.f32.mxu1 %v2677_v39  ;;  %v2679_v39 = vmul.f32 %v8007_v30, %v11024_v24  ;;  %v2189_v24 = vmul.f32 %v8007_v30, %v10393_v6  ;;  %v14676_v6 = vld [vmem:[#allocation56_spill] sm:$0xff] }
 0x3bd   : > { %14670 = vst [vmem:[#allocation48_spill] sm:$0xff] %v11150_v7  ;;  %2775 = vperm.xlu1 %7706, %v8005_v1   ;;  %v5210_v10 = vpop.f32.mrb[133].mxu0  ;;  %2803 = vperm.xlu0 %7707, %v10570_v8   ;;  %v2188_v1 = vmul.f32 %v8006_v2, %v14673_v34  ;;  %v8010_v34 = vld [vmem:[%s8931_s21 + $0xc0] sm:$0xff] }
 0x3be   : > { %v2190_v30 = vmul.f32 %v8010_v34, %v14676_v6  ;;  %v8014_v6 = vld [vmem:[%s8931_s21 + $0xd0] sm:$0xff] }
 0x3bf   : > { %v11157_v40 = vpop.permute.xlu1 %2433  ;;  %5537 = vmatmul.mubr.f32.gmra.mrb[42].mxu1 %v2187_v16  ;;  %v11159_v63 = vpop.permute.xlu0 %2453 }
 0x3c0   : > { %v11163_v7 = vpop.f32.mrb[134].mxu0  ;;  %5541 = vmatprep.mubr.f32.mxu1 %v2678_v26  ;;  %v8009_v26 = vld [vmem:[%s8936_s17 + $0x48] sm:$0xff] }
 0x3c1   : > { %14672 = vst [vmem:[#allocation57_spill] sm:$0xff] %v11163_v7  ;;  %2783 = vperm.xlu1 %7706, %v8008_v60   ;;  %v5215_v8 = vpop.f32.mrb[135].mxu0  ;;  %2811 = vperm.xlu0 %7707, %v10584_v20   ;;  %v2680_v20 = vmul.f32 %v8010_v34, %v11058_v5  ;;  %v14729_v7 = vld [vmem:[#allocation152_spill] sm:$0xff] }
 0x3c2   : > { %v8011_v8 = vld [vmem:[%s8931_s21 + $0xc8] sm:$0xff] }
 0x3c3   : > { %v11168_v62 = vpop.permute.xlu1 %2441  ;;  %5542 = vmatmul.mubr.f32.gmra.mrb[44].mxu1 %v2188_v1  ;;  %v11170_v16 = vpop.permute.xlu0 %2461 }
 0x3c4   : > { %v11172_v10 = vpop.f32.mrb[136].mxu0  ;;  %5546 = vmatprep.mubr.f32.mxu1 %v2679_v39  ;;  %v2681_v39 = vmul.f32 %v8011_v8, %v11038_v29  ;;  %v2191_v29 = vmul.f32 %v8011_v8, %v10407_v13  ;;  %v8015_v8 = vld [vmem:[%s8936_s17 + $0x78] sm:$0xff] }
 0x3c5   : > { %14674 = vst [vmem:[#allocation52_spill] sm:$0xff] %v11172_v10  ;;  %2791 = vperm.xlu1 %7706, %v8009_v26   ;;  %v5220_v2 = vpop.f32.mrb[137].mxu0  ;;  %2819 = vperm.xlu0 %7707, %v10598_v22   ;;  %v8012_v26 = vld [vmem:[%s8936_s17 + $0x58] sm:$0xff] }
 0x3c7   : > { %v11179_v60 = vpop.permute.xlu1 %2449  ;;  %5547 = vmatmul.mubr.f32.gmra.mrb[46].mxu1 %v2189_v24  ;;  %v11181_v1 = vpop.permute.xlu0 %2469 }
 0x3c8   : > { %v11185_v10 = vpop.f32.mrb[138].mxu0  ;;  %5551 = vmatprep.mubr.f32.mxu1 %v2680_v20  ;;  %v8013_v20 = vld [vmem:[%s8936_s17 + $0x68] sm:$0xff] }
 0x3c9   : > { %14675 = vst [vmem:[#allocation171_spill] sm:$0xff] %v11185_v10  ;;  %2799 = vperm.xlu1 %7706, %v8012_v26   ;;  %v5225_v22 = vpop.f32.mrb[139].mxu0  ;;  %2827 = vperm.xlu0 %7707, %v10612_v49   ;;  %v2682_v49 = vmul.f32 %v8014_v6, %v11069_v37  ;;  %v632_v10 = vld [vmem:[%s8915_s7 + $0x200] sm:$0xff] }
 0x3cb   : > { %v11190_v5 = vpop.permute.xlu1 %2457  ;;  %5552 = vmatmul.mubr.f32.gmra.mrb[48].mxu1 %v2190_v30  ;;  %v11192_v24 = vpop.permute.xlu0 %2477 }
 0x3cc   : > { %v11194_v2 = vpop.f32.mrb[140].mxu0  ;;  %5556 = vmatprep.mubr.f32.mxu1 %v2681_v39  ;;  %v14679_v39 = vld [vmem:[#allocation61_spill] sm:$0xff] }
 0x3cd   : > { %14677 = vst [vmem:[#allocation56_spill] sm:$0xff] %v11194_v2  ;;  %2807 = vperm.xlu1 %7706, %v8013_v20   ;;  %v5230_v34 = vpop.f32.mrb[141].mxu0  ;;  %2835 = vperm.xlu0 %7707, %v10626_v48   ;;  %v2192_v13 = vmul.f32 %v8014_v6, %v14679_v39  ;;  %v8016_v48 = vld [vmem:[%s8931_s21 + $0xd8] sm:$0xff] }
 0x3ce   : > { %v2683_v37 = vmul.f32 %v8016_v48, %v11049_v56  ;;  %v2193_v6 = vmul.f32 %v8016_v48, %v10421_v27  ;;  %v8019_v48 = vld [vmem:[%s8936_s17 + $0x98] sm:$0xff] }
 0x3cf   : > { %v11201_v26 = vpop.permute.xlu1 %2465  ;;  %5557 = vmatmul.mubr.f32.gmra.mrb[50].mxu1 %v2191_v29  ;;  %v11203_v30 = vpop.permute.xlu0 %2485 }
 0x3d0   : > { %v11205_v22 = vpop.f32.mrb[142].mxu0  ;;  %5561 = vmatprep.mubr.f32.mxu1 %v2682_v49  ;;  %v8017_v49 = vld [vmem:[%s8936_s17 + $0x88] sm:$0xff] }
 0x3d1   : > { %14678 = vst [vmem:[#allocation172_spill] sm:$0xff] %v11205_v22  ;;  %2815 = vperm.xlu1 %7706, %v8015_v8   ;;  %v5235_v20 = vpop.f32.mrb[143].mxu0  ;;  %2843 = vperm.xlu0 %7707, %v10640_v38   ;;  %v8018_v38 = vld [vmem:[%s8931_s21 + $0xe0] sm:$0xff] }
 0x3d2   : > { %v2684_v56 = vmul.f32 %v8018_v38, %v11080_v4 }
 0x3d3   : > { %v11212_v34 = vpop.permute.xlu1 %2473  ;;  %5562 = vmatmul.mubr.f32.gmra.mrb[52].mxu1 %v2192_v13  ;;  %v11214_v29 = vpop.permute.xlu0 %2493 }
 0x3d4   : > { %v11216_v2 = vpop.f32.mrb[144].mxu0  ;;  %5566 = vmatprep.mubr.f32.mxu1 %v2683_v37  ;;  %v14682_v37 = vld [vmem:[#allocation46_spill] sm:$0xff] }
 0x3d5   : > { %14680 = vst [vmem:[#allocation61_spill] sm:$0xff] %v11216_v2  ;;  %2823 = vperm.xlu1 %7706, %v8017_v49   ;;  %v5240_v39 = vpop.f32.mrb[145].mxu0  ;;  %2851 = vperm.xlu0 %7707, %v10654_v21   ;;  %v2194_v27 = vmul.f32 %v8018_v38, %v14682_v37  ;;  %v8020_v21 = vld [vmem:[%s8931_s21 + $0xe8] sm:$0xff] }
 0x3d6   : > { %v2685_v4 = vmul.f32 %v8020_v21, %v11060_v52  ;;  %v8021_v37 = vld [vmem:[%s8936_s17 + $0xa8] sm:$0xff] }
 0x3d7   : > { %v11223_v8 = vpop.permute.xlu1 %2481  ;;  %5567 = vmatmul.mubr.f32.gmra.mrb[54].mxu1 %v2193_v6  ;;  %v11225_v13 = vpop.permute.xlu0 %2501 }
 0x3d8   : > { %v11227_v20 = vpop.f32.mrb[146].mxu0  ;;  %5571 = vmatprep.mubr.f32.mxu1 %v2684_v56  ;;  %v14684_v56 = vld [vmem:[#allocation69_spill] sm:$0xff] }
 0x3d9   : > { %14681 = vst [vmem:[#allocation173_spill] sm:$0xff] %v11227_v20  ;;  %2831 = vperm.xlu1 %7706, %v8019_v48   ;;  %v5245_v49 = vpop.f32.mrb[147].mxu0  ;;  %2859 = vperm.xlu0 %7707, %v10668_v51   ;;  %v2195_v38 = vmul.f32 %v8020_v21, %v14684_v56  ;;  %v8022_v51 = vld [vmem:[%s8931_s21 + $0xf0] sm:$0xff]  ;;  %v8023_v56 = vld [vmem:[%s8936_s17 + $0xb8] sm:$0xff] }
 0x3da   : > { %v2686_v52 = vmul.f32 %v8022_v51, %v11091_v54 }
 0x3db   : > { %v11234_v39 = vpop.permute.xlu1 %2489  ;;  %5572 = vmatmul.mubr.f32.gmra.mrb[56].mxu1 %v2194_v27  ;;  %v11236_v6 = vpop.permute.xlu0 %2509 }
 0x3dc   : > { %v11238_v2 = vpop.f32.mrb[148].mxu0  ;;  %5576 = vmatprep.mubr.f32.mxu1 %v2685_v4  ;;  %v14686_v4 = vld [vmem:[#allocation64_spill] sm:$0xff] }
 0x3dd   : > { %14683 = vst [vmem:[#allocation46_spill] sm:$0xff] %v11238_v2  ;;  %2839 = vperm.xlu1 %7706, %v8021_v37   ;;  %v5250_v48 = vpop.f32.mrb[149].mxu0  ;;  %2867 = vperm.xlu0 %7707, %v10682_v25   ;;  %v2196_v21 = vmul.f32 %v8022_v51, %v14686_v4  ;;  %v8024_v25 = vld [vmem:[%s8931_s21 + $0xf8] sm:$0xff] }
 0x3de   : > { %v2687_v54 = vmul.f32 %v8024_v25, %v11071_v9  ;;  %v2197_v51 = vmul.f32 %v8024_v25, %v10449_v17  ;;  %v8027_v25 = vld [vmem:[%s8936_s17 + $0xd8] sm:$0xff] }
 0x3df   : > { %v11245_v49 = vpop.permute.xlu1 %2497  ;;  %5577 = vmatmul.mubr.f32.gmra.mrb[58].mxu1 %v2195_v38  ;;  %v11247_v27 = vpop.permute.xlu0 %2517 }
 0x3e0   : > { %v11249_v20 = vpop.f32.mrb[150].mxu0  ;;  %5581 = vmatprep.mubr.f32.mxu1 %v2686_v52  ;;  %v8025_v52 = vld [vmem:[%s8936_s17 + $0xc8] sm:$0xff] }
 0x3e1   : > { %14685 = vst [vmem:[#allocation69_spill] sm:$0xff] %v11249_v20  ;;  %2847 = vperm.xlu1 %7706, %v8023_v56   ;;  %v5255_v37 = vpop.f32.mrb[151].mxu0  ;;  %2875 = vperm.xlu0 %7707, %v10696_v35   ;;  %v8026_v35 = vld [vmem:[%s8931_s21 + $0x100] sm:$0xff] }
 0x3e2   : > { %v2688_v9 = vmul.f32 %v8026_v35, %v11102_v31 }
 0x3e3   : > { %v11256_v48 = vpop.permute.xlu1 %2505  ;;  %5582 = vmatmul.mubr.f32.gmra.mrb[60].mxu1 %v2196_v21  ;;  %v11258_v38 = vpop.permute.xlu0 %2525 }
 0x3e4   : > { %v11260_v2 = vpop.f32.mrb[152].mxu0  ;;  %5586 = vmatprep.mubr.f32.mxu1 %v2687_v54  ;;  %v14689_v54 = vld [vmem:[#allocation68_spill] sm:$0xff] }
 0x3e5   : > { %14687 = vst [vmem:[#allocation64_spill] sm:$0xff] %v11260_v2  ;;  %2855 = vperm.xlu1 %7706, %v8025_v52   ;;  %v5260_v4 = vpop.f32.mrb[153].mxu0  ;;  %2883 = vperm.xlu0 %7707, %v10710_v33   ;;  %v2198_v17 = vmul.f32 %v8026_v35, %v14689_v54  ;;  %v8028_v33 = vld [vmem:[%s8931_s21 + $0x108] sm:$0xff] }
 0x3e6   : > { %v2689_v31 = vmul.f32 %v8028_v33, %v11082_v12  ;;  %v2199_v35 = vmul.f32 %v8028_v33, %v10466_v58  ;;  %v8031_v33 = vld [vmem:[%s8936_s17 + $0xf8] sm:$0xff] }
 0x3e7   : > { %v11267_v56 = vpop.permute.xlu1 %2513  ;;  %5587 = vmatmul.mubr.f32.gmra.mrb[62].mxu1 %v2197_v51  ;;  %v11269_v21 = vpop.permute.xlu0 %2533 }
 0x3e8   : > { %v11271_v37 = vpop.f32.mrb[154].mxu0  ;;  %5591 = vmatprep.mubr.f32.mxu1 %v2688_v9  ;;  %v8029_v9 = vld [vmem:[%s8936_s17 + $0xe8] sm:$0xff] }
 0x3e9   : > { %14688 = vst [vmem:[#allocation174_spill] sm:$0xff] %v11271_v37  ;;  %2863 = vperm.xlu1 %7706, %v8027_v25   ;;  %v5265_v52 = vpop.f32.mrb[155].mxu0  ;;  %2891 = vperm.xlu0 %7707, %v10724_v42   ;;  %v8030_v42 = vld [vmem:[%s8931_s21 + $0x110] sm:$0xff] }
 0x3ea   : > { %v2690_v12 = vmul.f32 %v8030_v42, %v11113_v59 }
 0x3eb   : > { %v11278_v4 = vpop.permute.xlu1 %2521  ;;  %5592 = vmatmul.mubr.f32.gmra.mrb[64].mxu1 %v2198_v17  ;;  %v11280_v51 = vpop.permute.xlu0 %2541 }
 0x3ec   : > { %v11282_v2 = vpop.f32.mrb[156].mxu0  ;;  %5596 = vmatprep.mubr.f32.mxu1 %v2689_v31  ;;  %v14692_v31 = vld [vmem:[#allocation73_spill] sm:$0xff] }
 0x3ed   : > { %14690 = vst [vmem:[#allocation68_spill] sm:$0xff] %v11282_v2  ;;  %2871 = vperm.xlu1 %7706, %v8029_v9   ;;  %v5270_v54 = vpop.f32.mrb[157].mxu0  ;;  %2899 = vperm.xlu0 %7707, %v10738_v46   ;;  %v2200_v58 = vmul.f32 %v8030_v42, %v14692_v31  ;;  %v8032_v46 = vld [vmem:[%s8931_s21 + $0x118] sm:$0xff] }
 0x3ee   : > { %v2691_v59 = vmul.f32 %v8032_v46, %v11093_v47  ;;  %v2201_v42 = vmul.f32 %v8032_v46, %v10481_v11  ;;  %v8035_v46 = vld [vmem:[%s8936_s17 + $0x118] sm:$0xff] }
 0x3ef   : > { %v11289_v25 = vpop.permute.xlu1 %2529  ;;  %5597 = vmatmul.mubr.f32.gmra.mrb[66].mxu1 %v2199_v35  ;;  %v11291_v17 = vpop.permute.xlu0 %2549 }
 0x3f0   : > { %v11293_v52 = vpop.f32.mrb[158].mxu0  ;;  %5601 = vmatprep.mubr.f32.mxu1 %v2690_v12  ;;  %v8033_v12 = vld [vmem:[%s8936_s17 + $0x108] sm:$0xff] }
 0x3f1   : > { %14691 = vst [vmem:[#allocation175_spill] sm:$0xff] %v11293_v52  ;;  %2879 = vperm.xlu1 %7706, %v8031_v33   ;;  %v5275_v9 = vpop.f32.mrb[159].mxu0  ;;  %2907 = vperm.xlu0 %7707, %v10752_v45   ;;  %v8034_v45 = vld [vmem:[%s8931_s21 + $0x120] sm:$0xff] }
 0x3f2   : > { %v2692_v47 = vmul.f32 %v8034_v45, %v11124_v36 }
 0x3f3   : > { %v11300_v54 = vpop.permute.xlu1 %2537  ;;  %5602 = vmatmul.mubr.f32.gmra.mrb[68].mxu1 %v2200_v58  ;;  %v11302_v35 = vpop.permute.xlu0 %2557 }
 0x3f4   : > { %v11304_v2 = vpop.f32.mrb[160].mxu0  ;;  %5606 = vmatprep.mubr.f32.mxu1 %v2691_v59  ;;  %v14695_v59 = vld [vmem:[#allocation55_spill] sm:$0xff] }
 0x3f5   : > { %14693 = vst [vmem:[#allocation73_spill] sm:$0xff] %v11304_v2  ;;  %2887 = vperm.xlu1 %7706, %v8033_v12   ;;  %v5280_v31 = vpop.f32.mrb[161].mxu0  ;;  %2915 = vperm.xlu0 %7707, %v10766_v44   ;;  %v2202_v11 = vmul.f32 %v8034_v45, %v14695_v59  ;;  %v8036_v44 = vld [vmem:[%s8931_s21 + $0x128] sm:$0xff] }
 0x3f6   : > { %v2693_v36 = vmul.f32 %v8036_v44, %v11104_v18  ;;  %v8037_v59 = vld [vmem:[%s8936_s17 + $0x128] sm:$0xff] }
 0x3f7   : > { %v11311_v33 = vpop.permute.xlu1 %2545  ;;  %5607 = vmatmul.mubr.f32.gmra.mrb[70].mxu1 %v2201_v42  ;;  %v11313_v58 = vpop.permute.xlu0 %2565 }
 0x3f8   : > { %v11315_v9 = vpop.f32.mrb[162].mxu0  ;;  %5611 = vmatprep.mubr.f32.mxu1 %v2692_v47  ;;  %v14697_v47 = vld [vmem:[#allocation81_spill] sm:$0xff] }
 0x3f9   : > { %14694 = vst [vmem:[#allocation176_spill] sm:$0xff] %v11315_v9  ;;  %2895 = vperm.xlu1 %7706, %v8035_v46   ;;  %v5285_v12 = vpop.f32.mrb[163].mxu0  ;;  %2923 = vperm.xlu0 %7707, %v10780_v3   ;;  %v2203_v45 = vmul.f32 %v8036_v44, %v14697_v47  ;;  %v8038_v3 = vld [vmem:[%s8931_s21 + $0x130] sm:$0xff]  ;;  %v8039_v47 = vld [vmem:[%s8936_s17 + $0x138] sm:$0xff] }
 0x3fa   : > { %v2694_v18 = vmul.f32 %v8038_v3, %v11135_v15 }
 0x3fb   : > { %v11322_v31 = vpop.permute.xlu1 %2553  ;;  %5612 = vmatmul.mubr.f32.gmra.mrb[72].mxu1 %v2202_v11  ;;  %v11324_v42 = vpop.permute.xlu0 %2573 }
 0x3fc   : > { %v11326_v2 = vpop.f32.mrb[164].mxu0  ;;  %5616 = vmatprep.mubr.f32.mxu1 %v2693_v36  ;;  %v14699_v36 = vld [vmem:[#allocation76_spill] sm:$0xff] }
 0x3fd   : > { %14696 = vst [vmem:[#allocation55_spill] sm:$0xff] %v11326_v2  ;;  %2903 = vperm.xlu1 %7706, %v8037_v59   ;;  %v5290_v46 = vpop.f32.mrb[165].mxu0  ;;  %2931 = vperm.xlu0 %7707, %v10794_v41   ;;  %v2204_v44 = vmul.f32 %v8038_v3, %v14699_v36  ;;  %v8040_v41 = vld [vmem:[%s8931_s21 + $0x138] sm:$0xff] }
 0x3fe   : > { %v2695_v15 = vmul.f32 %v8040_v41, %v11115_v14  ;;  %v2205_v3 = vmul.f32 %v8040_v41, %v10506_v53  ;;  %v8043_v41 = vld [vmem:[%s8936_s17 + $0x158] sm:$0xff] }
 0x3ff   : > { %v11333_v12 = vpop.permute.xlu1 %2561  ;;  %5617 = vmatmul.mubr.f32.gmra.mrb[74].mxu1 %v2203_v45  ;;  %v11335_v11 = vpop.permute.xlu0 %2581 }
 0x400   : > { %v11337_v9 = vpop.f32.mrb[166].mxu0  ;;  %5621 = vmatprep.mubr.f32.mxu1 %v2694_v18  ;;  %v8041_v18 = vld [vmem:[%s8936_s17 + $0x148] sm:$0xff] }
 0x401   : > { %14698 = vst [vmem:[#allocation81_spill] sm:$0xff] %v11337_v9  ;;  %2911 = vperm.xlu1 %7706, %v8039_v47   ;;  %v5295_v59 = vpop.f32.mrb[167].mxu0  ;;  %2939 = vperm.xlu0 %7707, %v10808_v32   ;;  %v8042_v32 = vld [vmem:[%s8931_s21 + $0x140] sm:$0xff] }
 0x402   : > { %v2696_v14 = vmul.f32 %v8042_v32, %v11146_v0 }
 0x403   : > { %v11344_v46 = vpop.permute.xlu1 %2569  ;;  %5622 = vmatmul.mubr.f32.gmra.mrb[76].mxu1 %v2204_v44  ;;  %v11346_v45 = vpop.permute.xlu0 %2589 }
 0x404   : > { %v11348_v2 = vpop.f32.mrb[168].mxu0  ;;  %5626 = vmatprep.mubr.f32.mxu1 %v2695_v15  ;;  %v14702_v15 = vld [vmem:[#allocation80_spill] sm:$0xff] }
 0x405   : > { %14700 = vst [vmem:[#allocation76_spill] sm:$0xff] %v11348_v2  ;;  %2919 = vperm.xlu1 %7706, %v8041_v18   ;;  %v5300_v36 = vpop.f32.mrb[169].mxu0  ;;  %2947 = vperm.xlu0 %7707, %v10822_v28   ;;  %v2206_v53 = vmul.f32 %v8042_v32, %v14702_v15  ;;  %v8044_v28 = vld [vmem:[%s8931_s21 + $0x148] sm:$0xff] }
 0x406   : > { %v2697_v0 = vmul.f32 %v8044_v28, %v11126_v50  ;;  %v8045_v15 = vld [vmem:[%s8936_s17 + $0x168] sm:$0xff] }
 0x407   : > { %v11355_v47 = vpop.permute.xlu1 %2577  ;;  %5627 = vmatmul.mubr.f32.gmra.mrb[78].mxu1 %v2205_v3  ;;  %v11357_v44 = vpop.permute.xlu0 %2597 }
 0x408   : > { %v11359_v59 = vpop.f32.mrb[170].mxu0  ;;  %5631 = vmatprep.mubr.f32.mxu1 %v2696_v14  ;;  %v14704_v14 = vld [vmem:[#allocation58_spill] sm:$0xff] }
 0x409   : > { %14701 = vst [vmem:[#allocation177_spill] sm:$0xff] %v11359_v59  ;;  %2927 = vperm.xlu1 %7706, %v8043_v41   ;;  %v5305_v18 = vpop.f32.mrb[171].mxu0  ;;  %2955 = vperm.xlu0 %7707, %v10836_v55   ;;  %v2207_v32 = vmul.f32 %v8044_v28, %v14704_v14  ;;  %v8046_v55 = vld [vmem:[%s8931_s21 + $0x150] sm:$0xff]  ;;  %v8047_v14 = vld [vmem:[%s8936_s17 + $0x178] sm:$0xff] }
 0x40a   : > { %v2698_v50 = vmul.f32 %v8046_v55, %v11157_v40 }
 0x40b   : > { %v11366_v36 = vpop.permute.xlu1 %2585  ;;  %5632 = vmatmul.mubr.f32.gmra.mrb[80].mxu1 %v2206_v53  ;;  %v11368_v3 = vpop.permute.xlu0 %2605 }
 0x40c   : > { %v11370_v2 = vpop.f32.mrb[172].mxu0  ;;  %5636 = vmatprep.mubr.f32.mxu1 %v2697_v0  ;;  %v14706_v0 = vld [vmem:[#allocation85_spill] sm:$0xff] }
 0x40d   : > { %14703 = vst [vmem:[#allocation80_spill] sm:$0xff] %v11370_v2  ;;  %2935 = vperm.xlu1 %7706, %v8045_v15   ;;  %v5310_v41 = vpop.f32.mrb[173].mxu0  ;;  %2963 = vperm.xlu0 %7707, %v10850_v23   ;;  %v2208_v28 = vmul.f32 %v8046_v55, %v14706_v0  ;;  %v8048_v23 = vld [vmem:[%s8931_s21 + $0x158] sm:$0xff]  ;;  %v8049_v0 = vld [vmem:[%s8936_s17 + $0x188] sm:$0xff] }
 0x40e   : > { %v14707_v41 = vld [vmem:[#allocation26_spill] sm:$0xff]  ;;  %v2699_v40 = vmul.f32 %v8048_v23, %v11137_v19 }
 0x40f   : > { %v11377_v18 = vpop.permute.xlu1 %2593  ;;  %5637 = vmatmul.mubr.f32.gmra.mrb[82].mxu1 %v2207_v32  ;;  %v11379_v53 = vpop.permute.xlu0 %2613 }
 0x410   : > { %v11381_v59 = vpop.f32.mrb[174].mxu0  ;;  %5641 = vmatprep.mubr.f32.mxu1 %v2698_v50  ;;  %v14709_v50 = vld [vmem:[#allocation63_spill] sm:$0xff] }
 0x411   : > { %14705 = vst [vmem:[#allocation58_spill] sm:$0xff] %v11381_v59  ;;  %2943 = vperm.xlu1 %7706, %v8047_v14   ;;  %v5315_v15 = vpop.f32.mrb[175].mxu0  ;;  %2971 = vperm.xlu0 %7707, %v14707_v41   ;;  %v2209_v55 = vmul.f32 %v8048_v23, %v14709_v50  ;;  %v8050_v41 = vld [vmem:[%s8931_s21 + $0x160] sm:$0xff]  ;;  %v8051_v50 = vld [vmem:[%s8936_s17 + $0x198] sm:$0xff] }
 0x412   : > { %v14710_v15 = vld [vmem:[#allocation27_spill] sm:$0xff]  ;;  %v2700_v19 = vmul.f32 %v8050_v41, %v11168_v62 }
 0x413   : > { %v11388_v2 = vpop.permute.xlu1 %2601  ;;  %5642 = vmatmul.mubr.f32.gmra.mrb[84].mxu1 %v2208_v28  ;;  %v11390_v32 = vpop.permute.xlu0 %2621 }
 0x414   : > { %v11392_v9 = vpop.f32.mrb[176].mxu0  ;;  %5646 = vmatprep.mubr.f32.mxu1 %v2699_v40  ;;  %v14712_v40 = vld [vmem:[#allocation89_spill] sm:$0xff] }
 0x415   : > { %14708 = vst [vmem:[#allocation85_spill] sm:$0xff] %v11392_v9  ;;  %2951 = vperm.xlu1 %7706, %v8049_v0   ;;  %v5320_v14 = vpop.f32.mrb[177].mxu0  ;;  %2979 = vperm.xlu0 %7707, %v14710_v15   ;;  %v2210_v23 = vmul.f32 %v8050_v41, %v14712_v40  ;;  %v8052_v15 = vld [vmem:[%s8931_s21 + $0x168] sm:$0xff] }
 0x416   : > { %v14713_v14 = vld [vmem:[#allocation28_spill] sm:$0xff]  ;;  %v2701_v62 = vmul.f32 %v8052_v15, %v11148_v43 }
 0x417   : > { %v11399_v59 = vpop.permute.xlu1 %2609  ;;  %5647 = vmatmul.mubr.f32.gmra.mrb[86].mxu1 %v2209_v55  ;;  %v11401_v28 = vpop.permute.xlu0 %2629  ;;  %v8053_v40 = vld [vmem:[%s8936_s17 + $0x1a8] sm:$0xff] }
 0x418   : > { %v11403_v52 = vpop.f32.mrb[178].mxu0  ;;  %5651 = vmatprep.mubr.f32.mxu1 %v2700_v19  ;;  %v14715_v19 = vld [vmem:[#allocation62_spill] sm:$0xff] }
 0x419   : > { %14711 = vst [vmem:[#allocation26_spill] sm:$0xff] %v11403_v52  ;;  %2959 = vperm.xlu1 %7706, %v8051_v50   ;;  %v5325_v0 = vpop.f32.mrb[179].mxu0  ;;  %2987 = vperm.xlu0 %7707, %v14713_v14   ;;  %v2211_v41 = vmul.f32 %v8052_v15, %v14715_v19  ;;  %v8054_v14 = vld [vmem:[%s8931_s21 + $0x170] sm:$0xff]  ;;  %v8055_v19 = vld [vmem:[%s8936_s17 + $0x1b8] sm:$0xff] }
 0x41a   : > { %v14716_v0 = vld [vmem:[#allocation29_spill] sm:$0xff]  ;;  %v2702_v43 = vmul.f32 %v8054_v14, %v11179_v60 }
 0x41b   : > { %v11410_v9 = vpop.permute.xlu1 %2617  ;;  %5652 = vmatmul.mubr.f32.gmra.mrb[88].mxu1 %v2210_v23  ;;  %v11412_v55 = vpop.permute.xlu0 %2637 }
 0x41c   : > { %v11414_v37 = vpop.f32.mrb[180].mxu0  ;;  %5656 = vmatprep.mubr.f32.mxu1 %v2701_v62  ;;  %v14718_v62 = vld [vmem:[#allocation93_spill] sm:$0xff] }
 0x41d   : > { %14714 = vst [vmem:[#allocation63_spill] sm:$0xff] %v11414_v37  ;;  %2967 = vperm.xlu1 %7706, %v8053_v40   ;;  %v5330_v50 = vpop.f32.mrb[181].mxu0  ;;  %2995 = vperm.xlu0 %7707, %v14716_v0   ;;  %v2212_v15 = vmul.f32 %v8054_v14, %v14718_v62  ;;  %v8056_v0 = vld [vmem:[%s8931_s21 + $0x178] sm:$0xff]  ;;  %v8057_v62 = vld [vmem:[%s8936_s17 + $0x1c8] sm:$0xff] }
 0x41e   : > { %v14719_v50 = vld [vmem:[#allocation146_spill] sm:$0xff]  ;;  %v2703_v60 = vmul.f32 %v8056_v0, %v11159_v63 }
 0x41f   : > { %v11421_v52 = vpop.permute.xlu1 %2625  ;;  %5657 = vmatmul.mubr.f32.gmra.mrb[90].mxu1 %v2211_v41  ;;  %v11423_v23 = vpop.permute.xlu0 %2645 }
 0x420   : > { %v11425_v20 = vpop.f32.mrb[182].mxu0  ;;  %5661 = vmatprep.mubr.f32.mxu1 %v2702_v43  ;;  %v14721_v43 = vld [vmem:[#allocation71_spill] sm:$0xff] }
 0x421   : > { %14717 = vst [vmem:[#allocation27_spill] sm:$0xff] %v11425_v20  ;;  %2975 = vperm.xlu1 %7706, %v8055_v19   ;;  %v5335_v40 = vpop.f32.mrb[183].mxu0  ;;  %3003 = vperm.xlu0 %7707, %v14719_v50   ;;  %v2213_v14 = vmul.f32 %v8056_v0, %v14721_v43  ;;  %v8058_v50 = vld [vmem:[%s8931_s21 + $0x180] sm:$0xff] }
 0x422   : > { %v14722_v40 = vld [vmem:[#allocation148_spill] sm:$0xff]  ;;  %v2704_v63 = vmul.f32 %v8058_v50, %v11190_v5  ;;  %v14724_v0 = vld [vmem:[#allocation67_spill] sm:$0xff] }
 0x423   : > { %v11432_v37 = vpop.permute.xlu1 %2633  ;;  %5662 = vmatmul.mubr.f32.gmra.mrb[92].mxu1 %v2212_v15  ;;  %v11434_v41 = vpop.permute.xlu0 %2653  ;;  %v2214_v43 = vmul.f32 %v8058_v50, %v14724_v0  ;;  %v8060_v5 = vld [vmem:[%s8931_s21 + $0x188] sm:$0xff]  ;;  %v14728_v0 = vld [vmem:[#allocation74_spill] sm:$0xff] }
 0x424   : > { %v11436_v22 = vpop.f32.mrb[184].mxu0  ;;  %5666 = vmatprep.mubr.f32.mxu1 %v2703_v60  ;;  %v633_v50 = vld [vmem:[%s8915_s7 + $0x208] sm:$0xff] }
 0x425   : > { %14720 = vst [vmem:[#allocation89_spill] sm:$0xff] %v11436_v22  ;;  %2983 = vperm.xlu1 %7706, %v8057_v62   ;;  %v5340_v19 = vpop.f32.mrb[185].mxu0  ;;  %3011 = vperm.xlu0 %7707, %v14722_v40   ;;  %v8059_v62 = vld [vmem:[%s8936_s17 + $0x1d8] sm:$0xff]  ;;  %v2705_v22 = vmul.f32 %v8060_v5, %v11170_v16  ;;  %v7477_v16 = vpack.c.bf16 %v633_v50, %v632_v10 }
 0x426   : > { %v14725_v40 = vld [vmem:[#allocation150_spill] sm:$0xff] }
 0x427   : > { %v11443_v20 = vpop.permute.xlu1 %2641  ;;  %5667 = vmatmul.mubr.f32.gmra.mrb[94].mxu1 %v2213_v14  ;;  %7478 = vmatpush1.bf16.msra.mxu0 %v7477_v16  ;;  %v8063_v10 = vld [vmem:[%s8936_s17 + $0x1f8] sm:$0xff] }
 0x428   : > { %v11445_v15 = vpop.f32.mrb[186].mxu0  ;;  %5671 = vmatprep.mubr.f32.mxu1 %v2704_v63  ;;  %v11447_v60 = vpop.permute.xlu0 %2759  ;;  %7479 = vmatprep.subr.bf16.mxu0 %v14731_v57  ;;  %v14734_v50 = vld [vmem:[#allocation154_spill] sm:$0xff] }
 0x429   : > { %14723 = vst [vmem:[#allocation28_spill] sm:$0xff] %v11445_v15  ;;  %2991 = vperm.xlu1 %7706, %v8059_v62   ;;  %v5345_v19 = vpop.f32.mrb[187].mxu0  ;;  %3019 = vperm.xlu0 %7707, %v14725_v40   ;;  %v2215_v62 = vmul.f32 %v8060_v5, %v14728_v0  ;;  %v634_v5 = vld [vmem:[%s8915_s7 + $0x210] sm:$0xff]  ;;  %v635_v0 = vld [vmem:[%s8915_s7 + $0x218] sm:$0xff] }
 0x42a   : > { %v8061_v19 = vld [vmem:[%s8936_s17 + $0x1e8] sm:$0xff]  ;;  %v8064_v16 = vld [vmem:[%s8931_s21 + $0x198] sm:$0xff] }
 0x42b   : > { %v11454_v14 = vpop.permute.xlu1 %2649  ;;  %5672 = vmatmul.mubr.f32.gmra.mrb[96].mxu1 %v2214_v43  ;;  %v2706_v43 = vmul.f32 %v8062_v61, %v11201_v26 }
 0x42c   : > { %v11456_v15 = vpop.f32.mrb[188].mxu0  ;;  %5676 = vmatprep.mubr.f32.mxu1 %v2705_v22  ;;  %v11458_v63 = vpop.permute.xlu0 %2771 }
 0x42d   : > { %14726 = vst [vmem:[#allocation62_spill] sm:$0xff] %v11456_v15  ;;  %14727 = vst [vmem:[#allocation29_spill] sm:$0xff] %v11458_v63  ;;  %2999 = vperm.xlu1 %7706, %v8061_v19   ;;  %v5350_v40 = vpop.f32.mrb[189].mxu0  ;;  %3027 = vperm.xlu0 %7707, %v14729_v7   ;;  %v14732_v19 = vld [vmem:[#allocation70_spill] sm:$0xff] }
 0x42e   : > { %v2216_v40 = vmul.f32 %v8062_v61, %v14732_v19  ;;  %v636_v61 = vld [vmem:[%s8915_s7 + $0x220] sm:$0xff]  ;;  %v637_v19 = vld [vmem:[%s8915_s7 + $0x228] sm:$0xff] }
 0x42f   : > { %5677 = vmatmul.mubr.f32.gmra.mrb[98].mxu1 %v2215_v62  ;;  %v7480_v62 = vpack.c.bf16 %v635_v0, %v634_v5  ;;  %v8065_v0 = vld [vmem:[%s8936_s17 + $0x208] sm:$0xff] }
 0x430   : > { %v11467_v22 = vpop.permute.xlu1 %2755  ;;  %v11469_v15 = vpop.f32.mrb[190].mxu0  ;;  %5681 = vmatprep.mubr.f32.mxu1 %v2706_v43  ;;  %v2707_v43 = vmul.f32 %v8064_v16, %v11181_v1 }
 0x431   : > { %14730 = vst [vmem:[#allocation93_spill] sm:$0xff] %v11469_v15  ;;  %v11475_v7 = vpop.permute.xlu0 %2779  ;;  %3007 = vperm.xlu1 %7706, %v8063_v10   ;;  %v5355_v26 = vpop.f32.mrb[191].mxu0  ;;  %3035 = vperm.xlu0 %7707, %v14734_v50   ;;  %v14736_v10 = vld [vmem:[#allocation83_spill] sm:$0xff]  ;;  %v7483_v50 = vpack.c.bf16 %v637_v19, %v636_v61  ;;  %v8067_v61 = vld [vmem:[%s8936_s17 + $0x218] sm:$0xff]  ;;  %v14742_v19 = vld [vmem:[#allocation157_spill] sm:$0xff] }
 0x432   : > { %14733 = vst [vmem:[#allocation146_spill] sm:$0xff] %v11475_v7  ;;  %7481 = vmatpush1.bf16.msra.mxu0 %v7480_v62  ;;  %v2217_v26 = vmul.f32 %v8064_v16, %v14736_v10  ;;  %v8066_v62 = vld [vmem:[%s8931_s21 + $0x1a0] sm:$0xff]  ;;  %v638_v16 = vld [vmem:[%s8915_s7 + $0x230] sm:$0xff]  ;;  %v639_v10 = vld [vmem:[%s8915_s7 + $0x238] sm:$0xff] }
 0x433   : > { %5682 = vmatmul.mubr.f32.gmra.mrb[100].mxu1 %v2216_v40  ;;  %7482 = vmatprep.subr.bf16.mxu0 %v14731_v57  ;;  %v14738_v40 = vld [vmem:[#allocation35_spill] sm:$0xff] }
 0x434   : > { %v11481_v15 = vpop.permute.xlu1 %2763  ;;  %v11483_v63 = vpop.f32.mrb[192].mxu0  ;;  %5686 = vmatprep.mubr.f32.mxu1 %v2707_v43  ;;  %v2708_v43 = vmul.f32 %v8066_v62, %v11212_v34 }
 0x435   : > { %14735 = vst [vmem:[#allocation71_spill] sm:$0xff] %v11483_v63  ;;  %v11489_v5 = vpop.permute.xlu0 %2787  ;;  %3015 = vperm.xlu1 %7706, %v8065_v0   ;;  %v5360_v1 = vpop.f32.mrb[193].mxu0  ;;  %3043 = vperm.xlu0 %7707, %v14738_v40   ;;  %v14740_v0 = vld [vmem:[#allocation79_spill] sm:$0xff]  ;;  %v8068_v40 = vld [vmem:[%s8931_s21 + $0x1a8] sm:$0xff] }
 0x436   : > { %14737 = vst [vmem:[#allocation148_spill] sm:$0xff] %v11489_v5  ;;  %7484 = vmatpush1.bf16.msra.mxu0 %v7483_v50  ;;  %v2218_v1 = vmul.f32 %v8066_v62, %v14740_v0  ;;  %v2709_v50 = vmul.f32 %v8068_v40, %v11192_v24  ;;  %v14743_v62 = vld [vmem:[#allocation39_spill] sm:$0xff] }
 0x437   : > { %5687 = vmatmul.mubr.f32.gmra.mrb[102].mxu1 %v2217_v26  ;;  %7485 = vmatprep.subr.bf16.mxu0 %v14731_v57  ;;  %v7486_v26 = vpack.c.bf16 %v639_v10, %v638_v16  ;;  %v641_v16 = vld [vmem:[%s8915_s7 + $0x248] sm:$0xff]  ;;  %v14745_v10 = vld [vmem:[#allocation86_spill] sm:$0xff] }
 0x438   : > { %v11495_v63 = vpop.permute.xlu1 %2767  ;;  %v11497_v7 = vpop.f32.mrb[194].mxu0  ;;  %5691 = vmatprep.mubr.f32.mxu1 %v2708_v43 }
 0x439   : > { %14739 = vst [vmem:[#allocation67_spill] sm:$0xff] %v11497_v7  ;;  %v11503_v5 = vpop.permute.xlu0 %2795  ;;  %3023 = vperm.xlu1 %7706, %v8067_v61   ;;  %v5365_v34 = vpop.f32.mrb[195].mxu0  ;;  %3051 = vperm.xlu0 %7707, %v14742_v19   ;;  %v640_v61 = vld [vmem:[%s8915_s7 + $0x240] sm:$0xff] }
 0x43a   : > { %14741 = vst [vmem:[#allocation150_spill] sm:$0xff] %v11503_v5  ;;  %v5433_v43 = vpop.f32.mrb[0].mxu1  ;;  %7487 = vmatpush1.bf16.msra.mxu0 %v7486_v26  ;;  %v2219_v34 = vmul.f32 %v8068_v40, %v14745_v10  ;;  %v7489_v19 = vpack.c.bf16 %v641_v16, %v640_v61  ;;  %v8070_v26 = vld [vmem:[%s8931_s21 + $0x1b0] sm:$0xff]  ;;  %v14749_v10 = vld [vmem:[#allocation82_spill] sm:$0xff]  ;;  %v14751_v16 = vld [vmem:[#allocation160_spill] sm:$0xff] }
 0x43b   : > { %v5435_v7 = vpop.f32.mrb[1].mxu1  ;;  %5692 = vmatmul.mubr.f32.gmra.mrb[104].mxu1 %v2218_v1  ;;  %v11510_v0 = vadd.f32 %v5433_v43, %v14743_v62  ;;  %7488 = vmatprep.subr.bf16.mxu0 %v14731_v57  ;;  %v14747_v1 = vld [vmem:[#allocation37_spill] sm:$0xff]  ;;  %v643_v62 = vld [vmem:[%s8915_s7 + $0x258] sm:$0xff] }
 0x43c   : > { %v11512_v5 = vpop.permute.xlu1 %2775  ;;  %5696 = vmatprep.mubr.f32.mxu1 %v2709_v50  ;;  %v8069_v7 = vld [vmem:[%s8936_s17 + $0x228] sm:$0xff]  ;;  %v2710_v50 = vmul.f32 %v8070_v26, %v11223_v8  ;;  %v642_v40 = vld [vmem:[%s8915_s7 + $0x250] sm:$0xff]  ;;  %v8071_v61 = vld [vmem:[%s8936_s17 + $0x238] sm:$0xff] }
 0x43d   : > { %14744 = vst [vmem:[#allocation74_spill] sm:$0xff] %v11510_v0  ;;  %v11518_v24 = vpop.permute.xlu0 %2803  ;;  %3031 = vperm.xlu1 %7706, %v8069_v7   ;;  %3059 = vperm.xlu0 %7707, %v14747_v1   ;;  %v2220_v0 = vmul.f32 %v8070_v26, %v14749_v10  ;;  %v7492_v8 = vpack.c.bf16 %v643_v62, %v642_v40 }
 0x43e   : > { %14746 = vst [vmem:[#allocation152_spill] sm:$0xff] %v11518_v24  ;;  %7490 = vmatpush1.bf16.msra.mxu0 %v7489_v19  ;;  %v14752_v24 = vld [vmem:[#allocation41_spill] sm:$0xff] }
 0x43f   : > { %5697 = vmatmul.mubr.f32.gmra.mrb[106].mxu1 %v2219_v34  ;;  %7491 = vmatprep.subr.bf16.mxu0 %v14731_v57  ;;  %v8072_v34 = vld [vmem:[%s8931_s21 + $0x1b8] sm:$0xff] }
 0x440   : > { %v11524_v43 = vpop.permute.xlu1 %2783  ;;  %5701 = vmatprep.mubr.f32.mxu1 %v2710_v50  ;;  %v2711_v1 = vmul.f32 %v8072_v34, %v11203_v30  ;;  %v8073_v30 = vld [vmem:[%s8936_s17 + $0x248] sm:$0xff] }
 0x441   : > { %14748 = vst [vmem:[#allocation70_spill] sm:$0xff] %v11524_v43  ;;  %v11530_v7 = vpop.permute.xlu0 %2811  ;;  %3039 = vperm.xlu1 %7706, %v8071_v61   ;;  %3067 = vperm.xlu0 %7707, %v14751_v16   ;;  %v644_v61 = vld [vmem:[%s8915_s7 + $0x260] sm:$0xff]  ;;  %v645_v16 = vld [vmem:[%s8915_s7 + $0x268] sm:$0xff] }
 0x442   : > { %14750 = vst [vmem:[#allocation154_spill] sm:$0xff] %v11530_v7  ;;  %v5438_v19 = vpop.f32.mrb[2].mxu1  ;;  %7493 = vmatpush1.bf16.msra.mxu0 %v7492_v8  ;;  %v14755_v7 = vld [vmem:[#allocation95_spill] sm:$0xff]  ;;  %v8077_v43 = vld [vmem:[%s8936_s17 + $0x268] sm:$0xff] }
 0x443   : > { %v5440_v50 = vpop.f32.mrb[3].mxu1  ;;  %5702 = vmatmul.mubr.f32.gmra.mrb[108].mxu1 %v2220_v0  ;;  %v11537_v26 = vadd.f32 %v5438_v19, %v14752_v24  ;;  %7494 = vmatprep.subr.bf16.mxu0 %v14731_v57  ;;  %v2221_v40 = vmul.f32 %v8072_v34, %v14755_v7  ;;  %v14757_v0 = vld [vmem:[#allocation162_spill] sm:$0xff]  ;;  %v7495_v24 = vpack.c.bf16 %v645_v16, %v644_v61  ;;  %v8074_v8 = vld [vmem:[%s8931_s21 + $0x1c0] sm:$0xff] }
 0x444   : > { %v11539_v10 = vpop.permute.xlu1 %2791  ;;  %5706 = vmatprep.mubr.f32.mxu1 %v2711_v1  ;;  %v2712_v19 = vmul.f32 %v8074_v8, %v11234_v39  ;;  %v647_v61 = vld [vmem:[%s8915_s7 + $0x278] sm:$0xff]  ;;  %v14761_v16 = vld [vmem:[#allocation91_spill] sm:$0xff] }
 0x445   : > { %14753 = vst [vmem:[#allocation83_spill] sm:$0xff] %v11537_v26  ;;  %14754 = vst [vmem:[#allocation35_spill] sm:$0xff] %v11539_v10  ;;  %v11545_v62 = vpop.permute.xlu0 %2819  ;;  %3047 = vperm.xlu1 %7706, %v8073_v30   ;;  %3075 = vperm.xlu0 %7707, %v14757_v0   ;;  %v14758_v26 = vld [vmem:[#allocation34_spill] sm:$0xff]  ;;  %v646_v30 = vld [vmem:[%s8915_s7 + $0x270] sm:$0xff]  ;;  %v2222_v0 = vmul.f32 %v8074_v8, %v14761_v16 }
 0x446   : > { %14756 = vst [vmem:[#allocation79_spill] sm:$0xff] %v11545_v62  ;;  %v5443_v1 = vpop.f32.mrb[4].mxu1  ;;  %7496 = vmatpush1.bf16.msra.mxu0 %v7495_v24  ;;  %v8075_v62 = vld [vmem:[%s8936_s17 + $0x258] sm:$0xff]  ;;  %v8076_v24 = vld [vmem:[%s8931_s21 + $0x1c8] sm:$0xff] }
 0x447   : > { %v5445_v50 = vpop.f32.mrb[5].mxu1  ;;  %5707 = vmatmul.mubr.f32.gmra.mrb[110].mxu1 %v2221_v40  ;;  %v11552_v7 = vadd.f32 %v5443_v1, %v14758_v26  ;;  %7497 = vmatprep.subr.bf16.mxu0 %v14731_v57  ;;  %v14763_v40 = vld [vmem:[#allocation164_spill] sm:$0xff]  ;;  %v7498_v26 = vpack.c.bf16 %v647_v61, %v646_v30  ;;  %v2713_v1 = vmul.f32 %v8076_v24, %v11214_v29  ;;  %v648_v30 = vld [vmem:[%s8915_s7 + $0x280] sm:$0xff]  ;;  %v14766_v61 = vld [vmem:[#allocation98_spill] sm:$0xff] }
 0x448   : > { %v11554_v34 = vpop.permute.xlu1 %2799  ;;  %5711 = vmatprep.mubr.f32.mxu1 %v2712_v19  ;;  %v664_v50 = vld [vmem:[%s8915_s7 + $0x300] sm:$0xff]  ;;  %v14764_v16 = vld [vmem:[#allocation44_spill] sm:$0xff] }
 0x449   : > { %14759 = vst [vmem:[#allocation157_spill] sm:$0xff] %v11552_v7  ;;  %14760 = vst [vmem:[#allocation39_spill] sm:$0xff] %v11554_v34  ;;  %v11560_v39 = vpop.permute.xlu0 %2827  ;;  %3055 = vperm.xlu1 %7706, %v8075_v62   ;;  %3083 = vperm.xlu0 %7707, %v14763_v40   ;;  %v665_v7 = vld [vmem:[%s8915_s7 + $0x308] sm:$0xff]  ;;  %v2223_v40 = vmul.f32 %v8076_v24, %v14766_v61  ;;  %v14767_v24 = vld [vmem:[#allocation49_spill] sm:$0xff] }
 0x44a   : > { %14762 = vst [vmem:[#allocation86_spill] sm:$0xff] %v11560_v39  ;;  %v5448_v19 = vpop.f32.mrb[6].mxu1  ;;  %v7525_v8 = vpack.c.bf16 %v665_v7, %v664_v50  ;;  %7499 = vmatpush1.bf16.msra.mxu0 %v7498_v26  ;;  %v649_v29 = vld [vmem:[%s8915_s7 + $0x288] sm:$0xff]  ;;  %v8078_v7 = vld [vmem:[%s8936_s17 + $0x2a0] sm:$0xff] }
 0x44b   : > { %v5450_v34 = vpop.f32.mrb[7].mxu1  ;;  %5712 = vmatmul.mubr.f32.gmra.mrb[112].mxu1 %v2222_v0  ;;  %v11569_v62 = vadd.f32 %v5448_v19, %v14764_v16  ;;  %7500 = vmatprep.subr.bf16.mxu0 %v14731_v57  ;;  %v8079_v0 = vld [vmem:[%s8931_s21 + $0x1d0] sm:$0xff] }
 0x44c   : > { %v11571_v39 = vpop.permute.xlu1 %2807  ;;  %5716 = vmatprep.mubr.f32.mxu1 %v2713_v1  ;;  %v7501_v34 = vpack.c.bf16 %v649_v29, %v648_v30  ;;  %v2714_v26 = vmul.f32 %v8079_v0, %v11245_v49  ;;  %7526 = vmatpush1.bf16.msra.mxu1 %v7525_v8  ;;  %v651_v30 = vld [vmem:[%s8915_s7 + $0x298] sm:$0xff]  ;;  %v8081_v8 = vld [vmem:[%s8936_s17 + $0x2b0] sm:$0xff] }
 0x44d   : > { %14765 = vst [vmem:[#allocation37_spill] sm:$0xff] %v11569_v62  ;;  %v11577_v10 = vpop.permute.xlu0 %2835  ;;  %3063 = vperm.xlu1 %7706, %v8077_v43   ;;  %3091 = vperm.xlu0 %7707, %v8078_v7   ;;  %v650_v43 = vld [vmem:[%s8915_s7 + $0x290] sm:$0xff]  ;;  %v14769_v29 = vld [vmem:[#allocation94_spill] sm:$0xff] }
 0x44e   : > { %v5453_v1 = vpop.f32.mrb[8].mxu1  ;;  %7502 = vmatpush1.bf16.msra.mxu0 %v7501_v34  ;;  %v2224_v61 = vmul.f32 %v8079_v0, %v14769_v29  ;;  %v8080_v7 = vld [vmem:[%s8936_s17 + $0x278] sm:$0xff]  ;;  %7527 = vmatprep.subr.bf16.mxu1 %v14731_v57  ;;  %v14771_v0 = vld [vmem:[#allocation43_spill] sm:$0xff] }
 0x44f   : > { %v5455_v19 = vpop.f32.mrb[9].mxu1  ;;  %5717 = vmatmul.mubr.f32.gmra.mrb[114].mxu1 %v2223_v40  ;;  %v11584_v50 = vadd.f32 %v5453_v1, %v14767_v24  ;;  %7503 = vmatprep.subr.bf16.mxu0 %v14731_v57  ;;  %v7504_v40 = vpack.c.bf16 %v651_v30, %v650_v43  ;;  %v8082_v34 = vld [vmem:[%s8931_s21 + $0x1d8] sm:$0xff]  ;;  %v652_v43 = vld [vmem:[%s8915_s7 + $0x2a0] sm:$0xff]  ;;  %v653_v30 = vld [vmem:[%s8915_s7 + $0x2a8] sm:$0xff] }
 0x450   : > { %v11586_v16 = vpop.permute.xlu1 %2815  ;;  %5721 = vmatprep.mubr.f32.mxu1 %v2714_v26  ;;  %v2715_v1 = vmul.f32 %v8082_v34, %v11225_v13 }
 0x451   : > { %14768 = vst [vmem:[#allocation82_spill] sm:$0xff] %v11584_v50  ;;  %v11592_v49 = vpop.permute.xlu0 %2843  ;;  %3071 = vperm.xlu1 %7706, %v8080_v7   ;;  %3099 = vperm.xlu0 %7707, %v8081_v8   ;;  %v14773_v7 = vld [vmem:[#allocation100_spill] sm:$0xff] }
 0x452   : > { %14770 = vst [vmem:[#allocation160_spill] sm:$0xff] %v11592_v49  ;;  %v5458_v26 = vpop.f32.mrb[10].mxu1  ;;  %7505 = vmatpush1.bf16.msra.mxu0 %v7504_v40  ;;  %v2225_v13 = vmul.f32 %v8082_v34, %v14773_v7  ;;  %v8083_v50 = vld [vmem:[%s8936_s17 + $0x288] sm:$0xff]  ;;  %v7507_v40 = vpack.c.bf16 %v653_v30, %v652_v43  ;;  %v14775_v34 = vld [vmem:[#allocation42_spill] sm:$0xff]  ;;  %v14777_v43 = vld [vmem:[#allocation31_spill] sm:$0xff] }
 0x453   : > { %v5460_v19 = vpop.f32.mrb[11].mxu1  ;;  %5722 = vmatmul.mubr.f32.gmra.mrb[116].mxu1 %v2224_v61  ;;  %v11600_v24 = vadd.f32 %v5458_v26, %v14771_v0  ;;  %7506 = vmatprep.subr.bf16.mxu0 %v14731_v57  ;;  %v8084_v61 = vld [vmem:[%s8936_s17 + $0x2c0] sm:$0xff]  ;;  %v8095_v49 = vld [vmem:[%s8936_s17 + $0x2c8] sm:$0xff] }
 0x454   : > { %v11602_v29 = vpop.permute.xlu1 %2823  ;;  %5726 = vmatprep.mubr.f32.mxu1 %v2715_v1  ;;  %v8085_v26 = vld [vmem:[%s8931_s21 + $0x1e0] sm:$0xff] }
 0x455   : > { %14772 = vst [vmem:[#allocation41_spill] sm:$0xff] %v11600_v24  ;;  %v11608_v8 = vpop.permute.xlu0 %2851  ;;  %3079 = vperm.xlu1 %7706, %v8083_v50   ;;  %3107 = vperm.xlu0 %7707, %v8084_v61   ;;  %v2716_v1 = vmul.f32 %v8085_v26, %v11256_v48  ;;  %v654_v50 = vld [vmem:[%s8915_s7 + $0x2b0] sm:$0xff]  ;;  %v655_v61 = vld [vmem:[%s8915_s7 + $0x2b8] sm:$0xff]  ;;  %v2226_v30 = vmul.f32 %v8085_v26, %v14777_v43  ;;  %v14779_v26 = vld [vmem:[#allocation47_spill] sm:$0xff] }
 0x456   : > { %14774 = vst [vmem:[#allocation95_spill] sm:$0xff] %v11608_v8  ;;  %v5463_v19 = vpop.f32.mrb[12].mxu1  ;;  %7508 = vmatpush1.bf16.msra.mxu0 %v7507_v40  ;;  %v8086_v48 = vld [vmem:[%s8936_s17 + $0x298] sm:$0xff]  ;;  %v7510_v40 = vpack.c.bf16 %v655_v61, %v654_v50 }
 0x457   : > { %v5465_v0 = vpop.f32.mrb[13].mxu1  ;;  %5727 = vmatmul.mubr.f32.gmra.mrb[118].mxu1 %v2225_v13  ;;  %v11615_v7 = vadd.f32 %v5463_v19, %v14775_v34  ;;  %7509 = vmatprep.subr.bf16.mxu0 %v14731_v57  ;;  %v8087_v13 = vld [vmem:[%s8936_s17 + $0x2d0] sm:$0xff]  ;;  %v8088_v19 = vld [vmem:[%s8931_s21 + $0x1e8] sm:$0xff]  ;;  %v14781_v50 = vld [vmem:[#allocation102_spill] sm:$0xff] }
 0x458   : > { %v11617_v24 = vpop.permute.xlu1 %2831  ;;  %5731 = vmatprep.mubr.f32.mxu1 %v2716_v1  ;;  %v2717_v1 = vmul.f32 %v8088_v19, %v11236_v6  ;;  %v2227_v61 = vmul.f32 %v8088_v19, %v14781_v50  ;;  %v8089_v6 = vld [vmem:[%s8936_s17 + $0x2a8] sm:$0xff] }
 0x459   : > { %14776 = vst [vmem:[#allocation162_spill] sm:$0xff] %v11615_v7  ;;  %v11623_v62 = vpop.permute.xlu0 %2859  ;;  %3087 = vperm.xlu1 %7706, %v8086_v48   ;;  %3115 = vperm.xlu0 %7707, %v8087_v13   ;;  %v656_v48 = vld [vmem:[%s8915_s7 + $0x2c0] sm:$0xff]  ;;  %v657_v13 = vld [vmem:[%s8915_s7 + $0x2c8] sm:$0xff] }
 0x45a   : > { %14778 = vst [vmem:[#allocation34_spill] sm:$0xff] %v11623_v62  ;;  %v5468_v0 = vpop.f32.mrb[14].mxu1  ;;  %7511 = vmatpush1.bf16.msra.mxu0 %v7510_v40  ;;  %v7513_v40 = vpack.c.bf16 %v657_v13, %v656_v48  ;;  %v14783_v19 = vld [vmem:[#allocation60_spill] sm:$0xff]  ;;  %v658_v48 = vld [vmem:[%s8915_s7 + $0x2d0] sm:$0xff]  ;;  %v659_v13 = vld [vmem:[%s8915_s7 + $0x2d8] sm:$0xff] }
 0x45b   : > { %v5470_v34 = vpop.f32.mrb[15].mxu1  ;;  %5732 = vmatmul.mubr.f32.gmra.mrb[120].mxu1 %v2226_v30  ;;  %v11630_v43 = vadd.f32 %v5468_v0, %v14779_v26  ;;  %7512 = vmatprep.subr.bf16.mxu0 %v14731_v57  ;;  %v8090_v30 = vld [vmem:[%s8936_s17 + $0x2e0] sm:$0xff]  ;;  %v8091_v0 = vld [vmem:[%s8931_s21 + $0x1f0] sm:$0xff] }
 0x45c   : > { %v11632_v7 = vpop.permute.xlu1 %2839  ;;  %5736 = vmatprep.mubr.f32.mxu1 %v2717_v1  ;;  %v2718_v1 = vmul.f32 %v8091_v0, %v11267_v56 }
 0x45d   : > { %14780 = vst [vmem:[#allocation91_spill] sm:$0xff] %v11630_v43  ;;  %v11638_v62 = vpop.permute.xlu0 %2867  ;;  %3095 = vperm.xlu1 %7706, %v8089_v6   ;;  %3123 = vperm.xlu0 %7707, %v8090_v30   ;;  %v14786_v6 = vld [vmem:[#allocation99_spill] sm:$0xff] }
 0x45e   : > { %14782 = vst [vmem:[#allocation164_spill] sm:$0xff] %v11638_v62  ;;  %v5473_v34 = vpop.f32.mrb[16].mxu1  ;;  %7514 = vmatpush1.bf16.msra.mxu0 %v7513_v40  ;;  %v2228_v30 = vmul.f32 %v8091_v0, %v14786_v6  ;;  %v7516_v40 = vpack.c.bf16 %v659_v13, %v658_v48  ;;  %v667_v62 = vld [vmem:[%s8915_s7 + $0x318] sm:$0xff]  ;;  %v14788_v6 = vld [vmem:[#allocation65_spill] sm:$0xff]  ;;  %v660_v48 = vld [vmem:[%s8915_s7 + $0x2e0] sm:$0xff] }
 0x45f   : > { %v5475_v26 = vpop.f32.mrb[17].mxu1  ;;  %5737 = vmatmul.mubr.f32.gmra.mrb[122].mxu1 %v2227_v61  ;;  %v11645_v50 = vadd.f32 %v5473_v34, %v14783_v19  ;;  %7515 = vmatprep.subr.bf16.mxu0 %v14731_v57  ;;  %v8093_v61 = vld [vmem:[%s8936_s17 + $0x2f0] sm:$0xff]  ;;  %v8094_v34 = vld [vmem:[%s8931_s21 + $0x1f8] sm:$0xff]  ;;  %v14790_v13 = vld [vmem:[#allocation104_spill] sm:$0xff] }
 0x460   : > { %v11647_v43 = vpop.permute.xlu1 %2847  ;;  %5741 = vmatprep.mubr.f32.mxu1 %v2718_v1  ;;  %v8092_v26 = vld [vmem:[%s8936_s17 + $0x2b8] sm:$0xff]  ;;  %v2719_v19 = vmul.f32 %v8094_v34, %v11247_v27  ;;  %v661_v27 = vld [vmem:[%s8915_s7 + $0x2e8] sm:$0xff] }
 0x461   : > { %14784 = vst [vmem:[#allocation44_spill] sm:$0xff] %v11645_v50  ;;  %14785 = vst [vmem:[#allocation98_spill] sm:$0xff] %v11647_v43  ;;  %v11653_v56 = vpop.permute.xlu0 %2875  ;;  %3103 = vperm.xlu1 %7706, %v8092_v26   ;;  %3131 = vperm.xlu0 %7707, %v8093_v61   ;;  %v666_v50 = vld [vmem:[%s8915_s7 + $0x310] sm:$0xff]  ;;  %v2229_v61 = vmul.f32 %v8094_v34, %v14790_v13  ;;  %v14791_v34 = vld [vmem:[#allocation51_spill] sm:$0xff] }
 0x462   : > { %14787 = vst [vmem:[#allocation49_spill] sm:$0xff] %v11653_v56  ;;  %v5478_v1 = vpop.f32.mrb[18].mxu1  ;;  %7517 = vmatpush1.bf16.msra.mxu0 %v7516_v40  ;;  %v7528_v0 = vpack.c.bf16 %v667_v62, %v666_v50  ;;  %v7519_v62 = vpack.c.bf16 %v661_v27, %v660_v48  ;;  %v8097_v50 = vld [vmem:[%s8931_s21 + $0x200] sm:$0xff]  ;;  %v663_v48 = vld [vmem:[%s8915_s7 + $0x2f8] sm:$0xff]  ;;  %v14793_v27 = vld [vmem:[#allocation33_spill] sm:$0xff] }
 0x463   : > { %v5480_v8 = vpop.f32.mrb[19].mxu1  ;;  %5742 = vmatmul.mubr.f32.gmra.mrb[124].mxu1 %v2228_v30  ;;  %v11662_v26 = vadd.f32 %v5478_v1, %v14788_v6  ;;  %7518 = vmatprep.subr.bf16.mxu0 %v14731_v57  ;;  %v2720_v30 = vmul.f32 %v8097_v50, %v11278_v4  ;;  %v2230_v13 = vmul.f32 %v8097_v50, %v14793_v27  ;;  %v14794_v50 = vld [vmem:[#allocation50_spill] sm:$0xff] }
 0x464   : > { %v11664_v56 = vpop.permute.xlu1 %2855  ;;  %5746 = vmatprep.mubr.f32.mxu1 %v2719_v19  ;;  %v8096_v8 = vld [vmem:[%s8936_s17 + $0x300] sm:$0xff]  ;;  %7529 = vmatpush1.bf16.msra.mxu1 %v7528_v0  ;;  %v8098_v0 = vld [vmem:[%s8936_s17 + $0x2d8] sm:$0xff] }
 0x465   : > { %14789 = vst [vmem:[#allocation94_spill] sm:$0xff] %v11662_v26  ;;  %v11670_v43 = vpop.permute.xlu0 %2883  ;;  %3111 = vperm.xlu1 %7706, %v8095_v49   ;;  %3139 = vperm.xlu0 %7707, %v8096_v8   ;;  %v662_v49 = vld [vmem:[%s8915_s7 + $0x2f0] sm:$0xff]  ;;  %v8719_v8 = vmov 5  }
 0x466   : > { %v5483_v40 = vpop.f32.mrb[20].mxu1  ;;  %7520 = vmatpush1.bf16.msra.mxu0 %v7519_v62  ;;  %v8099_v62 = vld [vmem:[%s8931_s21 + $0x208] sm:$0xff]  ;;  %7530 = vmatprep.subr.bf16.mxu1 %v14731_v57 }
 0x467   : > { %v5485_v19 = vpop.f32.mrb[21].mxu1  ;;  %5747 = vmatmul.mubr.f32.gmra.mrb[126].mxu1 %v2229_v61  ;;  %v11677_v1 = vadd.f32 %v5483_v40, %v14791_v34  ;;  %7521 = vmatprep.subr.bf16.mxu0 %v14731_v57  ;;  %v7522_v61 = vpack.c.bf16 %v663_v48, %v662_v49  ;;  %v2721_v40 = vmul.f32 %v8099_v62, %v11258_v38  ;;  %v14796_v49 = vld [vmem:[#allocation32_spill] sm:$0xff] }
 0x468   : > { %v11679_v6 = vpop.permute.xlu1 %2863  ;;  %5751 = vmatprep.mubr.f32.mxu1 %v2720_v30  ;;  %v8100_v30 = vld [vmem:[%s8936_s17] sm:$0xff]  ;;  %v2231_v48 = vmul.f32 %v8099_v62, %v14796_v49  ;;  %v8101_v38 = vld [vmem:[%s8936_s17 + $0x2e8] sm:$0xff] }
 0x469   : > { %14792 = vst [vmem:[#allocation43_spill] sm:$0xff] %v11677_v1  ;;  %v11685_v4 = vpop.permute.xlu0 %2891  ;;  %3119 = vperm.xlu1 %7706, %v8098_v0   ;;  %7708 = vset.pattern.permute.xlu0 %v8719_v8  ;;  %v14800_v62 = vld [vmem:[#allocation103_spill] sm:$0xff] }
 0x46a   : > { %v5488_v19 = vpop.f32.mrb[22].mxu1  ;;  %3245 = vperm.xlu0 %7708, %v8100_v30   ;;  %7523 = vmatpush1.bf16.msra.mxu0 %v7522_v61  ;;  %v8102_v30 = vld [vmem:[%s8931_s21 + $0x210] sm:$0xff]  ;;  %v8103_v61 = vld [vmem:[%s8936_s17 + $0x18] sm:$0xff] }
 0x46b   : > { %v5490_v34 = vpop.f32.mrb[23].mxu1  ;;  %5752 = vmatmul.mubr.f32.gmra.mrb[128].mxu1 %v2230_v13  ;;  %v11693_v27 = vadd.f32 %v5488_v19, %v14794_v50  ;;  %v2722_v26 = vmul.f32 %v8102_v30, %v11289_v25  ;;  %v2232_v49 = vmul.f32 %v8102_v30, %v14800_v62  ;;  %v8105_v25 = vld [vmem:[%s8931_s21 + $0x218] sm:$0xff]  ;;  %v14804_v30 = vld [vmem:[#allocation107_spill] sm:$0xff] }
 0x46c   : > { %v11695_v0 = vpop.permute.xlu1 %2871  ;;  %5756 = vmatprep.mubr.f32.mxu1 %v2721_v40  ;;  %v14798_v34 = vld [vmem:[#allocation72_spill] sm:$0xff]  ;;  %v2233_v62 = vmul.f32 %v8105_v25, %v14804_v30 }
 0x46d   : > { %14795 = vst [vmem:[#allocation100_spill] sm:$0xff] %v11693_v27  ;;  %v11698_v1 = vpop.permute.xlu0 %2899  ;;  %3127 = vperm.xlu1 %7706, %v8101_v38   ;;  %v8104_v38 = vld [vmem:[%s8936_s17 + $0x2f8] sm:$0xff] }
 0x46e   : > { %14797 = vst [vmem:[#allocation42_spill] sm:$0xff] %v11698_v1  ;;  %v5493_v13 = vpop.f32.mrb[24].mxu1  ;;  %3257 = vperm.xlu0 %7708, %v8103_v61   ;;  %v2723_v1 = vmul.f32 %v8105_v25, %v11269_v21  ;;  %v8108_v21 = vld [vmem:[%s8931_s21 + $0x220] sm:$0xff] }
 0x46f   : > { %v5495_v19 = vpop.f32.mrb[25].mxu1  ;;  %5757 = vmatmul.mubr.f32.gmra.mrb[130].mxu1 %v2231_v48  ;;  %v11705_v50 = vadd.f32 %v5493_v13, %v14798_v34  ;;  %v8106_v48 = vld [vmem:[%s8936_s17 + $0x28] sm:$0xff] }
 0x470   : > { %v11707_v40 = vpop.permute.xlu1 %2879  ;;  %5761 = vmatprep.mubr.f32.mxu1 %v2722_v26  ;;  %v14802_v19 = vld [vmem:[#allocation77_spill] sm:$0xff] }
 0x471   : > { %14799 = vst [vmem:[#allocation31_spill] sm:$0xff] %v11705_v50  ;;  %v11710_v27 = vpop.permute.xlu0 %2907  ;;  %3135 = vperm.xlu1 %7706, %v8104_v38   ;;  %v8107_v38 = vld [vmem:[%s8936_s17 + $0x308] sm:$0xff] }
 0x472   : > { %14801 = vst [vmem:[#allocation47_spill] sm:$0xff] %v11710_v27  ;;  %v5498_v61 = vpop.f32.mrb[26].mxu1  ;;  %3265 = vperm.xlu0 %7708, %v8106_v48   ;;  %v2724_v27 = vmul.f32 %v8108_v21, %v11300_v54  ;;  %v8110_v54 = vld [vmem:[%s8931_s21 + $0x228] sm:$0xff] }
 0x473   : > { %v5500_v13 = vpop.f32.mrb[27].mxu1  ;;  %5762 = vmatmul.mubr.f32.gmra.mrb[132].mxu1 %v2232_v49  ;;  %v11717_v34 = vadd.f32 %v5498_v61, %v14802_v19  ;;  %v8109_v49 = vld [vmem:[%s8936_s17 + $0x38] sm:$0xff]  ;;  %v14809_v19 = vld [vmem:[#allocation105_spill] sm:$0xff] }
 0x474   : > { %v11719_v26 = vpop.permute.xlu1 %2887  ;;  %5766 = vmatprep.mubr.f32.mxu1 %v2723_v1  ;;  %v14806_v1 = vld [vmem:[#allocation54_spill] sm:$0xff]  ;;  %v2234_v30 = vmul.f32 %v8108_v21, %v14809_v19  ;;  %v14811_v21 = vld [vmem:[#allocation59_spill] sm:$0xff] }
 0x475   : > { %14803 = vst [vmem:[#allocation102_spill] sm:$0xff] %v11717_v34  ;;  %v11722_v50 = vpop.permute.xlu0 %2915  ;;  %3143 = vperm.xlu1 %7706, %v8107_v38   ;;  %v2725_v34 = vmul.f32 %v8110_v54, %v11280_v51  ;;  %v14813_v51 = vld [vmem:[#allocation112_spill] sm:$0xff] }
 0x476   : > { %14805 = vst [vmem:[#allocation60_spill] sm:$0xff] %v11722_v50  ;;  %v5503_v48 = vpop.f32.mrb[28].mxu1  ;;  %3273 = vperm.xlu0 %7708, %v8109_v49   ;;  %v8111_v50 = vld [vmem:[%s8936_s17 + $0x8] sm:$0xff] }
 0x477   : > { %v5505_v61 = vpop.f32.mrb[29].mxu1  ;;  %5767 = vmatmul.mubr.f32.gmra.mrb[134].mxu1 %v2233_v62  ;;  %v11729_v13 = vadd.f32 %v5503_v48, %v14806_v1  ;;  %v8112_v62 = vld [vmem:[%s8936_s17 + $0x48] sm:$0xff]  ;;  %v668_v48 = vld [vmem:[%s8915_s7 + $0x320] sm:$0xff] }
 0x478   : > { %v11731_v25 = vpop.permute.xlu1 %2895  ;;  %5771 = vmatprep.mubr.f32.mxu1 %v2724_v27  ;;  %v669_v61 = vld [vmem:[%s8915_s7 + $0x328] sm:$0xff] }
 0x479   : > { %14807 = vst [vmem:[#allocation99_spill] sm:$0xff] %v11729_v13  ;;  %14808 = vst [vmem:[#allocation65_spill] sm:$0xff] %v11731_v25  ;;  %v11734_v38 = vpop.permute.xlu0 %2923  ;;  %7709 = vset.pattern.permute.xlu1 %v8719_v8  ;;  %v7531_v27 = vpack.c.bf16 %v669_v61, %v668_v48  ;;  %v2235_v13 = vmul.f32 %v8110_v54, %v14813_v51  ;;  %v8114_v25 = vld [vmem:[%s8936_s17 + $0x10] sm:$0xff]  ;;  %v8115_v48 = vld [vmem:[%s8936_s17 + $0x58] sm:$0xff] }
 0x47a   : > { %14810 = vst [vmem:[#allocation104_spill] sm:$0xff] %v11734_v38  ;;  %3249 = vperm.xlu1 %7709, %v8111_v50   ;;  %v5508_v49 = vpop.f32.mrb[30].mxu1  ;;  %3281 = vperm.xlu0 %7708, %v8112_v62   ;;  %v8113_v50 = vld [vmem:[%s8931_s21 + $0x230] sm:$0xff]  ;;  %v8117_v51 = vld [vmem:[%s8936_s17 + $0x20] sm:$0xff] }
 0x47b   : > { %v5510_v1 = vpop.f32.mrb[31].mxu1  ;;  %5772 = vmatmul.mubr.f32.gmra.mrb[136].mxu1 %v2234_v30  ;;  %v11743_v19 = vadd.f32 %v5508_v49, %v14811_v21  ;;  %v2726_v62 = vmul.f32 %v8113_v50, %v11311_v33 }
 0x47c   : > { %v11745_v8 = vpop.permute.xlu1 %2903  ;;  %5776 = vmatprep.mubr.f32.mxu1 %v2725_v34  ;;  %7532 = vmatpush1.bf16.msra.mxu1 %v7531_v27  ;;  %v14814_v34 = vld [vmem:[#allocation84_spill] sm:$0xff]  ;;  %v14816_v1 = vld [vmem:[#allocation110_spill] sm:$0xff] }
 0x47d   : > { %14812 = vst [vmem:[#allocation51_spill] sm:$0xff] %v11743_v19  ;;  %v11748_v38 = vpop.permute.xlu0 %2931  ;;  %7533 = vmatprep.subr.bf16.mxu1 %v14731_v57  ;;  %v2236_v27 = vmul.f32 %v8113_v50, %v14816_v1  ;;  %v14820_v50 = vld [vmem:[#allocation113_spill] sm:$0xff] }
 0x47e   : > { %3253 = vperm.xlu1 %7709, %v8114_v25   ;;  %v5513_v30 = vpop.f32.mrb[32].mxu1  ;;  %3289 = vperm.xlu0 %7708, %v8115_v48   ;;  %v8116_v25 = vld [vmem:[%s8931_s21 + $0x238] sm:$0xff]  ;;  %v8118_v48 = vld [vmem:[%s8936_s17 + $0x68] sm:$0xff]  ;;  %v8120_v19 = vld [vmem:[%s8936_s17 + $0x30] sm:$0xff] }
 0x47f   : > { %v5515_v49 = vpop.f32.mrb[33].mxu1  ;;  %5777 = vmatmul.mubr.f32.gmra.mrb[138].mxu1 %v2235_v13  ;;  %v11756_v54 = vadd.f32 %v5513_v30, %v14814_v34  ;;  %v2727_v21 = vmul.f32 %v8116_v25, %v11291_v17  ;;  %v2237_v1 = vmul.f32 %v8116_v25, %v14820_v50  ;;  %v8119_v17 = vld [vmem:[%s8931_s21 + $0x240] sm:$0xff] }
 0x480   : > { %v11758_v61 = vpop.permute.xlu1 %2911  ;;  %5781 = vmatprep.mubr.f32.mxu1 %v2726_v62  ;;  %v14818_v49 = vld [vmem:[#allocation88_spill] sm:$0xff]  ;;  %v14824_v25 = vld [vmem:[#allocation111_spill] sm:$0xff] }
 0x481   : > { %14815 = vst [vmem:[#allocation33_spill] sm:$0xff] %v11756_v54  ;;  %v11761_v33 = vpop.permute.xlu0 %2939  ;;  %v2238_v50 = vmul.f32 %v8119_v17, %v14824_v25 }
 0x482   : > { %14817 = vst [vmem:[#allocation50_spill] sm:$0xff] %v11761_v33  ;;  %3261 = vperm.xlu1 %7709, %v8117_v51   ;;  %v5518_v13 = vpop.f32.mrb[34].mxu1  ;;  %3297 = vperm.xlu0 %7708, %v8118_v48   ;;  %v2728_v51 = vmul.f32 %v8119_v17, %v11322_v31  ;;  %v8122_v31 = vld [vmem:[%s8931_s21 + $0x248] sm:$0xff]  ;;  %v14829_v17 = vld [vmem:[#allocation118_spill] sm:$0xff]  ;;  %v8132_v33 = vld [vmem:[%s8936_s17 + $0x70] sm:$0xff] }
 0x483   : > { %v5520_v30 = vpop.f32.mrb[35].mxu1  ;;  %5782 = vmatmul.mubr.f32.gmra.mrb[140].mxu1 %v2236_v27  ;;  %v11768_v34 = vadd.f32 %v5518_v13, %v14818_v49  ;;  %v8121_v27 = vld [vmem:[%s8936_s17 + $0x78] sm:$0xff]  ;;  %v2239_v25 = vmul.f32 %v8122_v31, %v14829_v17 }
 0x484   : > { %v11770_v62 = vpop.permute.xlu1 %2919  ;;  %5786 = vmatprep.mubr.f32.mxu1 %v2727_v21  ;;  %v14822_v30 = vld [vmem:[#allocation92_spill] sm:$0xff] }
 0x485   : > { %14819 = vst [vmem:[#allocation32_spill] sm:$0xff] %v11768_v34  ;;  %v11773_v54 = vpop.permute.xlu0 %2947 }
 0x486   : > { %14821 = vst [vmem:[#allocation72_spill] sm:$0xff] %v11773_v54  ;;  %3269 = vperm.xlu1 %7709, %v8120_v19   ;;  %v5523_v48 = vpop.f32.mrb[36].mxu1  ;;  %3305 = vperm.xlu0 %7708, %v8121_v27   ;;  %v2729_v19 = vmul.f32 %v8122_v31, %v11302_v35  ;;  %v8123_v54 = vld [vmem:[%s8936_s17 + $0x40] sm:$0xff]  ;;  %v8125_v35 = vld [vmem:[%s8931_s21 + $0x250] sm:$0xff] }
 0x487   : > { %v5525_v13 = vpop.f32.mrb[37].mxu1  ;;  %5787 = vmatmul.mubr.f32.gmra.mrb[142].mxu1 %v2237_v1  ;;  %v11780_v49 = vadd.f32 %v5523_v48, %v14822_v30  ;;  %v8124_v1 = vld [vmem:[%s8936_s17 + $0x88] sm:$0xff] }
 0x488   : > { %v11782_v21 = vpop.permute.xlu1 %2927  ;;  %5791 = vmatprep.mubr.f32.mxu1 %v2728_v51  ;;  %v14826_v13 = vld [vmem:[#allocation66_spill] sm:$0xff] }
 0x489   : > { %14823 = vst [vmem:[#allocation103_spill] sm:$0xff] %v11780_v49  ;;  %v11785_v34 = vpop.permute.xlu0 %2955 }
 0x48a   : > { %14825 = vst [vmem:[#allocation77_spill] sm:$0xff] %v11785_v34  ;;  %3277 = vperm.xlu1 %7709, %v8123_v54   ;;  %v5528_v27 = vpop.f32.mrb[38].mxu1  ;;  %3313 = vperm.xlu0 %7708, %v8124_v1   ;;  %v2730_v54 = vmul.f32 %v8125_v35, %v11333_v12  ;;  %v8126_v34 = vld [vmem:[%s8936_s17 + $0x50] sm:$0xff]  ;;  %v8128_v12 = vld [vmem:[%s8931_s21 + $0x258] sm:$0xff] }
 0x48b   : > { %v5530_v48 = vpop.f32.mrb[39].mxu1  ;;  %5792 = vmatmul.mubr.f32.gmra.mrb[144].mxu1 %v2238_v50  ;;  %v11792_v30 = vadd.f32 %v5528_v27, %v14826_v13  ;;  %v8127_v50 = vld [vmem:[%s8936_s17 + $0x98] sm:$0xff]  ;;  %v14834_v13 = vld [vmem:[#allocation116_spill] sm:$0xff] }
 0x48c   : > { %v11794_v51 = vpop.permute.xlu1 %2935  ;;  %5796 = vmatprep.mubr.f32.mxu1 %v2729_v19  ;;  %v14831_v48 = vld [vmem:[#allocation75_spill] sm:$0xff]  ;;  %v2240_v17 = vmul.f32 %v8125_v35, %v14834_v13 }
 0x48d   : > { %14827 = vst [vmem:[#allocation107_spill] sm:$0xff] %v11792_v30  ;;  %14828 = vst [vmem:[#allocation54_spill] sm:$0xff] %v11794_v51  ;;  %v11797_v49 = vpop.permute.xlu0 %2963  ;;  %v12438_v51 = vld [vmem:[%s8936_s17 + $0xa0] sm:$0xff] }
 0x48e   : > { %14830 = vst [vmem:[#allocation105_spill] sm:$0xff] %v11797_v49  ;;  %3285 = vperm.xlu1 %7709, %v8126_v34   ;;  %v5533_v1 = vpop.f32.mrb[40].mxu1  ;;  %3321 = vperm.xlu0 %7708, %v8127_v50   ;;  %v2731_v34 = vmul.f32 %v8128_v12, %v11313_v58  ;;  %v8129_v49 = vld [vmem:[%s8936_s17 + $0x60] sm:$0xff] }
 0x48f   : > { %v5535_v27 = vpop.f32.mrb[41].mxu1  ;;  %5797 = vmatmul.mubr.f32.gmra.mrb[146].mxu1 %v2239_v25  ;;  %v11804_v19 = vadd.f32 %v5533_v1, %v14831_v48  ;;  %v8130_v25 = vld [vmem:[%s8936_s17 + $0xa8] sm:$0xff]  ;;  %v671_v48 = vld [vmem:[%s8915_s7 + $0x338] sm:$0xff]  ;;  %v14839_v58 = vld [vmem:[#allocation119_spill] sm:$0xff] }
 0x490   : > { %v11806_v31 = vpop.permute.xlu1 %2943  ;;  %5801 = vmatprep.mubr.f32.mxu1 %v2730_v54  ;;  %v670_v27 = vld [vmem:[%s8915_s7 + $0x330] sm:$0xff]  ;;  %v14836_v54 = vld [vmem:[#allocation78_spill] sm:$0xff] }
 0x491   : > { %14832 = vst [vmem:[#allocation59_spill] sm:$0xff] %v11804_v19  ;;  %14833 = vst [vmem:[#allocation112_spill] sm:$0xff] %v11806_v31  ;;  %v11809_v30 = vpop.permute.xlu0 %2971  ;;  %v7534_v13 = vpack.c.bf16 %v671_v48, %v670_v27 }
 0x492   : > { %14835 = vst [vmem:[#allocation84_spill] sm:$0xff] %v11809_v30  ;;  %3293 = vperm.xlu1 %7709, %v8129_v49   ;;  %v5538_v50 = vpop.f32.mrb[42].mxu1  ;;  %3329 = vperm.xlu0 %7708, %v8130_v25   ;;  %v2241_v30 = vmul.f32 %v8128_v12, %v14839_v58  ;;  %v8131_v49 = vld [vmem:[%s8931_s21 + $0x260] sm:$0xff]  ;;  %v14844_v12 = vld [vmem:[#allocation117_spill] sm:$0xff] }
 0x493   : > { %v5540_v1 = vpop.f32.mrb[43].mxu1  ;;  %5802 = vmatmul.mubr.f32.gmra.mrb[148].mxu1 %v2240_v17  ;;  %v11818_v19 = vadd.f32 %v5538_v50, %v14836_v54  ;;  %v2732_v25 = vmul.f32 %v8131_v49, %v11344_v46  ;;  %v14841_v54 = vld [vmem:[#allocation87_spill] sm:$0xff]  ;;  %v2242_v48 = vmul.f32 %v8131_v49, %v14844_v12  ;;  %v8134_v46 = vld [vmem:[%s8931_s21 + $0x268] sm:$0xff] }
 0x494   : > { %v11820_v35 = vpop.permute.xlu1 %2951  ;;  %5806 = vmatprep.mubr.f32.mxu1 %v2731_v34  ;;  %v8133_v1 = vld [vmem:[%s8936_s17 + $0xb8] sm:$0xff]  ;;  %7535 = vmatpush1.bf16.msra.mxu1 %v7534_v13 }
 0x495   : > { %14837 = vst [vmem:[#allocation110_spill] sm:$0xff] %v11818_v19  ;;  %14838 = vst [vmem:[#allocation88_spill] sm:$0xff] %v11820_v35  ;;  %v11823_v31 = vpop.permute.xlu0 %2979  ;;  %7536 = vmatprep.subr.bf16.mxu1 %v14731_v57  ;;  %v14846_v13 = vld [vmem:[#allocation90_spill] sm:$0xff]  ;;  %v8138_v19 = vld [vmem:[%s8936_s17 + $0x90] sm:$0xff] }
 0x496   : > { %14840 = vst [vmem:[#allocation113_spill] sm:$0xff] %v11823_v31  ;;  %3301 = vperm.xlu1 %7709, %v8132_v33   ;;  %v5543_v17 = vpop.f32.mrb[44].mxu1  ;;  %3337 = vperm.xlu0 %7708, %v8133_v1   ;;  %v2733_v33 = vmul.f32 %v8134_v46, %v11324_v42  ;;  %v8135_v1 = vld [vmem:[%s8936_s17 + $0x80] sm:$0xff]  ;;  %v8137_v42 = vld [vmem:[%s8931_s21 + $0x270] sm:$0xff]  ;;  %v12393_v31 = vld [vmem:[%s8936_s17 + $0x28] sm:$0xff] }
 0x497   : > { %v5545_v50 = vpop.f32.mrb[45].mxu1  ;;  %5807 = vmatmul.mubr.f32.gmra.mrb[150].mxu1 %v2241_v30  ;;  %v11830_v34 = vadd.f32 %v5543_v17, %v14841_v54  ;;  %v8136_v17 = vld [vmem:[%s8936_s17 + $0xc8] sm:$0xff] }
 0x498   : > { %v11832_v27 = vpop.permute.xlu1 %2959  ;;  %5811 = vmatprep.mubr.f32.mxu1 %v2732_v25  ;;  %v14849_v54 = vld [vmem:[#allocation124_spill] sm:$0xff] }
 0x499   : > { %14842 = vst [vmem:[#allocation92_spill] sm:$0xff] %v11830_v34  ;;  %14843 = vst [vmem:[#allocation111_spill] sm:$0xff] %v11832_v27  ;;  %v11835_v58 = vpop.permute.xlu0 %2987  ;;  %v2243_v12 = vmul.f32 %v8134_v46, %v14849_v54  ;;  %v14854_v46 = vld [vmem:[#allocation122_spill] sm:$0xff]  ;;  %v15015_v27 = vld [vmem:[#allocation160_spill] sm:$0xff] }
 0x49a   : > { %14845 = vst [vmem:[#allocation66_spill] sm:$0xff] %v11835_v58  ;;  %3309 = vperm.xlu1 %7709, %v8135_v1   ;;  %v5548_v30 = vpop.f32.mrb[46].mxu1  ;;  %3345 = vperm.xlu0 %7708, %v8136_v17   ;;  %v2734_v1 = vmul.f32 %v8137_v42, %v11355_v47  ;;  %v2244_v54 = vmul.f32 %v8137_v42, %v14854_v46  ;;  %v8140_v47 = vld [vmem:[%s8931_s21 + $0x278] sm:$0xff]  ;;  %v14859_v42 = vld [vmem:[#allocation125_spill] sm:$0xff] }
 0x49b   : > { %v5550_v50 = vpop.f32.mrb[47].mxu1  ;;  %5812 = vmatmul.mubr.f32.gmra.mrb[152].mxu1 %v2242_v48  ;;  %v11843_v25 = vadd.f32 %v5548_v30, %v14846_v13  ;;  %v8139_v48 = vld [vmem:[%s8936_s17 + $0xd8] sm:$0xff]  ;;  %v2245_v46 = vmul.f32 %v8140_v47, %v14859_v42  ;;  %v8150_v58 = vld [vmem:[%s8936_s17 + $0xd0] sm:$0xff] }
 0x49c   : > { %v11845_v49 = vpop.permute.xlu1 %2967  ;;  %5816 = vmatprep.mubr.f32.mxu1 %v2733_v33  ;;  %v14851_v50 = vld [vmem:[#allocation96_spill] sm:$0xff] }
 0x49d   : > { %14847 = vst [vmem:[#allocation118_spill] sm:$0xff] %v11843_v25  ;;  %14848 = vst [vmem:[#allocation75_spill] sm:$0xff] %v11845_v49  ;;  %v11848_v34 = vpop.permute.xlu0 %2995 }
 0x49e   : > { %14850 = vst [vmem:[#allocation116_spill] sm:$0xff] %v11848_v34  ;;  %3317 = vperm.xlu1 %7709, %v8138_v19   ;;  %v5553_v17 = vpop.f32.mrb[48].mxu1  ;;  %3353 = vperm.xlu0 %7708, %v8139_v48   ;;  %v2735_v19 = vmul.f32 %v8140_v47, %v11335_v11  ;;  %v8141_v34 = vld [vmem:[%s8936_s17 + $0xa0] sm:$0xff] }
 0x49f   : > { %v5555_v30 = vpop.f32.mrb[49].mxu1  ;;  %5817 = vmatmul.mubr.f32.gmra.mrb[154].mxu1 %v2243_v12  ;;  %v11855_v13 = vadd.f32 %v5553_v17, %v14851_v50  ;;  %v8142_v12 = vld [vmem:[%s8936_s17 + $0xe8] sm:$0xff]  ;;  %v8143_v11 = vld [vmem:[%s8931_s21 + $0x280] sm:$0xff] }
 0x4a0   : > { %v11857_v33 = vpop.permute.xlu1 %2975  ;;  %5821 = vmatprep.mubr.f32.mxu1 %v2734_v1  ;;  %v14856_v30 = vld [vmem:[#allocation97_spill] sm:$0xff] }
 0x4a1   : > { %14852 = vst [vmem:[#allocation78_spill] sm:$0xff] %v11855_v13  ;;  %14853 = vst [vmem:[#allocation119_spill] sm:$0xff] %v11857_v33  ;;  %v11860_v25 = vpop.permute.xlu0 %3003  ;;  %v12397_v33 = vld [vmem:[%s8936_s17 + $0x80] sm:$0xff] }
 0x4a2   : > { %14855 = vst [vmem:[#allocation87_spill] sm:$0xff] %v11860_v25  ;;  %3325 = vperm.xlu1 %7709, %v8141_v34   ;;  %v5558_v48 = vpop.f32.mrb[50].mxu1  ;;  %3361 = vperm.xlu0 %7708, %v8142_v12   ;;  %v2736_v34 = vmul.f32 %v8143_v11, %v11366_v36  ;;  %v8144_v25 = vld [vmem:[%s8936_s17 + $0xb0] sm:$0xff]  ;;  %v8146_v36 = vld [vmem:[%s8931_s21 + $0x288] sm:$0xff] }
 0x4a3   : > { %v5560_v17 = vpop.f32.mrb[51].mxu1  ;;  %5822 = vmatmul.mubr.f32.gmra.mrb[156].mxu1 %v2244_v54  ;;  %v11867_v50 = vadd.f32 %v5558_v48, %v14856_v30  ;;  %v8145_v54 = vld [vmem:[%s8936_s17 + $0xf8] sm:$0xff]  ;;  %v14864_v30 = vld [vmem:[#allocation123_spill] sm:$0xff] }
 0x4a4   : > { %v11869_v1 = vpop.permute.xlu1 %2983  ;;  %5826 = vmatprep.mubr.f32.mxu1 %v2735_v19  ;;  %v14861_v17 = vld [vmem:[#allocation30_spill] sm:$0xff]  ;;  %v2246_v42 = vmul.f32 %v8143_v11, %v14864_v30 }
 0x4a5   : > { %14857 = vst [vmem:[#allocation117_spill] sm:$0xff] %v11867_v50  ;;  %14858 = vst [vmem:[#allocation90_spill] sm:$0xff] %v11869_v1  ;;  %v11872_v13 = vpop.permute.xlu0 %3011 }
 0x4a6   : > { %14860 = vst [vmem:[#allocation124_spill] sm:$0xff] %v11872_v13  ;;  %3333 = vperm.xlu1 %7709, %v8144_v25   ;;  %v5563_v12 = vpop.f32.mrb[52].mxu1  ;;  %3369 = vperm.xlu0 %7708, %v8145_v54   ;;  %v2737_v25 = vmul.f32 %v8146_v36, %v11346_v45  ;;  %v8147_v13 = vld [vmem:[%s8936_s17 + $0xc0] sm:$0xff]  ;;  %v14869_v45 = vld [vmem:[#allocation20_spill] sm:$0xff] }
 0x4a7   : > { %v5565_v48 = vpop.f32.mrb[53].mxu1  ;;  %5827 = vmatmul.mubr.f32.gmra.mrb[158].mxu1 %v2245_v46  ;;  %v11879_v19 = vadd.f32 %v5563_v12, %v14861_v17  ;;  %v8148_v46 = vld [vmem:[%s8936_s17 + $0x108] sm:$0xff] }
 0x4a8   : > { %v11881_v47 = vpop.permute.xlu1 %2991  ;;  %5831 = vmatprep.mubr.f32.mxu1 %v2736_v34  ;;  %v672_v48 = vld [vmem:[%s8915_s7 + $0x340] sm:$0xff]  ;;  %v673_v17 = vld [vmem:[%s8915_s7 + $0x348] sm:$0xff]  ;;  %v14866_v34 = vld [vmem:[#allocation101_spill] sm:$0xff] }
 0x4a9   : > { %14862 = vst [vmem:[#allocation96_spill] sm:$0xff] %v11879_v19  ;;  %14863 = vst [vmem:[#allocation122_spill] sm:$0xff] %v11881_v47  ;;  %v11884_v50 = vpop.permute.xlu0 %3019  ;;  %v7537_v30 = vpack.c.bf16 %v673_v17, %v672_v48 }
 0x4aa   : > { %14865 = vst [vmem:[#allocation97_spill] sm:$0xff] %v11884_v50  ;;  %3341 = vperm.xlu1 %7709, %v8147_v13   ;;  %v5568_v54 = vpop.f32.mrb[54].mxu1  ;;  %3377 = vperm.xlu0 %7708, %v8148_v46   ;;  %v2247_v50 = vmul.f32 %v8146_v36, %v14869_v45  ;;  %v8149_v13 = vld [vmem:[%s8931_s21 + $0x290] sm:$0xff]  ;;  %v14874_v36 = vld [vmem:[#allocation127_spill] sm:$0xff] }
 0x4ab   : > { %v5570_v12 = vpop.f32.mrb[55].mxu1  ;;  %5832 = vmatmul.mubr.f32.gmra.mrb[160].mxu1 %v2246_v42  ;;  %v11893_v19 = vadd.f32 %v5568_v54, %v14866_v34  ;;  %v2738_v46 = vmul.f32 %v8149_v13, %v11377_v18  ;;  %v14871_v34 = vld [vmem:[#allocation106_spill] sm:$0xff]  ;;  %v2248_v17 = vmul.f32 %v8149_v13, %v14874_v36 }
 0x4ac   : > { %v11895_v11 = vpop.permute.xlu1 %2999  ;;  %5836 = vmatprep.mubr.f32.mxu1 %v2737_v25  ;;  %v8151_v12 = vld [vmem:[%s8936_s17 + $0x118] sm:$0xff]  ;;  %7538 = vmatpush1.bf16.msra.mxu1 %v7537_v30  ;;  %v14876_v30 = vld [vmem:[#allocation108_spill] sm:$0xff] }
 0x4ad   : > { %14867 = vst [vmem:[#allocation125_spill] sm:$0xff] %v11893_v19  ;;  %14868 = vst [vmem:[#allocation30_spill] sm:$0xff] %v11895_v11  ;;  %v11898_v47 = vpop.permute.xlu0 %3027  ;;  %7539 = vmatprep.subr.bf16.mxu1 %v14731_v57  ;;  %v8152_v18 = vld [vmem:[%s8931_s21 + $0x298] sm:$0xff]  ;;  %v8156_v19 = vld [vmem:[%s8936_s17 + $0xf0] sm:$0xff] }
 0x4ae   : > { %14870 = vst [vmem:[#allocation123_spill] sm:$0xff] %v11898_v47  ;;  %3349 = vperm.xlu1 %7709, %v8150_v58   ;;  %v5573_v42 = vpop.f32.mrb[56].mxu1  ;;  %3385 = vperm.xlu0 %7708, %v8151_v12   ;;  %v2739_v58 = vmul.f32 %v8152_v18, %v11357_v44  ;;  %v8153_v12 = vld [vmem:[%s8936_s17 + $0xe0] sm:$0xff]  ;;  %v15002_v47 = vld [vmem:[#allocation86_spill] sm:$0xff]  ;;  %v12356_v11 = vld [vmem:[%s8936_s17 + $0x10] sm:$0xff] }
 0x4af   : > { %v5575_v54 = vpop.f32.mrb[57].mxu1  ;;  %5837 = vmatmul.mubr.f32.gmra.mrb[162].mxu1 %v2247_v50  ;;  %v11905_v25 = vadd.f32 %v5573_v42, %v14871_v34  ;;  %v8154_v42 = vld [vmem:[%s8936_s17 + $0x128] sm:$0xff]  ;;  %v8155_v44 = vld [vmem:[%s8931_s21 + $0x2a0] sm:$0xff] }
 0x4b0   : > { %v11907_v48 = vpop.permute.xlu1 %3007  ;;  %5841 = vmatprep.mubr.f32.mxu1 %v2738_v46  ;;  %v14879_v34 = vld [vmem:[#allocation128_spill] sm:$0xff] }
 0x4b1   : > { %14872 = vst [vmem:[#allocation101_spill] sm:$0xff] %v11905_v25  ;;  %14873 = vst [vmem:[#allocation20_spill] sm:$0xff] %v11907_v48  ;;  %v11910_v45 = vpop.permute.xlu0 %3035  ;;  %v2249_v36 = vmul.f32 %v8152_v18, %v14879_v34  ;;  %v14884_v18 = vld [vmem:[#allocation21_spill] sm:$0xff] }
 0x4b2   : > { %14875 = vst [vmem:[#allocation106_spill] sm:$0xff] %v11910_v45  ;;  %3357 = vperm.xlu1 %7709, %v8153_v12   ;;  %v5578_v50 = vpop.f32.mrb[58].mxu1  ;;  %3393 = vperm.xlu0 %7708, %v8154_v42   ;;  %v2740_v12 = vmul.f32 %v8155_v44, %v11388_v2  ;;  %v2250_v34 = vmul.f32 %v8155_v44, %v14884_v18  ;;  %v8158_v2 = vld [vmem:[%s8931_s21 + $0x2a8] sm:$0xff]  ;;  %v14889_v44 = vld [vmem:[#allocation130_spill] sm:$0xff]  ;;  %v8168_v45 = vld [vmem:[%s8936_s17 + $0x130] sm:$0xff] }
 0x4b3   : > { %v5580_v54 = vpop.f32.mrb[59].mxu1  ;;  %5842 = vmatmul.mubr.f32.gmra.mrb[164].mxu1 %v2248_v17  ;;  %v11918_v46 = vadd.f32 %v5578_v50, %v14876_v30  ;;  %v8157_v17 = vld [vmem:[%s8936_s17 + $0x138] sm:$0xff]  ;;  %v2251_v18 = vmul.f32 %v8158_v2, %v14889_v44 }
 0x4b4   : > { %v11920_v13 = vpop.permute.xlu1 %3015  ;;  %5846 = vmatprep.mubr.f32.mxu1 %v2739_v58  ;;  %v14881_v54 = vld [vmem:[#allocation109_spill] sm:$0xff] }
 0x4b5   : > { %14877 = vst [vmem:[#allocation127_spill] sm:$0xff] %v11918_v46  ;;  %14878 = vst [vmem:[#allocation108_spill] sm:$0xff] %v11920_v13  ;;  %v11923_v25 = vpop.permute.xlu0 %3043 }
 0x4b6   : > { %14880 = vst [vmem:[#allocation128_spill] sm:$0xff] %v11923_v25  ;;  %3365 = vperm.xlu1 %7709, %v8156_v19   ;;  %v5583_v42 = vpop.f32.mrb[60].mxu1  ;;  %3401 = vperm.xlu0 %7708, %v8157_v17   ;;  %v2741_v19 = vmul.f32 %v8158_v2, %v11368_v3  ;;  %v8159_v25 = vld [vmem:[%s8936_s17 + $0x100] sm:$0xff]  ;;  %v8161_v3 = vld [vmem:[%s8931_s21 + $0x2b0] sm:$0xff] }
 0x4b7   : > { %v5585_v50 = vpop.f32.mrb[61].mxu1  ;;  %5847 = vmatmul.mubr.f32.gmra.mrb[166].mxu1 %v2249_v36  ;;  %v11930_v30 = vadd.f32 %v5583_v42, %v14881_v54  ;;  %v8160_v36 = vld [vmem:[%s8936_s17 + $0x148] sm:$0xff] }
 0x4b8   : > { %v11932_v58 = vpop.permute.xlu1 %3023  ;;  %5851 = vmatprep.mubr.f32.mxu1 %v2740_v12  ;;  %v14886_v50 = vld [vmem:[#allocation114_spill] sm:$0xff] }
 0x4b9   : > { %14882 = vst [vmem:[#allocation109_spill] sm:$0xff] %v11930_v30  ;;  %14883 = vst [vmem:[#allocation178_spill] sm:$0xff] %v11932_v58  ;;  %v11935_v46 = vpop.permute.xlu0 %3051  ;;  %v685_v58 = vld [vmem:[%s8915_s7 + $0x3a8] sm:$0xff] }
 0x4ba   : > { %14885 = vst [vmem:[#allocation21_spill] sm:$0xff] %v11935_v46  ;;  %3373 = vperm.xlu1 %7709, %v8159_v25   ;;  %v5588_v17 = vpop.f32.mrb[62].mxu1  ;;  %3409 = vperm.xlu0 %7708, %v8160_v36   ;;  %v2742_v25 = vmul.f32 %v8161_v3, %v11399_v59  ;;  %v8162_v46 = vld [vmem:[%s8936_s17 + $0x110] sm:$0xff]  ;;  %v8164_v59 = vld [vmem:[%s8931_s21 + $0x2b8] sm:$0xff] }
 0x4bb   : > { %v5590_v42 = vpop.f32.mrb[63].mxu1  ;;  %5852 = vmatmul.mubr.f32.gmra.mrb[168].mxu1 %v2250_v34  ;;  %v11942_v54 = vadd.f32 %v5588_v17, %v14886_v50  ;;  %v8163_v34 = vld [vmem:[%s8936_s17 + $0x158] sm:$0xff]  ;;  %v14894_v50 = vld [vmem:[#allocation129_spill] sm:$0xff] }
 0x4bc   : > { %v11944_v12 = vpop.permute.xlu1 %3031  ;;  %5856 = vmatprep.mubr.f32.mxu1 %v2741_v19  ;;  %v14891_v42 = vld [vmem:[#allocation115_spill] sm:$0xff]  ;;  %v2252_v44 = vmul.f32 %v8161_v3, %v14894_v50 }
 0x4bd   : > { %14887 = vst [vmem:[#allocation114_spill] sm:$0xff] %v11942_v54  ;;  %14888 = vst [vmem:[#allocation179_spill] sm:$0xff] %v11944_v12  ;;  %v11947_v30 = vpop.permute.xlu0 %3059 }
 0x4be   : > { %14890 = vst [vmem:[#allocation130_spill] sm:$0xff] %v11947_v30  ;;  %3381 = vperm.xlu1 %7709, %v8162_v46   ;;  %v5593_v36 = vpop.f32.mrb[64].mxu1  ;;  %3417 = vperm.xlu0 %7708, %v8163_v34   ;;  %v2743_v46 = vmul.f32 %v8164_v59, %v11379_v53  ;;  %v8165_v30 = vld [vmem:[%s8936_s17 + $0x120] sm:$0xff]  ;;  %v14899_v53 = vld [vmem:[#allocation132_spill] sm:$0xff] }
 0x4bf   : > { %v5595_v17 = vpop.f32.mrb[65].mxu1  ;;  %5857 = vmatmul.mubr.f32.gmra.mrb[170].mxu1 %v2251_v18  ;;  %v11954_v19 = vadd.f32 %v5593_v36, %v14891_v42  ;;  %v8166_v18 = vld [vmem:[%s8936_s17 + $0x168] sm:$0xff]  ;;  %v675_v42 = vld [vmem:[%s8915_s7 + $0x358] sm:$0xff] }
 0x4c0   : > { %v11956_v2 = vpop.permute.xlu1 %3039  ;;  %5861 = vmatprep.mubr.f32.mxu1 %v2742_v25  ;;  %v674_v17 = vld [vmem:[%s8915_s7 + $0x350] sm:$0xff]  ;;  %v14896_v25 = vld [vmem:[#allocation120_spill] sm:$0xff] }
 0x4c1   : > { %14892 = vst [vmem:[#allocation115_spill] sm:$0xff] %v11954_v19  ;;  %14893 = vst [vmem:[#allocation180_spill] sm:$0xff] %v11956_v2  ;;  %v11959_v54 = vpop.permute.xlu0 %3067  ;;  %v7540_v50 = vpack.c.bf16 %v675_v42, %v674_v17 }
 0x4c2   : > { %14895 = vst [vmem:[#allocation129_spill] sm:$0xff] %v11959_v54  ;;  %3389 = vperm.xlu1 %7709, %v8165_v30   ;;  %v5598_v34 = vpop.f32.mrb[66].mxu1  ;;  %3425 = vperm.xlu0 %7708, %v8166_v18   ;;  %v2253_v54 = vmul.f32 %v8164_v59, %v14899_v53  ;;  %v8167_v30 = vld [vmem:[%s8931_s21 + $0x2c0] sm:$0xff] }
 0x4c3   : > { %v5600_v36 = vpop.f32.mrb[67].mxu1  ;;  %5862 = vmatmul.mubr.f32.gmra.mrb[172].mxu1 %v2252_v44  ;;  %v11968_v19 = vadd.f32 %v5598_v34, %v14896_v25  ;;  %v2744_v18 = vmul.f32 %v8167_v30, %v11410_v9  ;;  %v14901_v25 = vld [vmem:[#allocation121_spill] sm:$0xff]  ;;  %v14904_v59 = vld [vmem:[#allocation131_spill] sm:$0xff]  ;;  %v8170_v9 = vld [vmem:[%s8931_s21 + $0x2c8] sm:$0xff] }
 0x4c4   : > { %v11970_v3 = vpop.permute.xlu1 %3047  ;;  %5866 = vmatprep.mubr.f32.mxu1 %v2743_v46  ;;  %v8169_v36 = vld [vmem:[%s8936_s17 + $0x178] sm:$0xff]  ;;  %7541 = vmatpush1.bf16.msra.mxu1 %v7540_v50  ;;  %v2254_v42 = vmul.f32 %v8167_v30, %v14904_v59 }
 0x4c5   : > { %14897 = vst [vmem:[#allocation120_spill] sm:$0xff] %v11968_v19  ;;  %14898 = vst [vmem:[#allocation181_spill] sm:$0xff] %v11970_v3  ;;  %v11973_v2 = vpop.permute.xlu0 %3075  ;;  %7542 = vmatprep.subr.bf16.mxu1 %v14731_v57  ;;  %v14906_v50 = vld [vmem:[#allocation126_spill] sm:$0xff]  ;;  %v8174_v19 = vld [vmem:[%s8936_s17 + $0x150] sm:$0xff] }
 0x4c6   : > { %14900 = vst [vmem:[#allocation132_spill] sm:$0xff] %v11973_v2  ;;  %3397 = vperm.xlu1 %7709, %v8168_v45   ;;  %v5603_v44 = vpop.f32.mrb[68].mxu1  ;;  %3433 = vperm.xlu0 %7708, %v8169_v36   ;;  %v2745_v45 = vmul.f32 %v8170_v9, %v11390_v32  ;;  %v8171_v36 = vld [vmem:[%s8936_s17 + $0x140] sm:$0xff]  ;;  %v8173_v32 = vld [vmem:[%s8931_s21 + $0x2d0] sm:$0xff] }
 0x4c7   : > { %v5605_v34 = vpop.f32.mrb[69].mxu1  ;;  %5867 = vmatmul.mubr.f32.gmra.mrb[174].mxu1 %v2253_v54  ;;  %v11980_v46 = vadd.f32 %v5603_v44, %v14901_v25  ;;  %v8172_v44 = vld [vmem:[%s8936_s17 + $0x188] sm:$0xff]  ;;  %v14909_v25 = vld [vmem:[#allocation134_spill] sm:$0xff]  ;;  %v8238_v2 = vld [vmem:[%s8936_s17 + $0x2b0] sm:$0xff] }
 0x4c8   : > { %v11982_v17 = vpop.permute.xlu1 %3055  ;;  %5871 = vmatprep.mubr.f32.mxu1 %v2744_v18  ;;  %v2255_v59 = vmul.f32 %v8170_v9, %v14909_v25  ;;  %v14914_v9 = vld [vmem:[#allocation133_spill] sm:$0xff] }
 0x4c9   : > { %14902 = vst [vmem:[#allocation121_spill] sm:$0xff] %v11980_v46  ;;  %14903 = vst [vmem:[#allocation182_spill] sm:$0xff] %v11982_v17  ;;  %v11985_v53 = vpop.permute.xlu0 %3083  ;;  %v2256_v25 = vmul.f32 %v8173_v32, %v14914_v9 }
 0x4ca   : > { %14905 = vst [vmem:[#allocation131_spill] sm:$0xff] %v11985_v53  ;;  %3405 = vperm.xlu1 %7709, %v8171_v36   ;;  %v5608_v54 = vpop.f32.mrb[70].mxu1  ;;  %3441 = vperm.xlu0 %7708, %v8172_v44   ;;  %v2746_v36 = vmul.f32 %v8173_v32, %v11421_v52  ;;  %v8176_v52 = vld [vmem:[%s8931_s21 + $0x2d8] sm:$0xff]  ;;  %v14919_v32 = vld [vmem:[#allocation137_spill] sm:$0xff] }
 0x4cb   : > { %v5610_v34 = vpop.f32.mrb[71].mxu1  ;;  %5872 = vmatmul.mubr.f32.gmra.mrb[176].mxu1 %v2254_v42  ;;  %v11993_v18 = vadd.f32 %v5608_v54, %v14906_v50  ;;  %v8175_v42 = vld [vmem:[%s8936_s17 + $0x198] sm:$0xff]  ;;  %v2257_v9 = vmul.f32 %v8176_v52, %v14919_v32  ;;  %v8186_v53 = vld [vmem:[%s8936_s17 + $0x190] sm:$0xff] }
 0x4cc   : > { %v11995_v30 = vpop.permute.xlu1 %3063  ;;  %5876 = vmatprep.mubr.f32.mxu1 %v2745_v45  ;;  %v14911_v34 = vld [vmem:[#allocation19_spill] sm:$0xff] }
 0x4cd   : > { %14907 = vst [vmem:[#allocation126_spill] sm:$0xff] %v11993_v18  ;;  %14908 = vst [vmem:[#allocation183_spill] sm:$0xff] %v11995_v30  ;;  %v11998_v46 = vpop.permute.xlu0 %3091 }
 0x4ce   : > { %14910 = vst [vmem:[#allocation134_spill] sm:$0xff] %v11998_v46  ;;  %3413 = vperm.xlu1 %7709, %v8174_v19   ;;  %v5613_v44 = vpop.f32.mrb[72].mxu1  ;;  %3449 = vperm.xlu0 %7708, %v8175_v42   ;;  %v2747_v19 = vmul.f32 %v8176_v52, %v11401_v28  ;;  %v8177_v46 = vld [vmem:[%s8936_s17 + $0x160] sm:$0xff] }
 0x4cf   : > { %v5615_v54 = vpop.f32.mrb[73].mxu1  ;;  %5877 = vmatmul.mubr.f32.gmra.mrb[178].mxu1 %v2255_v59  ;;  %v12005_v50 = vadd.f32 %v5613_v44, %v14911_v34  ;;  %v8178_v59 = vld [vmem:[%s8936_s17 + $0x1a8] sm:$0xff]  ;;  %v8179_v28 = vld [vmem:[%s8931_s21 + $0x2e0] sm:$0xff] }
 0x4d0   : > { %v12007_v45 = vpop.permute.xlu1 %3071  ;;  %5881 = vmatprep.mubr.f32.mxu1 %v2746_v36  ;;  %v14916_v54 = vld [vmem:[#allocation22_spill] sm:$0xff] }
 0x4d1   : > { %14912 = vst [vmem:[#allocation19_spill] sm:$0xff] %v12005_v50  ;;  %14913 = vst [vmem:[#allocation184_spill] sm:$0xff] %v12007_v45  ;;  %v12010_v18 = vpop.permute.xlu0 %3099  ;;  %v14987_v45 = vld [vmem:[#allocation167_spill] sm:$0xff] }
 0x4d2   : > { %14915 = vst [vmem:[#allocation133_spill] sm:$0xff] %v12010_v18  ;;  %3421 = vperm.xlu1 %7709, %v8177_v46   ;;  %v5618_v42 = vpop.f32.mrb[74].mxu1  ;;  %3457 = vperm.xlu0 %7708, %v8178_v59   ;;  %v2748_v46 = vmul.f32 %v8179_v28, %v11432_v37  ;;  %v8180_v18 = vld [vmem:[%s8936_s17 + $0x170] sm:$0xff]  ;;  %v8182_v37 = vld [vmem:[%s8931_s21 + $0x2e8] sm:$0xff] }
 0x4d3   : > { %v5620_v44 = vpop.f32.mrb[75].mxu1  ;;  %5882 = vmatmul.mubr.f32.gmra.mrb[180].mxu1 %v2256_v25  ;;  %v12017_v34 = vadd.f32 %v5618_v42, %v14916_v54  ;;  %v8181_v25 = vld [vmem:[%s8936_s17 + $0x1b8] sm:$0xff]  ;;  %v14924_v54 = vld [vmem:[#allocation135_spill] sm:$0xff] }
 0x4d4   : > { %v12019_v36 = vpop.permute.xlu1 %3079  ;;  %5886 = vmatprep.mubr.f32.mxu1 %v2747_v19  ;;  %v14921_v44 = vld [vmem:[#allocation23_spill] sm:$0xff]  ;;  %v2258_v32 = vmul.f32 %v8179_v28, %v14924_v54 }
 0x4d5   : > { %14917 = vst [vmem:[#allocation22_spill] sm:$0xff] %v12017_v34  ;;  %14918 = vst [vmem:[#allocation185_spill] sm:$0xff] %v12019_v36  ;;  %v12022_v50 = vpop.permute.xlu0 %3107  ;;  %v8233_v36 = vld [vmem:[%s8936_s17 + $0x2d8] sm:$0xff] }
 0x4d6   : > { %14920 = vst [vmem:[#allocation137_spill] sm:$0xff] %v12022_v50  ;;  %3429 = vperm.xlu1 %7709, %v8180_v18   ;;  %v5623_v59 = vpop.f32.mrb[76].mxu1  ;;  %3465 = vperm.xlu0 %7708, %v8181_v25   ;;  %v2749_v18 = vmul.f32 %v8182_v37, %v11412_v55  ;;  %v8183_v50 = vld [vmem:[%s8936_s17 + $0x180] sm:$0xff]  ;;  %v14929_v55 = vld [vmem:[#allocation140_spill] sm:$0xff] }
 0x4d7   : > { %v5625_v42 = vpop.f32.mrb[77].mxu1  ;;  %5887 = vmatmul.mubr.f32.gmra.mrb[182].mxu1 %v2257_v9  ;;  %v12029_v19 = vadd.f32 %v5623_v59, %v14921_v44  ;;  %v8184_v9 = vld [vmem:[%s8936_s17 + $0x1c8] sm:$0xff] }
 0x4d8   : > { %v12031_v52 = vpop.permute.xlu1 %3087  ;;  %5891 = vmatprep.mubr.f32.mxu1 %v2748_v46  ;;  %v676_v42 = vld [vmem:[%s8915_s7 + $0x360] sm:$0xff]  ;;  %v677_v44 = vld [vmem:[%s8915_s7 + $0x368] sm:$0xff] }
 0x4d9   : > { %14922 = vst [vmem:[#allocation23_spill] sm:$0xff] %v12029_v19  ;;  %14923 = vst [vmem:[#allocation186_spill] sm:$0xff] %v12031_v52  ;;  %v12034_v34 = vpop.permute.xlu0 %3115  ;;  %v14926_v46 = vld [vmem:[#allocation24_spill] sm:$0xff]  ;;  %v7543_v54 = vpack.c.bf16 %v677_v44, %v676_v42 }
 0x4da   : > { %14925 = vst [vmem:[#allocation135_spill] sm:$0xff] %v12034_v34  ;;  %3437 = vperm.xlu1 %7709, %v8183_v50   ;;  %v5628_v25 = vpop.f32.mrb[78].mxu1  ;;  %3473 = vperm.xlu0 %7708, %v8184_v9   ;;  %v2259_v34 = vmul.f32 %v8182_v37, %v14929_v55  ;;  %v8185_v50 = vld [vmem:[%s8931_s21 + $0x2f0] sm:$0xff]  ;;  %v14934_v37 = vld [vmem:[#allocation138_spill] sm:$0xff] }
 0x4db   : > { %v5630_v59 = vpop.f32.mrb[79].mxu1  ;;  %5892 = vmatmul.mubr.f32.gmra.mrb[184].mxu1 %v2258_v32  ;;  %v12043_v19 = vadd.f32 %v5628_v25, %v14926_v46  ;;  %v2750_v9 = vmul.f32 %v8185_v50, %v11443_v20  ;;  %v14931_v46 = vld [vmem:[#allocation25_spill] sm:$0xff]  ;;  %v2260_v44 = vmul.f32 %v8185_v50, %v14934_v37  ;;  %v8188_v20 = vld [vmem:[%s8931_s21 + $0x2f8] sm:$0xff] }
 0x4dc   : > { %v12045_v28 = vpop.permute.xlu1 %3095  ;;  %5896 = vmatprep.mubr.f32.mxu1 %v2749_v18  ;;  %v8187_v59 = vld [vmem:[%s8936_s17 + $0x1d8] sm:$0xff]  ;;  %7544 = vmatpush1.bf16.msra.mxu1 %v7543_v54  ;;  %v14936_v54 = vld [vmem:[#allocation136_spill] sm:$0xff] }
 0x4dd   : > { %14927 = vst [vmem:[#allocation24_spill] sm:$0xff] %v12043_v19  ;;  %14928 = vst [vmem:[#allocation187_spill] sm:$0xff] %v12045_v28  ;;  %v12048_v52 = vpop.permute.xlu0 %3123  ;;  %7545 = vmatprep.subr.bf16.mxu1 %v14731_v57  ;;  %v8195_v19 = vld [vmem:[%s8931_s21] sm:$0xff] }
 0x4de   : > { %14930 = vst [vmem:[#allocation140_spill] sm:$0xff] %v12048_v52  ;;  %3445 = vperm.xlu1 %7709, %v8186_v53   ;;  %v5633_v32 = vpop.f32.mrb[80].mxu1  ;;  %3481 = vperm.xlu0 %7708, %v8187_v59   ;;  %v2751_v53 = vmul.f32 %v8188_v20, %v11423_v23  ;;  %v8189_v59 = vld [vmem:[%s8936_s17 + $0x1a0] sm:$0xff] }
 0x4df   : > { %v5635_v25 = vpop.f32.mrb[81].mxu1  ;;  %5897 = vmatmul.mubr.f32.gmra.mrb[186].mxu1 %v2259_v34  ;;  %v12055_v18 = vadd.f32 %v5633_v32, %v14931_v46  ;;  %v8190_v32 = vld [vmem:[%s8936_s17 + $0x1e8] sm:$0xff]  ;;  %v14939_v46 = vld [vmem:[#allocation143_spill] sm:$0xff] }
 0x4e0   : > { %v12057_v42 = vpop.permute.xlu1 %3103  ;;  %5901 = vmatprep.mubr.f32.mxu1 %v2750_v9  ;;  %v2261_v37 = vmul.f32 %v8188_v20, %v14939_v46  ;;  %v8191_v23 = vld [vmem:[%s8931_s21 + $0x300] sm:$0xff] }
 0x4e1   : > { %14932 = vst [vmem:[#allocation25_spill] sm:$0xff] %v12055_v18  ;;  %14933 = vst [vmem:[#allocation188_spill] sm:$0xff] %v12057_v42  ;;  %v12060_v55 = vpop.permute.xlu0 %3131  ;;  %v8192_v18 = vld [vmem:[%s8936_s17 + $0x1b0] sm:$0xff]  ;;  %v8196_v52 = vld [vmem:[%s8936_s17 + $0x1c0] sm:$0xff] }
 0x4e2   : > { %14935 = vst [vmem:[#allocation138_spill] sm:$0xff] %v12060_v55  ;;  %3453 = vperm.xlu1 %7709, %v8189_v59   ;;  %v5638_v34 = vpop.f32.mrb[82].mxu1  ;;  %3489 = vperm.xlu0 %7708, %v8190_v32   ;;  %v2752_v59 = vmul.f32 %v8191_v23, %v11454_v14 }
 0x4e3   : > { %v5640_v25 = vpop.f32.mrb[83].mxu1  ;;  %5902 = vmatmul.mubr.f32.gmra.mrb[188].mxu1 %v2260_v44  ;;  %v12068_v9 = vadd.f32 %v5638_v34, %v14936_v54  ;;  %v8193_v44 = vld [vmem:[%s8936_s17 + $0x1f8] sm:$0xff]  ;;  %v14944_v54 = vld [vmem:[#allocation141_spill] sm:$0xff] }
 0x4e4   : > { %v12070_v50 = vpop.permute.xlu1 %3111  ;;  %5906 = vmatprep.mubr.f32.mxu1 %v2751_v53  ;;  %v14941_v25 = vld [vmem:[#allocation139_spill] sm:$0xff]  ;;  %v2262_v46 = vmul.f32 %v8191_v23, %v14944_v54  ;;  %v8198_v54 = vld [vmem:[%s8936_s17 + $0x1d0] sm:$0xff] }
 0x4e5   : > { %14937 = vst [vmem:[#allocation136_spill] sm:$0xff] %v12068_v9  ;;  %14938 = vst [vmem:[#allocation189_spill] sm:$0xff] %v12070_v50  ;;  %v12073_v55 = vpop.permute.xlu0 %3139  ;;  %v8194_v9 = vld [vmem:[%s8931_s21 + $0x308] sm:$0xff]  ;;  %v680_v50 = vld [vmem:[%s8915_s7 + $0x380] sm:$0xff] }
 0x4e6   : > { %14940 = vst [vmem:[#allocation143_spill] sm:$0xff] %v12073_v55  ;;  %3461 = vperm.xlu1 %7709, %v8192_v18   ;;  %v5643_v32 = vpop.f32.mrb[84].mxu1  ;;  %3497 = vperm.xlu0 %7708, %v8193_v44   ;;  %v2753_v14 = vmul.f32 %v8194_v9, %v11434_v41  ;;  %v14948_v41 = vld [vmem:[#allocation145_spill] sm:$0xff] }
 0x4e7   : > { %v5645_v34 = vpop.f32.mrb[85].mxu1  ;;  %5907 = vmatmul.mubr.f32.gmra.mrb[190].mxu1 %v2261_v37  ;;  %v12080_v53 = vadd.f32 %v5643_v32, %v14941_v25  ;;  %v8197_v37 = vld [vmem:[%s8936_s17 + $0x208] sm:$0xff]  ;;  %v3146_v32 = vmul.f32 %v8195_v19, %v11467_v22 }
 0x4e8   : > { %v12082_v20 = vpop.permute.xlu1 %3119  ;;  %5911 = vmatprep.mubr.f32.mxu1 %v2752_v59  ;;  %v14945_v59 = vld [vmem:[#allocation142_spill] sm:$0xff] }
 0x4e9   : > { %14942 = vst [vmem:[#allocation139_spill] sm:$0xff] %v12080_v53  ;;  %14943 = vst [vmem:[#allocation190_spill] sm:$0xff] %v12082_v20  ;;  %v3246_v55 = vpop.permute.xlu0 %3245  ;;  %v8199_v53 = vld [vmem:[%s8936_s17 + $0x218] sm:$0xff]  ;;  %v14963_v20 = vld [vmem:[#allocation29_spill] sm:$0xff] }
 0x4ea   : > { %v3636_v18 = vmul.f32 %v8195_v19, %v3246_v55  ;;  %3469 = vperm.xlu1 %7709, %v8196_v52   ;;  %v5648_v44 = vpop.f32.mrb[86].mxu1  ;;  %3505 = vperm.xlu0 %7708, %v8197_v37   ;;  %v2263_v55 = vmul.f32 %v8194_v9, %v14948_v41  ;;  %v14949_v19 = vld [vmem:[#allocation144_spill] sm:$0xff]  ;;  %v8200_v9 = vld [vmem:[%s8936_s17 + $0x1e0] sm:$0xff] }
 0x4eb   : > { %v5650_v34 = vpop.f32.mrb[87].mxu1  ;;  %5912 = vmatmul.mubr.f32.gmra.mrb[192].mxu1 %v2262_v46  ;;  %v12092_v25 = vadd.f32 %v5648_v44, %v14945_v59  ;;  %v14952_v59 = vld [vmem:[#allocation147_spill] sm:$0xff] }
 0x4ec   : > { %v12094_v23 = vpop.permute.xlu1 %3127  ;;  %5916 = vmatprep.mubr.f32.mxu1 %v2753_v14  ;;  %5986 = vmatprep.mubr.f32.mxu0 %v3636_v18 }
 0x4ed   : > { %14946 = vst [vmem:[#allocation141_spill] sm:$0xff] %v12092_v25  ;;  %14947 = vst [vmem:[#allocation142_spill] sm:$0xff] %v12094_v23  ;;  %5987 = vmatmul.mubr.f32.vlgmr.msra.gmra.mrb[196].mxu0 %v3146_v32  ;;  %v3258_v52 = vpop.permute.xlu0 %3257  ;;  %v8201_v32 = vld [vmem:[%s8936_s17 + $0x228] sm:$0xff] }
 0x4ee   : > { %3477 = vperm.xlu1 %7709, %v8198_v54   ;;  %v5653_v37 = vpop.f32.mrb[88].mxu1  ;;  %3513 = vperm.xlu0 %7708, %v8199_v53   ;;  %v8202_v54 = vld [vmem:[%s8936_s17 + $0x1f0] sm:$0xff] }
 0x4ef   : > { %v5655_v22 = vpop.f32.mrb[89].mxu1  ;;  %5917 = vmatmul.mubr.f32.gmra.mrb[194].mxu1 %v2263_v55  ;;  %v12100_v46 = vadd.f32 %v5653_v37, %v14949_v19  ;;  %v678_v19 = vld [vmem:[%s8915_s7 + $0x370] sm:$0xff] }
 0x4f0   : > { %v12102_v44 = vpop.permute.xlu1 %3135  ;;  %v8203_v22 = vld [vmem:[%s8936_s17 + $0x238] sm:$0xff] }
 0x4f1   : > { %14950 = vst [vmem:[#allocation145_spill] sm:$0xff] %v12100_v46  ;;  %14951 = vst [vmem:[#allocation144_spill] sm:$0xff] %v12102_v44  ;;  %v12104_v14 = vpop.permute.xlu0 %3265 }
 0x4f2   : > { %3485 = vperm.xlu1 %7709, %v8200_v9   ;;  %v5658_v18 = vpop.f32.mrb[90].mxu1  ;;  %3521 = vperm.xlu0 %7708, %v8201_v32   ;;  %v679_v9 = vld [vmem:[%s8915_s7 + $0x378] sm:$0xff] }
 0x4f3   : > { %v5660_v34 = vpop.f32.mrb[91].mxu1  ;;  %v12109_v53 = vadd.f32 %v5658_v18, %v14952_v59  ;;  %v7546_v32 = vpack.c.bf16 %v679_v9, %v678_v19 }
 0x4f4   : > { %v12111_v41 = vpop.permute.xlu1 %3143  ;;  %v14955_v34 = vld [vmem:[#allocation149_spill] sm:$0xff] }
 0x4f5   : > { %14953 = vst [vmem:[#allocation147_spill] sm:$0xff] %v12109_v53  ;;  %14954 = vst [vmem:[#allocation191_spill] sm:$0xff] %v12111_v41  ;;  %v12113_v55 = vpop.permute.xlu0 %3273  ;;  %7547 = vmatpush1.bf16.msra.mxu1 %v7546_v32  ;;  %v8204_v53 = vld [vmem:[%s8931_s21 + $0x8] sm:$0xff] }
 0x4f6   : > { %3493 = vperm.xlu1 %7709, %v8202_v54   ;;  %v5663_v37 = vpop.f32.mrb[92].mxu1  ;;  %3529 = vperm.xlu0 %7708, %v8203_v22   ;;  %v8205_v54 = vld [vmem:[%s8936_s17 + $0x200] sm:$0xff]  ;;  %v8206_v22 = vld [vmem:[%s8936_s17 + $0x248] sm:$0xff] }
 0x4f7   : > { %v5665_v46 = vpop.f32.mrb[93].mxu1  ;;  %v12120_v25 = vadd.f32 %v5663_v37, %v14955_v34  ;;  %7548 = vmatprep.subr.bf16.mxu1 %v14731_v57  ;;  %v14957_v37 = vld [vmem:[#allocation151_spill] sm:$0xff] }
 0x4f8   : > { %v3147_v46 = vmul.f32 %v8204_v53, %v11447_v60  ;;  %v8209_v60 = vld [vmem:[%s8936_s17 + $0x258] sm:$0xff] }
 0x4f9   : > { %14956 = vst [vmem:[#allocation149_spill] sm:$0xff] %v12120_v25  ;;  %v3250_v18 = vpop.permute.xlu1 %3249  ;;  %v12122_v59 = vpop.permute.xlu0 %3281  ;;  %v8208_v25 = vld [vmem:[%s8936_s17 + $0x210] sm:$0xff] }
 0x4fa   : > { %v3637_v41 = vmul.f32 %v8204_v53, %v3250_v18  ;;  %3501 = vperm.xlu1 %7709, %v8205_v54   ;;  %v5668_v44 = vpop.f32.mrb[94].mxu1  ;;  %3537 = vperm.xlu0 %7708, %v8206_v22   ;;  %v8207_v18 = vld [vmem:[%s8931_s21 + $0x10] sm:$0xff] }
 0x4fb   : > { %v5670_v19 = vpop.f32.mrb[95].mxu1  ;;  %v12130_v9 = vadd.f32 %v5668_v44, %v14957_v37  ;;  %v3148_v53 = vmul.f32 %v8207_v18, %v11481_v15 }
 0x4fc   : > { %5991 = vmatprep.mubr.f32.mxu0 %v3637_v41  ;;  %v8210_v19 = vld [vmem:[%s8931_s21 + $0x18] sm:$0xff]  ;;  %v14959_v41 = vld [vmem:[#allocation153_spill] sm:$0xff] }
 0x4fd   : > { %14958 = vst [vmem:[#allocation151_spill] sm:$0xff] %v12130_v9  ;;  %v3254_v32 = vpop.permute.xlu1 %3253  ;;  %5992 = vmatmul.mubr.f32.gmra.mrb[198].mxu0 %v3147_v46  ;;  %v12132_v34 = vpop.permute.xlu0 %3289  ;;  %v3639_v23 = vmul.f32 %v8210_v19, %v3258_v52  ;;  %v3149_v15 = vmul.f32 %v8210_v19, %v11495_v63  ;;  %v8216_v19 = vld [vmem:[%s8931_s21 + $0x28] sm:$0xff] }
 0x4fe   : > { %v3638_v54 = vmul.f32 %v8207_v18, %v3254_v32  ;;  %3509 = vperm.xlu1 %7709, %v8208_v25   ;;  %v5673_v22 = vpop.f32.mrb[96].mxu1  ;;  %3545 = vperm.xlu0 %7708, %v8209_v60   ;;  %v8211_v25 = vld [vmem:[%s8936_s17 + $0x220] sm:$0xff]  ;;  %v8212_v60 = vld [vmem:[%s8936_s17 + $0x268] sm:$0xff] }
 0x4ff   : > { %v5675_v44 = vpop.f32.mrb[97].mxu1  ;;  %v12140_v37 = vadd.f32 %v5673_v22, %v14959_v41  ;;  %v14961_v18 = vld [vmem:[#allocation155_spill] sm:$0xff] }
 0x500   : > { %5996 = vmatprep.mubr.f32.mxu0 %v3638_v54  ;;  %v8213_v54 = vld [vmem:[%s8931_s21 + $0x20] sm:$0xff] }
 0x501   : > { %14960 = vst [vmem:[#allocation153_spill] sm:$0xff] %v12140_v37  ;;  %v3262_v46 = vpop.permute.xlu1 %3261  ;;  %5997 = vmatmul.mubr.f32.gmra.mrb[200].mxu0 %v3148_v53  ;;  %v12142_v32 = vpop.permute.xlu0 %3297  ;;  %v3150_v63 = vmul.f32 %v8213_v54, %v14963_v20  ;;  %v3151_v20 = vmul.f32 %v8216_v19, %v11512_v5  ;;  %v681_v5 = vld [vmem:[%s8915_s7 + $0x388] sm:$0xff] }
 0x502   : > { %3517 = vperm.xlu1 %7709, %v8211_v25   ;;  %v5678_v9 = vpop.f32.mrb[98].mxu1  ;;  %3553 = vperm.xlu0 %7708, %v8212_v60   ;;  %v3640_v44 = vmul.f32 %v8213_v54, %v3262_v46  ;;  %v8214_v25 = vld [vmem:[%s8936_s17 + $0x230] sm:$0xff]  ;;  %v8215_v60 = vld [vmem:[%s8936_s17 + $0x278] sm:$0xff]  ;;  %v14964_v46 = vld [vmem:[#allocation156_spill] sm:$0xff] }
 0x503   : > { %v5680_v52 = vpop.f32.mrb[99].mxu1  ;;  %6001 = vmatprep.mubr.f32.mxu0 %v3639_v23  ;;  %v12148_v22 = vadd.f32 %v5678_v9, %v14961_v18  ;;  %v3641_v23 = vmul.f32 %v8216_v19, %v12104_v14  ;;  %v14968_v19 = vld [vmem:[#allocation146_spill] sm:$0xff] }
 0x505   : > { %14962 = vst [vmem:[#allocation155_spill] sm:$0xff] %v12148_v22  ;;  %v3270_v53 = vpop.permute.xlu1 %3269  ;;  %6002 = vmatmul.mubr.f32.gmra.mrb[202].mxu0 %v3149_v15  ;;  %v12151_v41 = vpop.permute.xlu0 %3305  ;;  %v8218_v22 = vld [vmem:[%s8936_s17 + $0x288] sm:$0xff] }
 0x506   : > { %3525 = vperm.xlu1 %7709, %v8214_v25   ;;  %v5683_v37 = vpop.f32.mrb[100].mxu1  ;;  %3561 = vperm.xlu0 %7708, %v8215_v60   ;;  %v8217_v25 = vld [vmem:[%s8936_s17 + $0x240] sm:$0xff] }
 0x507   : > { %6006 = vmatprep.mubr.f32.mxu0 %v3640_v44  ;;  %v5685_v9 = vpop.f32.mrb[101].mxu1  ;;  %v12159_v52 = vadd.f32 %v5683_v37, %v14964_v46  ;;  %v14966_v37 = vld [vmem:[#allocation158_spill] sm:$0xff]  ;;  %v8219_v44 = vld [vmem:[%s8931_s21 + $0x30] sm:$0xff] }
 0x509   : > { %14965 = vst [vmem:[#allocation29_spill] sm:$0xff] %v12159_v52  ;;  %v3278_v15 = vpop.permute.xlu1 %3277  ;;  %6007 = vmatmul.mubr.f32.gmra.mrb[204].mxu0 %v3150_v63  ;;  %v12161_v18 = vpop.permute.xlu0 %3313  ;;  %v3642_v63 = vmul.f32 %v8219_v44, %v3270_v53 }
 0x50a   : > { %3533 = vperm.xlu1 %7709, %v8217_v25   ;;  %v5688_v60 = vpop.f32.mrb[102].mxu1  ;;  %3569 = vperm.xlu0 %7708, %v8218_v22   ;;  %v8220_v25 = vld [vmem:[%s8936_s17 + $0x250] sm:$0xff]  ;;  %v8221_v22 = vld [vmem:[%s8936_s17 + $0x298] sm:$0xff] }
 0x50b   : > { %v5690_v14 = vpop.f32.mrb[103].mxu1  ;;  %6011 = vmatprep.mubr.f32.mxu0 %v3641_v23  ;;  %v12167_v54 = vadd.f32 %v5688_v60, %v14966_v37  ;;  %v3152_v23 = vmul.f32 %v8219_v44, %v14968_v19  ;;  %v7549_v37 = vpack.c.bf16 %v681_v5, %v680_v50  ;;  %v8224_v19 = vld [vmem:[%s8936_s17 + $0x2a8] sm:$0xff] }
 0x50c   : > { %v8222_v14 = vld [vmem:[%s8931_s21 + $0x38] sm:$0xff] }
 0x50d   : > { %14967 = vst [vmem:[#allocation156_spill] sm:$0xff] %v12167_v54  ;;  %v3286_v9 = vpop.permute.xlu1 %3285  ;;  %6012 = vmatmul.mubr.f32.gmra.mrb[206].mxu0 %v3151_v20  ;;  %v12170_v46 = vpop.permute.xlu0 %3321  ;;  %v3643_v60 = vmul.f32 %v8222_v14, %v12113_v55  ;;  %v14969_v20 = vld [vmem:[#allocation159_spill] sm:$0xff]  ;;  %7550 = vmatpush1.bf16.msra.mxu1 %v7549_v37  ;;  %v14971_v55 = vld [vmem:[#allocation70_spill] sm:$0xff] }
 0x50e   : > { %3541 = vperm.xlu1 %7709, %v8220_v25   ;;  %v5693_v52 = vpop.f32.mrb[104].mxu1  ;;  %3577 = vperm.xlu0 %7708, %v8221_v22   ;;  %v8223_v22 = vld [vmem:[%s8936_s17 + $0x260] sm:$0xff] }
 0x50f   : > { %6016 = vmatprep.mubr.f32.mxu0 %v3642_v63  ;;  %v5695_v53 = vpop.f32.mrb[105].mxu1  ;;  %v12180_v54 = vadd.f32 %v5693_v52, %v14969_v20  ;;  %v3153_v63 = vmul.f32 %v8222_v14, %v14971_v55  ;;  %7551 = vmatprep.subr.bf16.mxu1 %v14731_v57  ;;  %v14972_v52 = vld [vmem:[#allocation161_spill] sm:$0xff] }
 0x511   : > { %14970 = vst [vmem:[#allocation158_spill] sm:$0xff] %v12180_v54  ;;  %v12182_v25 = vpop.permute.xlu1 %3293  ;;  %6017 = vmatmul.mubr.f32.gmra.mrb[208].mxu0 %v3152_v23  ;;  %v12184_v42 = vpop.permute.xlu0 %3329  ;;  %v8225_v23 = vld [vmem:[%s8931_s21 + $0x40] sm:$0xff] }
 0x512   : > { %3549 = vperm.xlu1 %7709, %v8223_v22   ;;  %v5698_v44 = vpop.f32.mrb[106].mxu1  ;;  %3585 = vperm.xlu0 %7708, %v8224_v19   ;;  %v3644_v53 = vmul.f32 %v8225_v23, %v3278_v15  ;;  %v8226_v22 = vld [vmem:[%s8936_s17 + $0x270] sm:$0xff]  ;;  %v8227_v19 = vld [vmem:[%s8936_s17 + $0x2b8] sm:$0xff]  ;;  %v8229_v54 = vld [vmem:[%s8936_s17 + $0x280] sm:$0xff] }
 0x513   : > { %v5700_v50 = vpop.f32.mrb[107].mxu1  ;;  %6021 = vmatprep.mubr.f32.mxu0 %v3643_v60  ;;  %v12191_v5 = vadd.f32 %v5698_v44, %v14972_v52  ;;  %v14974_v60 = vld [vmem:[#allocation148_spill] sm:$0xff]  ;;  %v14975_v52 = vld [vmem:[#allocation163_spill] sm:$0xff] }
 0x514   : > { %v3154_v55 = vmul.f32 %v8225_v23, %v14974_v60  ;;  %v8228_v50 = vld [vmem:[%s8931_s21 + $0x48] sm:$0xff]  ;;  %v14977_v60 = vld [vmem:[#allocation35_spill] sm:$0xff] }
 0x515   : > { %14973 = vst [vmem:[#allocation146_spill] sm:$0xff] %v12191_v5  ;;  %v12194_v37 = vpop.permute.xlu1 %3301  ;;  %6022 = vmatmul.mubr.f32.gmra.mrb[210].mxu0 %v3153_v63  ;;  %v12196_v20 = vpop.permute.xlu0 %3337  ;;  %v3645_v44 = vmul.f32 %v8228_v50, %v12122_v59  ;;  %v8230_v23 = vld [vmem:[%s8936_s17 + $0x2c8] sm:$0xff]  ;;  %v3155_v59 = vmul.f32 %v8228_v50, %v14977_v60  ;;  %v14980_v50 = vld [vmem:[#allocation150_spill] sm:$0xff] }
 0x516   : > { %3557 = vperm.xlu1 %7709, %v8226_v22   ;;  %v5703_v14 = vpop.f32.mrb[108].mxu1  ;;  %3593 = vperm.xlu0 %7708, %v8227_v19  }
 0x517   : > { %6026 = vmatprep.mubr.f32.mxu0 %v3644_v53  ;;  %v5705_v15 = vpop.f32.mrb[109].mxu1  ;;  %v12204_v5 = vadd.f32 %v5703_v14, %v14975_v52  ;;  %v8231_v52 = vld [vmem:[%s8931_s21 + $0x50] sm:$0xff] }
 0x518   : > { %v14978_v15 = vld [vmem:[#allocation165_spill] sm:$0xff]  ;;  %v3156_v60 = vmul.f32 %v8231_v52, %v14980_v50  ;;  %v14983_v50 = vld [vmem:[#allocation39_spill] sm:$0xff] }
 0x519   : > { %14976 = vst [vmem:[#allocation159_spill] sm:$0xff] %v12204_v5  ;;  %v12206_v63 = vpop.permute.xlu1 %3309  ;;  %6027 = vmatmul.mubr.f32.gmra.mrb[212].mxu0 %v3154_v55  ;;  %v12208_v22 = vpop.permute.xlu0 %3345  ;;  %v3646_v5 = vmul.f32 %v8231_v52, %v3286_v9  ;;  %v8236_v52 = vld [vmem:[%s8936_s17 + $0x2e8] sm:$0xff] }
 0x51a   : > { %3565 = vperm.xlu1 %7709, %v8229_v54   ;;  %v5708_v19 = vpop.f32.mrb[110].mxu1  ;;  %3601 = vperm.xlu0 %7708, %v8230_v23   ;;  %v8232_v54 = vld [vmem:[%s8936_s17 + $0x290] sm:$0xff] }
 0x51b   : > { %v5710_v53 = vpop.f32.mrb[111].mxu1  ;;  %6031 = vmatprep.mubr.f32.mxu0 %v3645_v44  ;;  %v12214_v14 = vadd.f32 %v5708_v19, %v14978_v15  ;;  %v8234_v44 = vld [vmem:[%s8931_s21 + $0x58] sm:$0xff] }
 0x51c   : > { %v3647_v19 = vmul.f32 %v8234_v44, %v12132_v34  ;;  %v14981_v53 = vld [vmem:[#allocation36_spill] sm:$0xff]  ;;  %v3157_v34 = vmul.f32 %v8234_v44, %v14983_v50  ;;  %v8239_v44 = vld [vmem:[%s8936_s17 + $0x2f8] sm:$0xff] }
 0x51d   : > { %14979 = vst [vmem:[#allocation70_spill] sm:$0xff] %v12214_v14  ;;  %v12217_v55 = vpop.permute.xlu1 %3317  ;;  %6032 = vmatmul.mubr.f32.gmra.mrb[214].mxu0 %v3155_v59  ;;  %v12219_v28 = vpop.permute.xlu0 %3353  ;;  %v8235_v14 = vld [vmem:[%s8936_s17 + $0x2a0] sm:$0xff]  ;;  %v8240_v50 = vld [vmem:[%s8931_s21 + $0x68] sm:$0xff] }
 0x51e   : > { %3573 = vperm.xlu1 %7709, %v8232_v54   ;;  %v5713_v23 = vpop.f32.mrb[112].mxu1  ;;  %3609 = vperm.xlu0 %7708, %v8233_v36  }
 0x51f   : > { %6036 = vmatprep.mubr.f32.mxu0 %v3646_v5  ;;  %v5715_v9 = vpop.f32.mrb[113].mxu1  ;;  %v12227_v15 = vadd.f32 %v5713_v23, %v14981_v53  ;;  %v8237_v53 = vld [vmem:[%s8931_s21 + $0x60] sm:$0xff] }
 0x520   : > { %v14984_v9 = vld [vmem:[#allocation166_spill] sm:$0xff] }
 0x521   : > { %14982 = vst [vmem:[#allocation161_spill] sm:$0xff] %v12227_v15  ;;  %v12229_v59 = vpop.permute.xlu1 %3325  ;;  %6037 = vmatmul.mubr.f32.gmra.mrb[216].mxu0 %v3156_v60  ;;  %v12231_v54 = vpop.permute.xlu0 %3361  ;;  %v3648_v60 = vmul.f32 %v8237_v53, %v12182_v25  ;;  %v682_v25 = vld [vmem:[%s8915_s7 + $0x390] sm:$0xff] }
 0x522   : > { %3581 = vperm.xlu1 %7709, %v8235_v14   ;;  %v5718_v36 = vpop.f32.mrb[114].mxu1  ;;  %3617 = vperm.xlu0 %7708, %v8236_v52  }
 0x523   : > { %v5720_v5 = vpop.f32.mrb[115].mxu1  ;;  %6041 = vmatprep.mubr.f32.mxu0 %v3647_v19  ;;  %v12237_v23 = vadd.f32 %v5718_v36, %v14984_v9  ;;  %v14986_v19 = vld [vmem:[#allocation152_spill] sm:$0xff] }
 0x524   : > { %v3158_v36 = vmul.f32 %v8237_v53, %v14986_v19  ;;  %v3649_v5 = vmul.f32 %v8240_v50, %v12142_v32  ;;  %v8242_v32 = vld [vmem:[%s8936_s17 + $0x308] sm:$0xff] }
 0x525   : > { %14985 = vst [vmem:[#allocation148_spill] sm:$0xff] %v12237_v23  ;;  %v12241_v15 = vpop.permute.xlu1 %3333  ;;  %6042 = vmatmul.mubr.f32.gmra.mrb[218].mxu0 %v3157_v34  ;;  %v12243_v14 = vpop.permute.xlu0 %3369  ;;  %v683_v23 = vld [vmem:[%s8915_s7 + $0x398] sm:$0xff] }
 0x526   : > { %3589 = vperm.xlu1 %7709, %v8238_v2   ;;  %v5723_v52 = vpop.f32.mrb[116].mxu1  ;;  %3625 = vperm.xlu0 %7708, %v8239_v44   ;;  %v7552_v30 = vpack.c.bf16 %v683_v23, %v682_v25  ;;  %v8241_v44 = vld [vmem:[%s8936_s17 + $0x2c0] sm:$0xff]  ;;  %v8243_v23 = vld [vmem:[%s8931_s21 + $0x70] sm:$0xff] }
 0x527   : > { %6046 = vmatprep.mubr.f32.mxu0 %v3648_v60  ;;  %v5725_v9 = vpop.f32.mrb[117].mxu1  ;;  %v12253_v34 = vadd.f32 %v5723_v52, %v14987_v45  ;;  %v3159_v60 = vmul.f32 %v8240_v50, %v11571_v39  ;;  %v14989_v45 = vld [vmem:[#allocation168_spill] sm:$0xff]  ;;  %v8245_v50 = vld [vmem:[%s8936_s17 + $0x2d0] sm:$0xff] }
 0x528   : > { %7553 = vmatpush1.bf16.msra.mxu1 %v7552_v30 }
 0x529   : > { %14988 = vst [vmem:[#allocation163_spill] sm:$0xff] %v12253_v34  ;;  %v12255_v2 = vpop.permute.xlu1 %3341  ;;  %6047 = vmatmul.mubr.f32.gmra.mrb[220].mxu0 %v3158_v36  ;;  %v12257_v17 = vpop.permute.xlu0 %3377  ;;  %7554 = vmatprep.subr.bf16.mxu1 %v14731_v57  ;;  %v3650_v36 = vmul.f32 %v8243_v23, %v12194_v37  ;;  %v14996_v34 = vld [vmem:[#allocation79_spill] sm:$0xff] }
 0x52a   : > { %3597 = vperm.xlu1 %7709, %v8241_v44   ;;  %v5728_v53 = vpop.f32.mrb[118].mxu1  ;;  %3633 = vperm.xlu0 %7708, %v8242_v32   ;;  %v8244_v44 = vld [vmem:[%s8931_s21 + $0x78] sm:$0xff] }
 0x52b   : > { %v5730_v19 = vpop.f32.mrb[119].mxu1  ;;  %6051 = vmatprep.mubr.f32.mxu0 %v3649_v5  ;;  %v12263_v52 = vadd.f32 %v5728_v53, %v14989_v45  ;;  %v3651_v39 = vmul.f32 %v8244_v44, %v12151_v41  ;;  %v14233_v5 = vmov 6   ;;  %v14991_v53 = vld [vmem:[#allocation154_spill] sm:$0xff] }
 0x52c   : > { %v3160_v32 = vmul.f32 %v8243_v23, %v14991_v53  ;;  %v12278_v19 = vld [vmem:[%s8936_s17 + $0x8] sm:$0xff] }
 0x52d   : > { %14990 = vst [vmem:[#allocation35_spill] sm:$0xff] %v12263_v52  ;;  %v12268_v9 = vpop.permute.xlu1 %3349  ;;  %6052 = vmatmul.mubr.f32.gmra.mrb[222].mxu0 %v3159_v60  ;;  %v12270_v25 = vpop.permute.xlu0 %3385  ;;  %v14992_v60 = vld [vmem:[#allocation40_spill] sm:$0xff] }
 0x52e   : > { %3605 = vperm.xlu1 %7709, %v8245_v50   ;;  %v5733_v30 = vpop.f32.mrb[120].mxu1  ;;  %7711 = vset.pattern.permute.xlu0 %v14233_v5  ;;  %v8247_v5 = vld [vmem:[%s8936_s17 + $0x2e0] sm:$0xff] }
 0x52f   : > { %6056 = vmatprep.mubr.f32.mxu0 %v3650_v36  ;;  %v5735_v37 = vpop.f32.mrb[121].mxu1  ;;  %3739 = vperm.xlu0 %7711, %v12278_v19   ;;  %v12282_v45 = vadd.f32 %v5733_v30, %v14992_v60  ;;  %v3161_v36 = vmul.f32 %v8244_v44, %v11586_v16  ;;  %v14994_v30 = vld [vmem:[#allocation169_spill] sm:$0xff] }
 0x530   : > { %v12291_v37 = vld [vmem:[%s8936_s17 + $0x20] sm:$0xff]  ;;  %v8251_v44 = vld [vmem:[%s8936_s17 + $0x2f0] sm:$0xff] }
 0x531   : > { %14993 = vst [vmem:[#allocation165_spill] sm:$0xff] %v12282_v45  ;;  %v12284_v41 = vpop.permute.xlu1 %3357  ;;  %6057 = vmatmul.mubr.f32.gmra.mrb[224].mxu0 %v3160_v32  ;;  %v12286_v50 = vpop.permute.xlu0 %3393  ;;  %v8249_v32 = vld [vmem:[%s8931_s21 + $0x80] sm:$0xff] }
 0x532   : > { %3613 = vperm.xlu1 %7709, %v8247_v5   ;;  %v5738_v23 = vpop.f32.mrb[122].mxu1  ;;  %6061 = vmatprep.mubr.f32.mxu0 %v3651_v39  ;;  %v3652_v45 = vmul.f32 %v8249_v32, %v12206_v63  ;;  %v8250_v39 = vld [vmem:[%s8931_s21 + $0x88] sm:$0xff]  ;;  %v14997_v63 = vld [vmem:[#allocation45_spill] sm:$0xff] }
 0x533   : > { %v5740_v53 = vpop.f32.mrb[123].mxu1  ;;  %3751 = vperm.xlu0 %7711, %v12291_v37   ;;  %v12295_v60 = vadd.f32 %v5738_v23, %v14994_v30  ;;  %v3653_v16 = vmul.f32 %v8250_v39, %v12161_v18  ;;  %v3162_v23 = vmul.f32 %v8249_v32, %v14996_v34  ;;  %v3163_v34 = vmul.f32 %v8250_v39, %v11602_v29  ;;  %v8256_v29 = vld [vmem:[%s8931_s21 + $0x98] sm:$0xff] }
 0x534   : > { %v3655_v39 = vmul.f32 %v8256_v29, %v12170_v46  ;;  %v15003_v46 = vld [vmem:[#allocation38_spill] sm:$0xff] }
 0x535   : > { %14995 = vst [vmem:[#allocation150_spill] sm:$0xff] %v12295_v60  ;;  %v12299_v52 = vpop.permute.xlu1 %3365  ;;  %6062 = vmatmul.mubr.f32.gmra.mrb[226].mxu0 %v3161_v36  ;;  %v12301_v5 = vpop.permute.xlu0 %3401  ;;  %v12308_v60 = vld [vmem:[%s8936_s17 + $0x30] sm:$0xff] }
 0x536   : > { %3621 = vperm.xlu1 %7709, %v8251_v44   ;;  %v5743_v53 = vpop.f32.mrb[124].mxu1  ;;  %6066 = vmatprep.mubr.f32.mxu0 %v3652_v45  ;;  %v8253_v44 = vld [vmem:[%s8936_s17 + $0x300] sm:$0xff] }
 0x537   : > { %v5745_v30 = vpop.f32.mrb[125].mxu1  ;;  %3759 = vperm.xlu0 %7711, %v12308_v60   ;;  %v12312_v36 = vadd.f32 %v5743_v53, %v14997_v63  ;;  %v14999_v53 = vld [vmem:[#allocation170_spill] sm:$0xff] }
 0x538   : > { %v12321_v30 = vld [vmem:[%s8936_s17 + $0x40] sm:$0xff] }
 0x539   : > { %14998 = vst [vmem:[#allocation36_spill] sm:$0xff] %v12312_v36  ;;  %v12314_v3 = vpop.permute.xlu1 %3373  ;;  %6067 = vmatmul.mubr.f32.gmra.mrb[228].mxu0 %v3162_v23  ;;  %v12316_v18 = vpop.permute.xlu0 %3409  ;;  %v8255_v23 = vld [vmem:[%s8931_s21 + $0x90] sm:$0xff] }
 0x53a   : > { %3629 = vperm.xlu1 %7709, %v8253_v44   ;;  %v5748_v45 = vpop.f32.mrb[126].mxu1  ;;  %6071 = vmatprep.mubr.f32.mxu0 %v3653_v16  ;;  %v3654_v36 = vmul.f32 %v8255_v23, %v12217_v55 }
 0x53b   : > { %v5750_v32 = vpop.f32.mrb[127].mxu1  ;;  %3767 = vperm.xlu0 %7711, %v12321_v30   ;;  %v12325_v63 = vadd.f32 %v5748_v45, %v14999_v53  ;;  %v3164_v45 = vmul.f32 %v8255_v23, %v15002_v47  ;;  %v12338_v53 = vld [vmem:[%s8936_s17] sm:$0xff] }
 0x53c   : > { %v15001_v32 = vmov 6  }
 0x53d   : > { %15000 = vst [vmem:[#allocation39_spill] sm:$0xff] %v12325_v63  ;;  %v12329_v44 = vpop.permute.xlu1 %3381  ;;  %6072 = vmatmul.mubr.f32.gmra.mrb[230].mxu0 %v3163_v34  ;;  %v12331_v16 = vpop.permute.xlu0 %3417  ;;  %v12342_v63 = vld [vmem:[%s8936_s17 + $0x50] sm:$0xff]  ;;  %v684_v34 = vld [vmem:[%s8915_s7 + $0x3a0] sm:$0xff] }
 0x53e   : > { %7710 = vset.pattern.permute.xlu1 %v15001_v32  ;;  %v5753_v12 = vpop.f32.mrb[128].mxu1  ;;  %6076 = vmatprep.mubr.f32.mxu0 %v3654_v36  ;;  %v7555_v36 = vpack.c.bf16 %v685_v58, %v684_v34  ;;  %v15006_v58 = vld [vmem:[#allocation53_spill] sm:$0xff]  ;;  %v8261_v34 = vld [vmem:[%s8931_s21 + $0xa0] sm:$0xff] }
 0x53f   : > { %3735 = vperm.xlu1 %7710, %v12338_v53   ;;  %v5755_v55 = vpop.f32.mrb[129].mxu1  ;;  %3775 = vperm.xlu0 %7711, %v12342_v63   ;;  %v12348_v13 = vadd.f32 %v5753_v12, %v15003_v46  ;;  %v12360_v12 = vld [vmem:[%s8936_s17 + $0x60] sm:$0xff]  ;;  %v8262_v46 = vld [vmem:[%s8931_s21 + $0xa8] sm:$0xff] }
 0x540   : > { %7556 = vmatpush1.bf16.msra.mxu1 %v7555_v36  ;;  %v3165_v55 = vmul.f32 %v8256_v29, %v11617_v24 }
 0x541   : > { %15004 = vst [vmem:[#allocation166_spill] sm:$0xff] %v12348_v13  ;;  %v12350_v48 = vpop.permute.xlu1 %3389  ;;  %6077 = vmatmul.mubr.f32.gmra.mrb[232].mxu0 %v3164_v45  ;;  %v12352_v47 = vpop.permute.xlu0 %3425  ;;  %7557 = vmatprep.subr.bf16.mxu1 %v14731_v57  ;;  %v3166_v13 = vmul.f32 %v8261_v34, %v11577_v10 }
 0x542   : > { %15005 = vst [vmem:[#allocation152_spill] sm:$0xff] %v12352_v47  ;;  %v5758_v23 = vpop.f32.mrb[130].mxu1  ;;  %6081 = vmatprep.mubr.f32.mxu0 %v3655_v39  ;;  %v3656_v39 = vmul.f32 %v8261_v34, %v12229_v59  ;;  %v3167_v34 = vmul.f32 %v8262_v46, %v11632_v7 }
 0x543   : > { %3743 = vperm.xlu1 %7710, %v12356_v11   ;;  %v5760_v1 = vpop.f32.mrb[131].mxu1  ;;  %3783 = vperm.xlu0 %7711, %v12360_v12   ;;  %v12364_v45 = vadd.f32 %v5758_v23, %v15006_v58  ;;  %v12377_v23 = vld [vmem:[%s8936_s17 + $0x18] sm:$0xff]  ;;  %v12381_v58 = vld [vmem:[%s8936_s17 + $0x70] sm:$0xff] }
 0x544   : > { %v3657_v1 = vmul.f32 %v8262_v46, %v12184_v42  ;;  %v8268_v46 = vld [vmem:[%s8931_s21 + $0xb8] sm:$0xff] }
 0x545   : > { %15007 = vst [vmem:[#allocation167_spill] sm:$0xff] %v12364_v45  ;;  %v12369_v24 = vpop.permute.xlu1 %3397  ;;  %6082 = vmatmul.mubr.f32.gmra.mrb[234].mxu0 %v3165_v55  ;;  %v12371_v29 = vpop.permute.xlu0 %3433  ;;  %v15009_v55 = vld [vmem:[#allocation48_spill] sm:$0xff] }
 0x546   : > { %15008 = vst [vmem:[#allocation168_spill] sm:$0xff] %v12371_v29  ;;  %v5763_v36 = vpop.f32.mrb[132].mxu1  ;;  %6086 = vmatprep.mubr.f32.mxu0 %v3656_v39 }
 0x547   : > { %3747 = vperm.xlu1 %7710, %v12377_v23   ;;  %v5765_v59 = vpop.f32.mrb[133].mxu1  ;;  %3791 = vperm.xlu0 %7711, %v12381_v58   ;;  %v12385_v45 = vadd.f32 %v5763_v36, %v15009_v55  ;;  %v15012_v36 = vld [vmem:[#allocation57_spill] sm:$0xff] }
 0x548   : > { %v8267_v55 = vld [vmem:[%s8931_s21 + $0xb0] sm:$0xff] }
 0x549   : > { %15010 = vst [vmem:[#allocation154_spill] sm:$0xff] %v12385_v45  ;;  %v12387_v42 = vpop.permute.xlu1 %3405  ;;  %6087 = vmatmul.mubr.f32.gmra.mrb[236].mxu0 %v3166_v13  ;;  %v12389_v39 = vpop.permute.xlu0 %3441  ;;  %v3658_v45 = vmul.f32 %v8267_v55, %v12241_v15  ;;  %v3168_v35 = vmul.f32 %v8267_v55, %v15015_v27  ;;  %v15019_v55 = vld [vmem:[#allocation98_spill] sm:$0xff] }
 0x54a   : > { %15011 = vst [vmem:[#allocation40_spill] sm:$0xff] %v12389_v39  ;;  %v5768_v10 = vpop.f32.mrb[134].mxu1  ;;  %6091 = vmatprep.mubr.f32.mxu0 %v3657_v1  ;;  %v15016_v39 = vld [vmem:[#allocation52_spill] sm:$0xff] }
 0x54b   : > { %3755 = vperm.xlu1 %7710, %v12393_v31   ;;  %v5770_v59 = vpop.f32.mrb[135].mxu1  ;;  %3799 = vperm.xlu0 %7711, %v12397_v33   ;;  %v12401_v13 = vadd.f32 %v5768_v10, %v15012_v36  ;;  %v12416_v36 = vld [vmem:[%s8936_s17 + $0x38] sm:$0xff] }
 0x54c   : > { %v3659_v59 = vmul.f32 %v8268_v46, %v12196_v20 }
 0x54d   : > { %15013 = vst [vmem:[#allocation169_spill] sm:$0xff] %v12401_v13  ;;  %v12405_v1 = vpop.permute.xlu1 %3413  ;;  %6092 = vmatmul.mubr.f32.gmra.mrb[238].mxu0 %v3167_v34  ;;  %v12407_v7 = vpop.permute.xlu0 %3449  ;;  %v12420_v34 = vld [vmem:[%s8936_s17 + $0x90] sm:$0xff]  ;;  %v15020_v13 = vld [vmem:[#allocation171_spill] sm:$0xff] }
 0x54e   : > { %15014 = vst [vmem:[#allocation79_spill] sm:$0xff] %v12407_v7  ;;  %v5773_v49 = vpop.f32.mrb[136].mxu1  ;;  %6096 = vmatprep.mubr.f32.mxu0 %v3658_v45 }
 0x54f   : > { %v12413_v10 = vadd.f32 %v5773_v49, %v15016_v39  ;;  %3763 = vperm.xlu1 %7710, %v12416_v36   ;;  %v5775_v15 = vpop.f32.mrb[137].mxu1  ;;  %3807 = vperm.xlu0 %7711, %v12420_v34   ;;  %v686_v49 = vld [vmem:[%s8915_s7 + $0x3b0] sm:$0xff]  ;;  %v687_v39 = vld [vmem:[%s8915_s7 + $0x3b8] sm:$0xff] }
 0x550   : > { %v12434_v15 = vld [vmem:[%s8936_s17 + $0x48] sm:$0xff] }
 0x551   : > { %15017 = vst [vmem:[#allocation45_spill] sm:$0xff] %v12413_v10  ;;  %v12423_v20 = vpop.permute.xlu1 %3421  ;;  %6097 = vmatmul.mubr.f32.gmra.mrb[240].mxu0 %v3168_v35  ;;  %v12425_v45 = vpop.permute.xlu0 %3457  ;;  %v3169_v10 = vmul.f32 %v8268_v46, %v15019_v55  ;;  %v7558_v35 = vpack.c.bf16 %v687_v39, %v686_v49  ;;  %v15025_v49 = vld [vmem:[#allocation56_spill] sm:$0xff] }
 0x552   : > { %15018 = vst [vmem:[#allocation170_spill] sm:$0xff] %v12425_v45  ;;  %v5778_v27 = vpop.f32.mrb[138].mxu1  ;;  %6101 = vmatprep.mubr.f32.mxu0 %v3659_v59  ;;  %v8273_v59 = vld [vmem:[%s8931_s21 + $0xc0] sm:$0xff] }
 0x553   : > { %v12431_v7 = vadd.f32 %v5778_v27, %v15020_v13  ;;  %3771 = vperm.xlu1 %7710, %v12434_v15   ;;  %v5780_v29 = vpop.f32.mrb[139].mxu1  ;;  %3815 = vperm.xlu0 %7711, %v12438_v51   ;;  %v3660_v46 = vmul.f32 %v8273_v59, %v12255_v2  ;;  %v15024_v45 = vld [vmem:[#allocation95_spill] sm:$0xff]  ;;  %v12455_v2 = vld [vmem:[%s8936_s17 + $0x58] sm:$0xff] }
 0x554   : > { %7559 = vmatpush1.bf16.msra.mxu1 %v7558_v35  ;;  %v688_v29 = vld [vmem:[%s8915_s7 + $0x3c0] sm:$0xff]  ;;  %v3170_v47 = vmul.f32 %v8273_v59, %v15024_v45 }
 0x555   : > { %15021 = vst [vmem:[#allocation86_spill] sm:$0xff] %v12431_v7  ;;  %v12443_v55 = vpop.permute.xlu1 %3429  ;;  %6102 = vmatmul.mubr.f32.gmra.mrb[242].mxu0 %v3169_v10  ;;  %v12445_v13 = vpop.permute.xlu0 %3465  ;;  %7560 = vmatprep.subr.bf16.mxu1 %v14731_v57  ;;  %v689_v7 = vld [vmem:[%s8915_s7 + $0x3c8] sm:$0xff] }
 0x556   : > { %15022 = vst [vmem:[#allocation38_spill] sm:$0xff] %v12443_v55  ;;  %15023 = vst [vmem:[#allocation53_spill] sm:$0xff] %v12445_v13  ;;  %v5783_v27 = vpop.f32.mrb[140].mxu1  ;;  %6106 = vmatprep.mubr.f32.mxu0 %v3660_v46  ;;  %v12459_v13 = vld [vmem:[%s8936_s17 + $0xb0] sm:$0xff]  ;;  %v7561_v35 = vpack.c.bf16 %v689_v7, %v688_v29  ;;  %v8276_v46 = vld [vmem:[%s8931_s21 + $0xc8] sm:$0xff] }
 0x557   : > { %v12452_v39 = vadd.f32 %v5783_v27, %v15025_v49  ;;  %3779 = vperm.xlu1 %7710, %v12455_v2   ;;  %v5785_v10 = vpop.f32.mrb[141].mxu1  ;;  %3823 = vperm.xlu0 %7711, %v12459_v13   ;;  %v3661_v45 = vmul.f32 %v8276_v46, %v12208_v22  ;;  %v3171_v55 = vmul.f32 %v8276_v46, %v11664_v56  ;;  %v15029_v7 = vld [vmem:[#allocation172_spill] sm:$0xff] }
 0x558   : > { %7562 = vmatpush1.bf16.msra.mxu1 %v7561_v35  ;;  %v690_v10 = vld [vmem:[%s8915_s7 + $0x3d0] sm:$0xff]  ;;  %v12476_v22 = vld [vmem:[%s8936_s17 + $0x68] sm:$0xff] }
 0x559   : > { %15026 = vst [vmem:[#allocation48_spill] sm:$0xff] %v12452_v39  ;;  %v12464_v59 = vpop.permute.xlu1 %3437  ;;  %6107 = vmatmul.mubr.f32.gmra.mrb[244].mxu0 %v3170_v47  ;;  %v12466_v27 = vpop.permute.xlu0 %3473  ;;  %7563 = vmatprep.subr.bf16.mxu1 %v14731_v57  ;;  %v691_v39 = vld [vmem:[%s8915_s7 + $0x3d8] sm:$0xff] }
 0x55a   : > { %15027 = vst [vmem:[#allocation57_spill] sm:$0xff] %v12464_v59  ;;  %15028 = vst [vmem:[#allocation160_spill] sm:$0xff] %v12466_v27  ;;  %v5788_v49 = vpop.f32.mrb[142].mxu1  ;;  %6111 = vmatprep.mubr.f32.mxu0 %v3661_v45  ;;  %v12480_v27 = vld [vmem:[%s8936_s17 + $0xc0] sm:$0xff]  ;;  %v7564_v35 = vpack.c.bf16 %v691_v39, %v690_v10  ;;  %v8279_v45 = vld [vmem:[%s8931_s21 + $0xd0] sm:$0xff] }
 0x55b   : > { %v12473_v29 = vadd.f32 %v5788_v49, %v15029_v7  ;;  %3787 = vperm.xlu1 %7710, %v12476_v22   ;;  %v5790_v47 = vpop.f32.mrb[143].mxu1  ;;  %15031 = vst [vmem:[#allocation98_spill] sm:$0xff] %v12480_v27  ;;  %3831 = vperm.xlu0 %7711, %v12480_v27   ;;  %v3662_v56 = vmul.f32 %v8279_v45, %v12268_v9  ;;  %v15034_v59 = vld [vmem:[#allocation34_spill] sm:$0xff]  ;;  %v15035_v39 = vld [vmem:[#allocation61_spill] sm:$0xff] }
 0x55c   : > { %7565 = vmatpush1.bf16.msra.mxu1 %v7564_v35  ;;  %v692_v47 = vld [vmem:[%s8915_s7 + $0x3e0] sm:$0xff]  ;;  %v3172_v27 = vmul.f32 %v8279_v45, %v15034_v59  ;;  %v12497_v9 = vld [vmem:[%s8936_s17 + $0x78] sm:$0xff] }
 0x55d   : > { %15030 = vst [vmem:[#allocation52_spill] sm:$0xff] %v12473_v29  ;;  %v12485_v46 = vpop.permute.xlu1 %3445  ;;  %6112 = vmatmul.mubr.f32.gmra.mrb[246].mxu0 %v3171_v55  ;;  %v12487_v49 = vpop.permute.xlu0 %3481  ;;  %7566 = vmatprep.subr.bf16.mxu1 %v14731_v57  ;;  %v693_v29 = vld [vmem:[%s8915_s7 + $0x3e8] sm:$0xff] }
 0x55e   : > { %15032 = vst [vmem:[#allocation171_spill] sm:$0xff] %v12485_v46  ;;  %15033 = vst [vmem:[#allocation95_spill] sm:$0xff] %v12487_v49  ;;  %v5793_v7 = vpop.f32.mrb[144].mxu1  ;;  %6116 = vmatprep.mubr.f32.mxu0 %v3662_v56  ;;  %v12501_v49 = vld [vmem:[%s8936_s17 + $0xd0] sm:$0xff]  ;;  %v7567_v35 = vpack.c.bf16 %v693_v29, %v692_v47  ;;  %v8282_v56 = vld [vmem:[%s8931_s21 + $0xd8] sm:$0xff] }
 0x55f   : > { %v12494_v10 = vadd.f32 %v5793_v7, %v15035_v39  ;;  %3795 = vperm.xlu1 %7710, %v12497_v9   ;;  %v5795_v55 = vpop.f32.mrb[145].mxu1  ;;  %15037 = vst [vmem:[#allocation172_spill] sm:$0xff] %v12501_v49  ;;  %3839 = vperm.xlu0 %7711, %v12501_v49   ;;  %v3663_v46 = vmul.f32 %v8282_v56, %v12219_v28  ;;  %v694_v39 = vld [vmem:[%s8915_s7 + $0x3f0] sm:$0xff]  ;;  %v12518_v47 = vld [vmem:[%s8936_s17 + $0x88] sm:$0xff] }
 0x560   : > { %7568 = vmatpush1.bf16.msra.mxu1 %v7567_v35  ;;  %v695_v55 = vld [vmem:[%s8915_s7 + $0x3f8] sm:$0xff]  ;;  %v15038_v49 = vld [vmem:[#allocation173_spill] sm:$0xff]  ;;  %v8284_v35 = vld [vmem:[%s8931_s21 + $0xe0] sm:$0xff]  ;;  %s7242_s7 = sshll.u32 %s8938_s30, 4  ;;  %s14093_s7 = int_to_ptr.vmem [resolvable:$true] %s7242_s7 }
 0x561   : > { %15036 = vst [vmem:[#allocation56_spill] sm:$0xff] %v12494_v10  ;;  %v12506_v59 = vpop.permute.xlu1 %3453  ;;  %6117 = vmatmul.mubr.f32.gmra.mrb[248].mxu0 %v3172_v27  ;;  %v12508_v45 = vpop.permute.xlu0 %3489  ;;  %7569 = vmatprep.subr.bf16.mxu1 %v14731_v57  ;;  %v3173_v10 = vmul.f32 %v8282_v56, %v11679_v6  ;;  %v14237_v27 = vmov 7   ;;  %v3664_v57 = vmul.f32 %v8284_v35, %v12284_v41  ;;  %s8582_s9 = scalar_lea.vmem %s14093_s7, 12544  ;;  %p8589_p11 = scmp.lt.s32.totalorder %s14093_s7, %s8587_s28 }
 0x562   : > { %v5798_v7 = vpop.f32.mrb[146].mxu1  ;;  %6121 = vmatprep.mubr.f32.mxu0 %v3663_v46  ;;  %v7570_v46 = vpack.c.bf16 %v695_v55, %v694_v39  ;;  %v12534_v39 = vld [vmem:[%s8936_s17 + $0x98] sm:$0xff]  ;;  %p8583_p4 = scmp.ne.s32.totalorder %s14093_s7, %s8582_s9  ;;  %p8590_p7 = scmp.lt.s32.totalorder %s8588_s14, %s8582_s9 }
 0x563   : > { %v12515_v29 = vadd.f32 %v5798_v7, %v15038_v49  ;;  %3803 = vperm.xlu1 %7710, %v12518_v47   ;;  %v5800_v28 = vpop.f32.mrb[147].mxu1  ;;  %7712 = vset.pattern.permute.xlu0 %v14237_v27  ;;  %v15040_v7 = vld [vmem:[#allocation164_spill] sm:$0xff] }
 0x564   : > { %4225 = vperm.xlu0 %7712, %v12338_v53   ;;  %7571 = vmatpush1.bf16.msra.mxu1 %v7570_v46  ;;  %v3174_v28 = vmul.f32 %v8284_v35, %v15040_v7  ;;  %v8286_v53 = vld [vmem:[%s8931_s21 + $0xe8] sm:$0xff]  ;;  %p8584_p1 = pnand %p8583_p4, %p15386_p12  ;;  %p8591_p13 = por %p8590_p7, %p8589_p11 }
 0x565   : > { %15039 = vst [vmem:[#allocation34_spill] sm:$0xff] %v12515_v29  ;;  %v12525_v6 = vpop.permute.xlu1 %3461  ;;  %6122 = vmatmul.mubr.f32.gmra.mrb[250].mxu0 %v3173_v10  ;;  %v12527_v49 = vpop.permute.xlu0 %3497  ;;  %v15041_v29 = vld [vmem:[#allocation46_spill] sm:$0xff]  ;;  %v3665_v10 = vmul.f32 %v8286_v53, %v12231_v54  ;;  %v12549_v7 = vld [vmem:[%s8936_s17 + $0xa8] sm:$0xff] }
 0x566   : > { %v5803_v56 = vpop.f32.mrb[148].mxu1  ;;  %6126 = vmatprep.mubr.f32.mxu0 %v3664_v57  ;;  %v15043_v57 = vld [vmem:[#allocation69_spill] sm:$0xff]  ;;  %p8585_p10 = pneg %p8584_p1 }
 0x567   : > { %v12531_v27 = vadd.f32 %v5803_v56, %v15041_v29  ;;  %3811 = vperm.xlu1 %7710, %v12534_v39   ;;  %v5805_v41 = vpop.f32.mrb[149].mxu1  ;;  %v3175_v29 = vmul.f32 %v8286_v53, %v11695_v0  ;;  %v15045_v53 = vld [vmem:[#allocation49_spill] sm:$0xff] }
 0x568   : > { %4237 = vperm.xlu0 %7712, %v12377_v23   ;;  %v8288_v23 = vld [vmem:[%s8931_s21 + $0xf0] sm:$0xff]  ;;  %p8592_p3 = pnand %p8591_p13, %p8585_p10 }
 0x569   : > { %15042 = vst [vmem:[#allocation61_spill] sm:$0xff] %v12531_v27  ;;  %v12540_v55 = vpop.permute.xlu1 %3469  ;;  %6127 = vmatmul.mubr.f32.gmra.mrb[252].mxu0 %v3174_v28  ;;  %v12542_v46 = vpop.permute.xlu0 %3505  ;;  %v3666_v41 = vmul.f32 %v8288_v23, %v12299_v52  ;;  %v12564_v27 = vld [vmem:[%s8936_s17 + $0xb8] sm:$0xff] }
 0x56a   : > { %v5808_v35 = vpop.f32.mrb[150].mxu1  ;;  %6131 = vmatprep.mubr.f32.mxu0 %v3665_v10 }
 0x56b   : > { %v12546_v56 = vadd.f32 %v5808_v35, %v15043_v57  ;;  %3819 = vperm.xlu1 %7710, %v12549_v7   ;;  %v5810_v54 = vpop.f32.mrb[151].mxu1  ;;  %v3176_v35 = vmul.f32 %v8288_v23, %v15045_v53  ;;  %v15046_v57 = vld [vmem:[#allocation64_spill] sm:$0xff]  ;;  %v15048_v53 = vld [vmem:[#allocation174_spill] sm:$0xff] }
 0x56c   : > { %4245 = vperm.xlu0 %7712, %v12393_v31   ;;  %v8290_v31 = vld [vmem:[%s8931_s21 + $0xf8] sm:$0xff] }
 0x56d   : > { %15044 = vst [vmem:[#allocation173_spill] sm:$0xff] %v12546_v56  ;;  %v12555_v28 = vpop.permute.xlu1 %3477  ;;  %6132 = vmatmul.mubr.f32.gmra.mrb[254].mxu0 %v3175_v29  ;;  %v12557_v10 = vpop.permute.xlu0 %3513  ;;  %v3667_v54 = vmul.f32 %v8290_v31, %v12243_v14 }
 0x56e   : > { %v5813_v0 = vpop.f32.mrb[152].mxu1  ;;  %6136 = vmatprep.mubr.f32.mxu0 %v3666_v41 }
 0x56f   : > { %v12561_v56 = vadd.f32 %v5813_v0, %v15046_v57  ;;  %3827 = vperm.xlu1 %7710, %v12564_v27   ;;  %v5815_v52 = vpop.f32.mrb[153].mxu1  ;;  %v3177_v0 = vmul.f32 %v8290_v31, %v11707_v40 }
 0x570   : > { %4253 = vperm.xlu0 %7712, %v12416_v36   ;;  %v8292_v36 = vld [vmem:[%s8931_s21 + $0x100] sm:$0xff] }
 0x571   : > { %15047 = vst [vmem:[#allocation164_spill] sm:$0xff] %v12561_v56  ;;  %v12570_v29 = vpop.permute.xlu1 %3485  ;;  %6137 = vmatmul.mubr.f32.gmra.mrb[0].mxu0 %v3176_v35  ;;  %v12572_v41 = vpop.permute.xlu0 %3521  ;;  %v12579_v56 = vld [vmem:[%s8936_s17 + $0xc8] sm:$0xff]  ;;  %v3668_v52 = vmul.f32 %v8292_v36, %v12314_v3  ;;  %v3178_v31 = vmul.f32 %v8292_v36, %v11670_v43 }
 0x572   : > { %v5818_v23 = vpop.f32.mrb[154].mxu1  ;;  %6141 = vmatprep.mubr.f32.mxu0 %v3667_v54 }
 0x573   : > { %v12576_v57 = vadd.f32 %v5818_v23, %v15048_v53  ;;  %3835 = vperm.xlu1 %7710, %v12579_v56   ;;  %v5820_v14 = vpop.f32.mrb[155].mxu1  ;;  %v15051_v23 = vld [vmem:[#allocation68_spill] sm:$0xff] }
 0x574   : > { %4261 = vperm.xlu0 %7712, %v12434_v15   ;;  %v8294_v14 = vld [vmem:[%s8931_s21 + $0x108] sm:$0xff] }
 0x575   : > { %15049 = vst [vmem:[#allocation46_spill] sm:$0xff] %v12576_v57  ;;  %v12585_v35 = vpop.permute.xlu1 %3493  ;;  %6142 = vmatmul.mubr.f32.gmra.mrb[2].mxu0 %v3177_v0  ;;  %v12587_v54 = vpop.permute.xlu0 %3529  ;;  %v12594_v57 = vld [vmem:[%s8936_s17 + $0xd8] sm:$0xff]  ;;  %v3669_v15 = vmul.f32 %v8294_v14, %v12257_v17  ;;  %v3179_v36 = vmul.f32 %v8294_v14, %v11719_v26 }
 0x576   : > { %15050 = vst [vmem:[#allocation69_spill] sm:$0xff] %v12587_v54  ;;  %v5823_v40 = vpop.f32.mrb[156].mxu1  ;;  %6146 = vmatprep.mubr.f32.mxu0 %v3668_v52  ;;  %v8295_v54 = vld [vmem:[%s8931_s21 + $0x110] sm:$0xff] }
 0x577   : > { %v12591_v53 = vadd.f32 %v5823_v40, %v15051_v23  ;;  %3843 = vperm.xlu1 %7710, %v12594_v57   ;;  %v5825_v3 = vpop.f32.mrb[157].mxu1  ;;  %v15053_v40 = vld [vmem:[#allocation175_spill] sm:$0xff]  ;;  %v3670_v17 = vmul.f32 %v8295_v54, %v12329_v44  ;;  %v3180_v14 = vmul.f32 %v8295_v54, %v11685_v4  ;;  %v15059_v54 = vld [vmem:[#allocation176_spill] sm:$0xff] }
 0x578   : > { %4269 = vperm.xlu0 %7712, %v12455_v2  }
 0x579   : > { %15052 = vst [vmem:[#allocation49_spill] sm:$0xff] %v12591_v53  ;;  %v12600_v0 = vpop.permute.xlu1 %3501  ;;  %6147 = vmatmul.mubr.f32.gmra.mrb[4].mxu0 %v3178_v31  ;;  %v12602_v52 = vpop.permute.xlu0 %3537  ;;  %v15055_v53 = vmov 7  }
 0x57a   : > { %v5828_v43 = vpop.f32.mrb[158].mxu1  ;;  %6151 = vmatprep.mubr.f32.mxu0 %v3669_v15  ;;  %v15056_v15 = vld [vmem:[#allocation73_spill] sm:$0xff] }
 0x57b   : > { %v12606_v23 = vadd.f32 %v5828_v43, %v15053_v40  ;;  %7713 = vset.pattern.permute.xlu1 %v15055_v53  ;;  %v5830_v3 = vpop.f32.mrb[159].mxu1 }
 0x57c   : > { %4229 = vperm.xlu1 %7713, %v12278_v19   ;;  %4277 = vperm.xlu0 %7712, %v12476_v22   ;;  %v8296_v3 = vld [vmem:[%s8931_s21 + $0x118] sm:$0xff] }
 0x57d   : > { %15054 = vst [vmem:[#allocation64_spill] sm:$0xff] %v12606_v23  ;;  %v12613_v2 = vpop.permute.xlu1 %3509  ;;  %6152 = vmatmul.mubr.f32.gmra.mrb[6].mxu0 %v3179_v36  ;;  %v12615_v31 = vpop.permute.xlu0 %3545  ;;  %v3671_v44 = vmul.f32 %v8296_v3, %v12270_v25 }
 0x57e   : > { %v5833_v26 = vpop.f32.mrb[160].mxu1  ;;  %6156 = vmatprep.mubr.f32.mxu0 %v3670_v17  ;;  %v15058_v17 = vld [vmem:[#allocation65_spill] sm:$0xff] }
 0x57f   : > { %v12619_v43 = vadd.f32 %v5833_v26, %v15056_v15  ;;  %v5835_v40 = vpop.f32.mrb[161].mxu1  ;;  %v3181_v4 = vmul.f32 %v8296_v3, %v15058_v17 }
 0x580   : > { %4233 = vperm.xlu1 %7713, %v12356_v11   ;;  %4285 = vperm.xlu0 %7712, %v12497_v9   ;;  %v8297_v40 = vld [vmem:[%s8931_s21 + $0x120] sm:$0xff] }
 0x581   : > { %15057 = vst [vmem:[#allocation174_spill] sm:$0xff] %v12619_v43  ;;  %v12625_v19 = vpop.permute.xlu1 %3517  ;;  %6157 = vmatmul.mubr.f32.gmra.mrb[8].mxu0 %v3180_v14  ;;  %v12627_v22 = vpop.permute.xlu0 %3553  ;;  %v3672_v25 = vmul.f32 %v8297_v40, %v12350_v48 }
 0x582   : > { %v5838_v36 = vpop.f32.mrb[162].mxu1  ;;  %6161 = vmatprep.mubr.f32.mxu0 %v3671_v44  ;;  %v15061_v44 = vld [vmem:[#allocation42_spill] sm:$0xff] }
 0x583   : > { %v12631_v26 = vadd.f32 %v5838_v36, %v15059_v54  ;;  %v5840_v15 = vpop.f32.mrb[163].mxu1  ;;  %v3182_v3 = vmul.f32 %v8297_v40, %v15061_v44  ;;  %v15062_v36 = vld [vmem:[#allocation55_spill] sm:$0xff] }
 0x584   : > { %4241 = vperm.xlu1 %7713, %v12291_v37   ;;  %4293 = vperm.xlu0 %7712, %v12518_v47   ;;  %v8298_v15 = vld [vmem:[%s8931_s21 + $0x128] sm:$0xff] }
 0x585   : > { %15060 = vst [vmem:[#allocation68_spill] sm:$0xff] %v12631_v26  ;;  %v12637_v11 = vpop.permute.xlu1 %3525  ;;  %6162 = vmatmul.mubr.f32.gmra.mrb[10].mxu0 %v3181_v4  ;;  %v12639_v9 = vpop.permute.xlu0 %3561  ;;  %v3673_v48 = vmul.f32 %v8298_v15, %v12286_v50  ;;  %v3183_v40 = vmul.f32 %v8298_v15, %v11745_v8  ;;  %v15068_v15 = vld [vmem:[#allocation76_spill] sm:$0xff] }
 0x586   : > { %v5843_v14 = vpop.f32.mrb[164].mxu1  ;;  %6166 = vmatprep.mubr.f32.mxu0 %v3672_v25  ;;  %v15064_v25 = vld [vmem:[#allocation81_spill] sm:$0xff]  ;;  %v12810_v26 = vld [vmem:[%s8936_s17 + $0x128] sm:$0xff] }
 0x587   : > { %v12643_v17 = vadd.f32 %v5843_v14, %v15062_v36  ;;  %v5845_v54 = vpop.f32.mrb[165].mxu1  ;;  %v8299_v36 = vld [vmem:[%s8931_s21 + $0x130] sm:$0xff] }
 0x588   : > { %4249 = vperm.xlu1 %7713, %v12308_v60   ;;  %4301 = vperm.xlu0 %7712, %v12534_v39   ;;  %v3674_v50 = vmul.f32 %v8299_v36, %v12369_v24  ;;  %v15067_v54 = vld [vmem:[#allocation47_spill] sm:$0xff] }
 0x589   : > { %15063 = vst [vmem:[#allocation175_spill] sm:$0xff] %v12643_v17  ;;  %v12649_v37 = vpop.permute.xlu1 %3533  ;;  %6167 = vmatmul.mubr.f32.gmra.mrb[12].mxu0 %v3182_v3  ;;  %v12651_v47 = vpop.permute.xlu0 %3569  ;;  %v3184_v8 = vmul.f32 %v8299_v36, %v15067_v54  ;;  %v15071_v36 = vld [vmem:[#allocation177_spill] sm:$0xff]  ;;  %v8301_v54 = vld [vmem:[%s8931_s21 + $0x140] sm:$0xff] }
 0x58a   : > { %v5848_v4 = vpop.f32.mrb[166].mxu1  ;;  %6171 = vmatprep.mubr.f32.mxu0 %v3673_v48 }
 0x58b   : > { %v12655_v14 = vadd.f32 %v5848_v4, %v15064_v25  ;;  %v5850_v44 = vpop.f32.mrb[167].mxu1  ;;  %v8300_v25 = vld [vmem:[%s8931_s21 + $0x138] sm:$0xff] }
 0x58c   : > { %4257 = vperm.xlu1 %7713, %v12321_v30   ;;  %4309 = vperm.xlu0 %7712, %v12549_v7   ;;  %v3675_v24 = vmul.f32 %v8300_v25, %v12301_v5  ;;  %v3185_v44 = vmul.f32 %v8300_v25, %v11758_v61  ;;  %v3676_v5 = vmul.f32 %v8301_v54, %v12387_v42  ;;  %v8302_v42 = vld [vmem:[%s8931_s21 + $0x148] sm:$0xff] }
 0x58d   : > { %15065 = vst [vmem:[#allocation73_spill] sm:$0xff] %v12655_v14  ;;  %v12661_v60 = vpop.permute.xlu1 %3541  ;;  %6172 = vmatmul.mubr.f32.gmra.mrb[14].mxu0 %v3183_v40  ;;  %v12663_v39 = vpop.permute.xlu0 %3577 }
 0x58e   : > { %15066 = vst [vmem:[#allocation65_spill] sm:$0xff] %v12663_v39  ;;  %v5853_v3 = vpop.f32.mrb[168].mxu1  ;;  %6176 = vmatprep.mubr.f32.mxu0 %v3674_v50  ;;  %v15154_v39 = vld [vmem:[#allocation95_spill] sm:$0xff] }
 0x58f   : > { %v12667_v48 = vadd.f32 %v5853_v3, %v15068_v15  ;;  %v5855_v4 = vpop.f32.mrb[169].mxu1  ;;  %v15074_v15 = vld [vmem:[#allocation60_spill] sm:$0xff] }
 0x590   : > { %4265 = vperm.xlu1 %7713, %v12342_v63   ;;  %4317 = vperm.xlu0 %7712, %v12564_v27   ;;  %v3186_v61 = vmul.f32 %v8301_v54, %v15074_v15  ;;  %v15075_v4 = vld [vmem:[#allocation80_spill] sm:$0xff] }
 0x591   : > { %15069 = vst [vmem:[#allocation176_spill] sm:$0xff] %v12667_v48  ;;  %v12673_v30 = vpop.permute.xlu1 %3549  ;;  %6177 = vmatmul.mubr.f32.gmra.mrb[16].mxu0 %v3184_v8  ;;  %v12675_v7 = vpop.permute.xlu0 %3585 }
 0x592   : > { %15070 = vst [vmem:[#allocation42_spill] sm:$0xff] %v12675_v7  ;;  %v5858_v40 = vpop.f32.mrb[170].mxu1  ;;  %6181 = vmatprep.mubr.f32.mxu0 %v3675_v24 }
 0x593   : > { %v12679_v50 = vadd.f32 %v5858_v40, %v15071_v36  ;;  %v5860_v3 = vpop.f32.mrb[171].mxu1  ;;  %v3187_v36 = vmul.f32 %v8302_v42, %v11770_v62 }
 0x594   : > { %4273 = vperm.xlu1 %7713, %v12360_v12   ;;  %4325 = vperm.xlu0 %7712, %v12579_v56   ;;  %v3677_v12 = vmul.f32 %v8302_v42, %v12316_v18  ;;  %v15078_v3 = vld [vmem:[#allocation58_spill] sm:$0xff] }
 0x595   : > { %15072 = vst [vmem:[#allocation55_spill] sm:$0xff] %v12679_v50  ;;  %v12685_v63 = vpop.permute.xlu1 %3557  ;;  %6182 = vmatmul.mubr.f32.gmra.mrb[18].mxu0 %v3185_v44  ;;  %v12687_v27 = vpop.permute.xlu0 %3593  ;;  %v12775_v50 = vld [vmem:[%s8936_s17 + $0x120] sm:$0xff] }
 0x596   : > { %15073 = vst [vmem:[#allocation81_spill] sm:$0xff] %v12687_v27  ;;  %v5863_v8 = vpop.f32.mrb[172].mxu1  ;;  %6186 = vmatprep.mubr.f32.mxu0 %v3676_v5 }
 0x597   : > { %v12691_v25 = vadd.f32 %v5863_v8, %v15075_v4  ;;  %v5865_v24 = vpop.f32.mrb[173].mxu1  ;;  %v8303_v8 = vld [vmem:[%s8931_s21 + $0x150] sm:$0xff] }
 0x598   : > { %4281 = vperm.xlu1 %7713, %v12381_v58   ;;  %4333 = vperm.xlu0 %7712, %v12594_v57   ;;  %v3678_v18 = vmul.f32 %v8303_v8, %v12405_v1  ;;  %v12709_v58 = vld [vmem:[%s8936_s17 + $0xf0] sm:$0xff] }
 0x599   : > { %15076 = vst [vmem:[#allocation47_spill] sm:$0xff] %v12691_v25  ;;  %v12697_v56 = vpop.permute.xlu1 %3565  ;;  %6187 = vmatmul.mubr.f32.gmra.mrb[20].mxu0 %v3186_v61  ;;  %v12699_v40 = vpop.permute.xlu0 %3601  ;;  %v15082_v61 = vld [vmem:[#allocation104_spill] sm:$0xff]  ;;  %v15083_v24 = vld [vmem:[#allocation85_spill] sm:$0xff] }
 0x59a   : > { %15077 = vst [vmem:[#allocation76_spill] sm:$0xff] %v12699_v40  ;;  %v5868_v44 = vpop.f32.mrb[174].mxu1  ;;  %6191 = vmatprep.mubr.f32.mxu0 %v3677_v12  ;;  %v3188_v4 = vmul.f32 %v8303_v8, %v15082_v61 }
 0x59b   : > { %v12703_v54 = vadd.f32 %v5868_v44, %v15078_v3  ;;  %v5870_v5 = vpop.f32.mrb[175].mxu1  ;;  %v12729_v3 = vld [vmem:[%s8936_s17 + $0xe0] sm:$0xff] }
 0x59c   : > { %4289 = vperm.xlu1 %7713, %v12397_v33   ;;  %4345 = vperm.xlu0 %7712, %v12709_v58   ;;  %v8305_v33 = vld [vmem:[%s8931_s21 + $0x158] sm:$0xff] }
 0x59d   : > { %15079 = vst [vmem:[#allocation177_spill] sm:$0xff] %v12703_v54  ;;  %v12712_v57 = vpop.permute.xlu1 %3573  ;;  %6192 = vmatmul.mubr.f32.gmra.mrb[22].mxu0 %v3187_v36  ;;  %v12714_v15 = vpop.permute.xlu0 %3609  ;;  %v3679_v12 = vmul.f32 %v8305_v33, %v12331_v16  ;;  %v3189_v8 = vmul.f32 %v8305_v33, %v11782_v21 }
 0x59e   : > { %15080 = vst [vmem:[#allocation60_spill] sm:$0xff] %v12712_v57  ;;  %15081 = vst [vmem:[#allocation80_spill] sm:$0xff] %v12714_v15  ;;  %v5873_v62 = vpop.f32.mrb[176].mxu1  ;;  %6196 = vmatprep.mubr.f32.mxu0 %v3678_v18  ;;  %v15087_v18 = vld [vmem:[#allocation26_spill] sm:$0xff]  ;;  %v12843_v15 = vld [vmem:[%s8936_s17 + $0x150] sm:$0xff] }
 0x59f   : > { %v12718_v42 = vadd.f32 %v5873_v62, %v15083_v24  ;;  %v5875_v1 = vpop.f32.mrb[177].mxu1  ;;  %v8307_v62 = vld [vmem:[%s8931_s21 + $0x160] sm:$0xff] }
 0x5a0   : > { %4297 = vperm.xlu1 %7713, %v12420_v34   ;;  %7715 = vset.pattern.permute.xlu0 %v15001_v32  ;;  %v3680_v61 = vmul.f32 %v8307_v62, %v12423_v20  ;;  %v12744_v1 = vld [vmem:[%s8936_s17 + $0xf8] sm:$0xff]  ;;  %v3190_v33 = vmul.f32 %v8307_v62, %v11748_v38  ;;  %v12760_v38 = vld [vmem:[%s8936_s17 + $0x108] sm:$0xff] }
 0x5a1   : > { %15084 = vst [vmem:[#allocation58_spill] sm:$0xff] %v12718_v42  ;;  %v12724_v44 = vpop.permute.xlu1 %3581  ;;  %6197 = vmatmul.mubr.f32.gmra.mrb[24].mxu0 %v3188_v4  ;;  %v12726_v36 = vpop.permute.xlu0 %3617  ;;  %3847 = vperm.xlu0 %7715, %v12729_v3   ;;  %v15096_v62 = vld [vmem:[#allocation54_spill] sm:$0xff] }
 0x5a2   : > { %15085 = vst [vmem:[#allocation104_spill] sm:$0xff] %v12724_v44  ;;  %15086 = vst [vmem:[#allocation85_spill] sm:$0xff] %v12726_v36  ;;  %v5878_v5 = vpop.f32.mrb[178].mxu1  ;;  %6201 = vmatprep.mubr.f32.mxu0 %v3679_v12  ;;  %v15091_v12 = vld [vmem:[#allocation63_spill] sm:$0xff]  ;;  %v15100_v42 = vld [vmem:[#allocation98_spill] sm:$0xff] }
 0x5a3   : > { %v12734_v16 = vadd.f32 %v5878_v5, %v15087_v18  ;;  %v5880_v34 = vpop.f32.mrb[179].mxu1  ;;  %v15093_v18 = vld [vmem:[#allocation152_spill] sm:$0xff] }
 0x5a4   : > { %4305 = vperm.xlu1 %7713, %v12438_v51   ;;  %v8309_v51 = vld [vmem:[%s8931_s21 + $0x168] sm:$0xff] }
 0x5a5   : > { %15088 = vst [vmem:[#allocation26_spill] sm:$0xff] %v12734_v16  ;;  %v12739_v4 = vpop.permute.xlu1 %3589  ;;  %6202 = vmatmul.mubr.f32.gmra.mrb[26].mxu0 %v3189_v8  ;;  %v12741_v24 = vpop.permute.xlu0 %3625  ;;  %3859 = vperm.xlu0 %7715, %v12744_v1   ;;  %v3681_v34 = vmul.f32 %v8309_v51, %v15093_v18  ;;  %v8311_v18 = vld [vmem:[%s8931_s21 + $0x170] sm:$0xff] }
 0x5a6   : > { %15089 = vst [vmem:[#allocation192_spill] sm:$0xff] %v12739_v4  ;;  %15090 = vst [vmem:[#allocation193_spill] sm:$0xff] %v12741_v24  ;;  %v5883_v21 = vpop.f32.mrb[180].mxu1  ;;  %6206 = vmatprep.mubr.f32.mxu0 %v3680_v61 }
 0x5a7   : > { %v12749_v5 = vadd.f32 %v5883_v21, %v15091_v12  ;;  %v5885_v20 = vpop.f32.mrb[181].mxu1  ;;  %v3191_v21 = vmul.f32 %v8309_v51, %v15096_v62  ;;  %v15097_v12 = vld [vmem:[#allocation27_spill] sm:$0xff]  ;;  %v15102_v51 = vld [vmem:[#allocation50_spill] sm:$0xff]  ;;  %v15103_v62 = vld [vmem:[#allocation89_spill] sm:$0xff] }
 0x5a8   : > { %4313 = vperm.xlu1 %7713, %v12459_v13  }
 0x5a9   : > { %15092 = vst [vmem:[#allocation63_spill] sm:$0xff] %v12749_v5  ;;  %v12754_v8 = vpop.permute.xlu1 %3597  ;;  %6207 = vmatmul.mubr.f32.gmra.mrb[28].mxu0 %v3190_v33  ;;  %7718 = vset.pattern.permute.xlu0 %v15055_v53  ;;  %v12757_v16 = vpop.permute.xlu0 %3633  ;;  %v15099_v33 = vld [vmem:[#allocation38_spill] sm:$0xff] }
 0x5aa   : > { %15094 = vst [vmem:[#allocation152_spill] sm:$0xff] %v12754_v8  ;;  %15095 = vst [vmem:[#allocation194_spill] sm:$0xff] %v12757_v16  ;;  %v5888_v61 = vpop.f32.mrb[182].mxu1  ;;  %6211 = vmatprep.mubr.f32.mxu0 %v3681_v34  ;;  %4357 = vperm.xlu0 %7718, %v12760_v38   ;;  %v3682_v5 = vmul.f32 %v8311_v18, %v15099_v33  ;;  %v15105_v33 = vld [vmem:[#allocation168_spill] sm:$0xff]  ;;  %v8319_v16 = vld [vmem:[%s8931_s21 + $0x190] sm:$0xff] }
 0x5ab   : > { %v12765_v20 = vadd.f32 %v5888_v61, %v15097_v12  ;;  %v5890_v13 = vpop.f32.mrb[183].mxu1  ;;  %v3192_v61 = vmul.f32 %v8311_v18, %v15102_v51  ;;  %v15108_v18 = vld [vmem:[#allocation112_spill] sm:$0xff] }
 0x5ac   : > { %4321 = vperm.xlu1 %7713, %v15100_v42   ;;  %v8313_v42 = vld [vmem:[%s8931_s21 + $0x178] sm:$0xff] }
 0x5ad   : > { %15098 = vst [vmem:[#allocation54_spill] sm:$0xff] %v12765_v20  ;;  %v12770_v54 = vpop.permute.xlu1 %3605  ;;  %6212 = vmatmul.mubr.f32.gmra.mrb[30].mxu0 %v3191_v21  ;;  %v3683_v20 = vmul.f32 %v8313_v42, %v15105_v33  ;;  %v15106_v21 = vld [vmem:[#allocation172_spill] sm:$0xff]  ;;  %v3193_v51 = vmul.f32 %v8313_v42, %v15108_v18  ;;  %v12795_v33 = vld [vmem:[%s8936_s17 + $0x110] sm:$0xff] }
 0x5ae   : > { %15101 = vst [vmem:[#allocation27_spill] sm:$0xff] %v12770_v54  ;;  %v5893_v34 = vpop.f32.mrb[184].mxu1  ;;  %6216 = vmatprep.mubr.f32.mxu0 %v3682_v5  ;;  %v12772_v25 = vpop.permute.xlu0 %3739  ;;  %4369 = vperm.xlu0 %7718, %v12775_v50  }
 0x5af   : > { %v12780_v12 = vadd.f32 %v5893_v34, %v15103_v62  ;;  %v5895_v13 = vpop.f32.mrb[185].mxu1  ;;  %v15109_v34 = vld [vmem:[#allocation28_spill] sm:$0xff] }
 0x5b0   : > { %4329 = vperm.xlu1 %7713, %v15106_v21   ;;  %v15111_v21 = vld [vmem:[#allocation57_spill] sm:$0xff] }
 0x5b1   : > { %15104 = vst [vmem:[#allocation38_spill] sm:$0xff] %v12780_v12  ;;  %v12785_v5 = vpop.permute.xlu1 %3613  ;;  %6217 = vmatmul.mubr.f32.gmra.mrb[32].mxu0 %v3192_v61  ;;  %v8315_v61 = vld [vmem:[%s8931_s21 + $0x180] sm:$0xff] }
 0x5b2   : > { %15107 = vst [vmem:[#allocation98_spill] sm:$0xff] %v12785_v5  ;;  %v5898_v48 = vpop.f32.mrb[186].mxu1  ;;  %6221 = vmatprep.mubr.f32.mxu0 %v3683_v20  ;;  %v12787_v14 = vpop.permute.xlu0 %3751  ;;  %7721 = vset.pattern.permute.xlu0 %v15001_v32  ;;  %v3684_v20 = vmul.f32 %v8315_v61, %v15111_v21  ;;  %v8317_v21 = vld [vmem:[%s8931_s21 + $0x188] sm:$0xff] }
 0x5b3   : > { %v12792_v62 = vadd.f32 %v5898_v48, %v15109_v34  ;;  %v5900_v13 = vpop.f32.mrb[187].mxu1  ;;  %3871 = vperm.xlu0 %7721, %v12795_v33   ;;  %v15113_v48 = vld [vmem:[#allocation72_spill] sm:$0xff] }
 0x5b4   : > { %4337 = vperm.xlu1 %7713, %v12729_v3   ;;  %v3194_v34 = vmul.f32 %v8315_v61, %v15113_v48  ;;  %v15114_v13 = vld [vmem:[#allocation62_spill] sm:$0xff]  ;;  %v15116_v3 = vld [vmem:[#allocation40_spill] sm:$0xff]  ;;  %v15119_v48 = vld [vmem:[#allocation93_spill] sm:$0xff] }
 0x5b5   : > { %15110 = vst [vmem:[#allocation50_spill] sm:$0xff] %v12792_v62  ;;  %v12801_v12 = vpop.permute.xlu1 %3621  ;;  %6222 = vmatmul.mubr.f32.gmra.mrb[34].mxu0 %v3193_v51  ;;  %v3685_v43 = vmul.f32 %v8317_v21, %v15116_v3  ;;  %v8318_v51 = vld [vmem:[%s8936_s17 + $0xe8] sm:$0xff]  ;;  %v15121_v3 = vld [vmem:[#allocation171_spill] sm:$0xff] }
 0x5b6   : > { %15112 = vst [vmem:[#allocation89_spill] sm:$0xff] %v12801_v12  ;;  %v5903_v42 = vpop.f32.mrb[188].mxu1  ;;  %6226 = vmatprep.mubr.f32.mxu0 %v3684_v20  ;;  %v12803_v18 = vpop.permute.xlu0 %3759  ;;  %v3686_v24 = vmul.f32 %v8319_v16, %v15121_v3  ;;  %v15125_v12 = vld [vmem:[#allocation79_spill] sm:$0xff] }
 0x5b7   : > { %v12807_v62 = vadd.f32 %v5903_v42, %v15114_v13  ;;  %v5905_v17 = vpop.f32.mrb[189].mxu1  ;;  %3883 = vperm.xlu0 %7721, %v12810_v26   ;;  %v15118_v42 = vld [vmem:[#allocation88_spill] sm:$0xff] }
 0x5b8   : > { %4341 = vperm.xlu1 %7713, %v8318_v51   ;;  %v3195_v17 = vmul.f32 %v8317_v21, %v15118_v42  ;;  %v15123_v42 = vld [vmem:[#allocation71_spill] sm:$0xff] }
 0x5b9   : > { %15115 = vst [vmem:[#allocation168_spill] sm:$0xff] %v12807_v62  ;;  %v12816_v20 = vpop.permute.xlu1 %3629  ;;  %6227 = vmatmul.mubr.f32.gmra.mrb[36].mxu0 %v3194_v34  ;;  %v12829_v34 = vld [vmem:[%s8936_s17 + $0x138] sm:$0xff] }
 0x5ba   : > { %15117 = vst [vmem:[#allocation172_spill] sm:$0xff] %v12816_v20  ;;  %v5908_v23 = vpop.f32.mrb[190].mxu1  ;;  %6231 = vmatprep.mubr.f32.mxu0 %v3685_v43  ;;  %v12818_v61 = vpop.permute.xlu0 %3767  ;;  %v8321_v20 = vld [vmem:[%s8931_s21 + $0x198] sm:$0xff] }
 0x5bb   : > { %v12822_v13 = vadd.f32 %v5908_v23, %v15119_v48  ;;  %v5910_v62 = vpop.f32.mrb[191].mxu1  ;;  %7724 = vset.pattern.permute.xlu0 %v15055_v53  ;;  %v3687_v36 = vmul.f32 %v8321_v20, %v15125_v12  ;;  %v15129_v12 = vld [vmem:[#allocation67_spill] sm:$0xff] }
 0x5bc   : > { %7714 = vset.pattern.permute.xlu1 %v15001_v32  ;;  %4381 = vperm.xlu0 %7724, %v12829_v34   ;;  %v15122_v62 = vld [vmem:[#allocation77_spill] sm:$0xff] }
 0x5bd   : > { %15120 = vst [vmem:[#allocation112_spill] sm:$0xff] %v12822_v13  ;;  %3851 = vperm.xlu1 %7714, %v8318_v51   ;;  %6232 = vmatmul.mubr.f32.gmra.mrb[38].mxu0 %v3195_v17  ;;  %v3196_v21 = vmul.f32 %v8319_v16, %v15122_v62  ;;  %v15126_v51 = vld [vmem:[#allocation74_spill] sm:$0xff] }
 0x5be   : > { %v12832_v43 = vpop.permute.xlu1 %3735  ;;  %v5913_v23 = vpop.f32.mrb[192].mxu1  ;;  %6236 = vmatprep.mubr.f32.mxu0 %v3686_v24 }
 0x5bf   : > { %v12836_v48 = vadd.f32 %v5913_v23, %v15123_v42  ;;  %v5915_v13 = vpop.f32.mrb[193].mxu1  ;;  %v12838_v3 = vpop.permute.xlu0 %3775  ;;  %v15128_v23 = vld [vmem:[#allocation111_spill] sm:$0xff] }
 0x5c0   : > { %v5988_v5 = vpop.f32.mrb[196].mxu0  ;;  %4393 = vperm.xlu0 %7724, %v12843_v15   ;;  %v3197_v62 = vmul.f32 %v8321_v20, %v15128_v23  ;;  %v15131_v20 = vld [vmem:[#allocation105_spill] sm:$0xff]  ;;  %v8326_v23 = vld [vmem:[%s8936_s17 + $0x100] sm:$0xff] }
 0x5c1   : > { %15124 = vst [vmem:[#allocation28_spill] sm:$0xff] %v12836_v48  ;;  %v12847_v17 = vadd.f32 %v5988_v5, %v15126_v51  ;;  %3855 = vperm.xlu1 %7714, %v12709_v58   ;;  %v5990_v16 = vpop.f32.mrb[197].mxu0  ;;  %6237 = vmatmul.mubr.f32.gmra.mrb[40].mxu0 %v3196_v21  ;;  %v8323_v5 = vld [vmem:[%s8931_s21 + $0x1a0] sm:$0xff] }
 0x5c2   : > { %v12850_v24 = vpop.permute.xlu1 %3743  ;;  %v5918_v13 = vpop.f32.mrb[194].mxu1  ;;  %6241 = vmatprep.mubr.f32.mxu0 %v3687_v36  ;;  %v3688_v58 = vmul.f32 %v8323_v5, %v12506_v59  ;;  %v3198_v21 = vmul.f32 %v8323_v5, %v15131_v20  ;;  %v12869_v51 = vld [vmem:[%s8936_s17 + $0x140] sm:$0xff]  ;;  %v8325_v59 = vld [vmem:[%s8931_s21 + $0x1a8] sm:$0xff]  ;;  %v15132_v16 = vld [vmem:[#allocation170_spill] sm:$0xff] }
 0x5c3   : > { %15127 = vst [vmem:[#allocation57_spill] sm:$0xff] %v12847_v17  ;;  %v12854_v42 = vadd.f32 %v5918_v13, %v15129_v12  ;;  %v5920_v48 = vpop.f32.mrb[195].mxu1  ;;  %v12856_v54 = vpop.permute.xlu0 %3783  ;;  %v3689_v13 = vmul.f32 %v8325_v59, %v15132_v16  ;;  %v12881_v5 = vld [vmem:[%s8936_s17 + $0x158] sm:$0xff]  ;;  %v8328_v20 = vld [vmem:[%s8931_s21 + $0x1b0] sm:$0xff]  ;;  %v15134_v16 = vld [vmem:[#allocation84_spill] sm:$0xff] }
 0x5c4   : > { %7727 = vset.pattern.permute.xlu0 %v15001_v32  ;;  %v15136_v17 = vld [vmem:[#allocation53_spill] sm:$0xff] }
 0x5c5   : > { %15130 = vst [vmem:[#allocation72_spill] sm:$0xff] %v12854_v42  ;;  %7716 = vset.pattern.permute.xlu1 %v15055_v53  ;;  %6242 = vmatmul.mubr.f32.gmra.mrb[42].mxu0 %v3197_v62  ;;  %v15133_v62 = vld [vmem:[#allocation75_spill] sm:$0xff]  ;;  %v3690_v42 = vmul.f32 %v8328_v20, %v12525_v6  ;;  %v12896_v6 = vld [vmem:[%s8936_s17 + $0x168] sm:$0xff] }
 0x5c6   : > { %4349 = vperm.xlu1 %7716, %v12744_v1   ;;  %v12863_v36 = vpop.permute.xlu1 %3747  ;;  %6246 = vmatprep.mubr.f32.mxu0 %v3688_v58  ;;  %v3199_v12 = vmul.f32 %v8325_v59, %v15133_v62  ;;  %v8329_v62 = vld [vmem:[%s8931_s21 + $0x1b8] sm:$0xff] }
 0x5c7   : > { %v12866_v48 = vpop.permute.xlu0 %3791  ;;  %3895 = vperm.xlu0 %7727, %v12869_v51   ;;  %v3691_v40 = vmul.f32 %v8329_v62, %v15136_v17  ;;  %v8331_v17 = vld [vmem:[%s8931_s21 + $0x1c0] sm:$0xff] }
 0x5c8   : > { %v3692_v7 = vmul.f32 %v8331_v17, %v12540_v55 }
 0x5c9   : > { %6247 = vmatmul.mubr.f32.gmra.mrb[44].mxu0 %v3198_v21 }
 0x5ca   : > { %4353 = vperm.xlu1 %7716, %v8326_v23   ;;  %v12875_v1 = vpop.permute.xlu1 %3755  ;;  %6251 = vmatprep.mubr.f32.mxu0 %v3689_v13  ;;  %v3200_v13 = vmul.f32 %v8328_v20, %v15134_v16  ;;  %v15139_v20 = vld [vmem:[#allocation119_spill] sm:$0xff] }
 0x5cb   : > { %v12878_v58 = vpop.permute.xlu0 %3799  ;;  %3907 = vperm.xlu0 %7727, %v12881_v5   ;;  %v3201_v16 = vmul.f32 %v8329_v62, %v15139_v20  ;;  %v15145_v20 = vld [vmem:[#allocation160_spill] sm:$0xff] }
 0x5cd   : > { %6252 = vmatmul.mubr.f32.gmra.mrb[46].mxu0 %v3199_v12  ;;  %v15137_v12 = vld [vmem:[#allocation83_spill] sm:$0xff] }
 0x5ce   : > { %7717 = vset.pattern.permute.xlu1 %v15001_v32  ;;  %v12887_v21 = vpop.permute.xlu1 %3763  ;;  %6256 = vmatprep.mubr.f32.mxu0 %v3690_v42 }
 0x5cf   : > { %3863 = vperm.xlu1 %7717, %v8326_v23   ;;  %v12890_v59 = vpop.permute.xlu0 %3807  ;;  %7730 = vset.pattern.permute.xlu0 %v15055_v53 }
 0x5d0   : > { %15135 = vst [vmem:[#allocation62_spill] sm:$0xff] %v12890_v59  ;;  %v5993_v8 = vpop.f32.mrb[198].mxu0  ;;  %4405 = vperm.xlu0 %7730, %v12896_v6   ;;  %v12911_v59 = vld [vmem:[%s8936_s17 + $0x180] sm:$0xff] }
 0x5d1   : > { %v12900_v27 = vadd.f32 %v5993_v8, %v15137_v12  ;;  %v5995_v42 = vpop.f32.mrb[199].mxu0  ;;  %6257 = vmatmul.mubr.f32.gmra.mrb[48].mxu0 %v3200_v13  ;;  %v15141_v8 = vld [vmem:[#allocation157_spill] sm:$0xff] }
 0x5d2   : > { %v12902_v23 = vpop.permute.xlu1 %3771  ;;  %6261 = vmatprep.mubr.f32.mxu0 %v3691_v40  ;;  %v8333_v42 = vld [vmem:[%s8931_s21 + $0x1c8] sm:$0xff] }
 0x5d3   : > { %15138 = vst [vmem:[#allocation40_spill] sm:$0xff] %v12900_v27  ;;  %3867 = vperm.xlu1 %7717, %v12760_v38   ;;  %v12906_v4 = vpop.permute.xlu0 %3815  ;;  %v15143_v38 = vld [vmem:[#allocation113_spill] sm:$0xff]  ;;  %v3693_v27 = vmul.f32 %v8333_v42, %v15145_v20 }
 0x5d4   : > { %15140 = vst [vmem:[#allocation88_spill] sm:$0xff] %v12906_v4  ;;  %v5998_v44 = vpop.f32.mrb[200].mxu0  ;;  %4417 = vperm.xlu0 %7730, %v12911_v59   ;;  %v3202_v12 = vmul.f32 %v8331_v17, %v15143_v38  ;;  %v12931_v17 = vld [vmem:[%s8936_s17 + $0x170] sm:$0xff]  ;;  %v15148_v38 = vld [vmem:[#allocation90_spill] sm:$0xff]  ;;  %v12946_v4 = vld [vmem:[%s8936_s17 + $0x188] sm:$0xff] }
 0x5d5   : > { %v12915_v13 = vadd.f32 %v5998_v44, %v15141_v8  ;;  %v6000_v40 = vpop.f32.mrb[201].mxu0  ;;  %6262 = vmatmul.mubr.f32.gmra.mrb[50].mxu0 %v3201_v16  ;;  %v15146_v16 = vld [vmem:[#allocation37_spill] sm:$0xff]  ;;  %v3203_v20 = vmul.f32 %v8333_v42, %v15148_v38  ;;  %v15152_v42 = vld [vmem:[#allocation66_spill] sm:$0xff] }
 0x5d6   : > { %v12917_v62 = vpop.permute.xlu1 %3779  ;;  %6266 = vmatprep.mubr.f32.mxu0 %v3692_v7 }
 0x5d7   : > { %15142 = vst [vmem:[#allocation93_spill] sm:$0xff] %v12915_v13  ;;  %7719 = vset.pattern.permute.xlu1 %v15055_v53  ;;  %v12921_v55 = vpop.permute.xlu0 %3823  ;;  %v8335_v13 = vld [vmem:[%s8931_s21 + $0x1d0] sm:$0xff] }
 0x5d8   : > { %15144 = vst [vmem:[#allocation171_spill] sm:$0xff] %v12921_v55  ;;  %4361 = vperm.xlu1 %7719, %v12795_v33   ;;  %v6003_v44 = vpop.f32.mrb[202].mxu0  ;;  %7733 = vset.pattern.permute.xlu0 %v15001_v32  ;;  %v3694_v55 = vmul.f32 %v8335_v13, %v12555_v28  ;;  %v3204_v38 = vmul.f32 %v8335_v13, %v15152_v42  ;;  %v8338_v28 = vld [vmem:[%s8931_s21 + $0x1d8] sm:$0xff] }
 0x5d9   : > { %v12928_v8 = vadd.f32 %v6003_v44, %v15146_v16  ;;  %v6005_v7 = vpop.f32.mrb[203].mxu0  ;;  %6267 = vmatmul.mubr.f32.gmra.mrb[52].mxu0 %v3202_v12  ;;  %3919 = vperm.xlu0 %7733, %v12931_v17   ;;  %v8336_v44 = vld [vmem:[%s8936_s17 + $0x118] sm:$0xff]  ;;  %v3695_v57 = vmul.f32 %v8338_v28, %v15154_v39  ;;  %v8340_v39 = vld [vmem:[%s8931_s21 + $0x1e0] sm:$0xff] }
 0x5da   : > { %v12934_v40 = vpop.permute.xlu1 %3787  ;;  %6271 = vmatprep.mubr.f32.mxu0 %v3693_v27  ;;  %v15150_v7 = vld [vmem:[#allocation82_spill] sm:$0xff] }
 0x5db   : > { %15147 = vst [vmem:[#allocation77_spill] sm:$0xff] %v12928_v8  ;;  %v12937_v33 = vpop.permute.xlu0 %3831  ;;  %v15158_v13 = vld [vmem:[#allocation122_spill] sm:$0xff] }
 0x5dc   : > { %15149 = vst [vmem:[#allocation71_spill] sm:$0xff] %v12937_v33  ;;  %4365 = vperm.xlu1 %7719, %v8336_v44   ;;  %v6008_v16 = vpop.f32.mrb[204].mxu0  ;;  %v3205_v42 = vmul.f32 %v8338_v28, %v15158_v13 }
 0x5dd   : > { %v12943_v12 = vadd.f32 %v6008_v16, %v15150_v7  ;;  %v6010_v8 = vpop.f32.mrb[205].mxu0  ;;  %6272 = vmatmul.mubr.f32.gmra.mrb[54].mxu0 %v3203_v20  ;;  %3931 = vperm.xlu0 %7733, %v12946_v4   ;;  %v15155_v20 = vld [vmem:[#allocation41_spill] sm:$0xff] }
 0x5de   : > { %v12949_v27 = vpop.permute.xlu1 %3795  ;;  %6276 = vmatprep.mubr.f32.mxu0 %v3694_v55 }
 0x5df   : > { %15151 = vst [vmem:[#allocation79_spill] sm:$0xff] %v12943_v12  ;;  %v12952_v33 = vpop.permute.xlu0 %3839 }
 0x5e0   : > { %15153 = vst [vmem:[#allocation74_spill] sm:$0xff] %v12952_v33  ;;  %7720 = vset.pattern.permute.xlu1 %v15001_v32  ;;  %v6013_v8 = vpop.f32.mrb[206].mxu0  ;;  %v12965_v33 = vld [vmem:[%s8936_s17 + $0x198] sm:$0xff] }
 0x5e1   : > { %v12958_v16 = vadd.f32 %v6013_v8, %v15155_v20  ;;  %3875 = vperm.xlu1 %7720, %v8336_v44   ;;  %v6015_v7 = vpop.f32.mrb[207].mxu0  ;;  %6277 = vmatmul.mubr.f32.gmra.mrb[56].mxu0 %v3204_v38  ;;  %15159 = vst [vmem:[#allocation105_spill] sm:$0xff] %v12965_v33  ;;  %v3696_v8 = vmul.f32 %v8340_v39, %v12570_v29  ;;  %v8341_v44 = vld [vmem:[%s8931_s21] sm:$0xff]  ;;  %v12980_v29 = vld [vmem:[%s8936_s17 + $0x1b0] sm:$0xff] }
 0x5e2   : > { %v12960_v55 = vpop.permute.xlu1 %3803  ;;  %6281 = vmatprep.mubr.f32.mxu0 %v3695_v57  ;;  %7736 = vset.pattern.permute.xlu0 %v15055_v53  ;;  %v4126_v7 = vmul.f32 %v8341_v44, %v12832_v43  ;;  %v15160_v57 = vld [vmem:[#allocation162_spill] sm:$0xff]  ;;  %v8343_v43 = vld [vmem:[%s8931_s21 + $0x1e8] sm:$0xff] }
 0x5e3   : > { %15156 = vst [vmem:[#allocation111_spill] sm:$0xff] %v12958_v16  ;;  %15157 = vst [vmem:[#allocation67_spill] sm:$0xff] %v12960_v55  ;;  %v4226_v12 = vpop.permute.xlu0 %4225  ;;  %4429 = vperm.xlu0 %7736, %v12965_v33   ;;  %v15162_v33 = vld [vmem:[#allocation116_spill] sm:$0xff] }
 0x5e4   : > { %v4616_v20 = vmul.f32 %v8341_v44, %v4226_v12  ;;  %v6018_v38 = vpop.f32.mrb[208].mxu0  ;;  %v3206_v55 = vmul.f32 %v8340_v39, %v15162_v33  ;;  %v3697_v12 = vmul.f32 %v8343_v43, %v12508_v45  ;;  %v15165_v39 = vld [vmem:[#allocation30_spill] sm:$0xff]  ;;  %v8344_v45 = vld [vmem:[%s8931_s21 + $0x1f0] sm:$0xff] }
 0x5e5   : > { %v12973_v16 = vadd.f32 %v6018_v38, %v15160_v57  ;;  %3879 = vperm.xlu1 %7720, %v12775_v50   ;;  %v6020_v28 = vpop.f32.mrb[209].mxu0  ;;  %6282 = vmatmul.mubr.f32.gmra.mrb[58].mxu0 %v3205_v42  ;;  %v15163_v50 = vld [vmem:[#allocation91_spill] sm:$0xff] }
 0x5e6   : > { %v12976_v13 = vpop.permute.xlu1 %3811  ;;  %6286 = vmatprep.mubr.f32.mxu0 %v3696_v8  ;;  %6541 = vmatprep.mubr.f32.mxu1 %v4616_v20  ;;  %v3207_v8 = vmul.f32 %v8343_v43, %v15165_v39  ;;  %v3698_v20 = vmul.f32 %v8344_v45, %v12585_v35  ;;  %v12997_v57 = vld [vmem:[%s8936_s17 + $0x1a0] sm:$0xff] }
 0x5e7   : > { %15161 = vst [vmem:[#allocation170_spill] sm:$0xff] %v12973_v16  ;;  %6542 = vmatmul.mubr.f32.vlgmr.msra.gmra.mrb[196].mxu1 %v4126_v7  ;;  %4441 = vperm.xlu0 %7736, %v12980_v29   ;;  %v15168_v43 = vld [vmem:[#allocation87_spill] sm:$0xff] }
 0x5e8   : > { %v6023_v44 = vpop.f32.mrb[210].mxu0  ;;  %v15172_v16 = vld [vmem:[#allocation43_spill] sm:$0xff] }
 0x5e9   : > { %v12986_v38 = vadd.f32 %v6023_v44, %v15163_v50  ;;  %7722 = vset.pattern.permute.xlu1 %v15055_v53  ;;  %v6025_v42 = vpop.f32.mrb[211].mxu0  ;;  %6287 = vmatmul.mubr.f32.gmra.mrb[60].mxu0 %v3206_v55  ;;  %v15166_v55 = vld [vmem:[#allocation44_spill] sm:$0xff]  ;;  %v3208_v50 = vmul.f32 %v8344_v45, %v15168_v43 }
 0x5ea   : > { %4373 = vperm.xlu1 %7722, %v12810_v26   ;;  %v12990_v33 = vpop.permute.xlu1 %3819  ;;  %6291 = vmatprep.mubr.f32.mxu0 %v3697_v12  ;;  %v8346_v12 = vld [vmem:[%s8936_s17 + $0x130] sm:$0xff]  ;;  %v8347_v42 = vld [vmem:[%s8931_s21 + $0x1f8] sm:$0xff]  ;;  %v15171_v45 = vld [vmem:[#allocation20_spill] sm:$0xff] }
 0x5eb   : > { %15164 = vst [vmem:[#allocation75_spill] sm:$0xff] %v12986_v38  ;;  %7739 = vset.pattern.permute.xlu0 %v15001_v32  ;;  %v3699_v35 = vmul.f32 %v8347_v42, %v12527_v49  ;;  %v13010_v38 = vld [vmem:[%s8936_s17 + $0x1b8] sm:$0xff]  ;;  %v8349_v49 = vld [vmem:[%s8931_s21 + $0x200] sm:$0xff] }
 0x5ec   : > { %v6028_v7 = vpop.f32.mrb[212].mxu0  ;;  %3943 = vperm.xlu0 %7739, %v12997_v57   ;;  %v3700_v43 = vmul.f32 %v8349_v49, %v12600_v0  ;;  %v8351_v0 = vld [vmem:[%s8931_s21 + $0x208] sm:$0xff] }
 0x5ed   : > { %v13001_v28 = vadd.f32 %v6028_v7, %v15166_v55  ;;  %v6030_v26 = vpop.f32.mrb[213].mxu0  ;;  %6292 = vmatmul.mubr.f32.gmra.mrb[62].mxu0 %v3207_v8  ;;  %v15169_v7 = vld [vmem:[#allocation94_spill] sm:$0xff] }
 0x5ee   : > { %4377 = vperm.xlu1 %7722, %v8346_v12   ;;  %v13004_v44 = vpop.permute.xlu1 %3827  ;;  %6296 = vmatprep.mubr.f32.mxu0 %v3698_v20  ;;  %v3209_v20 = vmul.f32 %v8347_v42, %v15171_v45 }
 0x5ef   : > { %15167 = vst [vmem:[#allocation84_spill] sm:$0xff] %v13001_v28 }
 0x5f0   : > { %v6033_v39 = vpop.f32.mrb[214].mxu0  ;;  %3955 = vperm.xlu0 %7739, %v13010_v38  }
 0x5f1   : > { %v13014_v55 = vadd.f32 %v6033_v39, %v15169_v7  ;;  %v6035_v8 = vpop.f32.mrb[215].mxu0  ;;  %6297 = vmatmul.mubr.f32.gmra.mrb[64].mxu0 %v3208_v50  ;;  %v13027_v7 = vld [vmem:[%s8936_s17 + $0x1c8] sm:$0xff] }
 0x5f2   : > { %7723 = vset.pattern.permute.xlu1 %v15001_v32  ;;  %v13017_v26 = vpop.permute.xlu1 %3835  ;;  %6301 = vmatprep.mubr.f32.mxu0 %v3699_v35  ;;  %v3701_v8 = vmul.f32 %v8351_v0, %v12542_v46  ;;  %v8354_v46 = vld [vmem:[%s8931_s21 + $0x210] sm:$0xff] }
 0x5f3   : > { %15170 = vst [vmem:[#allocation53_spill] sm:$0xff] %v13014_v55  ;;  %3887 = vperm.xlu1 %7723, %v8346_v12   ;;  %v15174_v12 = vld [vmem:[#allocation124_spill] sm:$0xff]  ;;  %v15184_v55 = vld [vmem:[#allocation178_spill] sm:$0xff] }
 0x5f4   : > { %v6038_v28 = vpop.f32.mrb[216].mxu0  ;;  %7742 = vset.pattern.permute.xlu0 %v15055_v53  ;;  %v3210_v42 = vmul.f32 %v8349_v49, %v15174_v12  ;;  %v8353_v49 = vld [vmem:[%s8931_s21 + $0x8] sm:$0xff] }
 0x5f5   : > { %v13024_v39 = vadd.f32 %v6038_v28, %v15172_v16  ;;  %v6040_v50 = vpop.f32.mrb[217].mxu0  ;;  %6302 = vmatmul.mubr.f32.gmra.mrb[66].mxu0 %v3209_v20  ;;  %4453 = vperm.xlu0 %7742, %v13027_v7   ;;  %v15175_v28 = vld [vmem:[#allocation100_spill] sm:$0xff]  ;;  %v4127_v12 = vmul.f32 %v8353_v49, %v12772_v25  ;;  %v4238_v25 = vpop.permute.xlu0 %4237 }
 0x5f6   : > { %v13030_v35 = vpop.permute.xlu1 %3843  ;;  %6306 = vmatprep.mubr.f32.mxu0 %v3700_v43  ;;  %v13040_v50 = vld [vmem:[%s8936_s17 + $0x1e0] sm:$0xff]  ;;  %v15178_v43 = vld [vmem:[#allocation108_spill] sm:$0xff] }
 0x5f7   : > { %15173 = vst [vmem:[#allocation83_spill] sm:$0xff] %v13024_v39  ;;  %3891 = vperm.xlu1 %7723, %v12829_v34   ;;  %15177 = vst [vmem:[#allocation157_spill] sm:$0xff] %v13040_v50  ;;  %v3211_v39 = vmul.f32 %v8351_v0, %v15178_v43  ;;  %v15181_v43 = vld [vmem:[#allocation97_spill] sm:$0xff] }
 0x5f8   : > { %v6043_v16 = vpop.f32.mrb[218].mxu0 }
 0x5f9   : > { %v13037_v45 = vadd.f32 %v6043_v16, %v15175_v28  ;;  %v6045_v20 = vpop.f32.mrb[219].mxu0  ;;  %6307 = vmatmul.mubr.f32.gmra.mrb[68].mxu0 %v3210_v42  ;;  %4465 = vperm.xlu0 %7742, %v13040_v50   ;;  %v3702_v16 = vmul.f32 %v8354_v46, %v12613_v2  ;;  %v3212_v2 = vmul.f32 %v8354_v46, %v15181_v43  ;;  %v15183_v43 = vld [vmem:[#allocation102_spill] sm:$0xff] }
 0x5fa   : > { %6311 = vmatprep.mubr.f32.mxu0 %v3701_v8  ;;  %v15179_v20 = vld [vmem:[#allocation31_spill] sm:$0xff] }
 0x5fb   : > { %15176 = vst [vmem:[#allocation119_spill] sm:$0xff] %v13037_v45  ;;  %7725 = vset.pattern.permute.xlu1 %v15055_v53  ;;  %v4230_v34 = vpop.permute.xlu1 %4229 }
 0x5fc   : > { %v4617_v28 = vmul.f32 %v8353_v49, %v4230_v34  ;;  %4385 = vperm.xlu1 %7725, %v12869_v51   ;;  %v6048_v42 = vpop.f32.mrb[220].mxu0  ;;  %v13056_v49 = vld [vmem:[%s8936_s17 + $0x1d0] sm:$0xff]  ;;  %v8356_v51 = vld [vmem:[%s8931_s21 + $0x218] sm:$0xff] }
 0x5fd   : > { %v13051_v8 = vadd.f32 %v6048_v42, %v15179_v20  ;;  %v6050_v0 = vpop.f32.mrb[221].mxu0  ;;  %6312 = vmatmul.mubr.f32.gmra.mrb[70].mxu0 %v3211_v39  ;;  %7745 = vset.pattern.permute.xlu0 %v15001_v32  ;;  %15182 = vst [vmem:[#allocation160_spill] sm:$0xff] %v13056_v49  ;;  %v3703_v34 = vmul.f32 %v8356_v51, %v12557_v10  ;;  %v8357_v42 = vld [vmem:[%s8931_s21 + $0x10] sm:$0xff]  ;;  %v8358_v20 = vld [vmem:[%s8936_s17 + $0x148] sm:$0xff] }
 0x5fe   : > { %6316 = vmatprep.mubr.f32.mxu0 %v3702_v16  ;;  %6546 = vmatprep.mubr.f32.mxu1 %v4617_v28  ;;  %v8359_v16 = vld [vmem:[%s8931_s21 + $0x18] sm:$0xff]  ;;  %v4128_v46 = vmul.f32 %v8357_v42, %v12850_v24  ;;  %v3213_v10 = vmul.f32 %v8356_v51, %v15184_v55  ;;  %v4246_v51 = vpop.permute.xlu0 %4245 }
 0x5ff   : > { %15180 = vst [vmem:[#allocation113_spill] sm:$0xff] %v13051_v8  ;;  %v4234_v45 = vpop.permute.xlu1 %4233  ;;  %6547 = vmatmul.mubr.f32.gmra.mrb[198].mxu1 %v4127_v12  ;;  %3967 = vperm.xlu0 %7745, %v13056_v49   ;;  %v4619_v28 = vmul.f32 %v8359_v16, %v4238_v25  ;;  %v8361_v49 = vld [vmem:[%s8931_s21 + $0x220] sm:$0xff] }
 0x600   : > { %v4618_v39 = vmul.f32 %v8357_v42, %v4234_v45  ;;  %4389 = vperm.xlu1 %7725, %v8358_v20   ;;  %v6053_v0 = vpop.f32.mrb[222].mxu0  ;;  %v13070_v45 = vld [vmem:[%s8936_s17 + $0x1e8] sm:$0xff]  ;;  %v3704_v25 = vmul.f32 %v8361_v49, %v12625_v19  ;;  %v8362_v42 = vld [vmem:[%s8931_s21 + $0x20] sm:$0xff] }
 0x601   : > { %v13066_v12 = vadd.f32 %v6053_v0, %v15183_v43  ;;  %v6055_v8 = vpop.f32.mrb[223].mxu0  ;;  %6317 = vmatmul.mubr.f32.gmra.mrb[72].mxu0 %v3212_v2  ;;  %v15185_v2 = vld [vmem:[#allocation99_spill] sm:$0xff] }
 0x602   : > { %6321 = vmatprep.mubr.f32.mxu0 %v3703_v34  ;;  %6551 = vmatprep.mubr.f32.mxu1 %v4618_v39  ;;  %v4129_v8 = vmul.f32 %v8359_v16, %v12863_v36  ;;  %v15186_v19 = vld [vmem:[#allocation123_spill] sm:$0xff]  ;;  %v8363_v36 = vld [vmem:[%s8931_s21 + $0x228] sm:$0xff] }
 0x603   : > { %v4242_v50 = vpop.permute.xlu1 %4241  ;;  %6552 = vmatmul.mubr.f32.gmra.mrb[200].mxu1 %v4128_v46  ;;  %3979 = vperm.xlu0 %7745, %v13070_v45   ;;  %v3214_v0 = vmul.f32 %v8361_v49, %v15186_v19  ;;  %v4130_v46 = vmul.f32 %v8362_v42, %v12787_v14 }
 0x604   : > { %7726 = vset.pattern.permute.xlu1 %v15001_v32  ;;  %v6058_v24 = vpop.f32.mrb[224].mxu0  ;;  %6556 = vmatprep.mubr.f32.mxu1 %v4619_v28  ;;  %v4620_v39 = vmul.f32 %v8362_v42, %v4242_v50  ;;  %v8364_v28 = vld [vmem:[%s8931_s21 + $0x28] sm:$0xff]  ;;  %v15187_v50 = vld [vmem:[#allocation51_spill] sm:$0xff]  ;;  %v13099_v42 = vld [vmem:[%s8936_s17 + $0x210] sm:$0xff] }
 0x605   : > { %v13078_v34 = vadd.f32 %v6058_v24, %v15185_v2  ;;  %3899 = vperm.xlu1 %7726, %v8358_v20   ;;  %v6060_v55 = vpop.f32.mrb[225].mxu0  ;;  %6322 = vmatmul.mubr.f32.gmra.mrb[74].mxu0 %v3213_v10  ;;  %v3705_v20 = vmul.f32 %v8363_v36, %v12572_v41  ;;  %v4621_v10 = vmul.f32 %v8364_v28, %v4246_v51  ;;  %v13088_v24 = vld [vmem:[%s8936_s17 + $0x1f8] sm:$0xff]  ;;  %v8366_v2 = vld [vmem:[%s8931_s21 + $0x230] sm:$0xff] }
 0x606   : > { %6326 = vmatprep.mubr.f32.mxu0 %v3704_v25  ;;  %v15188_v25 = vld [vmem:[#allocation179_spill] sm:$0xff]  ;;  %v3706_v55 = vmul.f32 %v8366_v2, %v12637_v11 }
 0x607   : > { %v4250_v43 = vpop.permute.xlu1 %4249  ;;  %6557 = vmatmul.mubr.f32.gmra.mrb[202].mxu1 %v4129_v8  ;;  %7748 = vset.pattern.permute.xlu0 %v15055_v53  ;;  %v3215_v41 = vmul.f32 %v8363_v36, %v15188_v25  ;;  %v8368_v36 = vld [vmem:[%s8931_s21 + $0x30] sm:$0xff] }
 0x608   : > { %v6063_v16 = vpop.f32.mrb[226].mxu0  ;;  %6561 = vmatprep.mubr.f32.mxu1 %v4620_v39  ;;  %4477 = vperm.xlu0 %7748, %v13088_v24   ;;  %v15189_v39 = vld [vmem:[#allocation33_spill] sm:$0xff]  ;;  %v4622_v11 = vmul.f32 %v8368_v36, %v4250_v43 }
 0x609   : > { %v13092_v49 = vadd.f32 %v6063_v16, %v15187_v50  ;;  %3903 = vperm.xlu1 %7726, %v12843_v15   ;;  %v6065_v14 = vpop.f32.mrb[227].mxu0  ;;  %6327 = vmatmul.mubr.f32.gmra.mrb[76].mxu0 %v3214_v0  ;;  %v4131_v15 = vmul.f32 %v8364_v28, %v12875_v1  ;;  %v4132_v1 = vmul.f32 %v8368_v36, %v12803_v18  ;;  %v15191_v50 = vld [vmem:[#allocation69_spill] sm:$0xff]  ;;  %v8372_v18 = vld [vmem:[%s8936_s17 + $0x160] sm:$0xff] }
 0x60a   : > { %6331 = vmatprep.mubr.f32.mxu0 %v3705_v20  ;;  %v15190_v20 = vld [vmem:[#allocation106_spill] sm:$0xff] }
 0x60b   : > { %v4258_v8 = vpop.permute.xlu1 %4257  ;;  %6562 = vmatmul.mubr.f32.gmra.mrb[204].mxu1 %v4130_v46  ;;  %v4254_v46 = vpop.permute.xlu0 %4253  ;;  %v3216_v16 = vmul.f32 %v8366_v2, %v15190_v20 }
 0x60c   : > { %v6068_v51 = vpop.f32.mrb[228].mxu0  ;;  %6566 = vmatprep.mubr.f32.mxu1 %v4621_v10  ;;  %4489 = vperm.xlu0 %7748, %v13099_v42   ;;  %v8369_v10 = vld [vmem:[%s8931_s21 + $0x238] sm:$0xff] }
 0x60d   : > { %v13104_v19 = vadd.f32 %v6068_v51, %v15189_v39  ;;  %7728 = vset.pattern.permute.xlu1 %v15055_v53  ;;  %v6070_v0 = vpop.f32.mrb[229].mxu0  ;;  %6332 = vmatmul.mubr.f32.gmra.mrb[78].mxu0 %v3215_v41  ;;  %v3707_v14 = vmul.f32 %v8369_v10, %v15191_v50  ;;  %v8370_v41 = vld [vmem:[%s8931_s21 + $0x38] sm:$0xff]  ;;  %v13121_v51 = vld [vmem:[%s8936_s17 + $0x200] sm:$0xff] }
 0x60e   : > { %4397 = vperm.xlu1 %7728, %v12881_v5   ;;  %6336 = vmatprep.mubr.f32.mxu0 %v3706_v55  ;;  %v4623_v43 = vmul.f32 %v8370_v41, %v4254_v46  ;;  %v15192_v5 = vld [vmem:[#allocation32_spill] sm:$0xff]  ;;  %v8373_v46 = vld [vmem:[%s8931_s21 + $0x240] sm:$0xff]  ;;  %v4133_v20 = vmul.f32 %v8370_v41, %v12887_v21 }
 0x60f   : > { %v13111_v28 = vpop.permute.xlu1 %4265  ;;  %6567 = vmatmul.mubr.f32.gmra.mrb[206].mxu1 %v4131_v15  ;;  %v15193_v15 = vld [vmem:[#allocation180_spill] sm:$0xff]  ;;  %v3708_v36 = vmul.f32 %v8373_v46, %v12649_v37 }
 0x610   : > { %v6073_v25 = vpop.f32.mrb[230].mxu0  ;;  %6571 = vmatprep.mubr.f32.mxu1 %v4622_v11  ;;  %7751 = vset.pattern.permute.xlu0 %v15001_v32  ;;  %v3217_v39 = vmul.f32 %v8369_v10, %v15193_v15  ;;  %v15195_v37 = vld [vmem:[#allocation128_spill] sm:$0xff] }
 0x611   : > { %v13118_v55 = vadd.f32 %v6073_v25, %v15192_v5  ;;  %v6075_v2 = vpop.f32.mrb[231].mxu0  ;;  %6337 = vmatmul.mubr.f32.gmra.mrb[80].mxu0 %v3216_v16  ;;  %3991 = vperm.xlu0 %7751, %v13121_v51   ;;  %v15194_v16 = vld [vmem:[#allocation103_spill] sm:$0xff]  ;;  %v4262_v5 = vpop.permute.xlu0 %4261 }
 0x612   : > { %4401 = vperm.xlu1 %7728, %v8372_v18   ;;  %6341 = vmatprep.mubr.f32.mxu0 %v3707_v14  ;;  %v13135_v14 = vld [vmem:[%s8936_s17 + $0x218] sm:$0xff]  ;;  %v8376_v2 = vld [vmem:[%s8931_s21 + $0x248] sm:$0xff] }
 0x613   : > { %v13126_v0 = vpop.permute.xlu1 %4273  ;;  %6572 = vmatmul.mubr.f32.gmra.mrb[208].mxu1 %v4132_v1  ;;  %v8375_v1 = vld [vmem:[%s8931_s21 + $0x40] sm:$0xff]  ;;  %v3709_v15 = vmul.f32 %v8376_v2, %v12602_v52 }
 0x614   : > { %v6078_v11 = vpop.f32.mrb[232].mxu0  ;;  %6576 = vmatprep.mubr.f32.mxu1 %v4623_v43  ;;  %v4624_v10 = vmul.f32 %v8375_v1, %v4258_v8  ;;  %v3218_v43 = vmul.f32 %v8373_v46, %v15195_v37  ;;  %v4134_v21 = vmul.f32 %v8375_v1, %v12818_v61  ;;  %v13152_v61 = vld [vmem:[%s8936_s17 + $0x228] sm:$0xff]  ;;  %v15198_v37 = vld [vmem:[#allocation59_spill] sm:$0xff] }
 0x615   : > { %v13132_v50 = vadd.f32 %v6078_v11, %v15194_v16  ;;  %v6080_v25 = vpop.f32.mrb[233].mxu0  ;;  %6342 = vmatmul.mubr.f32.gmra.mrb[82].mxu0 %v3217_v39  ;;  %4003 = vperm.xlu0 %7751, %v13135_v14   ;;  %v8377_v11 = vld [vmem:[%s8931_s21 + $0x48] sm:$0xff]  ;;  %v15196_v16 = vld [vmem:[#allocation107_spill] sm:$0xff] }
 0x616   : > { %7729 = vset.pattern.permute.xlu1 %v15001_v32  ;;  %6346 = vmatprep.mubr.f32.mxu0 %v3708_v36  ;;  %v4625_v8 = vmul.f32 %v8377_v11, %v4262_v5 }
 0x617   : > { %3911 = vperm.xlu1 %7729, %v8372_v18   ;;  %v13142_v41 = vpop.permute.xlu1 %4281  ;;  %6577 = vmatmul.mubr.f32.gmra.mrb[210].mxu1 %v4133_v20  ;;  %v15197_v18 = vld [vmem:[#allocation181_spill] sm:$0xff] }
 0x618   : > { %v6083_v39 = vpop.f32.mrb[234].mxu0  ;;  %6581 = vmatprep.mubr.f32.mxu1 %v4624_v10  ;;  %v3219_v52 = vmul.f32 %v8376_v2, %v15197_v18  ;;  %v8379_v20 = vld [vmem:[%s8931_s21 + $0x250] sm:$0xff]  ;;  %v4135_v10 = vmul.f32 %v8377_v11, %v12902_v23  ;;  %v4270_v2 = vpop.permute.xlu0 %4269  ;;  %v8382_v23 = vld [vmem:[%s8931_s21 + $0x258] sm:$0xff] }
 0x619   : > { %v13148_v25 = vadd.f32 %v6083_v39, %v15196_v16  ;;  %v6085_v36 = vpop.f32.mrb[235].mxu0  ;;  %6347 = vmatmul.mubr.f32.gmra.mrb[84].mxu0 %v3218_v43  ;;  %7754 = vset.pattern.permute.xlu0 %v15055_v53  ;;  %v3710_v5 = vmul.f32 %v8379_v20, %v12661_v60  ;;  %v8380_v39 = vld [vmem:[%s8931_s21 + $0x50] sm:$0xff]  ;;  %v3711_v11 = vmul.f32 %v8382_v23, %v12615_v31 }
 0x61a   : > { %6351 = vmatprep.mubr.f32.mxu0 %v3709_v15  ;;  %4501 = vperm.xlu0 %7754, %v13152_v61   ;;  %v15199_v16 = vld [vmem:[#allocation21_spill] sm:$0xff] }
 0x61b   : > { %3915 = vperm.xlu1 %7729, %v12896_v6   ;;  %v13157_v46 = vpop.permute.xlu1 %4289  ;;  %6582 = vmatmul.mubr.f32.gmra.mrb[212].mxu1 %v4134_v21  ;;  %v4626_v6 = vmul.f32 %v8380_v39, %v13111_v28  ;;  %v8381_v21 = vld [vmem:[%s8936_s17 + $0x240] sm:$0xff]  ;;  %v3220_v60 = vmul.f32 %v8379_v20, %v15199_v16  ;;  %v8383_v28 = vld [vmem:[%s8931_s21 + $0x58] sm:$0xff] }
 0x61c   : > { %v6088_v1 = vpop.f32.mrb[236].mxu0  ;;  %6586 = vmatprep.mubr.f32.mxu1 %v4625_v8  ;;  %v4627_v18 = vmul.f32 %v8383_v28, %v4270_v2  ;;  %v15200_v20 = vld [vmem:[#allocation110_spill] sm:$0xff] }
 0x61d   : > { %v13163_v43 = vadd.f32 %v6088_v1, %v15198_v37  ;;  %v6090_v15 = vpop.f32.mrb[237].mxu0  ;;  %6352 = vmatmul.mubr.f32.gmra.mrb[86].mxu0 %v3219_v52  ;;  %v4136_v52 = vmul.f32 %v8380_v39, %v12838_v3  ;;  %v13185_v37 = vld [vmem:[%s8936_s17 + $0x230] sm:$0xff]  ;;  %v8386_v2 = vld [vmem:[%s8936_s17 + $0x178] sm:$0xff] }
 0x61e   : > { %6356 = vmatprep.mubr.f32.mxu0 %v3710_v5  ;;  %4513 = vperm.xlu0 %7754, %v8381_v21   ;;  %v8385_v15 = vld [vmem:[%s8931_s21 + $0x260] sm:$0xff]  ;;  %v15202_v21 = vld [vmem:[#allocation92_spill] sm:$0xff] }
 0x61f   : > { %7731 = vset.pattern.permute.xlu1 %v15055_v53  ;;  %v13170_v8 = vpop.permute.xlu1 %4297  ;;  %6587 = vmatmul.mubr.f32.gmra.mrb[214].mxu1 %v4135_v10  ;;  %v15201_v10 = vld [vmem:[#allocation182_spill] sm:$0xff]  ;;  %v3712_v3 = vmul.f32 %v8385_v15, %v12673_v30 }
 0x620   : > { %4409 = vperm.xlu1 %7731, %v12931_v17   ;;  %v6093_v36 = vpop.f32.mrb[238].mxu0  ;;  %6591 = vmatprep.mubr.f32.mxu1 %v4626_v6  ;;  %v3221_v31 = vmul.f32 %v8382_v23, %v15201_v10  ;;  %v4137_v6 = vmul.f32 %v8383_v28, %v12917_v62  ;;  %v4278_v23 = vpop.permute.xlu0 %4277  ;;  %v15203_v30 = vld [vmem:[#allocation130_spill] sm:$0xff]  ;;  %v8389_v62 = vld [vmem:[%s8931_s21 + $0x268] sm:$0xff] }
 0x621   : > { %v13178_v5 = vadd.f32 %v6093_v36, %v15200_v20  ;;  %v6095_v1 = vpop.f32.mrb[239].mxu0  ;;  %6357 = vmatmul.mubr.f32.gmra.mrb[88].mxu0 %v3220_v60  ;;  %v3713_v28 = vmul.f32 %v8389_v62, %v12627_v22  ;;  %v8390_v10 = vld [vmem:[%s8931_s21 + $0x68] sm:$0xff] }
 0x622   : > { %6361 = vmatprep.mubr.f32.mxu0 %v3711_v11  ;;  %7757 = vset.pattern.permute.xlu0 %v15001_v32  ;;  %v8387_v11 = vld [vmem:[%s8931_s21 + $0x60] sm:$0xff]  ;;  %v13201_v1 = vld [vmem:[%s8936_s17 + $0x248] sm:$0xff] }
 0x623   : > { %v13182_v17 = vpop.permute.xlu1 %4305  ;;  %6592 = vmatmul.mubr.f32.gmra.mrb[216].mxu1 %v4136_v52  ;;  %4015 = vperm.xlu0 %7757, %v13185_v37   ;;  %v4628_v36 = vmul.f32 %v8387_v11, %v13126_v0  ;;  %v3222_v52 = vmul.f32 %v8385_v15, %v15203_v30  ;;  %v4629_v0 = vmul.f32 %v8390_v10, %v4278_v23  ;;  %v15204_v15 = vld [vmem:[#allocation118_spill] sm:$0xff] }
 0x624   : > { %4413 = vperm.xlu1 %7731, %v8386_v2   ;;  %v6098_v39 = vpop.f32.mrb[240].mxu0  ;;  %6596 = vmatprep.mubr.f32.mxu1 %v4627_v18 }
 0x625   : > { %v13193_v16 = vadd.f32 %v6098_v39, %v15202_v21  ;;  %v6100_v60 = vpop.f32.mrb[241].mxu0  ;;  %6362 = vmatmul.mubr.f32.gmra.mrb[90].mxu0 %v3221_v31  ;;  %v4138_v31 = vmul.f32 %v8387_v11, %v12856_v54  ;;  %v13219_v54 = vld [vmem:[%s8936_s17 + $0x258] sm:$0xff] }
 0x626   : > { %6366 = vmatprep.mubr.f32.mxu0 %v3712_v3  ;;  %v8391_v60 = vld [vmem:[%s8931_s21 + $0x270] sm:$0xff]  ;;  %v15206_v11 = vld [vmem:[#allocation78_spill] sm:$0xff] }
 0x627   : > { %v13198_v20 = vpop.permute.xlu1 %4313  ;;  %6597 = vmatmul.mubr.f32.gmra.mrb[218].mxu1 %v4137_v6  ;;  %4027 = vperm.xlu0 %7757, %v13201_v1   ;;  %v15205_v6 = vld [vmem:[#allocation183_spill] sm:$0xff]  ;;  %v3714_v23 = vmul.f32 %v8391_v60, %v12685_v63 }
 0x628   : > { %7732 = vset.pattern.permute.xlu1 %v15001_v32  ;;  %v6103_v18 = vpop.f32.mrb[242].mxu0  ;;  %6601 = vmatprep.mubr.f32.mxu1 %v4628_v36  ;;  %v3223_v22 = vmul.f32 %v8389_v62, %v15205_v6  ;;  %v8393_v62 = vld [vmem:[%s8931_s21 + $0x70] sm:$0xff] }
 0x629   : > { %v13210_v3 = vadd.f32 %v6103_v18, %v15204_v15  ;;  %3923 = vperm.xlu1 %7732, %v8386_v2   ;;  %v6105_v39 = vpop.f32.mrb[243].mxu0  ;;  %6367 = vmatmul.mubr.f32.gmra.mrb[92].mxu0 %v3222_v52  ;;  %v4139_v2 = vmul.f32 %v8390_v10, %v12934_v40  ;;  %v4630_v63 = vmul.f32 %v8393_v62, %v13142_v41  ;;  %v8394_v40 = vld [vmem:[%s8931_s21 + $0x278] sm:$0xff]  ;;  %v8396_v6 = vld [vmem:[%s8936_s17 + $0x270] sm:$0xff] }
 0x62a   : > { %6371 = vmatprep.mubr.f32.mxu0 %v3713_v28  ;;  %v15207_v28 = vld [vmem:[#allocation129_spill] sm:$0xff]  ;;  %v3715_v10 = vmul.f32 %v8394_v40, %v12639_v9  ;;  %v15209_v9 = vld [vmem:[#allocation184_spill] sm:$0xff] }
 0x62b   : > { %v13213_v21 = vpop.permute.xlu1 %4321  ;;  %6602 = vmatmul.mubr.f32.gmra.mrb[220].mxu1 %v4138_v31  ;;  %7760 = vset.pattern.permute.xlu0 %v15055_v53  ;;  %v3224_v18 = vmul.f32 %v8391_v60, %v15207_v28  ;;  %v4286_v31 = vpop.permute.xlu0 %4285  ;;  %v15208_v41 = vld [vmem:[#allocation117_spill] sm:$0xff] }
 0x62c   : > { %v6108_v36 = vpop.f32.mrb[244].mxu0  ;;  %6606 = vmatprep.mubr.f32.mxu1 %v4629_v0  ;;  %4525 = vperm.xlu0 %7760, %v13219_v54  }
 0x62d   : > { %v13224_v30 = vadd.f32 %v6108_v36, %v15206_v11  ;;  %3927 = vperm.xlu1 %7732, %v12911_v59   ;;  %v6110_v52 = vpop.f32.mrb[245].mxu0  ;;  %6372 = vmatmul.mubr.f32.gmra.mrb[94].mxu0 %v3223_v22  ;;  %v8395_v59 = vld [vmem:[%s8931_s21 + $0x78] sm:$0xff]  ;;  %v4140_v22 = vmul.f32 %v8393_v62, %v12866_v48  ;;  %v3225_v36 = vmul.f32 %v8394_v40, %v15209_v9  ;;  %v8397_v11 = vld [vmem:[%s8931_s21 + $0x280] sm:$0xff]  ;;  %v8400_v40 = vld [vmem:[%s8936_s17 + $0x190] sm:$0xff] }
 0x62e   : > { %6376 = vmatprep.mubr.f32.mxu0 %v3714_v23  ;;  %v4631_v39 = vmul.f32 %v8395_v59, %v4286_v31  ;;  %v3716_v48 = vmul.f32 %v8397_v11, %v12697_v56  ;;  %v4141_v62 = vmul.f32 %v8395_v59, %v12949_v27  ;;  %v8399_v31 = vld [vmem:[%s8931_s21 + $0x80] sm:$0xff]  ;;  %v15212_v9 = vld [vmem:[#allocation125_spill] sm:$0xff] }
 0x62f   : > { %v13230_v0 = vpop.permute.xlu1 %4329  ;;  %6607 = vmatmul.mubr.f32.gmra.mrb[222].mxu1 %v4139_v2  ;;  %v4632_v56 = vmul.f32 %v8399_v31, %v13157_v46  ;;  %v4294_v27 = vpop.permute.xlu0 %4293  ;;  %v4142_v46 = vmul.f32 %v8399_v31, %v12878_v58 }
 0x630   : > { %v6113_v15 = vpop.f32.mrb[246].mxu0  ;;  %6611 = vmatprep.mubr.f32.mxu1 %v4630_v63  ;;  %4537 = vperm.xlu0 %7760, %v8396_v6   ;;  %v15210_v63 = vld [vmem:[#allocation96_spill] sm:$0xff] }
 0x631   : > { %v13238_v23 = vadd.f32 %v6113_v15, %v15208_v41  ;;  %7734 = vset.pattern.permute.xlu1 %v15055_v53  ;;  %v6115_v60 = vpop.f32.mrb[247].mxu0  ;;  %6377 = vmatmul.mubr.f32.gmra.mrb[96].mxu0 %v3224_v18  ;;  %v13253_v18 = vld [vmem:[%s8936_s17 + $0x260] sm:$0xff] }
 0x632   : > { %4421 = vperm.xlu1 %7734, %v12946_v4   ;;  %6381 = vmatprep.mubr.f32.mxu0 %v3715_v10  ;;  %v15211_v10 = vld [vmem:[#allocation132_spill] sm:$0xff] }
 0x633   : > { %v13243_v2 = vpop.permute.xlu1 %4337  ;;  %6612 = vmatmul.mubr.f32.gmra.mrb[224].mxu1 %v4140_v22  ;;  %v3226_v15 = vmul.f32 %v8397_v11, %v15211_v10  ;;  %v8402_v22 = vld [vmem:[%s8931_s21 + $0x88] sm:$0xff]  ;;  %v8403_v11 = vld [vmem:[%s8936_s17 + $0x278] sm:$0xff] }
 0x634   : > { %v6118_v52 = vpop.f32.mrb[248].mxu0  ;;  %6616 = vmatprep.mubr.f32.mxu1 %v4631_v39  ;;  %7763 = vset.pattern.permute.xlu0 %v15001_v32  ;;  %v8401_v39 = vld [vmem:[%s8931_s21 + $0x288] sm:$0xff]  ;;  %v4633_v41 = vmul.f32 %v8402_v22, %v4294_v27 }
 0x635   : > { %v13250_v4 = vadd.f32 %v6118_v52, %v15210_v63  ;;  %v6120_v28 = vpop.f32.mrb[249].mxu0  ;;  %6382 = vmatmul.mubr.f32.gmra.mrb[98].mxu0 %v3225_v36  ;;  %4039 = vperm.xlu0 %7763, %v13253_v18   ;;  %v3717_v6 = vmul.f32 %v8401_v39, %v12651_v47  ;;  %v15213_v52 = vld [vmem:[#allocation185_spill] sm:$0xff]  ;;  %v15214_v63 = vld [vmem:[#allocation60_spill] sm:$0xff] }
 0x636   : > { %4425 = vperm.xlu1 %7734, %v8400_v40   ;;  %6386 = vmatprep.mubr.f32.mxu0 %v3716_v48  ;;  %v3227_v47 = vmul.f32 %v8401_v39, %v15213_v52 }
 0x637   : > { %v13260_v59 = vpop.permute.xlu1 %4341  ;;  %6617 = vmatmul.mubr.f32.gmra.mrb[226].mxu1 %v4141_v62  ;;  %v8404_v62 = vld [vmem:[%s8931_s21 + $0x290] sm:$0xff] }
 0x638   : > { %v6123_v60 = vpop.f32.mrb[250].mxu0  ;;  %6621 = vmatprep.mubr.f32.mxu1 %v4632_v56  ;;  %v3718_v28 = vmul.f32 %v8404_v62, %v15214_v63  ;;  %v15215_v56 = vld [vmem:[#allocation67_spill] sm:$0xff] }
 0x639   : > { %v13267_v36 = vadd.f32 %v6123_v60, %v15212_v9  ;;  %v6125_v48 = vpop.f32.mrb[251].mxu0  ;;  %6387 = vmatmul.mubr.f32.gmra.mrb[100].mxu0 %v3226_v15  ;;  %4051 = vperm.xlu0 %7763, %v8403_v11   ;;  %v4143_v10 = vmul.f32 %v8402_v22, %v15215_v56  ;;  %v15216_v15 = vld [vmem:[#allocation101_spill] sm:$0xff]  ;;  %v8406_v60 = vld [vmem:[%s8936_s17 + $0x288] sm:$0xff]  ;;  %v8407_v22 = vld [vmem:[%s8931_s21 + $0x298] sm:$0xff] }
 0x63a   : > { %7735 = vset.pattern.permute.xlu1 %v15001_v32  ;;  %6391 = vmatprep.mubr.f32.mxu0 %v3717_v6  ;;  %v15218_v48 = vld [vmem:[#allocation105_spill] sm:$0xff] }
 0x63b   : > { %3935 = vperm.xlu1 %7735, %v8400_v40   ;;  %6622 = vmatmul.mubr.f32.gmra.mrb[228].mxu1 %v4142_v46  ;;  %v8405_v40 = vld [vmem:[%s8931_s21 + $0x90] sm:$0xff]  ;;  %v15217_v46 = vld [vmem:[#allocation131_spill] sm:$0xff] }
 0x63c   : > { %v13274_v58 = vpop.permute.xlu1 %3851  ;;  %v6128_v31 = vpop.f32.mrb[252].mxu0  ;;  %6626 = vmatprep.mubr.f32.mxu1 %v4633_v41  ;;  %v4634_v39 = vmul.f32 %v8405_v40, %v13170_v8  ;;  %v3228_v9 = vmul.f32 %v8404_v62, %v15217_v46  ;;  %v15219_v11 = vld [vmem:[#allocation65_spill] sm:$0xff]  ;;  %v15220_v8 = vld [vmem:[#allocation62_spill] sm:$0xff] }
 0x63d   : > { %v13278_v27 = vadd.f32 %v6128_v31, %v15216_v15  ;;  %v6130_v6 = vpop.f32.mrb[253].mxu0  ;;  %6392 = vmatmul.mubr.f32.gmra.mrb[102].mxu0 %v3227_v47  ;;  %7766 = vset.pattern.permute.xlu0 %v15055_v53  ;;  %v4302_v41 = vpop.permute.xlu0 %4301  ;;  %v3719_v52 = vmul.f32 %v8407_v22, %v15219_v11  ;;  %v8408_v47 = vld [vmem:[%s8931_s21 + $0x98] sm:$0xff]  ;;  %v15221_v15 = vld [vmem:[#allocation127_spill] sm:$0xff] }
 0x63e   : > { %6396 = vmatprep.mubr.f32.mxu0 %v3718_v28  ;;  %4549 = vperm.xlu0 %7766, %v8406_v60   ;;  %v4635_v63 = vmul.f32 %v8408_v47, %v4302_v41  ;;  %v4144_v28 = vmul.f32 %v8405_v40, %v15220_v8  ;;  %v15223_v60 = vld [vmem:[#allocation186_spill] sm:$0xff]  ;;  %v8410_v41 = vld [vmem:[%s8931_s21 + $0x2a0] sm:$0xff] }
 0x63f   : > { %3939 = vperm.xlu1 %7735, %v15218_v48   ;;  %6627 = vmatmul.mubr.f32.gmra.mrb[230].mxu1 %v4143_v10  ;;  %v8409_v10 = vld [vmem:[%s8936_s17 + $0x2a0] sm:$0xff]  ;;  %v3229_v46 = vmul.f32 %v8407_v22, %v15223_v60  ;;  %v15224_v48 = vld [vmem:[#allocation104_spill] sm:$0xff] }
 0x640   : > { %v13289_v31 = vpop.permute.xlu1 %3855  ;;  %v6133_v56 = vpop.f32.mrb[254].mxu0  ;;  %6631 = vmatprep.mubr.f32.mxu1 %v4634_v39  ;;  %v3720_v11 = vmul.f32 %v8410_v41, %v15224_v48  ;;  %v4145_v39 = vmul.f32 %v8408_v47, %v12976_v13  ;;  %v8411_v8 = vld [vmem:[%s8931_s21 + $0xa0] sm:$0xff]  ;;  %v8412_v13 = vld [vmem:[%s8936_s17 + $0x290] sm:$0xff]  ;;  %v8413_v47 = vld [vmem:[%s8931_s21 + $0x2a8] sm:$0xff] }
 0x641   : > { %v13293_v6 = vadd.f32 %v6133_v56, %v15221_v15  ;;  %v6135_v62 = vpop.f32.mrb[255].mxu0  ;;  %6397 = vmatmul.mubr.f32.gmra.mrb[104].mxu0 %v3228_v9  ;;  %v15225_v9 = vld [vmem:[#allocation109_spill] sm:$0xff]  ;;  %v8414_v60 = vld [vmem:[%s8931_s21 + $0xa8] sm:$0xff] }
 0x642   : > { %6401 = vmatprep.mubr.f32.mxu0 %v3719_v52  ;;  %4561 = vperm.xlu0 %7766, %v8409_v10   ;;  %v15228_v62 = vld [vmem:[#allocation42_spill] sm:$0xff] }
 0x643   : > { %15222 = vst [vmem:[#allocation37_spill] sm:$0xff] %v13293_v6  ;;  %7737 = vset.pattern.permute.xlu1 %v15055_v53  ;;  %6632 = vmatmul.mubr.f32.gmra.mrb[232].mxu1 %v4144_v28  ;;  %v4636_v28 = vmul.f32 %v8411_v8, %v13182_v17  ;;  %v3721_v10 = vmul.f32 %v8413_v47, %v15228_v62  ;;  %v15229_v17 = vld [vmem:[#allocation88_spill] sm:$0xff] }
 0x644   : > { %4433 = vperm.xlu1 %7737, %v12997_v57   ;;  %v6138_v40 = vpop.f32.mrb[0].mxu0  ;;  %6636 = vmatprep.mubr.f32.mxu1 %v4635_v63  ;;  %v15227_v57 = vld [vmem:[#allocation134_spill] sm:$0xff]  ;;  %v4310_v63 = vpop.permute.xlu0 %4309  ;;  %v8416_v62 = vld [vmem:[%s8936_s17 + $0x2a8] sm:$0xff] }
 0x645   : > { %v13303_v52 = vadd.f32 %v6138_v40, %v15225_v9  ;;  %v13305_v56 = vpop.permute.xlu1 %4349  ;;  %v6140_v22 = vpop.f32.mrb[1].mxu0  ;;  %6402 = vmatmul.mubr.f32.gmra.mrb[106].mxu0 %v3229_v46  ;;  %v3230_v15 = vmul.f32 %v8410_v41, %v15227_v57  ;;  %v4637_v48 = vmul.f32 %v8414_v60, %v4310_v63  ;;  %v8415_v46 = vld [vmem:[%s8936_s17 + $0x1a8] sm:$0xff]  ;;  %v15230_v9 = vld [vmem:[#allocation114_spill] sm:$0xff]  ;;  %v15231_v57 = vld [vmem:[#allocation187_spill] sm:$0xff] }
 0x646   : > { %6406 = vmatprep.mubr.f32.mxu0 %v3720_v11  ;;  %7769 = vset.pattern.permute.xlu0 %v15001_v32  ;;  %v4146_v11 = vmul.f32 %v8411_v8, %v15229_v17  ;;  %v8417_v63 = vld [vmem:[%s8931_s21 + $0x2b0] sm:$0xff]  ;;  %v15233_v17 = vld [vmem:[#allocation115_spill] sm:$0xff] }
 0x647   : > { %15226 = vst [vmem:[#allocation90_spill] sm:$0xff] %v13303_v52  ;;  %6637 = vmatmul.mubr.f32.gmra.mrb[234].mxu1 %v4145_v39  ;;  %4063 = vperm.xlu0 %7769, %v8412_v13   ;;  %v3231_v13 = vmul.f32 %v8413_v47, %v15231_v57  ;;  %v15232_v52 = vld [vmem:[#allocation192_spill] sm:$0xff] }
 0x648   : > { %4437 = vperm.xlu1 %7737, %v8415_v46   ;;  %v6143_v40 = vpop.f32.mrb[2].mxu0  ;;  %6641 = vmatprep.mubr.f32.mxu1 %v4636_v28  ;;  %v3722_v6 = vmul.f32 %v8417_v63, %v15232_v52  ;;  %v4147_v28 = vmul.f32 %v8414_v60, %v12990_v33  ;;  %v15234_v52 = vld [vmem:[#allocation133_spill] sm:$0xff]  ;;  %v8419_v33 = vld [vmem:[%s8931_s21 + $0x2b8] sm:$0xff] }
 0x649   : > { %v13318_v22 = vadd.f32 %v6143_v40, %v15230_v9  ;;  %v13320_v41 = vpop.permute.xlu1 %4353  ;;  %v6145_v39 = vpop.f32.mrb[3].mxu0  ;;  %6407 = vmatmul.mubr.f32.gmra.mrb[108].mxu0 %v3230_v15  ;;  %v15235_v60 = vld [vmem:[#allocation81_spill] sm:$0xff] }
 0x64a   : > { %6411 = vmatprep.mubr.f32.mxu0 %v3721_v10  ;;  %v4318_v40 = vpop.permute.xlu0 %4317  ;;  %v8418_v10 = vld [vmem:[%s8931_s21 + $0xb0] sm:$0xff]  ;;  %v3232_v39 = vmul.f32 %v8417_v63, %v15234_v52  ;;  %v8421_v63 = vld [vmem:[%s8931_s21 + $0xb8] sm:$0xff] }
 0x64b   : > { %6642 = vmatmul.mubr.f32.gmra.mrb[236].mxu1 %v4146_v11  ;;  %4075 = vperm.xlu0 %7769, %v8416_v62   ;;  %v4638_v11 = vmul.f32 %v8418_v10, %v13198_v20  ;;  %v15237_v20 = vld [vmem:[#allocation120_spill] sm:$0xff] }
 0x64c   : > { %7738 = vset.pattern.permute.xlu1 %v15001_v32  ;;  %v6148_v8 = vpop.f32.mrb[4].mxu0  ;;  %6646 = vmatprep.mubr.f32.mxu1 %v4637_v48  ;;  %v3723_v48 = vmul.f32 %v8419_v33, %v15235_v60  ;;  %v8422_v60 = vld [vmem:[%s8931_s21 + $0x2c0] sm:$0xff] }
 0x64d   : > { %v13329_v15 = vadd.f32 %v6148_v8, %v15233_v17  ;;  %3947 = vperm.xlu1 %7738, %v8415_v46   ;;  %v6150_v47 = vpop.f32.mrb[5].mxu0  ;;  %6412 = vmatmul.mubr.f32.gmra.mrb[110].mxu0 %v3231_v13  ;;  %v8420_v46 = vld [vmem:[%s8936_s17 + $0x2b8] sm:$0xff]  ;;  %v15236_v13 = vld [vmem:[#allocation171_spill] sm:$0xff] }
 0x64e   : > { %v13333_v9 = vpop.permute.xlu1 %3863  ;;  %6416 = vmatprep.mubr.f32.mxu0 %v3722_v6  ;;  %v4148_v62 = vmul.f32 %v8418_v10, %v15236_v13  ;;  %v15238_v47 = vld [vmem:[#allocation188_spill] sm:$0xff]  ;;  %v4326_v52 = vpop.permute.xlu0 %4325 }
 0x64f   : > { %6647 = vmatmul.mubr.f32.gmra.mrb[238].mxu1 %v4147_v28  ;;  %7772 = vset.pattern.permute.xlu0 %v15055_v53  ;;  %v4639_v28 = vmul.f32 %v8421_v63, %v4318_v40  ;;  %v15239_v10 = vld [vmem:[#allocation152_spill] sm:$0xff] }
 0x650   : > { %v6153_v57 = vpop.f32.mrb[6].mxu0  ;;  %6651 = vmatprep.mubr.f32.mxu1 %v4638_v11  ;;  %4573 = vperm.xlu0 %7772, %v8420_v46   ;;  %v3233_v11 = vmul.f32 %v8419_v33, %v15238_v47  ;;  %v3724_v46 = vmul.f32 %v8422_v60, %v15239_v10  ;;  %v8424_v33 = vld [vmem:[%s8931_s21 + $0xc0] sm:$0xff] }
 0x651   : > { %v13342_v8 = vadd.f32 %v6153_v57, %v15237_v20  ;;  %3951 = vperm.xlu1 %7738, %v12980_v29   ;;  %v6155_v6 = vpop.f32.mrb[7].mxu0  ;;  %6417 = vmatmul.mubr.f32.gmra.mrb[112].mxu0 %v3232_v39  ;;  %v8423_v57 = vld [vmem:[%s8936_s17 + $0x2d0] sm:$0xff]  ;;  %v4149_v29 = vmul.f32 %v8421_v63, %v13004_v44  ;;  %v8425_v44 = vld [vmem:[%s8931_s21 + $0x2c8] sm:$0xff] }
 0x652   : > { %v13346_v17 = vpop.permute.xlu1 %3867  ;;  %6421 = vmatprep.mubr.f32.mxu0 %v3723_v48  ;;  %v15240_v39 = vld [vmem:[#allocation121_spill] sm:$0xff]  ;;  %v15242_v63 = vld [vmem:[#allocation76_spill] sm:$0xff] }
 0x653   : > { %6652 = vmatmul.mubr.f32.gmra.mrb[240].mxu1 %v4148_v62  ;;  %v4640_v62 = vmul.f32 %v8424_v33, %v13213_v21  ;;  %v15241_v20 = vld [vmem:[#allocation137_spill] sm:$0xff]  ;;  %v3725_v47 = vmul.f32 %v8425_v44, %v15242_v63 }
 0x654   : > { %v6158_v13 = vpop.f32.mrb[8].mxu0  ;;  %6656 = vmatprep.mubr.f32.mxu1 %v4639_v28  ;;  %4585 = vperm.xlu0 %7772, %v8423_v57   ;;  %v3234_v6 = vmul.f32 %v8422_v60, %v15241_v20  ;;  %v8426_v60 = vld [vmem:[%s8936_s17 + $0x2c0] sm:$0xff] }
 0x655   : > { %v13354_v40 = vadd.f32 %v6158_v13, %v15240_v39  ;;  %7740 = vset.pattern.permute.xlu1 %v15055_v53  ;;  %v6160_v48 = vpop.f32.mrb[9].mxu0  ;;  %6422 = vmatmul.mubr.f32.gmra.mrb[114].mxu0 %v3233_v11  ;;  %v15243_v11 = vld [vmem:[#allocation71_spill] sm:$0xff]  ;;  %v4334_v13 = vpop.permute.xlu0 %4333  ;;  %v8427_v39 = vld [vmem:[%s8931_s21 + $0xc8] sm:$0xff] }
 0x656   : > { %4445 = vperm.xlu1 %7740, %v13010_v38   ;;  %6426 = vmatprep.mubr.f32.mxu0 %v3724_v46  ;;  %v4150_v21 = vmul.f32 %v8424_v33, %v15243_v11  ;;  %v15244_v38 = vld [vmem:[#allocation126_spill] sm:$0xff]  ;;  %v8428_v48 = vld [vmem:[%s8936_s17 + $0x1c0] sm:$0xff]  ;;  %v8429_v33 = vld [vmem:[%s8931_s21 + $0x2d0] sm:$0xff] }
 0x657   : > { %v13361_v28 = vpop.permute.xlu1 %4361  ;;  %6657 = vmatmul.mubr.f32.gmra.mrb[242].mxu1 %v4149_v29  ;;  %v4641_v29 = vmul.f32 %v8427_v39, %v4326_v52  ;;  %v15247_v11 = vld [vmem:[#allocation27_spill] sm:$0xff] }
 0x658   : > { %v6163_v10 = vpop.f32.mrb[10].mxu0  ;;  %6661 = vmatprep.mubr.f32.mxu1 %v4640_v62  ;;  %7775 = vset.pattern.permute.xlu0 %v15001_v32  ;;  %v15246_v62 = vld [vmem:[#allocation189_spill] sm:$0xff] }
 0x659   : > { %v13368_v46 = vadd.f32 %v6163_v10, %v15244_v38  ;;  %v6165_v57 = vpop.f32.mrb[11].mxu0  ;;  %6427 = vmatmul.mubr.f32.gmra.mrb[116].mxu0 %v3234_v6  ;;  %4087 = vperm.xlu0 %7775, %v8426_v60   ;;  %v3235_v20 = vmul.f32 %v8425_v44, %v15246_v62  ;;  %v3726_v10 = vmul.f32 %v8429_v33, %v15247_v11  ;;  %v13387_v11 = vpop.permute.xlu0 %4345 }
 0x65a   : > { %4449 = vperm.xlu1 %7740, %v8428_v48   ;;  %6431 = vmatprep.mubr.f32.mxu0 %v3725_v47  ;;  %v4151_v6 = vmul.f32 %v8427_v39, %v13017_v26  ;;  %v15248_v57 = vld [vmem:[#allocation19_spill] sm:$0xff]  ;;  %v8431_v47 = vld [vmem:[%s8931_s21 + $0xd0] sm:$0xff]  ;;  %v8432_v26 = vld [vmem:[%s8931_s21 + $0x2d8] sm:$0xff] }
 0x65b   : > { %15245 = vst [vmem:[#allocation82_spill] sm:$0xff] %v13368_v46  ;;  %v13374_v63 = vpop.permute.xlu1 %4365  ;;  %6662 = vmatmul.mubr.f32.gmra.mrb[244].mxu1 %v4150_v21  ;;  %v8430_v46 = vld [vmem:[%s8936_s17 + $0x2d8] sm:$0xff]  ;;  %v4642_v44 = vmul.f32 %v8431_v47, %v13230_v0  ;;  %v15249_v21 = vld [vmem:[#allocation135_spill] sm:$0xff]  ;;  %v15250_v39 = vld [vmem:[#allocation80_spill] sm:$0xff] }
 0x65c   : > { %v6168_v38 = vpop.f32.mrb[12].mxu0  ;;  %6666 = vmatprep.mubr.f32.mxu1 %v4641_v29  ;;  %v3236_v62 = vmul.f32 %v8429_v33, %v15249_v21  ;;  %v3727_v29 = vmul.f32 %v8432_v26, %v15250_v39  ;;  %v15251_v0 = vld [vmem:[#allocation74_spill] sm:$0xff] }
 0x65d   : > { %v13380_v60 = vadd.f32 %v6168_v38, %v15248_v57  ;;  %v6170_v52 = vpop.f32.mrb[13].mxu0  ;;  %6432 = vmatmul.mubr.f32.gmra.mrb[118].mxu0 %v3235_v20  ;;  %4099 = vperm.xlu0 %7775, %v8430_v46   ;;  %v4152_v38 = vmul.f32 %v8431_v47, %v15251_v0  ;;  %v15252_v57 = vld [vmem:[#allocation22_spill] sm:$0xff]  ;;  %v8435_v47 = vld [vmem:[%s8931_s21 + $0x2e0] sm:$0xff] }
 0x65e   : > { %7741 = vset.pattern.permute.xlu1 %v15001_v32  ;;  %6436 = vmatprep.mubr.f32.mxu0 %v3726_v10  ;;  %v8433_v33 = vld [vmem:[%s8931_s21 + $0xd8] sm:$0xff] }
 0x65f   : > { %3959 = vperm.xlu1 %7741, %v8428_v48   ;;  %6667 = vmatmul.mubr.f32.gmra.mrb[246].mxu1 %v4151_v6  ;;  %v4643_v48 = vmul.f32 %v8433_v33, %v4334_v13  ;;  %v8434_v6 = vld [vmem:[%s8936_s17 + $0x2e8] sm:$0xff]  ;;  %v15253_v21 = vld [vmem:[#allocation190_spill] sm:$0xff]  ;;  %v4153_v13 = vmul.f32 %v8433_v33, %v13030_v35  ;;  %v15257_v33 = vld [vmem:[#allocation85_spill] sm:$0xff] }
 0x660   : > { %v13391_v20 = vpop.permute.xlu1 %3875  ;;  %v6173_v46 = vpop.f32.mrb[14].mxu0  ;;  %6671 = vmatprep.mubr.f32.mxu1 %v4642_v44  ;;  %v3237_v39 = vmul.f32 %v8432_v26, %v15253_v21  ;;  %v15254_v0 = vld [vmem:[#allocation98_spill] sm:$0xff]  ;;  %v8436_v26 = vld [vmem:[%s8931_s21 + $0xe0] sm:$0xff]  ;;  %v8437_v35 = vld [vmem:[%s8931_s21 + $0x2e8] sm:$0xff] }
 0x661   : > { %v13395_v52 = vadd.f32 %v6173_v46, %v15252_v57  ;;  %v6175_v10 = vpop.f32.mrb[15].mxu0  ;;  %6437 = vmatmul.mubr.f32.gmra.mrb[120].mxu0 %v3236_v62  ;;  %7778 = vset.pattern.permute.xlu0 %v15055_v53  ;;  %v3848_v44 = vpop.permute.xlu0 %3847  ;;  %v3728_v46 = vmul.f32 %v8435_v47, %v15254_v0  ;;  %v3729_v0 = vmul.f32 %v8437_v35, %v15257_v33 }
 0x662   : > { %6441 = vmatprep.mubr.f32.mxu0 %v3727_v29  ;;  %4597 = vperm.xlu0 %7778, %v8434_v6   ;;  %v15255_v29 = vld [vmem:[#allocation23_spill] sm:$0xff] }
 0x663   : > { %3963 = vperm.xlu1 %7741, %v13027_v7   ;;  %6672 = vmatmul.mubr.f32.gmra.mrb[248].mxu1 %v4152_v38  ;;  %v4644_v7 = vmul.f32 %v8436_v26, %v13243_v2  ;;  %v15256_v38 = vld [vmem:[#allocation140_spill] sm:$0xff] }
 0x664   : > { %v13404_v57 = vpop.permute.xlu1 %3879  ;;  %v6178_v62 = vpop.f32.mrb[16].mxu0  ;;  %6676 = vmatprep.mubr.f32.mxu1 %v4643_v48  ;;  %v3238_v21 = vmul.f32 %v8435_v47, %v15256_v38  ;;  %v4154_v48 = vmul.f32 %v8436_v26, %v3848_v44  ;;  %v15259_v2 = vld [vmem:[#allocation24_spill] sm:$0xff]  ;;  %v8438_v47 = vld [vmem:[%s8936_s17 + $0x2f0] sm:$0xff]  ;;  %v15261_v38 = vld [vmem:[#allocation142_spill] sm:$0xff] }
 0x665   : > { %v13408_v10 = vadd.f32 %v6178_v62, %v15255_v29  ;;  %v6180_v6 = vpop.f32.mrb[17].mxu0  ;;  %6442 = vmatmul.mubr.f32.gmra.mrb[122].mxu0 %v3237_v39  ;;  %v15258_v62 = vld [vmem:[#allocation160_spill] sm:$0xff]  ;;  %v3860_v26 = vpop.permute.xlu0 %3859  ;;  %v3239_v33 = vmul.f32 %v8437_v35, %v15261_v38  ;;  %v8443_v38 = vld [vmem:[%s8936_s17 + $0x300] sm:$0xff] }
 0x666   : > { %6446 = vmatprep.mubr.f32.mxu0 %v3728_v46  ;;  %7780 = vset.pattern.permute.xlu0 %v15001_v32 }
 0x667   : > { %7743 = vset.pattern.permute.xlu1 %v15055_v53  ;;  %6677 = vmatmul.mubr.f32.gmra.mrb[250].mxu1 %v4153_v13  ;;  %v8439_v13 = vld [vmem:[%s8931_s21 + $0xe8] sm:$0xff] }
 0x668   : > { %4457 = vperm.xlu1 %7743, %v15258_v62   ;;  %v6183_v39 = vpop.f32.mrb[18].mxu0  ;;  %6681 = vmatprep.mubr.f32.mxu1 %v4644_v7  ;;  %v4645_v44 = vmul.f32 %v8439_v13, %v13260_v59  ;;  %v8440_v7 = vld [vmem:[%s8931_s21 + $0x2f0] sm:$0xff] }
 0x669   : > { %v13419_v46 = vadd.f32 %v6183_v39, %v15259_v2  ;;  %v13421_v29 = vpop.permute.xlu1 %4373  ;;  %v6185_v6 = vpop.f32.mrb[19].mxu0  ;;  %6447 = vmatmul.mubr.f32.gmra.mrb[124].mxu0 %v3238_v21  ;;  %4111 = vperm.xlu0 %7780, %v8438_v47   ;;  %v15262_v62 = vld [vmem:[#allocation89_spill] sm:$0xff]  ;;  %v8441_v2 = vld [vmem:[%s8936_s17 + $0x1d8] sm:$0xff]  ;;  %v4155_v21 = vmul.f32 %v8439_v13, %v13274_v58 }
 0x66a   : > { %6451 = vmatprep.mubr.f32.mxu0 %v3729_v0  ;;  %v3730_v39 = vmul.f32 %v8440_v7, %v15262_v62  ;;  %v15263_v47 = vld [vmem:[#allocation25_spill] sm:$0xff]  ;;  %v15265_v62 = vld [vmem:[#allocation138_spill] sm:$0xff] }
 0x66b   : > { %15260 = vst [vmem:[#allocation66_spill] sm:$0xff] %v13419_v46  ;;  %6682 = vmatmul.mubr.f32.gmra.mrb[252].mxu1 %v4154_v48  ;;  %v8442_v48 = vld [vmem:[%s8931_s21 + $0xf0] sm:$0xff]  ;;  %v8444_v58 = vld [vmem:[%s8931_s21 + $0x2f8] sm:$0xff] }
 0x66c   : > { %4461 = vperm.xlu1 %7743, %v8441_v2   ;;  %v6188_v6 = vpop.f32.mrb[20].mxu0  ;;  %6686 = vmatprep.mubr.f32.mxu1 %v4645_v44  ;;  %v4646_v35 = vmul.f32 %v8442_v48, %v13387_v11  ;;  %v3240_v44 = vmul.f32 %v8440_v7, %v15265_v62  ;;  %v15266_v13 = vld [vmem:[#allocation193_spill] sm:$0xff]  ;;  %v15267_v11 = vld [vmem:[#allocation136_spill] sm:$0xff]  ;;  %v8445_v7 = vld [vmem:[%s8931_s21 + $0xf8] sm:$0xff] }
 0x66d   : > { %v13432_v46 = vadd.f32 %v6188_v6, %v15263_v47  ;;  %v13434_v59 = vpop.permute.xlu1 %4377  ;;  %v6190_v0 = vpop.f32.mrb[21].mxu0  ;;  %6452 = vmatmul.mubr.f32.gmra.mrb[126].mxu0 %v3239_v33  ;;  %7782 = vset.pattern.permute.xlu0 %v15055_v53  ;;  %v3731_v6 = vmul.f32 %v8444_v58, %v15266_v13 }
 0x66e   : > { %6456 = vmatprep.mubr.f32.mxu0 %v3730_v39  ;;  %4609 = vperm.xlu0 %7782, %v8443_v38   ;;  %v4358_v33 = vpop.permute.xlu0 %4357  ;;  %v4156_v0 = vmul.f32 %v8442_v48, %v13289_v31  ;;  %v8446_v31 = vld [vmem:[%s8936_s17 + $0x308] sm:$0xff]  ;;  %v8447_v48 = vld [vmem:[%s8931_s21 + $0x300] sm:$0xff] }
 0x66f   : > { %15264 = vst [vmem:[#allocation95_spill] sm:$0xff] %v13432_v46  ;;  %6687 = vmatmul.mubr.f32.gmra.mrb[254].mxu1 %v4155_v21  ;;  %v4647_v21 = vmul.f32 %v8445_v7, %v13305_v56  ;;  %v4157_v46 = vmul.f32 %v8445_v7, %v3860_v26  ;;  %v15273_v7 = vld [vmem:[#allocation143_spill] sm:$0xff] }
 0x670   : > { %7744 = vset.pattern.permute.xlu1 %v15001_v32  ;;  %v6193_v47 = vpop.f32.mrb[22].mxu0  ;;  %6691 = vmatprep.mubr.f32.mxu1 %v4646_v35  ;;  %v15269_v35 = vld [vmem:[#allocation144_spill] sm:$0xff] }
 0x671   : > { %v13446_v39 = vadd.f32 %v6193_v47, %v15267_v11  ;;  %3971 = vperm.xlu1 %7744, %v8441_v2   ;;  %v6195_v38 = vpop.f32.mrb[23].mxu0  ;;  %6457 = vmatmul.mubr.f32.gmra.mrb[128].mxu0 %v3240_v44  ;;  %v3241_v13 = vmul.f32 %v8444_v58, %v15269_v35  ;;  %v15270_v47 = vld [vmem:[#allocation172_spill] sm:$0xff]  ;;  %v15271_v11 = vld [vmem:[#allocation139_spill] sm:$0xff]  ;;  %v3242_v35 = vmul.f32 %v8447_v48, %v15273_v7 }
 0x672   : > { %v13450_v62 = vpop.permute.xlu1 %3887  ;;  %6461 = vmatprep.mubr.f32.mxu0 %v3731_v6  ;;  %7784 = vset.pattern.permute.xlu0 %v15001_v32  ;;  %v3732_v2 = vmul.f32 %v8447_v48, %v15270_v47  ;;  %v15272_v38 = vld [vmem:[#allocation157_spill] sm:$0xff] }
 0x673   : > { %15268 = vst [vmem:[#allocation41_spill] sm:$0xff] %v13446_v39  ;;  %6692 = vmatmul.mubr.f32.gmra.mrb[0].mxu1 %v4156_v0  ;;  %4123 = vperm.xlu0 %7784, %v8446_v31   ;;  %v8448_v39 = vld [vmem:[%s8931_s21 + $0x100] sm:$0xff]  ;;  %v4370_v0 = vpop.permute.xlu0 %4369  ;;  %v15274_v31 = vld [vmem:[#allocation194_spill] sm:$0xff] }
 0x674   : > { %v6198_v44 = vpop.f32.mrb[24].mxu0  ;;  %6696 = vmatprep.mubr.f32.mxu1 %v4647_v21  ;;  %v4648_v58 = vmul.f32 %v8448_v39, %v13320_v41  ;;  %v8449_v21 = vld [vmem:[%s8931_s21 + $0x308] sm:$0xff] }
 0x675   : > { %v13458_v56 = vadd.f32 %v6198_v44, %v15271_v11  ;;  %3975 = vperm.xlu1 %7744, %v15272_v38   ;;  %v6200_v6 = vpop.f32.mrb[25].mxu0  ;;  %6462 = vmatmul.mubr.f32.gmra.mrb[130].mxu0 %v3241_v13  ;;  %v3733_v47 = vmul.f32 %v8449_v21, %v15274_v31  ;;  %v8450_v11 = vld [vmem:[%s8931_s21 + $0x108] sm:$0xff]  ;;  %v4158_v13 = vmul.f32 %v8448_v39, %v13333_v9 }
 0x676   : > { %v13463_v26 = vpop.permute.xlu1 %3891  ;;  %6466 = vmatprep.mubr.f32.mxu0 %v3732_v2  ;;  %v4649_v38 = vmul.f32 %v8450_v11, %v4358_v33  ;;  %v15275_v6 = vld [vmem:[#allocation141_spill] sm:$0xff]  ;;  %v4159_v39 = vmul.f32 %v8450_v11, %v13346_v17 }
 0x677   : > { %6697 = vmatmul.mubr.f32.gmra.mrb[2].mxu1 %v4157_v46  ;;  %7785 = vset.pattern.permute.xlu0 %v15055_v53  ;;  %v15276_v46 = vld [vmem:[#allocation191_spill] sm:$0xff]  ;;  %v3872_v9 = vpop.permute.xlu0 %3871 }
 0x678   : > { %v6203_v44 = vpop.f32.mrb[26].mxu0  ;;  %6701 = vmatprep.mubr.f32.mxu1 %v4648_v58  ;;  %v3243_v48 = vmul.f32 %v8449_v21, %v15276_v46  ;;  %v15277_v58 = vld [vmem:[#allocation145_spill] sm:$0xff]  ;;  %v8453_v46 = vld [vmem:[%s8931_s21 + $0x118] sm:$0xff] }
 0x679   : > { %v13472_v41 = vadd.f32 %v6203_v44, %v15275_v6  ;;  %7746 = vset.pattern.permute.xlu1 %v15055_v53  ;;  %v6205_v2 = vpop.f32.mrb[27].mxu0  ;;  %6467 = vmatmul.mubr.f32.gmra.mrb[132].mxu0 %v3242_v35  ;;  %v8451_v35 = vld [vmem:[%s8931_s21 + $0x110] sm:$0xff]  ;;  %v15278_v6 = vld [vmem:[#allocation147_spill] sm:$0xff] }
 0x67a   : > { %4469 = vperm.xlu1 %7746, %v13070_v45   ;;  %6471 = vmatprep.mubr.f32.mxu0 %v3733_v47  ;;  %v4650_v45 = vmul.f32 %v8451_v35, %v13361_v28  ;;  %v8452_v47 = vld [vmem:[%s8936_s17 + $0x1f0] sm:$0xff]  ;;  %v8454_v28 = vld [vmem:[%s8931_s21 + $0x120] sm:$0xff] }
 0x67b   : > { %v13477_v7 = vpop.permute.xlu1 %4385  ;;  %6702 = vmatmul.mubr.f32.gmra.mrb[4].mxu1 %v4158_v13  ;;  %v4160_v13 = vmul.f32 %v8451_v35, %v3872_v9  ;;  %v3884_v2 = vpop.permute.xlu0 %3883 }
 0x67c   : > { %v6208_v33 = vpop.f32.mrb[28].mxu0  ;;  %6706 = vmatprep.mubr.f32.mxu1 %v4649_v38 }
 0x67d   : > { %v13481_v31 = vadd.f32 %v6208_v33, %v15277_v58  ;;  %v6210_v44 = vpop.f32.mrb[29].mxu0  ;;  %6472 = vmatmul.mubr.f32.gmra.mrb[134].mxu0 %v3243_v48  ;;  %v4651_v48 = vmul.f32 %v8453_v46, %v13374_v63  ;;  %v4652_v33 = vmul.f32 %v8454_v28, %v4370_v0  ;;  %v4162_v0 = vmul.f32 %v8454_v28, %v13404_v57 }
 0x67e   : > { %4473 = vperm.xlu1 %7746, %v8452_v47   ;;  %v15279_v44 = vld [vmem:[#allocation149_spill] sm:$0xff] }
 0x67f   : > { %v13486_v21 = vpop.permute.xlu1 %4389  ;;  %6707 = vmatmul.mubr.f32.gmra.mrb[6].mxu1 %v4159_v39  ;;  %v4161_v39 = vmul.f32 %v8453_v46, %v13391_v20  ;;  %v4382_v63 = vpop.permute.xlu0 %4381  ;;  %v8455_v20 = vld [vmem:[%s8931_s21 + $0x128] sm:$0xff] }
 0x680   : > { %v6213_v38 = vpop.f32.mrb[30].mxu0  ;;  %6711 = vmatprep.mubr.f32.mxu1 %v4650_v45  ;;  %v4653_v46 = vmul.f32 %v8455_v20, %v13421_v29  ;;  %v8457_v29 = vld [vmem:[%s8936_s17 + $0x208] sm:$0xff] }
 0x681   : > { %v13489_v17 = vadd.f32 %v6213_v38, %v15278_v6  ;;  %v6215_v11 = vpop.f32.mrb[31].mxu0 }
 0x682   : > { %7747 = vset.pattern.permute.xlu1 %v15001_v32 }
 0x683   : > { %3983 = vperm.xlu1 %7747, %v8452_v47   ;;  %6712 = vmatmul.mubr.f32.gmra.mrb[8].mxu1 %v4160_v13  ;;  %v15280_v13 = vld [vmem:[#allocation151_spill] sm:$0xff] }
 0x684   : > { %v13495_v58 = vpop.permute.xlu1 %3899  ;;  %v6218_v9 = vpop.f32.mrb[32].mxu0  ;;  %6716 = vmatprep.mubr.f32.mxu1 %v4651_v48 }
 0x685   : > { %v13499_v35 = vadd.f32 %v6218_v9, %v15279_v44  ;;  %v6220_v45 = vpop.f32.mrb[33].mxu0 }
 0x686   : > { %v4394_v45 = vpop.permute.xlu0 %4393 }
 0x687   : > { %3987 = vperm.xlu1 %7747, %v13088_v24   ;;  %6717 = vmatmul.mubr.f32.gmra.mrb[10].mxu1 %v4161_v39  ;;  %v4163_v24 = vmul.f32 %v8455_v20, %v3884_v2  ;;  %v8456_v39 = vld [vmem:[%s8931_s21 + $0x130] sm:$0xff]  ;;  %v8458_v2 = vld [vmem:[%s8931_s21 + $0x138] sm:$0xff] }
 0x688   : > { %v13502_v38 = vpop.permute.xlu1 %3903  ;;  %v6223_v47 = vpop.f32.mrb[34].mxu0  ;;  %6721 = vmatprep.mubr.f32.mxu1 %v4652_v33  ;;  %v15281_v33 = vld [vmem:[#allocation153_spill] sm:$0xff]  ;;  %v4654_v44 = vmul.f32 %v8456_v39, %v13434_v59 }
 0x689   : > { %v13506_v6 = vadd.f32 %v6223_v47, %v15280_v13  ;;  %v6225_v11 = vpop.f32.mrb[35].mxu0  ;;  %v15282_v13 = vld [vmem:[#allocation155_spill] sm:$0xff] }
 0x68b   : > { %7749 = vset.pattern.permute.xlu1 %v15055_v53  ;;  %6722 = vmatmul.mubr.f32.gmra.mrb[12].mxu1 %v4162_v0  ;;  %v4655_v0 = vmul.f32 %v8458_v2, %v4382_v63 }
 0x68c   : > { %4481 = vperm.xlu1 %7749, %v13121_v51   ;;  %v6228_v48 = vpop.f32.mrb[36].mxu0  ;;  %6726 = vmatprep.mubr.f32.mxu1 %v4653_v46  ;;  %v4164_v51 = vmul.f32 %v8456_v39, %v13450_v62  ;;  %v8459_v62 = vld [vmem:[%s8931_s21 + $0x140] sm:$0xff] }
 0x68d   : > { %v13513_v9 = vadd.f32 %v6228_v48, %v15281_v33  ;;  %v4398_v57 = vpop.permute.xlu1 %4397  ;;  %v6230_v28 = vpop.f32.mrb[37].mxu0  ;;  %v4165_v48 = vmul.f32 %v8458_v2, %v13463_v26  ;;  %v15283_v33 = vld [vmem:[#allocation29_spill] sm:$0xff]  ;;  %v4656_v39 = vmul.f32 %v8459_v62, %v13477_v7 }
 0x68f   : > { %6727 = vmatmul.mubr.f32.gmra.mrb[14].mxu1 %v4163_v24  ;;  %v3896_v24 = vpop.permute.xlu0 %3895 }
 0x690   : > { %4485 = vperm.xlu1 %7749, %v8457_v29   ;;  %v6233_v47 = vpop.f32.mrb[38].mxu0  ;;  %6731 = vmatprep.mubr.f32.mxu1 %v4654_v44 }
 0x691   : > { %v13521_v11 = vadd.f32 %v6233_v47, %v15282_v13  ;;  %v4402_v20 = vpop.permute.xlu1 %4401  ;;  %v6235_v46 = vpop.f32.mrb[39].mxu0  ;;  %v4166_v47 = vmul.f32 %v8459_v62, %v3896_v24  ;;  %v15284_v13 = vld [vmem:[#allocation156_spill] sm:$0xff] }
 0x692   : > { %v8460_v46 = vld [vmem:[%s8931_s21 + $0x148] sm:$0xff] }
 0x693   : > { %6732 = vmatmul.mubr.f32.gmra.mrb[16].mxu1 %v4164_v51  ;;  %v3908_v2 = vpop.permute.xlu0 %3907  ;;  %v4167_v24 = vmul.f32 %v8460_v46, %v13495_v58 }
 0x694   : > { %7750 = vset.pattern.permute.xlu1 %v15001_v32  ;;  %v6238_v59 = vpop.f32.mrb[40].mxu0  ;;  %6736 = vmatprep.mubr.f32.mxu1 %v4655_v0 }
 0x695   : > { %v13526_v28 = vadd.f32 %v6238_v59, %v15283_v33  ;;  %3995 = vperm.xlu1 %7750, %v8457_v29   ;;  %v6240_v63 = vpop.f32.mrb[41].mxu0  ;;  %v4657_v29 = vmul.f32 %v8460_v46, %v13486_v21  ;;  %v8461_v33 = vld [vmem:[%s8931_s21 + $0x150] sm:$0xff] }
 0x696   : > { %v3912_v44 = vpop.permute.xlu1 %3911  ;;  %v4658_v63 = vmul.f32 %v8461_v33, %v4394_v45  ;;  %v4168_v45 = vmul.f32 %v8461_v33, %v13502_v38  ;;  %v8464_v38 = vld [vmem:[%s8931_s21 + $0x160] sm:$0xff] }
 0x697   : > { %6737 = vmatmul.mubr.f32.gmra.mrb[18].mxu1 %v4165_v48  ;;  %v15285_v48 = vld [vmem:[#allocation158_spill] sm:$0xff]  ;;  %v4406_v21 = vpop.permute.xlu0 %4405  ;;  %v4660_v33 = vmul.f32 %v8464_v38, %v4402_v20 }
 0x698   : > { %v6243_v51 = vpop.f32.mrb[42].mxu0  ;;  %6741 = vmatprep.mubr.f32.mxu1 %v4656_v39 }
 0x699   : > { %v13531_v0 = vadd.f32 %v6243_v51, %v15284_v13  ;;  %3999 = vperm.xlu1 %7750, %v13099_v42   ;;  %v6245_v26 = vpop.f32.mrb[43].mxu0  ;;  %v15287_v51 = vld [vmem:[#allocation146_spill] sm:$0xff] }
 0x69a   : > { %v3916_v59 = vpop.permute.xlu1 %3915  ;;  %v8462_v26 = vld [vmem:[%s8931_s21 + $0x158] sm:$0xff] }
 0x69b   : > { %6742 = vmatmul.mubr.f32.gmra.mrb[20].mxu1 %v4166_v47  ;;  %v4659_v46 = vmul.f32 %v8462_v26, %v4398_v57 }
 0x69c   : > { %v6248_v7 = vpop.f32.mrb[44].mxu0  ;;  %6746 = vmatprep.mubr.f32.mxu1 %v4657_v29  ;;  %v8463_v29 = vld [vmem:[%s8936_s17 + $0x220] sm:$0xff] }
 0x69d   : > { %v13539_v62 = vadd.f32 %v6248_v7, %v15285_v48  ;;  %7752 = vset.pattern.permute.xlu1 %v15055_v53  ;;  %v6250_v42 = vpop.f32.mrb[45].mxu0 }
 0x69e   : > { %4493 = vperm.xlu1 %7752, %v13135_v14   ;;  %v4169_v14 = vmul.f32 %v8462_v26, %v3908_v2  ;;  %v4170_v2 = vmul.f32 %v8464_v38, %v3912_v44 }
 0x69f   : > { %15286 = vst [vmem:[#allocation122_spill] sm:$0xff] %v13539_v62  ;;  %v4410_v39 = vpop.permute.xlu1 %4409  ;;  %6747 = vmatmul.mubr.f32.gmra.mrb[22].mxu1 %v4167_v24  ;;  %v15288_v24 = vld [vmem:[#allocation159_spill] sm:$0xff]  ;;  %v4418_v62 = vpop.permute.xlu0 %4417 }
 0x6a0   : > { %v6253_v47 = vpop.f32.mrb[46].mxu0  ;;  %6751 = vmatprep.mubr.f32.mxu1 %v4658_v63 }
 0x6a1   : > { %v13545_v13 = vadd.f32 %v6253_v47, %v15287_v51  ;;  %v6255_v58 = vpop.f32.mrb[47].mxu0  ;;  %v8465_v51 = vld [vmem:[%s8931_s21 + $0x168] sm:$0xff] }
 0x6a2   : > { %4497 = vperm.xlu1 %7752, %v8463_v29   ;;  %v15289_v58 = vld [vmem:[#allocation70_spill] sm:$0xff] }
 0x6a3   : > { %v4414_v7 = vpop.permute.xlu1 %4413  ;;  %6752 = vmatmul.mubr.f32.gmra.mrb[24].mxu1 %v4168_v45  ;;  %v4661_v45 = vmul.f32 %v8465_v51, %v4406_v21  ;;  %v8466_v21 = vld [vmem:[%s8931_s21 + $0x170] sm:$0xff] }
 0x6a4   : > { %v6258_v48 = vpop.f32.mrb[48].mxu0  ;;  %6756 = vmatprep.mubr.f32.mxu1 %v4659_v46  ;;  %v4662_v44 = vmul.f32 %v8466_v21, %v4410_v39 }
 0x6a5   : > { %v13550_v42 = vadd.f32 %v6258_v48, %v15288_v24  ;;  %v6260_v63 = vpop.f32.mrb[49].mxu0  ;;  %v3920_v48 = vpop.permute.xlu0 %3919 }
 0x6a6   : > { %7753 = vset.pattern.permute.xlu1 %v15001_v32  ;;  %v4172_v38 = vmul.f32 %v8466_v21, %v3920_v48 }
 0x6a7   : > { %4007 = vperm.xlu1 %7753, %v8463_v29   ;;  %6757 = vmatmul.mubr.f32.gmra.mrb[26].mxu1 %v4169_v14  ;;  %v4171_v29 = vmul.f32 %v8465_v51, %v3916_v59  ;;  %v15290_v14 = vld [vmem:[#allocation161_spill] sm:$0xff] }
 0x6a8   : > { %v3924_v57 = vpop.permute.xlu1 %3923  ;;  %v6263_v47 = vpop.f32.mrb[50].mxu0  ;;  %6761 = vmatprep.mubr.f32.mxu1 %v4660_v33 }
 0x6a9   : > { %v13556_v26 = vadd.f32 %v6263_v47, %v15289_v58  ;;  %v6265_v46 = vpop.f32.mrb[51].mxu0  ;;  %v15292_v47 = vld [vmem:[#allocation148_spill] sm:$0xff] }
 0x6aa   : > { %v3932_v46 = vpop.permute.xlu0 %3931 }
 0x6ab   : > { %4011 = vperm.xlu1 %7753, %v13152_v61   ;;  %6762 = vmatmul.mubr.f32.gmra.mrb[28].mxu1 %v4170_v2 }
 0x6ac   : > { %v3928_v20 = vpop.permute.xlu1 %3927  ;;  %v6268_v24 = vpop.f32.mrb[52].mxu0  ;;  %6766 = vmatprep.mubr.f32.mxu1 %v4661_v45  ;;  %v8467_v45 = vld [vmem:[%s8931_s21 + $0x178] sm:$0xff] }
 0x6ad   : > { %v13560_v63 = vadd.f32 %v6268_v24, %v15290_v14  ;;  %v6270_v33 = vpop.f32.mrb[53].mxu0  ;;  %v4663_v58 = vmul.f32 %v8467_v45, %v4414_v7  ;;  %v8468_v24 = vld [vmem:[%s8931_s21 + $0x180] sm:$0xff]  ;;  %v8469_v14 = vld [vmem:[%s8936_s17 + $0x238] sm:$0xff]  ;;  %v4173_v48 = vmul.f32 %v8467_v45, %v3924_v57  ;;  %v8470_v57 = vld [vmem:[%s8931_s21 + $0x188] sm:$0xff] }
 0x6ae   : > { %v4664_v39 = vmul.f32 %v8468_v24, %v4418_v62  ;;  %v15296_v62 = vld [vmem:[#allocation35_spill] sm:$0xff] }
 0x6af   : > { %15291 = vst [vmem:[#allocation162_spill] sm:$0xff] %v13560_v63  ;;  %7755 = vset.pattern.permute.xlu1 %v15055_v53  ;;  %6767 = vmatmul.mubr.f32.gmra.mrb[30].mxu1 %v4171_v29 }
 0x6b0   : > { %4505 = vperm.xlu1 %7755, %v13185_v37   ;;  %v6273_v61 = vpop.f32.mrb[54].mxu0  ;;  %6771 = vmatprep.mubr.f32.mxu1 %v4662_v44  ;;  %v15294_v37 = vld [vmem:[#allocation163_spill] sm:$0xff] }
 0x6b1   : > { %v13566_v2 = vadd.f32 %v6273_v61, %v15292_v47  ;;  %v4422_v59 = vpop.permute.xlu1 %4421  ;;  %v6275_v51 = vpop.f32.mrb[55].mxu0  ;;  %v4174_v61 = vmul.f32 %v8468_v24, %v3928_v20 }
 0x6b2   : > { %v4665_v45 = vmul.f32 %v8470_v57, %v4422_v59  ;;  %v8472_v59 = vld [vmem:[%s8931_s21 + $0x190] sm:$0xff] }
 0x6b3   : > { %15293 = vst [vmem:[#allocation116_spill] sm:$0xff] %v13566_v2  ;;  %6772 = vmatmul.mubr.f32.gmra.mrb[32].mxu1 %v4172_v38  ;;  %v4430_v38 = vpop.permute.xlu0 %4429 }
 0x6b4   : > { %4509 = vperm.xlu1 %7755, %v8469_v14   ;;  %v6278_v29 = vpop.f32.mrb[56].mxu0  ;;  %6776 = vmatprep.mubr.f32.mxu1 %v4663_v58 }
 0x6b5   : > { %v13572_v33 = vadd.f32 %v6278_v29, %v15294_v37  ;;  %v4426_v21 = vpop.permute.xlu1 %4425  ;;  %v6280_v44 = vpop.f32.mrb[57].mxu0  ;;  %v4714_v29 = vld [vmem:[%s8938_s30] sm:$0xff] }
 0x6b6   : > { %v15298_v44 = vld [vmem:[#allocation57_spill] sm:$0xff] }
 0x6b7   : > { %15295 = vst [vmem:[#allocation91_spill] sm:$0xff] %v13572_v33  ;;  %6777 = vmatmul.mubr.f32.gmra.mrb[34].mxu1 %v4173_v48  ;;  %v4442_v63 = vpop.permute.xlu0 %4441 }
 0x6b8   : > { %7756 = vset.pattern.permute.xlu1 %v15001_v32  ;;  %v6283_v7 = vpop.f32.mrb[58].mxu0  ;;  %6781 = vmatprep.mubr.f32.mxu1 %v4664_v39  ;;  %v4175_v39 = vmul.f32 %v8470_v57, %v3932_v46  ;;  %v8473_v46 = vld [vmem:[%s8931_s21 + $0x198] sm:$0xff] }
 0x6b9   : > { %v13576_v47 = vadd.f32 %v6283_v7, %v15296_v62  ;;  %4019 = vperm.xlu1 %7756, %v8469_v14   ;;  %v6285_v51 = vpop.f32.mrb[59].mxu0  ;;  %v15299_v7 = vld [vmem:[#allocation165_spill] sm:$0xff]  ;;  %v8471_v14 = vld [vmem:[%s8936_s17 + $0x240] sm:$0xff]  ;;  %v15300_v57 = vld [vmem:[#allocation150_spill] sm:$0xff] }
 0x6ba   : > { %v3936_v58 = vpop.permute.xlu1 %3935  ;;  %v6543_v37 = vpop.f32.mrb[196].mxu1 }
 0x6bb   : > { %15297 = vst [vmem:[#allocation30_spill] sm:$0xff] %v13576_v47  ;;  %v6544_v48 = vadd.f32 %v6543_v37, %v15298_v44  ;;  %v6545_v33 = vpop.f32.mrb[197].mxu1  ;;  %6782 = vmatmul.mubr.f32.gmra.mrb[36].mxu1 %v4174_v61  ;;  %v4666_v47 = vmul.f32 %v8472_v59, %v4426_v21  ;;  %v4176_v61 = vmul.f32 %v8472_v59, %v3936_v58  ;;  %v8474_v58 = vld [vmem:[%s8931_s21 + $0x1a0] sm:$0xff] }
 0x6bc   : > { %v6288_v20 = vpop.f32.mrb[60].mxu0  ;;  %6786 = vmatprep.mubr.f32.mxu1 %v4665_v45  ;;  %v4667_v33 = vmul.f32 %v8473_v46, %v4430_v38  ;;  %v15302_v59 = vld [vmem:[#allocation39_spill] sm:$0xff] }
 0x6bd   : > { %v7032_v24 = vadd.f32 %v6544_v48, %v4714_v29  ;;  %v13582_v62 = vadd.f32 %v6288_v20, %v15299_v7  ;;  %4023 = vperm.xlu1 %7756, %v8471_v14   ;;  %v6290_v51 = vpop.f32.mrb[61].mxu0  ;;  %v3944_v48 = vpop.permute.xlu0 %3943  ;;  %v8475_v7 = vld [vmem:[%s8936_s17 + $0x250] sm:$0xff] }
 0x6be   : > { %v3940_v2 = vpop.permute.xlu1 %3939  ;;  %v4178_v51 = vmul.f32 %v8474_v58, %v3944_v48  ;;  %v15303_v48 = vld [vmem:[#allocation166_spill] sm:$0xff] }
 0x6bf   : > { %7130 = vst [vmem:[%s8938_s30] sm:$0xff] %v7032_v24  ;;  %6787 = vmatmul.mubr.f32.gmra.mrb[38].mxu1 %v4175_v39  ;;  %v15301_v39 = vld [vmem:[#allocation36_spill] sm:$0xff] }
 0x6c0   : > { %v6293_v37 = vpop.f32.mrb[62].mxu0  ;;  %6791 = vmatprep.mubr.f32.mxu1 %v4666_v47  ;;  %v4177_v47 = vmul.f32 %v8473_v46, %v3940_v2  ;;  %v8477_v46 = vld [vmem:[%s8931_s21 + $0x1b0] sm:$0xff] }
 0x6c1   : > { %v13589_v45 = vadd.f32 %v6293_v37, %v15300_v57  ;;  %7758 = vset.pattern.permute.xlu1 %v15055_v53  ;;  %v6295_v29 = vpop.f32.mrb[63].mxu0  ;;  %v4670_v57 = vmul.f32 %v8477_v46, %v4442_v63 }
 0x6c2   : > { %4517 = vperm.xlu1 %7758, %v13201_v1  }
 0x6c3   : > { %v4434_v21 = vpop.permute.xlu1 %4433  ;;  %6792 = vmatmul.mubr.f32.gmra.mrb[40].mxu1 %v4176_v61  ;;  %v8476_v61 = vld [vmem:[%s8931_s21 + $0x1a8] sm:$0xff] }
 0x6c4   : > { %v6298_v44 = vpop.f32.mrb[64].mxu0  ;;  %6796 = vmatprep.mubr.f32.mxu1 %v4667_v33  ;;  %v4668_v24 = vmul.f32 %v8474_v58, %v4434_v21 }
 0x6c5   : > { %v13594_v20 = vadd.f32 %v6298_v44, %v15301_v39  ;;  %v6300_v38 = vpop.f32.mrb[65].mxu0 }
 0x6c6   : > { %4521 = vperm.xlu1 %7758, %v8475_v7  }
 0x6c7   : > { %v4438_v14 = vpop.permute.xlu1 %4437  ;;  %6797 = vmatmul.mubr.f32.gmra.mrb[42].mxu1 %v4177_v47 }
 0x6c8   : > { %v6303_v1 = vpop.f32.mrb[66].mxu0  ;;  %6801 = vmatprep.mubr.f32.mxu1 %v4668_v24  ;;  %v4669_v2 = vmul.f32 %v8476_v61, %v4438_v14 }
 0x6c9   : > { %v13599_v37 = vadd.f32 %v6303_v1, %v15302_v59  ;;  %v6305_v33 = vpop.f32.mrb[67].mxu0  ;;  %v3956_v59 = vpop.permute.xlu0 %3955 }
 0x6ca   : > { %7759 = vset.pattern.permute.xlu1 %v15001_v32  ;;  %v15306_v33 = vld [vmem:[#allocation40_spill] sm:$0xff] }
 0x6cb   : > { %4031 = vperm.xlu1 %7759, %v8475_v7   ;;  %6802 = vmatmul.mubr.f32.gmra.mrb[44].mxu1 %v4178_v51  ;;  %v15304_v7 = vld [vmem:[#allocation167_spill] sm:$0xff]  ;;  %v4715_v51 = vld [vmem:[%s8938_s30 + $0x8] sm:$0xff] }
 0x6cc   : > { %v3948_v29 = vpop.permute.xlu1 %3947  ;;  %v6308_v21 = vpop.f32.mrb[68].mxu0  ;;  %6806 = vmatprep.mubr.f32.mxu1 %v4669_v2 }
 0x6cd   : > { %v4179_v44 = vmul.f32 %v8476_v61, %v3948_v29  ;;  %v13605_v47 = vadd.f32 %v6308_v21, %v15303_v48  ;;  %v6310_v39 = vpop.f32.mrb[69].mxu0  ;;  %v8478_v48 = vld [vmem:[%s8931_s21 + $0x1b8] sm:$0xff] }
 0x6ce   : > { %v4181_v39 = vmul.f32 %v8478_v48, %v3956_v59 }
 0x6cf   : > { %4035 = vperm.xlu1 %7759, %v13219_v54   ;;  %6807 = vmatmul.mubr.f32.gmra.mrb[46].mxu1 %v4179_v44 }
 0x6d0   : > { %v3952_v38 = vpop.permute.xlu1 %3951  ;;  %v6313_v58 = vpop.f32.mrb[70].mxu0  ;;  %6811 = vmatprep.mubr.f32.mxu1 %v4670_v57  ;;  %v15307_v57 = vld [vmem:[#allocation154_spill] sm:$0xff] }
 0x6d1   : > { %v4180_v24 = vmul.f32 %v8477_v46, %v3952_v38  ;;  %v13609_v14 = vadd.f32 %v6313_v58, %v15304_v7  ;;  %v6315_v63 = vpop.f32.mrb[71].mxu0  ;;  %v4716_v58 = vld [vmem:[%s8938_s30 + $0x10] sm:$0xff] }
 0x6d2   : > { %v6548_v1 = vpop.f32.mrb[198].mxu1 }
 0x6d3   : > { %15305 = vst [vmem:[#allocation44_spill] sm:$0xff] %v13609_v14  ;;  %v6549_v61 = vadd.f32 %v6548_v1, %v15306_v33  ;;  %7761 = vset.pattern.permute.xlu1 %v15055_v53  ;;  %6812 = vmatmul.mubr.f32.gmra.mrb[48].mxu1 %v4180_v24  ;;  %v6550_v54 = vpop.f32.mrb[199].mxu1  ;;  %v15309_v24 = vld [vmem:[#allocation93_spill] sm:$0xff]  ;;  %v8479_v33 = vld [vmem:[%s8936_s17 + $0x268] sm:$0xff] }
 0x6d4   : > { %4529 = vperm.xlu1 %7761, %v13253_v18   ;;  %v6318_v2 = vpop.f32.mrb[72].mxu0  ;;  %v4454_v18 = vpop.permute.xlu0 %4453  ;;  %v15310_v54 = vld [vmem:[#allocation169_spill] sm:$0xff]  ;;  %v4719_v14 = vld [vmem:[%s8938_s30 + $0x28] sm:$0xff] }
 0x6d5   : > { %v7033_v46 = vadd.f32 %v6549_v61, %v4715_v51  ;;  %v13616_v29 = vadd.f32 %v6318_v2, %v15307_v57  ;;  %v4446_v21 = vpop.permute.xlu1 %4445  ;;  %v6320_v44 = vpop.f32.mrb[73].mxu0 }
 0x6d6   : > { %v4671_v38 = vmul.f32 %v8478_v48, %v4446_v21  ;;  %v6553_v7 = vpop.f32.mrb[200].mxu1  ;;  %v8480_v21 = vld [vmem:[%s8931_s21 + $0x1c0] sm:$0xff] }
 0x6d7   : > { %15308 = vst [vmem:[#allocation87_spill] sm:$0xff] %v13616_v29  ;;  %7131 = vst [vmem:[%s8938_s30 + $0x8] sm:$0xff] %v7033_v46  ;;  %v6554_v63 = vadd.f32 %v6553_v7, %v15309_v24  ;;  %v6555_v1 = vpop.f32.mrb[201].mxu1  ;;  %v4717_v46 = vld [vmem:[%s8938_s30 + $0x18] sm:$0xff]  ;;  %v15312_v7 = vld [vmem:[#allocation77_spill] sm:$0xff] }
 0x6d8   : > { %4533 = vperm.xlu1 %7761, %v8479_v33   ;;  %v6323_v51 = vpop.f32.mrb[74].mxu0  ;;  %6816 = vmatprep.mubr.f32.mxu1 %v4671_v38 }
 0x6d9   : > { %v7034_v61 = vadd.f32 %v6554_v63, %v4716_v58  ;;  %v13624_v2 = vadd.f32 %v6323_v51, %v15310_v54  ;;  %v4450_v59 = vpop.permute.xlu1 %4449  ;;  %v6325_v57 = vpop.f32.mrb[75].mxu0  ;;  %6817 = vmatmul.mubr.f32.gmra.mrb[50].mxu1 %v4181_v39  ;;  %v15313_v63 = vld [vmem:[#allocation45_spill] sm:$0xff] }
 0x6da   : > { %v4672_v44 = vmul.f32 %v8480_v21, %v4450_v59  ;;  %v6558_v48 = vpop.f32.mrb[202].mxu1  ;;  %v13634_v54 = vpop.permute.xlu0 %4465  ;;  %v4718_v57 = vld [vmem:[%s8938_s30 + $0x20] sm:$0xff] }
 0x6db   : > { %15311 = vst [vmem:[#allocation94_spill] sm:$0xff] %v13624_v2  ;;  %7132 = vst [vmem:[%s8938_s30 + $0x10] sm:$0xff] %v7034_v61  ;;  %v6559_v24 = vadd.f32 %v6558_v48, %v15312_v7  ;;  %v6560_v1 = vpop.f32.mrb[203].mxu1  ;;  %v8481_v2 = vld [vmem:[%s8931_s21 + $0x1c8] sm:$0xff] }
 0x6dc   : > { %7762 = vset.pattern.permute.xlu1 %v15001_v32  ;;  %v6328_v38 = vpop.f32.mrb[76].mxu0  ;;  %6821 = vmatprep.mubr.f32.mxu1 %v4672_v44  ;;  %v4673_v48 = vmul.f32 %v8481_v2, %v4454_v18  ;;  %v15315_v1 = vld [vmem:[#allocation79_spill] sm:$0xff] }
 0x6dd   : > { %v7035_v58 = vadd.f32 %v6559_v24, %v4717_v46  ;;  %v13632_v51 = vadd.f32 %v6328_v38, %v15313_v63  ;;  %4043 = vperm.xlu1 %7762, %v8479_v33   ;;  %v6330_v39 = vpop.f32.mrb[77].mxu0  ;;  %v15316_v63 = vld [vmem:[#allocation86_spill] sm:$0xff]  ;;  %v8482_v33 = vld [vmem:[%s8936_s17 + $0x270] sm:$0xff] }
 0x6de   : > { %v3960_v59 = vpop.permute.xlu1 %3959  ;;  %v6563_v61 = vpop.f32.mrb[204].mxu1 }
 0x6df   : > { %15314 = vst [vmem:[#allocation20_spill] sm:$0xff] %v13632_v51  ;;  %7133 = vst [vmem:[%s8938_s30 + $0x18] sm:$0xff] %v7035_v58  ;;  %v4182_v7 = vmul.f32 %v8480_v21, %v3960_v59  ;;  %v6564_v44 = vadd.f32 %v6563_v61, %v15315_v1  ;;  %v6565_v46 = vpop.f32.mrb[205].mxu1  ;;  %v15317_v58 = vld [vmem:[#allocation111_spill] sm:$0xff]  ;;  %v3968_v1 = vpop.permute.xlu0 %3967 }
 0x6e0   : > { %v6333_v24 = vpop.f32.mrb[78].mxu0  ;;  %v15318_v46 = vld [vmem:[#allocation48_spill] sm:$0xff] }
 0x6e1   : > { %v7036_v38 = vadd.f32 %v6564_v44, %v4718_v57  ;;  %v13641_v51 = vadd.f32 %v6333_v24, %v15316_v63  ;;  %4047 = vperm.xlu1 %7762, %v8482_v33   ;;  %v6335_v39 = vpop.f32.mrb[79].mxu0  ;;  %6822 = vmatmul.mubr.f32.gmra.mrb[52].mxu1 %v4182_v7  ;;  %v8483_v63 = vld [vmem:[%s8936_s17 + $0x278] sm:$0xff] }
 0x6e2   : > { %v3964_v29 = vpop.permute.xlu1 %3963  ;;  %v6568_v18 = vpop.f32.mrb[206].mxu1  ;;  %6826 = vmatprep.mubr.f32.mxu1 %v4673_v48  ;;  %v4720_v48 = vld [vmem:[%s8938_s30 + $0x30] sm:$0xff] }
 0x6e3   : > { %7134 = vst [vmem:[%s8938_s30 + $0x20] sm:$0xff] %v7036_v38  ;;  %v4183_v21 = vmul.f32 %v8481_v2, %v3964_v29  ;;  %v6569_v59 = vadd.f32 %v6568_v18, %v15317_v58  ;;  %v6570_v57 = vpop.f32.mrb[207].mxu1  ;;  %v15320_v2 = vld [vmem:[#allocation170_spill] sm:$0xff]  ;;  %v8484_v39 = vld [vmem:[%s8931_s21 + $0x1d0] sm:$0xff] }
 0x6e4   : > { %v6338_v61 = vpop.f32.mrb[80].mxu0 }
 0x6e5   : > { %v7037_v44 = vadd.f32 %v6569_v59, %v4719_v14  ;;  %v13648_v24 = vadd.f32 %v6338_v61, %v15318_v46  ;;  %7764 = vset.pattern.permute.xlu1 %v15055_v53  ;;  %v6340_v7 = vpop.f32.mrb[81].mxu0  ;;  %6827 = vmatmul.mubr.f32.gmra.mrb[54].mxu1 %v4183_v21  ;;  %v4184_v14 = vmul.f32 %v8484_v39, %v3968_v1  ;;  %v15321_v61 = vld [vmem:[#allocation52_spill] sm:$0xff] }
 0x6e6   : > { %4541 = vperm.xlu1 %7764, %v8483_v63   ;;  %v6573_v29 = vpop.f32.mrb[208].mxu1  ;;  %v8485_v7 = vld [vmem:[%s8936_s17 + $0x280] sm:$0xff]  ;;  %v4721_v63 = vld [vmem:[%s8938_s30 + $0x38] sm:$0xff] }
 0x6e7   : > { %15319 = vst [vmem:[#allocation43_spill] sm:$0xff] %v13648_v24  ;;  %7135 = vst [vmem:[%s8938_s30 + $0x28] sm:$0xff] %v7037_v44  ;;  %v6574_v38 = vadd.f32 %v6573_v29, %v15320_v2  ;;  %v4458_v33 = vpop.permute.xlu1 %4457  ;;  %v6575_v18 = vpop.f32.mrb[209].mxu1  ;;  %v15323_v29 = vld [vmem:[#allocation75_spill] sm:$0xff]  ;;  %v4723_v24 = vld [vmem:[%s8938_s30 + $0x48] sm:$0xff] }
 0x6e8   : > { %v4674_v58 = vmul.f32 %v8484_v39, %v4458_v33  ;;  %v6343_v59 = vpop.f32.mrb[82].mxu0  ;;  %v8486_v33 = vld [vmem:[%s8931_s21 + $0x1d8] sm:$0xff] }
 0x6e9   : > { %v7038_v57 = vadd.f32 %v6574_v38, %v4720_v48  ;;  %v13657_v21 = vadd.f32 %v6343_v59, %v15321_v61  ;;  %v6345_v46 = vpop.f32.mrb[83].mxu0  ;;  %v15324_v59 = vld [vmem:[#allocation56_spill] sm:$0xff] }
 0x6ea   : > { %4545 = vperm.xlu1 %7764, %v8485_v7   ;;  %v6578_v44 = vpop.f32.mrb[210].mxu1  ;;  %6831 = vmatprep.mubr.f32.mxu1 %v4674_v58  ;;  %v4722_v58 = vld [vmem:[%s8938_s30 + $0x40] sm:$0xff] }
 0x6eb   : > { %15322 = vst [vmem:[#allocation124_spill] sm:$0xff] %v13657_v21  ;;  %7136 = vst [vmem:[%s8938_s30 + $0x30] sm:$0xff] %v7038_v57  ;;  %v6579_v2 = vadd.f32 %v6578_v44, %v15323_v29  ;;  %v4462_v1 = vpop.permute.xlu1 %4461  ;;  %v6580_v18 = vpop.f32.mrb[211].mxu1  ;;  %6832 = vmatmul.mubr.f32.gmra.mrb[56].mxu1 %v4184_v14  ;;  %v15326_v57 = vld [vmem:[#allocation84_spill] sm:$0xff]  ;;  %v8487_v29 = vld [vmem:[%s8931_s21 + $0x1e0] sm:$0xff] }
 0x6ec   : > { %v4675_v48 = vmul.f32 %v8486_v33, %v4462_v1  ;;  %v6348_v38 = vpop.f32.mrb[84].mxu0 }
 0x6ed   : > { %v7039_v39 = vadd.f32 %v6579_v2, %v4721_v63  ;;  %v13665_v61 = vadd.f32 %v6348_v38, %v15324_v59  ;;  %v6350_v46 = vpop.f32.mrb[85].mxu0  ;;  %v4676_v63 = vmul.f32 %v8487_v29, %v13634_v54  ;;  %v15327_v59 = vld [vmem:[#allocation34_spill] sm:$0xff] }
 0x6ee   : > { %7765 = vset.pattern.permute.xlu1 %v15001_v32  ;;  %v6583_v21 = vpop.f32.mrb[212].mxu1  ;;  %6836 = vmatprep.mubr.f32.mxu1 %v4675_v48 }
 0x6ef   : > { %15325 = vst [vmem:[#allocation100_spill] sm:$0xff] %v13665_v61  ;;  %7137 = vst [vmem:[%s8938_s30 + $0x38] sm:$0xff] %v7039_v39  ;;  %v6584_v44 = vadd.f32 %v6583_v21, %v15326_v57  ;;  %4055 = vperm.xlu1 %7765, %v8485_v7   ;;  %v6585_v14 = vpop.f32.mrb[213].mxu1  ;;  %v15329_v39 = vld [vmem:[#allocation53_spill] sm:$0xff]  ;;  %v8488_v7 = vld [vmem:[%s8936_s17 + $0x288] sm:$0xff] }
 0x6f0   : > { %v3972_v2 = vpop.permute.xlu1 %3971  ;;  %v6353_v1 = vpop.f32.mrb[86].mxu0 }
 0x6f1   : > { %v7040_v18 = vadd.f32 %v6584_v44, %v4722_v58  ;;  %v4185_v38 = vmul.f32 %v8486_v33, %v3972_v2  ;;  %v13674_v46 = vadd.f32 %v6353_v1, %v15327_v59  ;;  %v6355_v61 = vpop.f32.mrb[87].mxu0  ;;  %v15330_v44 = vld [vmem:[#allocation61_spill] sm:$0xff]  ;;  %v3980_v59 = vpop.permute.xlu0 %3979 }
 0x6f2   : > { %v6588_v48 = vpop.f32.mrb[214].mxu1  ;;  %v4724_v1 = vld [vmem:[%s8938_s30 + $0x50] sm:$0xff] }
 0x6f3   : > { %15328 = vst [vmem:[#allocation108_spill] sm:$0xff] %v13674_v46  ;;  %7138 = vst [vmem:[%s8938_s30 + $0x40] sm:$0xff] %v7040_v18  ;;  %v6589_v21 = vadd.f32 %v6588_v48, %v15329_v39  ;;  %4059 = vperm.xlu1 %7765, %v8488_v7   ;;  %v6590_v57 = vpop.f32.mrb[215].mxu1  ;;  %6837 = vmatmul.mubr.f32.gmra.mrb[58].mxu1 %v4185_v38  ;;  %v15332_v48 = vld [vmem:[#allocation83_spill] sm:$0xff] }
 0x6f4   : > { %v3976_v54 = vpop.permute.xlu1 %3975  ;;  %v6358_v14 = vpop.f32.mrb[88].mxu0  ;;  %6841 = vmatprep.mubr.f32.mxu1 %v4676_v63  ;;  %v8489_v63 = vld [vmem:[%s8936_s17 + $0x290] sm:$0xff] }
 0x6f5   : > { %v7041_v33 = vadd.f32 %v6589_v21, %v4723_v24  ;;  %v4186_v58 = vmul.f32 %v8487_v29, %v3976_v54  ;;  %v13681_v2 = vadd.f32 %v6358_v14, %v15330_v44  ;;  %v6360_v61 = vpop.f32.mrb[89].mxu0  ;;  %v15333_v21 = vld [vmem:[#allocation173_spill] sm:$0xff]  ;;  %v8490_v14 = vld [vmem:[%s8931_s21 + $0x1e8] sm:$0xff] }
 0x6f6   : > { %v6593_v18 = vpop.f32.mrb[216].mxu1  ;;  %v4187_v44 = vmul.f32 %v8490_v14, %v3980_v59  ;;  %v4725_v61 = vld [vmem:[%s8938_s30 + $0x58] sm:$0xff]  ;;  %v4728_v46 = vld [vmem:[%s8938_s30 + $0x70] sm:$0xff] }
 0x6f7   : > { %15331 = vst [vmem:[#allocation31_spill] sm:$0xff] %v13681_v2  ;;  %7139 = vst [vmem:[%s8938_s30 + $0x48] sm:$0xff] %v7041_v33  ;;  %v6594_v39 = vadd.f32 %v6593_v18, %v15332_v48  ;;  %7767 = vset.pattern.permute.xlu1 %v15055_v53  ;;  %v6595_v38 = vpop.f32.mrb[217].mxu1  ;;  %6842 = vmatmul.mubr.f32.gmra.mrb[60].mxu1 %v4186_v58  ;;  %v15335_v48 = vld [vmem:[#allocation119_spill] sm:$0xff]  ;;  %v8491_v2 = vld [vmem:[%s8936_s17 + $0x298] sm:$0xff] }
 0x6f8   : > { %4553 = vperm.xlu1 %7767, %v8489_v63   ;;  %v6363_v24 = vpop.f32.mrb[90].mxu0  ;;  %v4478_v63 = vpop.permute.xlu0 %4477 }
 0x6f9   : > { %v7042_v29 = vadd.f32 %v6594_v39, %v4724_v1  ;;  %v13689_v7 = vadd.f32 %v6363_v24, %v15333_v21  ;;  %v4470_v57 = vpop.permute.xlu1 %4469  ;;  %v6365_v54 = vpop.f32.mrb[91].mxu0  ;;  %v15336_v24 = vld [vmem:[#allocation164_spill] sm:$0xff] }
 0x6fa   : > { %v4677_v33 = vmul.f32 %v8490_v14, %v4470_v57  ;;  %v6598_v18 = vpop.f32.mrb[218].mxu1  ;;  %v8492_v54 = vld [vmem:[%s8931_s21 + $0x1f0] sm:$0xff] }
 0x6fb   : > { %15334 = vst [vmem:[#allocation97_spill] sm:$0xff] %v13689_v7  ;;  %7140 = vst [vmem:[%s8938_s30 + $0x50] sm:$0xff] %v7042_v29  ;;  %v6599_v58 = vadd.f32 %v6598_v18, %v15335_v48  ;;  %v6600_v38 = vpop.f32.mrb[219].mxu1  ;;  %v4726_v29 = vld [vmem:[%s8938_s30 + $0x60] sm:$0xff] }
 0x6fc   : > { %4557 = vperm.xlu1 %7767, %v8491_v2   ;;  %v6368_v1 = vpop.f32.mrb[92].mxu0  ;;  %6846 = vmatprep.mubr.f32.mxu1 %v4677_v33  ;;  %v15338_v48 = vld [vmem:[#allocation113_spill] sm:$0xff] }
 0x6fd   : > { %v7043_v39 = vadd.f32 %v6599_v58, %v4725_v61  ;;  %v13697_v21 = vadd.f32 %v6368_v1, %v15336_v24  ;;  %v4474_v59 = vpop.permute.xlu1 %4473  ;;  %v6370_v57 = vpop.f32.mrb[93].mxu0  ;;  %6847 = vmatmul.mubr.f32.gmra.mrb[62].mxu1 %v4187_v44  ;;  %v15339_v58 = vld [vmem:[#allocation46_spill] sm:$0xff] }
 0x6fe   : > { %v4678_v14 = vmul.f32 %v8492_v54, %v4474_v59  ;;  %v6603_v18 = vpop.f32.mrb[220].mxu1  ;;  %v13707_v24 = vpop.permute.xlu0 %4489  ;;  %v4727_v57 = vld [vmem:[%s8938_s30 + $0x68] sm:$0xff] }
 0x6ff   : > { %15337 = vst [vmem:[#allocation102_spill] sm:$0xff] %v13697_v21  ;;  %7141 = vst [vmem:[%s8938_s30 + $0x58] sm:$0xff] %v7043_v39  ;;  %v6604_v38 = vadd.f32 %v6603_v18, %v15338_v48  ;;  %v6605_v7 = vpop.f32.mrb[221].mxu1  ;;  %v8493_v21 = vld [vmem:[%s8931_s21 + $0x1f8] sm:$0xff] }
 0x700   : > { %7768 = vset.pattern.permute.xlu1 %v15001_v32  ;;  %v6373_v33 = vpop.f32.mrb[94].mxu0  ;;  %6851 = vmatprep.mubr.f32.mxu1 %v4678_v14  ;;  %v4679_v18 = vmul.f32 %v8493_v21, %v4478_v63 }
 0x701   : > { %v7044_v61 = vadd.f32 %v6604_v38, %v4726_v29  ;;  %v13705_v1 = vadd.f32 %v6373_v33, %v15339_v58  ;;  %4067 = vperm.xlu1 %7768, %v8491_v2   ;;  %v6375_v44 = vpop.f32.mrb[95].mxu0  ;;  %v15341_v33 = vld [vmem:[#allocation49_spill] sm:$0xff]  ;;  %v8494_v2 = vld [vmem:[%s8936_s17 + $0x2a0] sm:$0xff] }
 0x702   : > { %v3984_v59 = vpop.permute.xlu1 %3983  ;;  %v6608_v39 = vpop.f32.mrb[222].mxu1 }
 0x703   : > { %15340 = vst [vmem:[#allocation178_spill] sm:$0xff] %v13705_v1  ;;  %7142 = vst [vmem:[%s8938_s30 + $0x60] sm:$0xff] %v7044_v61  ;;  %v4188_v7 = vmul.f32 %v8492_v54, %v3984_v59  ;;  %v6609_v14 = vadd.f32 %v6608_v39, %v13066_v12  ;;  %v6610_v29 = vpop.f32.mrb[223].mxu1 }
 0x704   : > { %v6378_v48 = vpop.f32.mrb[96].mxu0 }
 0x705   : > { %v7045_v38 = vadd.f32 %v6609_v14, %v4727_v57  ;;  %v13714_v58 = vadd.f32 %v6378_v48, %v15341_v33  ;;  %4071 = vperm.xlu1 %7768, %v8494_v2   ;;  %v6380_v44 = vpop.f32.mrb[97].mxu0  ;;  %6852 = vmatmul.mubr.f32.gmra.mrb[64].mxu1 %v4188_v7  ;;  %v3992_v57 = vpop.permute.xlu0 %3991  ;;  %v15342_v14 = vld [vmem:[#allocation64_spill] sm:$0xff] }
 0x706   : > { %v3988_v1 = vpop.permute.xlu1 %3987  ;;  %v6613_v63 = vpop.f32.mrb[224].mxu1  ;;  %6856 = vmatprep.mubr.f32.mxu1 %v4679_v18  ;;  %v8495_v48 = vld [vmem:[%s8936_s17 + $0x2a8] sm:$0xff] }
 0x707   : > { %7143 = vst [vmem:[%s8938_s30 + $0x68] sm:$0xff] %v7045_v38  ;;  %v4189_v54 = vmul.f32 %v8493_v21, %v3988_v1  ;;  %v6614_v12 = vadd.f32 %v6613_v63, %v13078_v34  ;;  %v6615_v61 = vpop.f32.mrb[225].mxu1  ;;  %v4729_v18 = vld [vmem:[%s8938_s30 + $0x78] sm:$0xff] }
 0x708   : > { %v6383_v59 = vpop.f32.mrb[98].mxu0 }
 0x709   : > { %v7046_v39 = vadd.f32 %v6614_v12, %v4728_v46  ;;  %v13721_v29 = vadd.f32 %v6383_v59, %v15342_v14  ;;  %7770 = vset.pattern.permute.xlu1 %v15055_v53  ;;  %v6385_v7 = vpop.f32.mrb[99].mxu0  ;;  %6857 = vmatmul.mubr.f32.gmra.mrb[66].mxu1 %v4189_v54  ;;  %v8496_v46 = vld [vmem:[%s8931_s21 + $0x200] sm:$0xff]  ;;  %v15343_v12 = vld [vmem:[#allocation174_spill] sm:$0xff]  ;;  %v8497_v59 = vld [vmem:[%s8936_s17 + $0x2b0] sm:$0xff] }
 0x70a   : > { %4565 = vperm.xlu1 %7770, %v8495_v48   ;;  %v6618_v21 = vpop.f32.mrb[226].mxu1  ;;  %v4190_v33 = vmul.f32 %v8496_v46, %v3992_v57  ;;  %v4730_v14 = vld [vmem:[%s8938_s30 + $0x80] sm:$0xff]  ;;  %v8498_v48 = vld [vmem:[%s8931_s21 + $0x208] sm:$0xff] }
 0x70b   : > { %7144 = vst [vmem:[%s8938_s30 + $0x70] sm:$0xff] %v7046_v39  ;;  %v6619_v34 = vadd.f32 %v6618_v21, %v13092_v49  ;;  %v4482_v1 = vpop.permute.xlu1 %4481  ;;  %v6620_v38 = vpop.f32.mrb[227].mxu1 }
 0x70c   : > { %v4680_v2 = vmul.f32 %v8496_v46, %v4482_v1  ;;  %v6388_v44 = vpop.f32.mrb[100].mxu0  ;;  %v15344_v1 = vld [vmem:[#allocation68_spill] sm:$0xff] }
 0x70d   : > { %v7047_v63 = vadd.f32 %v6619_v34, %v4729_v18  ;;  %v13730_v54 = vadd.f32 %v6388_v44, %v15343_v12  ;;  %v6390_v61 = vpop.f32.mrb[101].mxu0 }
 0x70e   : > { %4569 = vperm.xlu1 %7770, %v8497_v59   ;;  %v6623_v39 = vpop.f32.mrb[228].mxu1  ;;  %6861 = vmatprep.mubr.f32.mxu1 %v4680_v2  ;;  %v4731_v2 = vld [vmem:[%s8938_s30 + $0x88] sm:$0xff] }
 0x70f   : > { %7145 = vst [vmem:[%s8938_s30 + $0x78] sm:$0xff] %v7047_v63  ;;  %v6624_v49 = vadd.f32 %v6623_v39, %v13104_v19  ;;  %v4486_v7 = vpop.permute.xlu1 %4485  ;;  %v6625_v57 = vpop.f32.mrb[229].mxu1  ;;  %6862 = vmatmul.mubr.f32.gmra.mrb[68].mxu1 %v4190_v33  ;;  %v8499_v63 = vld [vmem:[%s8931_s21 + $0x210] sm:$0xff] }
 0x710   : > { %v4681_v18 = vmul.f32 %v8498_v48, %v4486_v7  ;;  %v6393_v21 = vpop.f32.mrb[102].mxu0  ;;  %v4682_v12 = vmul.f32 %v8499_v63, %v13707_v24  ;;  %v15345_v7 = vld [vmem:[#allocation175_spill] sm:$0xff] }
 0x711   : > { %v7048_v34 = vadd.f32 %v6624_v49, %v4730_v14  ;;  %v13738_v38 = vadd.f32 %v6393_v21, %v15344_v1  ;;  %v6395_v46 = vpop.f32.mrb[103].mxu0  ;;  %v4732_v1 = vld [vmem:[%s8938_s30 + $0x90] sm:$0xff] }
 0x712   : > { %7771 = vset.pattern.permute.xlu1 %v15001_v32  ;;  %v6628_v44 = vpop.f32.mrb[230].mxu1  ;;  %6866 = vmatprep.mubr.f32.mxu1 %v4681_v18 }
 0x713   : > { %7146 = vst [vmem:[%s8938_s30 + $0x80] sm:$0xff] %v7048_v34  ;;  %v6629_v19 = vadd.f32 %v6628_v44, %v13118_v55  ;;  %4079 = vperm.xlu1 %7771, %v8497_v59   ;;  %v6630_v33 = vpop.f32.mrb[231].mxu1  ;;  %v8500_v59 = vld [vmem:[%s8936_s17 + $0x2b8] sm:$0xff]  ;;  %v15346_v44 = vld [vmem:[#allocation73_spill] sm:$0xff] }
 0x714   : > { %v3996_v61 = vpop.permute.xlu1 %3995  ;;  %v6398_v14 = vpop.f32.mrb[104].mxu0 }
 0x715   : > { %v7049_v39 = vadd.f32 %v6629_v19, %v4731_v2  ;;  %v4191_v49 = vmul.f32 %v8498_v48, %v3996_v61  ;;  %v13747_v57 = vadd.f32 %v6398_v14, %v15345_v7  ;;  %v6400_v21 = vpop.f32.mrb[105].mxu0  ;;  %v4733_v61 = vld [vmem:[%s8938_s30 + $0x98] sm:$0xff] }
 0x716   : > { %v6633_v18 = vpop.f32.mrb[232].mxu1  ;;  %v15347_v21 = vld [vmem:[#allocation176_spill] sm:$0xff] }
 0x717   : > { %7147 = vst [vmem:[%s8938_s30 + $0x88] sm:$0xff] %v7049_v39  ;;  %v6634_v55 = vadd.f32 %v6633_v18, %v13132_v50  ;;  %4083 = vperm.xlu1 %7771, %v8500_v59   ;;  %v6635_v34 = vpop.f32.mrb[233].mxu1  ;;  %6867 = vmatmul.mubr.f32.gmra.mrb[70].mxu1 %v4191_v49  ;;  %v4004_v39 = vpop.permute.xlu0 %4003  ;;  %v8502_v59 = vld [vmem:[%s8931_s21 + $0x218] sm:$0xff] }
 0x718   : > { %v4000_v24 = vpop.permute.xlu1 %3999  ;;  %v6403_v46 = vpop.f32.mrb[106].mxu0  ;;  %6871 = vmatprep.mubr.f32.mxu1 %v4682_v12  ;;  %v8501_v12 = vld [vmem:[%s8936_s17 + $0x2c0] sm:$0xff]  ;;  %v4193_v34 = vmul.f32 %v8502_v59, %v4004_v39 }
 0x719   : > { %v7050_v48 = vadd.f32 %v6634_v55, %v4732_v1  ;;  %v4192_v2 = vmul.f32 %v8499_v63, %v4000_v24  ;;  %v13754_v19 = vadd.f32 %v6403_v46, %v15346_v44  ;;  %v6405_v33 = vpop.f32.mrb[107].mxu0 }
 0x71a   : > { %v6638_v14 = vpop.f32.mrb[234].mxu1  ;;  %v8503_v33 = vld [vmem:[%s8936_s17 + $0x2c8] sm:$0xff] }
 0x71b   : > { %7148 = vst [vmem:[%s8938_s30 + $0x90] sm:$0xff] %v7050_v48  ;;  %v6639_v50 = vadd.f32 %v6638_v14, %v13148_v25  ;;  %7773 = vset.pattern.permute.xlu1 %v15055_v53  ;;  %v6640_v49 = vpop.f32.mrb[235].mxu1  ;;  %6872 = vmatmul.mubr.f32.gmra.mrb[72].mxu1 %v4192_v2  ;;  %v4734_v25 = vld [vmem:[%s8938_s30 + $0xa0] sm:$0xff]  ;;  %v4502_v44 = vpop.permute.xlu0 %4501 }
 0x71c   : > { %4577 = vperm.xlu1 %7773, %v8501_v12   ;;  %v6408_v63 = vpop.f32.mrb[108].mxu0 }
 0x71d   : > { %v7051_v7 = vadd.f32 %v6639_v50, %v4733_v61  ;;  %v13762_v1 = vadd.f32 %v6408_v63, %v15347_v21  ;;  %v4494_v18 = vpop.permute.xlu1 %4493  ;;  %v6410_v55 = vpop.f32.mrb[109].mxu0  ;;  %v15348_v50 = vld [vmem:[#allocation55_spill] sm:$0xff] }
 0x71e   : > { %v4683_v24 = vmul.f32 %v8502_v59, %v4494_v18  ;;  %v6643_v46 = vpop.f32.mrb[236].mxu1  ;;  %v8504_v63 = vld [vmem:[%s8931_s21 + $0x220] sm:$0xff] }
 0x71f   : > { %7149 = vst [vmem:[%s8938_s30 + $0x98] sm:$0xff] %v7051_v7  ;;  %v6644_v48 = vadd.f32 %v6643_v46, %v13163_v43  ;;  %v6645_v2 = vpop.f32.mrb[237].mxu1  ;;  %v4735_v7 = vld [vmem:[%s8938_s30 + $0xa8] sm:$0xff] }
 0x720   : > { %4581 = vperm.xlu1 %7773, %v8503_v33   ;;  %v6413_v61 = vpop.f32.mrb[110].mxu0  ;;  %6876 = vmatprep.mubr.f32.mxu1 %v4683_v24 }
 0x721   : > { %v7052_v14 = vadd.f32 %v6644_v48, %v4734_v25  ;;  %v13770_v49 = vadd.f32 %v6413_v61, %v15348_v50  ;;  %v4498_v39 = vpop.permute.xlu1 %4497  ;;  %v6415_v12 = vpop.f32.mrb[111].mxu0  ;;  %6877 = vmatmul.mubr.f32.gmra.mrb[74].mxu1 %v4193_v34  ;;  %v15349_v25 = vld [vmem:[#allocation47_spill] sm:$0xff]  ;;  %v8505_v50 = vld [vmem:[%s8931_s21 + $0x228] sm:$0xff] }
 0x722   : > { %v4684_v21 = vmul.f32 %v8504_v63, %v4498_v39  ;;  %v6648_v43 = vpop.f32.mrb[238].mxu1  ;;  %v13780_v48 = vpop.permute.xlu0 %4513  ;;  %v4736_v61 = vld [vmem:[%s8938_s30 + $0xb0] sm:$0xff] }
 0x723   : > { %7150 = vst [vmem:[%s8938_s30 + $0xa0] sm:$0xff] %v7052_v14  ;;  %v6649_v18 = vadd.f32 %v6648_v43, %v13178_v5  ;;  %v6650_v55 = vpop.f32.mrb[239].mxu1  ;;  %v4685_v5 = vmul.f32 %v8505_v50, %v4502_v44 }
 0x724   : > { %7774 = vset.pattern.permute.xlu1 %v15001_v32  ;;  %v6418_v59 = vpop.f32.mrb[112].mxu0  ;;  %6881 = vmatprep.mubr.f32.mxu1 %v4684_v21 }
 0x725   : > { %v7053_v24 = vadd.f32 %v6649_v18, %v4735_v7  ;;  %v13778_v46 = vadd.f32 %v6418_v59, %v15349_v25  ;;  %4091 = vperm.xlu1 %7774, %v8503_v33   ;;  %v6420_v34 = vpop.f32.mrb[113].mxu0  ;;  %v15350_v18 = vld [vmem:[#allocation177_spill] sm:$0xff] }
 0x726   : > { %v4008_v2 = vpop.permute.xlu1 %4007  ;;  %v6653_v14 = vpop.f32.mrb[240].mxu1  ;;  %v8506_v33 = vld [vmem:[%s8936_s17 + $0x2d0] sm:$0xff]  ;;  %v4737_v34 = vld [vmem:[%s8938_s30 + $0xb8] sm:$0xff] }
 0x727   : > { %7151 = vst [vmem:[%s8938_s30 + $0xa8] sm:$0xff] %v7053_v24  ;;  %v4194_v39 = vmul.f32 %v8504_v63, %v4008_v2  ;;  %v6654_v12 = vadd.f32 %v6653_v14, %v13193_v16  ;;  %v6655_v21 = vpop.f32.mrb[241].mxu1 }
 0x728   : > { %v6423_v7 = vpop.f32.mrb[114].mxu0 }
 0x729   : > { %v7054_v43 = vadd.f32 %v6654_v12, %v4736_v61  ;;  %v13787_v55 = vadd.f32 %v6423_v7, %v15350_v18  ;;  %4095 = vperm.xlu1 %7774, %v8506_v33   ;;  %v6425_v59 = vpop.f32.mrb[115].mxu0  ;;  %6882 = vmatmul.mubr.f32.gmra.mrb[76].mxu1 %v4194_v39  ;;  %v4016_v61 = vpop.permute.xlu0 %4015  ;;  %v15351_v12 = vld [vmem:[#allocation58_spill] sm:$0xff]  ;;  %v8508_v33 = vld [vmem:[%s8931_s21 + $0x230] sm:$0xff] }
 0x72a   : > { %v4012_v25 = vpop.permute.xlu1 %4011  ;;  %v6658_v44 = vpop.f32.mrb[242].mxu1  ;;  %6886 = vmatprep.mubr.f32.mxu1 %v4685_v5  ;;  %v8507_v7 = vld [vmem:[%s8936_s17 + $0x2d8] sm:$0xff]  ;;  %v4738_v5 = vld [vmem:[%s8938_s30 + $0xc0] sm:$0xff]  ;;  %v4196_v59 = vmul.f32 %v8508_v33, %v4016_v61 }
 0x72b   : > { %7152 = vst [vmem:[%s8938_s30 + $0xb0] sm:$0xff] %v7054_v43  ;;  %v4195_v63 = vmul.f32 %v8505_v50, %v4012_v25  ;;  %v6659_v16 = vadd.f32 %v6658_v44, %v13210_v3  ;;  %v6660_v24 = vpop.f32.mrb[243].mxu1 }
 0x72c   : > { %v6428_v2 = vpop.f32.mrb[116].mxu0 }
 0x72d   : > { %v7055_v14 = vadd.f32 %v6659_v16, %v4737_v34  ;;  %v13794_v21 = vadd.f32 %v6428_v2, %v15351_v12  ;;  %7776 = vset.pattern.permute.xlu1 %v15055_v53  ;;  %v6430_v39 = vpop.f32.mrb[117].mxu0  ;;  %6887 = vmatmul.mubr.f32.gmra.mrb[78].mxu1 %v4195_v63  ;;  %v15352_v16 = vld [vmem:[#allocation26_spill] sm:$0xff]  ;;  %v8509_v2 = vld [vmem:[%s8936_s17 + $0x2e0] sm:$0xff] }
 0x72e   : > { %4589 = vperm.xlu1 %7776, %v8507_v7   ;;  %v6663_v50 = vpop.f32.mrb[244].mxu1  ;;  %v4739_v12 = vld [vmem:[%s8938_s30 + $0xc8] sm:$0xff] }
 0x72f   : > { %7153 = vst [vmem:[%s8938_s30 + $0xb8] sm:$0xff] %v7055_v14  ;;  %v6664_v3 = vadd.f32 %v6663_v50, %v13224_v30  ;;  %v4506_v43 = vpop.permute.xlu1 %4505  ;;  %v6665_v18 = vpop.f32.mrb[245].mxu1  ;;  %v8510_v7 = vld [vmem:[%s8931_s21 + $0x238] sm:$0xff] }
 0x730   : > { %v4686_v25 = vmul.f32 %v8508_v33, %v4506_v43  ;;  %v6433_v34 = vpop.f32.mrb[118].mxu0  ;;  %v15353_v43 = vld [vmem:[#allocation63_spill] sm:$0xff] }
 0x731   : > { %v7056_v44 = vadd.f32 %v6664_v3, %v4738_v5  ;;  %v13803_v63 = vadd.f32 %v6433_v34, %v15352_v16  ;;  %v6435_v24 = vpop.f32.mrb[119].mxu0 }
 0x732   : > { %4593 = vperm.xlu1 %7776, %v8509_v2   ;;  %v6668_v14 = vpop.f32.mrb[246].mxu1  ;;  %6891 = vmatprep.mubr.f32.mxu1 %v4686_v25  ;;  %v4740_v25 = vld [vmem:[%s8938_s30 + $0xd0] sm:$0xff] }
 0x733   : > { %7154 = vst [vmem:[%s8938_s30 + $0xc0] sm:$0xff] %v7056_v44  ;;  %v6669_v30 = vadd.f32 %v6668_v14, %v13238_v23  ;;  %v4510_v39 = vpop.permute.xlu1 %4509  ;;  %v6670_v61 = vpop.f32.mrb[247].mxu1  ;;  %6892 = vmatmul.mubr.f32.gmra.mrb[80].mxu1 %v4196_v59  ;;  %v8511_v44 = vld [vmem:[%s8931_s21 + $0x240] sm:$0xff] }
 0x734   : > { %v4687_v5 = vmul.f32 %v8510_v7, %v4510_v39  ;;  %v6438_v50 = vpop.f32.mrb[120].mxu0  ;;  %v4688_v16 = vmul.f32 %v8511_v44, %v13780_v48  ;;  %v15354_v39 = vld [vmem:[#allocation54_spill] sm:$0xff] }
 0x735   : > { %v7057_v3 = vadd.f32 %v6669_v30, %v4739_v12  ;;  %v13811_v18 = vadd.f32 %v6438_v50, %v15353_v43  ;;  %v6440_v33 = vpop.f32.mrb[121].mxu0  ;;  %v4741_v43 = vld [vmem:[%s8938_s30 + $0xd8] sm:$0xff] }
 0x736   : > { %7777 = vset.pattern.permute.xlu1 %v15001_v32  ;;  %v6673_v34 = vpop.f32.mrb[248].mxu1  ;;  %6896 = vmatprep.mubr.f32.mxu1 %v4687_v5 }
 0x737   : > { %7155 = vst [vmem:[%s8938_s30 + $0xc8] sm:$0xff] %v7057_v3  ;;  %v6674_v23 = vadd.f32 %v6673_v34, %v13250_v4  ;;  %4103 = vperm.xlu1 %7777, %v8509_v2   ;;  %v6675_v59 = vpop.f32.mrb[249].mxu1  ;;  %v8512_v2 = vld [vmem:[%s8936_s17 + $0x2e8] sm:$0xff]  ;;  %v15355_v34 = vld [vmem:[#allocation38_spill] sm:$0xff] }
 0x738   : > { %v4020_v24 = vpop.permute.xlu1 %4019  ;;  %v6443_v12 = vpop.f32.mrb[122].mxu0 }
 0x739   : > { %v7058_v14 = vadd.f32 %v6674_v23, %v4740_v25  ;;  %v4197_v30 = vmul.f32 %v8510_v7, %v4020_v24  ;;  %v13820_v61 = vadd.f32 %v6443_v12, %v15354_v39  ;;  %v6445_v50 = vpop.f32.mrb[123].mxu0  ;;  %v4742_v24 = vld [vmem:[%s8938_s30 + $0xe0] sm:$0xff] }
 0x73a   : > { %v6678_v5 = vpop.f32.mrb[250].mxu1  ;;  %v15356_v50 = vld [vmem:[#allocation50_spill] sm:$0xff] }
 0x73b   : > { %7156 = vst [vmem:[%s8938_s30 + $0xd0] sm:$0xff] %v7058_v14  ;;  %v6679_v4 = vadd.f32 %v6678_v5, %v13267_v36  ;;  %4107 = vperm.xlu1 %7777, %v8512_v2   ;;  %v6680_v3 = vpop.f32.mrb[251].mxu1  ;;  %6897 = vmatmul.mubr.f32.gmra.mrb[82].mxu1 %v4197_v30  ;;  %v4028_v14 = vpop.permute.xlu0 %4027  ;;  %v8514_v2 = vld [vmem:[%s8931_s21 + $0x248] sm:$0xff] }
 0x73c   : > { %v4024_v48 = vpop.permute.xlu1 %4023  ;;  %v6448_v33 = vpop.f32.mrb[124].mxu0  ;;  %6901 = vmatprep.mubr.f32.mxu1 %v4688_v16  ;;  %v8513_v16 = vld [vmem:[%s8936_s17 + $0x2f0] sm:$0xff]  ;;  %v4199_v3 = vmul.f32 %v8514_v2, %v4028_v14 }
 0x73d   : > { %v7059_v7 = vadd.f32 %v6679_v4, %v4741_v43  ;;  %v4198_v25 = vmul.f32 %v8511_v44, %v4024_v48  ;;  %v13827_v23 = vadd.f32 %v6448_v33, %v15355_v34  ;;  %v6450_v59 = vpop.f32.mrb[125].mxu0 }
 0x73e   : > { %v6683_v12 = vpop.f32.mrb[252].mxu1 }
 0x73f   : > { %7157 = vst [vmem:[%s8938_s30 + $0xd8] sm:$0xff] %v7059_v7  ;;  %v6684_v36 = vadd.f32 %v6683_v12, %v13278_v27  ;;  %7779 = vset.pattern.permute.xlu1 %v15055_v53  ;;  %6902 = vmatmul.mubr.f32.gmra.mrb[84].mxu1 %v4198_v25  ;;  %v6685_v30 = vpop.f32.mrb[253].mxu1  ;;  %v4743_v27 = vld [vmem:[%s8938_s30 + $0xe8] sm:$0xff]  ;;  %v15357_v7 = vld [vmem:[#allocation37_spill] sm:$0xff]  ;;  %v4526_v59 = vpop.permute.xlu0 %4525 }
 0x740   : > { %4601 = vperm.xlu1 %7779, %v8513_v16   ;;  %v6453_v44 = vpop.f32.mrb[126].mxu0  ;;  %v8515_v12 = vld [vmem:[%s8936_s17 + $0x2f8] sm:$0xff]  ;;  %v15358_v30 = vld [vmem:[#allocation168_spill] sm:$0xff] }
 0x741   : > { %v7060_v39 = vadd.f32 %v6684_v36, %v4742_v24  ;;  %v13835_v43 = vadd.f32 %v6453_v44, %v15356_v50  ;;  %v4518_v5 = vpop.permute.xlu1 %4517  ;;  %v6455_v4 = vpop.f32.mrb[127].mxu0  ;;  %v8516_v50 = vld [vmem:[%s8931_s21 + $0x250] sm:$0xff] }
 0x742   : > { %v4689_v48 = vmul.f32 %v8514_v2, %v4518_v5  ;;  %v6688_v33 = vpop.f32.mrb[254].mxu1  ;;  %v15360_v2 = vld [vmem:[#allocation90_spill] sm:$0xff] }
 0x743   : > { %7158 = vst [vmem:[%s8938_s30 + $0xe0] sm:$0xff] %v7060_v39  ;;  %v6689_v25 = vadd.f32 %v6688_v33, %v15357_v7  ;;  %v6690_v34 = vpop.f32.mrb[255].mxu1  ;;  %v4744_v39 = vld [vmem:[%s8938_s30 + $0xf0] sm:$0xff] }
 0x744   : > { %4605 = vperm.xlu1 %7779, %v8515_v12   ;;  %v6458_v24 = vpop.f32.mrb[128].mxu0  ;;  %6906 = vmatprep.mubr.f32.mxu1 %v4689_v48 }
 0x745   : > { %v7061_v36 = vadd.f32 %v6689_v25, %v4743_v27  ;;  %v13843_v16 = vadd.f32 %v6458_v24, %v15358_v30  ;;  %v4522_v14 = vpop.permute.xlu1 %4521  ;;  %v6460_v44 = vpop.f32.mrb[129].mxu0  ;;  %6907 = vmatmul.mubr.f32.gmra.mrb[86].mxu1 %v4199_v3  ;;  %v15361_v25 = vld [vmem:[#allocation112_spill] sm:$0xff] }
 0x746   : > { %v4690_v5 = vmul.f32 %v8516_v50, %v4522_v14  ;;  %v6693_v4 = vpop.f32.mrb[0].mxu1  ;;  %v4538_v24 = vpop.permute.xlu0 %4537  ;;  %v4745_v14 = vld [vmem:[%s8938_s30 + $0xf8] sm:$0xff] }
 0x747   : > { %15359 = vst [vmem:[#allocation99_spill] sm:$0xff] %v13843_v16  ;;  %7159 = vst [vmem:[%s8938_s30 + $0xe8] sm:$0xff] %v7061_v36  ;;  %v6694_v33 = vadd.f32 %v6693_v4, %v15360_v2  ;;  %v6695_v7 = vpop.f32.mrb[1].mxu1  ;;  %v8517_v44 = vld [vmem:[%s8931_s21 + $0x258] sm:$0xff] }
 0x748   : > { %7781 = vset.pattern.permute.xlu1 %v15001_v32  ;;  %v6463_v48 = vpop.f32.mrb[130].mxu0  ;;  %6911 = vmatprep.mubr.f32.mxu1 %v4690_v5  ;;  %v4691_v16 = vmul.f32 %v8517_v44, %v4526_v59 }
 0x749   : > { %v7062_v27 = vadd.f32 %v6694_v33, %v4744_v39  ;;  %v13851_v34 = vadd.f32 %v6463_v48, %v15361_v25  ;;  %4115 = vperm.xlu1 %7781, %v8515_v12   ;;  %v6465_v3 = vpop.f32.mrb[131].mxu0  ;;  %v15362_v33 = vld [vmem:[#allocation28_spill] sm:$0xff]  ;;  %v8518_v12 = vld [vmem:[%s8936_s17 + $0x300] sm:$0xff] }
 0x74a   : > { %v4032_v30 = vpop.permute.xlu1 %4031  ;;  %v6698_v36 = vpop.f32.mrb[2].mxu1  ;;  %v4746_v3 = vld [vmem:[%s8938_s30 + $0x100] sm:$0xff] }
 0x74b   : > { %7160 = vst [vmem:[%s8938_s30 + $0xf0] sm:$0xff] %v7062_v27  ;;  %v4200_v4 = vmul.f32 %v8516_v50, %v4032_v30  ;;  %v6699_v32 = vadd.f32 %v6698_v36, %v13318_v22  ;;  %v6700_v5 = vpop.f32.mrb[3].mxu1 }
 0x74c   : > { %v6468_v39 = vpop.f32.mrb[132].mxu0 }
 0x74d   : > { %v7063_v2 = vadd.f32 %v6699_v32, %v4745_v14  ;;  %v13858_v7 = vadd.f32 %v6468_v39, %v15362_v33  ;;  %4119 = vperm.xlu1 %7781, %v8518_v12   ;;  %v6470_v48 = vpop.f32.mrb[133].mxu0  ;;  %6912 = vmatmul.mubr.f32.gmra.mrb[88].mxu1 %v4200_v4  ;;  %v4040_v14 = vpop.permute.xlu0 %4039  ;;  %v15363_v32 = vld [vmem:[#allocation72_spill] sm:$0xff]  ;;  %v8520_v12 = vld [vmem:[%s8931_s21 + $0x260] sm:$0xff] }
 0x74e   : > { %v4036_v25 = vpop.permute.xlu1 %4035  ;;  %v6703_v59 = vpop.f32.mrb[4].mxu1  ;;  %6916 = vmatprep.mubr.f32.mxu1 %v4691_v16  ;;  %v8519_v16 = vld [vmem:[%s8936_s17 + $0x308] sm:$0xff]  ;;  %v4202_v48 = vmul.f32 %v8520_v12, %v4040_v14 }
 0x74f   : > { %7161 = vst [vmem:[%s8938_s30 + $0xf8] sm:$0xff] %v7063_v2  ;;  %v4201_v50 = vmul.f32 %v8517_v44, %v4036_v25  ;;  %v6704_v22 = vadd.f32 %v6703_v59, %v13329_v15  ;;  %v6705_v27 = vpop.f32.mrb[5].mxu1  ;;  %v4747_v39 = vld [vmem:[%s8938_s30 + $0x108] sm:$0xff] }
 0x750   : > { %v6473_v30 = vpop.f32.mrb[134].mxu0 }
 0x751   : > { %v7064_v36 = vadd.f32 %v6704_v22, %v4746_v3  ;;  %v13865_v5 = vadd.f32 %v6473_v30, %v15363_v32  ;;  %7783 = vset.pattern.permute.xlu1 %v15055_v53  ;;  %v6475_v4 = vpop.f32.mrb[135].mxu0  ;;  %6917 = vmatmul.mubr.f32.gmra.mrb[90].mxu1 %v4201_v50  ;;  %v4748_v53 = vld [vmem:[%s8938_s30 + $0x110] sm:$0xff]  ;;  %v4749_v32 = vld [vmem:[%s8938_s30 + $0x118] sm:$0xff] }
 0x752   : > { %4613 = vperm.xlu1 %7783, %v8519_v16   ;;  %v6708_v44 = vpop.f32.mrb[6].mxu1  ;;  %v15364_v4 = vld [vmem:[#allocation82_spill] sm:$0xff] }
 0x753   : > { %7162 = vst [vmem:[%s8938_s30 + $0x100] sm:$0xff] %v7064_v36  ;;  %v6709_v15 = vadd.f32 %v6708_v44, %v13342_v8  ;;  %v4530_v2 = vpop.permute.xlu1 %4529  ;;  %v6710_v33 = vpop.f32.mrb[7].mxu1  ;;  %v8521_v8 = vld [vmem:[%s8931_s21 + $0x268] sm:$0xff]  ;;  %v8522_v44 = vld [vmem:[%s8931_s21 + $0x270] sm:$0xff] }
 0x754   : > { %v4692_v25 = vmul.f32 %v8520_v12, %v4530_v2  ;;  %v4750_v12 = vld [vmem:[%s8938_s30 + $0x120] sm:$0xff] }
 0x755   : > { %v7065_v3 = vadd.f32 %v6709_v15, %v4747_v39  ;;  %v4694_v15 = vmul.f32 %v8522_v44, %v4538_v24 }
 0x756   : > { %v6713_v59 = vpop.f32.mrb[8].mxu1  ;;  %6921 = vmatprep.mubr.f32.mxu1 %v4692_v25 }
 0x757   : > { %7163 = vst [vmem:[%s8938_s30 + $0x108] sm:$0xff] %v7065_v3  ;;  %v6714_v50 = vadd.f32 %v6713_v59, %v13354_v40  ;;  %v4534_v22 = vpop.permute.xlu1 %4533  ;;  %6922 = vmatmul.mubr.f32.gmra.mrb[92].mxu1 %v4202_v48  ;;  %v6715_v27 = vpop.f32.mrb[9].mxu1 }
 0x758   : > { %v4693_v30 = vmul.f32 %v8521_v8, %v4534_v22  ;;  %v4751_v22 = vld [vmem:[%s8938_s30 + $0x128] sm:$0xff]  ;;  %v4052_v27 = vpop.permute.xlu0 %4051 }
 0x759   : > { %v7066_v36 = vadd.f32 %v6714_v50, %v4748_v53 }
 0x75a   : > { %v6718_v14 = vpop.f32.mrb[10].mxu1  ;;  %6926 = vmatprep.mubr.f32.mxu1 %v4693_v30 }
 0x75b   : > { %7164 = vst [vmem:[%s8938_s30 + $0x110] sm:$0xff] %v7066_v36  ;;  %v6719_v16 = vadd.f32 %v6718_v14, %v15364_v4  ;;  %v6720_v39 = vpop.f32.mrb[11].mxu1 }
 0x75c   : > { %v4044_v2 = vpop.permute.xlu1 %4043 }
 0x75d   : > { %v7067_v40 = vadd.f32 %v6719_v16, %v4749_v32  ;;  %v4203_v33 = vmul.f32 %v8521_v8, %v4044_v2  ;;  %v8523_v32 = vld [vmem:[%s8931_s21 + $0x278] sm:$0xff]  ;;  %v4752_v16 = vld [vmem:[%s8938_s30 + $0x130] sm:$0xff]  ;;  %v4550_v2 = vpop.permute.xlu0 %4549 }
 0x75e   : > { %v6723_v48 = vpop.f32.mrb[12].mxu1  ;;  %v4205_v14 = vmul.f32 %v8523_v32, %v4052_v27 }
 0x75f   : > { %7165 = vst [vmem:[%s8938_s30 + $0x118] sm:$0xff] %v7067_v40  ;;  %v6724_v25 = vadd.f32 %v6723_v48, %v13380_v60  ;;  %v6725_v3 = vpop.f32.mrb[13].mxu1  ;;  %6927 = vmatmul.mubr.f32.gmra.mrb[94].mxu1 %v4203_v33  ;;  %v8524_v33 = vld [vmem:[%s8931_s21 + $0x280] sm:$0xff]  ;;  %v4753_v48 = vld [vmem:[%s8938_s30 + $0x138] sm:$0xff] }
 0x760   : > { %v4048_v53 = vpop.permute.xlu1 %4047  ;;  %6931 = vmatprep.mubr.f32.mxu1 %v4694_v15  ;;  %v15365_v3 = vld [vmem:[#allocation66_spill] sm:$0xff] }
 0x761   : > { %v7068_v59 = vadd.f32 %v6724_v25, %v4750_v12  ;;  %v4204_v50 = vmul.f32 %v8522_v44, %v4048_v53 }
 0x762   : > { %v6728_v24 = vpop.f32.mrb[14].mxu1 }
 0x763   : > { %7166 = vst [vmem:[%s8938_s30 + $0x120] sm:$0xff] %v7068_v59  ;;  %v6729_v8 = vadd.f32 %v6728_v24, %v13395_v52  ;;  %6932 = vmatmul.mubr.f32.gmra.mrb[96].mxu1 %v4204_v50  ;;  %v6730_v30 = vpop.f32.mrb[15].mxu1  ;;  %v4562_v50 = vpop.permute.xlu0 %4561  ;;  %v4754_v24 = vld [vmem:[%s8938_s30 + $0x140] sm:$0xff] }
 0x765   : > { %v7069_v36 = vadd.f32 %v6729_v8, %v4751_v22  ;;  %v4542_v60 = vpop.permute.xlu1 %4541  ;;  %v8525_v8 = vld [vmem:[%s8931_s21 + $0x288] sm:$0xff] }
 0x766   : > { %v4695_v4 = vmul.f32 %v8523_v32, %v4542_v60  ;;  %v6733_v39 = vpop.f32.mrb[16].mxu1  ;;  %v4697_v30 = vmul.f32 %v8525_v8, %v4550_v2  ;;  %v15366_v60 = vld [vmem:[#allocation95_spill] sm:$0xff] }
 0x767   : > { %7167 = vst [vmem:[%s8938_s30 + $0x128] sm:$0xff] %v7069_v36  ;;  %v6734_v44 = vadd.f32 %v6733_v39, %v13408_v10  ;;  %v6735_v15 = vpop.f32.mrb[17].mxu1  ;;  %v4755_v39 = vld [vmem:[%s8938_s30 + $0x148] sm:$0xff] }
 0x768   : > { %6936 = vmatprep.mubr.f32.mxu1 %v4695_v4 }
 0x769   : > { %v7070_v52 = vadd.f32 %v6734_v44, %v4752_v16  ;;  %v4546_v40 = vpop.permute.xlu1 %4545  ;;  %6937 = vmatmul.mubr.f32.gmra.mrb[98].mxu1 %v4205_v14 }
 0x76a   : > { %v4696_v12 = vmul.f32 %v8524_v33, %v4546_v40  ;;  %v6738_v25 = vpop.f32.mrb[18].mxu1 }
 0x76b   : > { %7168 = vst [vmem:[%s8938_s30 + $0x130] sm:$0xff] %v7070_v52  ;;  %v6739_v53 = vadd.f32 %v6738_v25, %v15365_v3  ;;  %v6740_v59 = vpop.f32.mrb[19].mxu1  ;;  %v15367_v52 = vld [vmem:[#allocation41_spill] sm:$0xff] }
 0x76c   : > { %6941 = vmatprep.mubr.f32.mxu1 %v4696_v12  ;;  %v4064_v12 = vpop.permute.xlu0 %4063 }
 0x76d   : > { %v7071_v10 = vadd.f32 %v6739_v53, %v4753_v48  ;;  %v4756_v48 = vld [vmem:[%s8938_s30 + $0x150] sm:$0xff] }
 0x76e   : > { %v4056_v22 = vpop.permute.xlu1 %4055  ;;  %v6743_v27 = vpop.f32.mrb[20].mxu1 }
 0x76f   : > { %7169 = vst [vmem:[%s8938_s30 + $0x138] sm:$0xff] %v7071_v10  ;;  %v4206_v36 = vmul.f32 %v8524_v33, %v4056_v22  ;;  %v6744_v32 = vadd.f32 %v6743_v27, %v15366_v60  ;;  %v6745_v14 = vpop.f32.mrb[21].mxu1  ;;  %v8526_v10 = vld [vmem:[%s8931_s21 + $0x290] sm:$0xff] }
 0x770   : > { %v4208_v22 = vmul.f32 %v8526_v10, %v4064_v12 }
 0x771   : > { %v7072_v4 = vadd.f32 %v6744_v32, %v4754_v24  ;;  %6942 = vmatmul.mubr.f32.gmra.mrb[100].mxu1 %v4206_v36 }
 0x772   : > { %v4060_v16 = vpop.permute.xlu1 %4059  ;;  %v6748_v44 = vpop.f32.mrb[22].mxu1  ;;  %6946 = vmatprep.mubr.f32.mxu1 %v4697_v30 }
 0x773   : > { %7170 = vst [vmem:[%s8938_s30 + $0x140] sm:$0xff] %v7072_v4  ;;  %v4207_v15 = vmul.f32 %v8525_v8, %v4060_v16  ;;  %v6749_v40 = vadd.f32 %v6748_v44, %v15367_v52  ;;  %v6750_v2 = vpop.f32.mrb[23].mxu1  ;;  %v4757_v8 = vld [vmem:[%s8938_s30 + $0x158] sm:$0xff]  ;;  %v4758_v16 = vld [vmem:[%s8938_s30 + $0x160] sm:$0xff] }
 0x774   : > { %v8528_v52 = vld [vmem:[%s8931_s21 + $0x2a0] sm:$0xff] }
 0x775   : > { %v7073_v33 = vadd.f32 %v6749_v40, %v4755_v39  ;;  %6947 = vmatmul.mubr.f32.gmra.mrb[102].mxu1 %v4207_v15  ;;  %v4700_v40 = vmul.f32 %v8528_v52, %v4562_v50 }
 0x776   : > { %v6753_v25 = vpop.f32.mrb[24].mxu1 }
 0x777   : > { %7171 = vst [vmem:[%s8938_s30 + $0x148] sm:$0xff] %v7073_v33  ;;  %v6754_v3 = vadd.f32 %v6753_v25, %v13458_v56  ;;  %v4554_v53 = vpop.permute.xlu1 %4553  ;;  %v6755_v59 = vpop.f32.mrb[25].mxu1  ;;  %v8527_v56 = vld [vmem:[%s8931_s21 + $0x298] sm:$0xff] }
 0x778   : > { %v4698_v24 = vmul.f32 %v8526_v10, %v4554_v53  ;;  %v4759_v33 = vld [vmem:[%s8938_s30 + $0x168] sm:$0xff]  ;;  %v4760_v10 = vld [vmem:[%s8938_s30 + $0x170] sm:$0xff] }
 0x779   : > { %v7074_v27 = vadd.f32 %v6754_v3, %v4756_v48 }
 0x77a   : > { %v6758_v30 = vpop.f32.mrb[26].mxu1  ;;  %6951 = vmatprep.mubr.f32.mxu1 %v4698_v24 }
 0x77b   : > { %7172 = vst [vmem:[%s8938_s30 + $0x150] sm:$0xff] %v7074_v27  ;;  %v6759_v36 = vadd.f32 %v6758_v30, %v13472_v41  ;;  %v4558_v60 = vpop.permute.xlu1 %4557  ;;  %6952 = vmatmul.mubr.f32.gmra.mrb[104].mxu1 %v4208_v22  ;;  %v6760_v32 = vpop.f32.mrb[27].mxu1  ;;  %v8529_v30 = vld [vmem:[%s8931_s21 + $0x2a8] sm:$0xff] }
 0x77c   : > { %v4699_v14 = vmul.f32 %v8527_v56, %v4558_v60  ;;  %v4076_v22 = vpop.permute.xlu0 %4075  ;;  %v4761_v32 = vld [vmem:[%s8938_s30 + $0x178] sm:$0xff] }
 0x77d   : > { %v7075_v4 = vadd.f32 %v6759_v36, %v4757_v8  ;;  %v4211_v36 = vmul.f32 %v8529_v30, %v4076_v22  ;;  %v4764_v22 = vld [vmem:[%s8938_s30 + $0x190] sm:$0xff] }
 0x77e   : > { %v6763_v39 = vpop.f32.mrb[28].mxu1  ;;  %6956 = vmatprep.mubr.f32.mxu1 %v4699_v14 }
 0x77f   : > { %7173 = vst [vmem:[%s8938_s30 + $0x158] sm:$0xff] %v7075_v4  ;;  %v6764_v44 = vadd.f32 %v6763_v39, %v13481_v31  ;;  %v6765_v15 = vpop.f32.mrb[29].mxu1 }
 0x780   : > { %v4068_v2 = vpop.permute.xlu1 %4067 }
 0x781   : > { %v7076_v41 = vadd.f32 %v6764_v44, %v4758_v16  ;;  %v4209_v12 = vmul.f32 %v8527_v56, %v4068_v2  ;;  %v4574_v16 = vpop.permute.xlu0 %4573  ;;  %v8530_v44 = vld [vmem:[%s8931_s21 + $0x2b0] sm:$0xff] }
 0x782   : > { %v6768_v48 = vpop.f32.mrb[30].mxu1 }
 0x783   : > { %7174 = vst [vmem:[%s8938_s30 + $0x160] sm:$0xff] %v7076_v41  ;;  %v6769_v25 = vadd.f32 %v6768_v48, %v13489_v17  ;;  %v6770_v3 = vpop.f32.mrb[31].mxu1  ;;  %6957 = vmatmul.mubr.f32.gmra.mrb[106].mxu1 %v4209_v12  ;;  %v4763_v48 = vld [vmem:[%s8938_s30 + $0x188] sm:$0xff] }
 0x784   : > { %v4072_v53 = vpop.permute.xlu1 %4071  ;;  %6961 = vmatprep.mubr.f32.mxu1 %v4700_v40  ;;  %v8531_v3 = vld [vmem:[%s8931_s21 + $0x2b8] sm:$0xff] }
 0x785   : > { %v7077_v31 = vadd.f32 %v6769_v25, %v4759_v33  ;;  %v4210_v59 = vmul.f32 %v8528_v52, %v4072_v53  ;;  %v4762_v52 = vld [vmem:[%s8938_s30 + $0x180] sm:$0xff]  ;;  %v4586_v12 = vpop.permute.xlu0 %4585  ;;  %v4703_v53 = vmul.f32 %v8531_v3, %v4574_v16 }
 0x786   : > { %v6773_v50 = vpop.f32.mrb[32].mxu1 }
 0x787   : > { %7175 = vst [vmem:[%s8938_s30 + $0x168] sm:$0xff] %v7077_v31  ;;  %v6774_v24 = vadd.f32 %v6773_v50, %v13499_v35  ;;  %6962 = vmatmul.mubr.f32.gmra.mrb[108].mxu1 %v4210_v59  ;;  %v6775_v27 = vpop.f32.mrb[33].mxu1 }
 0x789   : > { %v7078_v8 = vadd.f32 %v6774_v24, %v4760_v10  ;;  %v4566_v17 = vpop.permute.xlu1 %4565 }
 0x78a   : > { %v4701_v60 = vmul.f32 %v8529_v30, %v4566_v17  ;;  %v6778_v56 = vpop.f32.mrb[34].mxu1  ;;  %v4088_v30 = vpop.permute.xlu0 %4087 }
 0x78b   : > { %7176 = vst [vmem:[%s8938_s30 + $0x170] sm:$0xff] %v7078_v8  ;;  %v6779_v14 = vadd.f32 %v6778_v56, %v13506_v6  ;;  %v6780_v4 = vpop.f32.mrb[35].mxu1 }
 0x78c   : > { %6966 = vmatprep.mubr.f32.mxu1 %v4701_v60  ;;  %v8532_v4 = vld [vmem:[%s8931_s21 + $0x2c0] sm:$0xff] }
 0x78d   : > { %v7079_v35 = vadd.f32 %v6779_v14, %v4761_v32  ;;  %v4570_v39 = vpop.permute.xlu1 %4569  ;;  %6967 = vmatmul.mubr.f32.gmra.mrb[110].mxu1 %v4211_v36  ;;  %v4214_v16 = vmul.f32 %v8532_v4, %v4088_v30 }
 0x78e   : > { %v4702_v15 = vmul.f32 %v8530_v44, %v4570_v39  ;;  %v6783_v40 = vpop.f32.mrb[36].mxu1  ;;  %v4100_v30 = vpop.permute.xlu0 %4099 }
 0x78f   : > { %7177 = vst [vmem:[%s8938_s30 + $0x178] sm:$0xff] %v7079_v35  ;;  %v6784_v2 = vadd.f32 %v6783_v40, %v13513_v9  ;;  %v6785_v41 = vpop.f32.mrb[37].mxu1 }
 0x790   : > { %6971 = vmatprep.mubr.f32.mxu1 %v4702_v15  ;;  %v15368_v15 = vld [vmem:[#allocation122_spill] sm:$0xff] }
 0x791   : > { %v7080_v6 = vadd.f32 %v6784_v2, %v4762_v52 }
 0x792   : > { %v4080_v33 = vpop.permute.xlu1 %4079  ;;  %v6788_v25 = vpop.f32.mrb[38].mxu1 }
 0x793   : > { %7178 = vst [vmem:[%s8938_s30 + $0x180] sm:$0xff] %v7080_v6  ;;  %v4212_v31 = vmul.f32 %v8530_v44, %v4080_v33  ;;  %v6789_v59 = vadd.f32 %v6788_v25, %v13521_v11  ;;  %v6790_v10 = vpop.f32.mrb[39].mxu1  ;;  %v4765_v11 = vld [vmem:[%s8938_s30 + $0x198] sm:$0xff]  ;;  %v4767_v33 = vld [vmem:[%s8938_s30 + $0x1a8] sm:$0xff] }
 0x795   : > { %v7081_v50 = vadd.f32 %v6789_v59, %v4763_v48  ;;  %6972 = vmatmul.mubr.f32.gmra.mrb[112].mxu1 %v4212_v31 }
 0x796   : > { %v4084_v9 = vpop.permute.xlu1 %4083  ;;  %v6793_v24 = vpop.f32.mrb[40].mxu1  ;;  %6976 = vmatprep.mubr.f32.mxu1 %v4703_v53  ;;  %v8534_v53 = vld [vmem:[%s8931_s21 + $0x2d0] sm:$0xff] }
 0x797   : > { %7179 = vst [vmem:[%s8938_s30 + $0x188] sm:$0xff] %v7081_v50  ;;  %v4213_v27 = vmul.f32 %v8531_v3, %v4084_v9  ;;  %v6794_v8 = vadd.f32 %v6793_v24, %v13526_v28  ;;  %v6795_v17 = vpop.f32.mrb[41].mxu1  ;;  %v4766_v28 = vld [vmem:[%s8938_s30 + $0x1a0] sm:$0xff]  ;;  %v4706_v31 = vmul.f32 %v8534_v53, %v4586_v12  ;;  %v4768_v9 = vld [vmem:[%s8938_s30 + $0x1b0] sm:$0xff]  ;;  %v4769_v12 = vld [vmem:[%s8938_s30 + $0x1b8] sm:$0xff] }
 0x799   : > { %v7082_v36 = vadd.f32 %v6794_v8, %v4764_v22  ;;  %6977 = vmatmul.mubr.f32.gmra.mrb[114].mxu1 %v4213_v27 }
 0x79a   : > { %v6798_v60 = vpop.f32.mrb[42].mxu1 }
 0x79b   : > { %7180 = vst [vmem:[%s8938_s30 + $0x190] sm:$0xff] %v7082_v36  ;;  %v6799_v32 = vadd.f32 %v6798_v60, %v13531_v0  ;;  %v4578_v56 = vpop.permute.xlu1 %4577  ;;  %v6800_v14 = vpop.f32.mrb[43].mxu1  ;;  %v8533_v0 = vld [vmem:[%s8931_s21 + $0x2c8] sm:$0xff] }
 0x79c   : > { %v4704_v35 = vmul.f32 %v8532_v4, %v4578_v56 }
 0x79d   : > { %v7083_v39 = vadd.f32 %v6799_v32, %v4765_v11  ;;  %v8535_v32 = vld [vmem:[%s8931_s21 + $0x2d8] sm:$0xff] }
 0x79e   : > { %v6803_v44 = vpop.f32.mrb[44].mxu1  ;;  %6981 = vmatprep.mubr.f32.mxu1 %v4704_v35  ;;  %v4217_v56 = vmul.f32 %v8535_v32, %v4100_v30  ;;  %v8536_v35 = vld [vmem:[%s8931_s21 + $0x2e0] sm:$0xff] }
 0x79f   : > { %7181 = vst [vmem:[%s8938_s30 + $0x198] sm:$0xff] %v7083_v39  ;;  %v6804_v52 = vadd.f32 %v6803_v44, %v15368_v15  ;;  %v4582_v40 = vpop.permute.xlu1 %4581  ;;  %6982 = vmatmul.mubr.f32.gmra.mrb[116].mxu1 %v4214_v16  ;;  %v6805_v2 = vpop.f32.mrb[45].mxu1  ;;  %v4770_v44 = vld [vmem:[%s8938_s30 + $0x1c0] sm:$0xff] }
 0x7a0   : > { %v4705_v41 = vmul.f32 %v8533_v0, %v4582_v40 }
 0x7a1   : > { %v7084_v6 = vadd.f32 %v6804_v52, %v4766_v28  ;;  %v4598_v28 = vpop.permute.xlu0 %4597 }
 0x7a2   : > { %v6808_v48 = vpop.f32.mrb[46].mxu1  ;;  %6986 = vmatprep.mubr.f32.mxu1 %v4705_v41 }
 0x7a3   : > { %7182 = vst [vmem:[%s8938_s30 + $0x1a0] sm:$0xff] %v7084_v6  ;;  %v6809_v25 = vadd.f32 %v6808_v48, %v13545_v13  ;;  %v6810_v3 = vpop.f32.mrb[47].mxu1  ;;  %v4771_v48 = vld [vmem:[%s8938_s30 + $0x1c8] sm:$0xff] }
 0x7a4   : > { %v4092_v59 = vpop.permute.xlu1 %4091  ;;  %v15370_v3 = vld [vmem:[#allocation116_spill] sm:$0xff] }
 0x7a5   : > { %v7085_v10 = vadd.f32 %v6809_v25, %v4767_v33  ;;  %v4215_v50 = vmul.f32 %v8533_v0, %v4092_v59  ;;  %v8537_v0 = vld [vmem:[%s8931_s21 + $0x2e8] sm:$0xff] }
 0x7a6   : > { %v6813_v22 = vpop.f32.mrb[48].mxu1  ;;  %v4709_v41 = vmul.f32 %v8537_v0, %v4598_v28 }
 0x7a7   : > { %7183 = vst [vmem:[%s8938_s30 + $0x1a8] sm:$0xff] %v7085_v10  ;;  %v6814_v24 = vadd.f32 %v6813_v22, %v13550_v42  ;;  %v6815_v27 = vpop.f32.mrb[49].mxu1  ;;  %6987 = vmatmul.mubr.f32.gmra.mrb[118].mxu1 %v4215_v50  ;;  %v4772_v22 = vld [vmem:[%s8938_s30 + $0x1d0] sm:$0xff] }
 0x7a8   : > { %v4096_v8 = vpop.permute.xlu1 %4095  ;;  %6991 = vmatprep.mubr.f32.mxu1 %v4706_v31  ;;  %v15371_v27 = vld [vmem:[#allocation91_spill] sm:$0xff] }
 0x7a9   : > { %v7086_v13 = vadd.f32 %v6814_v24, %v4768_v9  ;;  %v4216_v17 = vmul.f32 %v8534_v53, %v4096_v8  ;;  %v4112_v9 = vpop.permute.xlu0 %4111 }
 0x7ab   : > { %7184 = vst [vmem:[%s8938_s30 + $0x1b0] sm:$0xff] %v7086_v13  ;;  %6992 = vmatmul.mubr.f32.gmra.mrb[120].mxu1 %v4216_v17  ;;  %v8538_v17 = vld [vmem:[%s8931_s21 + $0x2f0] sm:$0xff] }
 0x7ac   : > { %v6818_v36 = vpop.f32.mrb[50].mxu1  ;;  %v4220_v30 = vmul.f32 %v8538_v17, %v4112_v9 }
 0x7ad   : > { %v6819_v11 = vadd.f32 %v6818_v36, %v13556_v26  ;;  %v4590_v60 = vpop.permute.xlu1 %4589  ;;  %v6820_v42 = vpop.f32.mrb[51].mxu1  ;;  %v15369_v26 = vld [vmem:[#allocation162_spill] sm:$0xff] }
 0x7ae   : > { %v4707_v14 = vmul.f32 %v8535_v32, %v4590_v60  ;;  %v8539_v32 = vld [vmem:[%s8931_s21 + $0x2f8] sm:$0xff]  ;;  %v4610_v42 = vpop.permute.xlu0 %4609 }
 0x7af   : > { %v7087_v4 = vadd.f32 %v6819_v11, %v4769_v12 }
 0x7b0   : > { %6996 = vmatprep.mubr.f32.mxu1 %v4707_v14  ;;  %v4773_v14 = vld [vmem:[%s8938_s30 + $0x1d8] sm:$0xff] }
 0x7b1   : > { %7185 = vst [vmem:[%s8938_s30 + $0x1b8] sm:$0xff] %v7087_v4  ;;  %v4594_v16 = vpop.permute.xlu1 %4593  ;;  %6997 = vmatmul.mubr.f32.gmra.mrb[122].mxu1 %v4217_v56 }
 0x7b2   : > { %v4708_v39 = vmul.f32 %v8536_v35, %v4594_v16  ;;  %v15372_v16 = vld [vmem:[#allocation30_spill] sm:$0xff] }
 0x7b4   : > { %v6823_v15 = vpop.f32.mrb[52].mxu1  ;;  %7001 = vmatprep.mubr.f32.mxu1 %v4708_v39 }
 0x7b5   : > { %v6824_v52 = vadd.f32 %v6823_v15, %v15369_v26  ;;  %v6825_v40 = vpop.f32.mrb[53].mxu1 }
 0x7b6   : > { %v4104_v2 = vpop.permute.xlu1 %4103  ;;  %v4774_v40 = vld [vmem:[%s8938_s30 + $0x1e0] sm:$0xff] }
 0x7b7   : > { %v7088_v6 = vadd.f32 %v6824_v52, %v4770_v44  ;;  %v4218_v33 = vmul.f32 %v8536_v35, %v4104_v2  ;;  %v8540_v44 = vld [vmem:[%s8931_s21 + $0x300] sm:$0xff] }
 0x7b8   : > { %v6828_v25 = vpop.f32.mrb[54].mxu1  ;;  %v4712_v15 = vmul.f32 %v8540_v44, %v4610_v42 }
 0x7b9   : > { %7186 = vst [vmem:[%s8938_s30 + $0x1c0] sm:$0xff] %v7088_v6  ;;  %v6829_v53 = vadd.f32 %v6828_v25, %v15370_v3  ;;  %v6830_v31 = vpop.f32.mrb[55].mxu1  ;;  %7002 = vmatmul.mubr.f32.gmra.mrb[124].mxu1 %v4218_v33  ;;  %v4124_v25 = vpop.permute.xlu0 %4123  ;;  %v4775_v3 = vld [vmem:[%s8938_s30 + $0x1e8] sm:$0xff] }
 0x7ba   : > { %v4108_v59 = vpop.permute.xlu1 %4107  ;;  %7006 = vmatprep.mubr.f32.mxu1 %v4709_v41 }
 0x7bb   : > { %v7089_v10 = vadd.f32 %v6829_v53, %v4771_v48  ;;  %v4219_v50 = vmul.f32 %v8537_v0, %v4108_v59 }
 0x7bd   : > { %7187 = vst [vmem:[%s8938_s30 + $0x1c8] sm:$0xff] %v7089_v10  ;;  %7007 = vmatmul.mubr.f32.gmra.mrb[126].mxu1 %v4219_v50  ;;  %v8541_v10 = vld [vmem:[%s8931_s21 + $0x308] sm:$0xff] }
 0x7be   : > { %v6833_v24 = vpop.f32.mrb[56].mxu1 }
 0x7bf   : > { %v6834_v8 = vadd.f32 %v6833_v24, %v15371_v27  ;;  %v4602_v13 = vpop.permute.xlu1 %4601  ;;  %v6835_v12 = vpop.f32.mrb[57].mxu1  ;;  %v4776_v24 = vld [vmem:[%s8938_s30 + $0x1f0] sm:$0xff] }
 0x7c0   : > { %v4710_v36 = vmul.f32 %v8538_v17, %v4602_v13  ;;  %v4777_v17 = vld [vmem:[%s8938_s30 + $0x1f8] sm:$0xff] }
 0x7c1   : > { %v7090_v11 = vadd.f32 %v6834_v8, %v4772_v22 }
 0x7c2   : > { %7011 = vmatprep.mubr.f32.mxu1 %v4710_v36 }
 0x7c3   : > { %7188 = vst [vmem:[%s8938_s30 + $0x1d0] sm:$0xff] %v7090_v11  ;;  %v4606_v60 = vpop.permute.xlu1 %4605  ;;  %7012 = vmatmul.mubr.f32.gmra.mrb[128].mxu1 %v4220_v30 }
 0x7c4   : > { %v4711_v56 = vmul.f32 %v8539_v32, %v4606_v60  ;;  %v4778_v60 = vld [vmem:[%s8938_s30 + $0x200] sm:$0xff] }
 0x7c6   : > { %v6838_v4 = vpop.f32.mrb[58].mxu1  ;;  %7016 = vmatprep.mubr.f32.mxu1 %v4711_v56 }
 0x7c7   : > { %v6839_v35 = vadd.f32 %v6838_v4, %v15372_v16  ;;  %v6840_v39 = vpop.f32.mrb[59].mxu1  ;;  %v15373_v16 = vld [vmem:[#allocation44_spill] sm:$0xff] }
 0x7c8   : > { %v4116_v28 = vpop.permute.xlu1 %4115 }
 0x7c9   : > { %v7091_v26 = vadd.f32 %v6839_v35, %v4773_v14  ;;  %v4221_v52 = vmul.f32 %v8539_v32, %v4116_v28  ;;  %v4779_v14 = vld [vmem:[%s8938_s30 + $0x208] sm:$0xff]  ;;  %v4780_v28 = vld [vmem:[%s8938_s30 + $0x210] sm:$0xff] }
 0x7ca   : > { %v6843_v2 = vpop.f32.mrb[60].mxu1 }
 0x7cb   : > { %7189 = vst [vmem:[%s8938_s30 + $0x1d8] sm:$0xff] %v7091_v26  ;;  %v6844_v0 = vadd.f32 %v6843_v2, %v13582_v62  ;;  %v6845_v41 = vpop.f32.mrb[61].mxu1  ;;  %7017 = vmatmul.mubr.f32.gmra.mrb[130].mxu1 %v4221_v52  ;;  %v4223_v62 = vmul.f32 %v8541_v10, %v4124_v25 }
 0x7cc   : > { %v4120_v6 = vpop.permute.xlu1 %4119  ;;  %7021 = vmatprep.mubr.f32.mxu1 %v4712_v15  ;;  %v15374_v15 = vld [vmem:[#allocation87_spill] sm:$0xff] }
 0x7cd   : > { %v7092_v33 = vadd.f32 %v6844_v0, %v4774_v40  ;;  %v4222_v48 = vmul.f32 %v8540_v44, %v4120_v6  ;;  %v4781_v40 = vld [vmem:[%s8938_s30 + $0x218] sm:$0xff] }
 0x7ce   : > { %v15375_v0 = vld [vmem:[#allocation94_spill] sm:$0xff] }
 0x7cf   : > { %7190 = vst [vmem:[%s8938_s30 + $0x1e0] sm:$0xff] %v7092_v33  ;;  %7022 = vmatmul.mubr.f32.gmra.mrb[132].mxu1 %v4222_v48  ;;  %v4782_v48 = vld [vmem:[%s8938_s30 + $0x220] sm:$0xff] }
 0x7d0   : > { %v6848_v53 = vpop.f32.mrb[62].mxu1 }
 0x7d1   : > { %v6849_v31 = vadd.f32 %v6848_v53, %v13589_v45  ;;  %v4614_v59 = vpop.permute.xlu1 %4613  ;;  %v6850_v50 = vpop.f32.mrb[63].mxu1 }
 0x7d2   : > { %v4713_v9 = vmul.f32 %v8541_v10, %v4614_v59  ;;  %v4783_v10 = vld [vmem:[%s8938_s30 + $0x228] sm:$0xff] }
 0x7d3   : > { %v7093_v22 = vadd.f32 %v6849_v31, %v4775_v3  ;;  %v15376_v3 = vld [vmem:[#allocation20_spill] sm:$0xff] }
 0x7d4   : > { %7026 = vmatprep.mubr.f32.mxu1 %v4713_v9 }
 0x7d5   : > { %7191 = vst [vmem:[%s8938_s30 + $0x1e8] sm:$0xff] %v7093_v22  ;;  %7027 = vmatmul.mubr.f32.gmra.mrb[134].mxu1 %v4223_v62 }
 0x7d8   : > { %v6853_v27 = vpop.f32.mrb[64].mxu1 }
 0x7d9   : > { %v6854_v8 = vadd.f32 %v6853_v27, %v13594_v20  ;;  %v6855_v13 = vpop.f32.mrb[65].mxu1 }
 0x7db   : > { %v7094_v45 = vadd.f32 %v6854_v8, %v4776_v24  ;;  %v4784_v24 = vld [vmem:[%s8938_s30 + $0x230] sm:$0xff] }
 0x7dc   : > { %v6858_v30 = vpop.f32.mrb[66].mxu1  ;;  %v15377_v8 = vld [vmem:[#allocation43_spill] sm:$0xff] }
 0x7dd   : > { %7192 = vst [vmem:[%s8938_s30 + $0x1f0] sm:$0xff] %v7094_v45  ;;  %v6859_v12 = vadd.f32 %v6858_v30, %v13599_v37  ;;  %v6860_v36 = vpop.f32.mrb[67].mxu1  ;;  %v4785_v30 = vld [vmem:[%s8938_s30 + $0x238] sm:$0xff] }
 0x7de   : > { %v15378_v36 = vld [vmem:[#allocation124_spill] sm:$0xff] }
 0x7df   : > { %v7095_v11 = vadd.f32 %v6859_v12, %v4777_v17 }
 0x7e1   : > { %7193 = vst [vmem:[%s8938_s30 + $0x1f8] sm:$0xff] %v7095_v11 }
 0x7e2   : > { %v6863_v32 = vpop.f32.mrb[68].mxu1 }
 0x7e3   : > { %v6864_v56 = vadd.f32 %v6863_v32, %v13605_v47  ;;  %v6865_v20 = vpop.f32.mrb[69].mxu1  ;;  %v4786_v32 = vld [vmem:[%s8938_s30 + $0x240] sm:$0xff] }
 0x7e4   : > { %v15379_v20 = vld [vmem:[#allocation100_spill] sm:$0xff] }
 0x7e5   : > { %v7096_v42 = vadd.f32 %v6864_v56, %v4778_v60 }
 0x7e7   : > { %7194 = vst [vmem:[%s8938_s30 + $0x200] sm:$0xff] %v7096_v42 }
 0x7ea   : > { %v6868_v4 = vpop.f32.mrb[70].mxu1 }
 0x7eb   : > { %v6869_v35 = vadd.f32 %v6868_v4, %v15373_v16  ;;  %v6870_v37 = vpop.f32.mrb[71].mxu1  ;;  %v4787_v16 = vld [vmem:[%s8938_s30 + $0x248] sm:$0xff] }
 0x7ec   : > { %v15380_v37 = vld [vmem:[#allocation108_spill] sm:$0xff] }
 0x7ed   : > { %v7097_v39 = vadd.f32 %v6869_v35, %v4779_v14 }
 0x7ee   : > { %v6873_v44 = vpop.f32.mrb[72].mxu1 }
 0x7ef   : > { %7195 = vst [vmem:[%s8938_s30 + $0x208] sm:$0xff] %v7097_v39  ;;  %v6874_v26 = vadd.f32 %v6873_v44, %v15374_v15  ;;  %v6875_v52 = vpop.f32.mrb[73].mxu1  ;;  %v4788_v15 = vld [vmem:[%s8938_s30 + $0x250] sm:$0xff] }
 0x7f0   : > { %v15381_v52 = vld [vmem:[#allocation31_spill] sm:$0xff] }
 0x7f1   : > { %v7098_v47 = vadd.f32 %v6874_v26, %v4780_v28 }
 0x7f3   : > { %7196 = vst [vmem:[%s8938_s30 + $0x210] sm:$0xff] %v7098_v47 }
 0x7f4   : > { %v6878_v2 = vpop.f32.mrb[74].mxu1 }
 0x7f5   : > { %v6879_v41 = vadd.f32 %v6878_v2, %v15375_v0  ;;  %v6880_v6 = vpop.f32.mrb[75].mxu1  ;;  %v4789_v0 = vld [vmem:[%s8938_s30 + $0x258] sm:$0xff] }
 0x7f6   : > { %v15382_v6 = vld [vmem:[#allocation97_spill] sm:$0xff] }
 0x7f7   : > { %v7099_v33 = vadd.f32 %v6879_v41, %v4781_v40 }
 0x7f9   : > { %7197 = vst [vmem:[%s8938_s30 + $0x218] sm:$0xff] %v7099_v33 }
 0x7fc   : > { %v6883_v25 = vpop.f32.mrb[76].mxu1 }
 0x7fd   : > { %v6884_v53 = vadd.f32 %v6883_v25, %v15376_v3  ;;  %v6885_v31 = vpop.f32.mrb[77].mxu1  ;;  %v4790_v3 = vld [vmem:[%s8938_s30 + $0x260] sm:$0xff] }
 0x7fe   : > { %v15383_v31 = vld [vmem:[#allocation102_spill] sm:$0xff] }
 0x7ff   : > { %v7100_v59 = vadd.f32 %v6884_v53, %v4782_v48 }
 0x800   : > { %v6888_v62 = vpop.f32.mrb[78].mxu1 }
 0x801   : > { %7198 = vst [vmem:[%s8938_s30 + $0x220] sm:$0xff] %v7100_v59  ;;  %v6889_v50 = vadd.f32 %v6888_v62, %v13641_v51  ;;  %v6890_v9 = vpop.f32.mrb[79].mxu1 }
 0x803   : > { %v7101_v22 = vadd.f32 %v6889_v50, %v4783_v10  ;;  %v4791_v50 = vld [vmem:[%s8938_s30 + $0x268] sm:$0xff] }
 0x805   : > { %7199 = vst [vmem:[%s8938_s30 + $0x228] sm:$0xff] %v7101_v22  ;;  %v15384_v22 = vld [vmem:[#allocation178_spill] sm:$0xff] }
 0x806   : > { %v6893_v27 = vpop.f32.mrb[80].mxu1 }
 0x807   : > { %v6894_v13 = vadd.f32 %v6893_v27, %v15377_v8  ;;  %v6895_v45 = vpop.f32.mrb[81].mxu1 }
 0x809   : > { %v7102_v17 = vadd.f32 %v6894_v13, %v4784_v24  ;;  %v4792_v13 = vld [vmem:[%s8938_s30 + $0x270] sm:$0xff] }
 0x80b   : > { %7200 = vst [vmem:[%s8938_s30 + $0x230] sm:$0xff] %v7102_v17 }
 0x80e   : > { %v6898_v12 = vpop.f32.mrb[82].mxu1 }
 0x80f   : > { %v6899_v11 = vadd.f32 %v6898_v12, %v15378_v36  ;;  %v6900_v51 = vpop.f32.mrb[83].mxu1  ;;  %v4793_v36 = vld [vmem:[%s8938_s30 + $0x278] sm:$0xff] }
 0x811   : > { %v7103_v60 = vadd.f32 %v6899_v11, %v4785_v30 }
 0x812   : > { %v6903_v56 = vpop.f32.mrb[84].mxu1 }
 0x813   : > { %7201 = vst [vmem:[%s8938_s30 + $0x238] sm:$0xff] %v7103_v60  ;;  %v6904_v42 = vadd.f32 %v6903_v56, %v15379_v20  ;;  %v6905_v14 = vpop.f32.mrb[85].mxu1  ;;  %v4794_v56 = vld [vmem:[%s8938_s30 + $0x280] sm:$0xff] }
 0x815   : > { %v7104_v4 = vadd.f32 %v6904_v42, %v4786_v32 }
 0x817   : > { %7202 = vst [vmem:[%s8938_s30 + $0x240] sm:$0xff] %v7104_v4  ;;  %v4795_v4 = vld [vmem:[%s8938_s30 + $0x288] sm:$0xff] }
 0x818   : > { %v6908_v35 = vpop.f32.mrb[86].mxu1 }
 0x819   : > { %v6909_v39 = vadd.f32 %v6908_v35, %v15380_v37  ;;  %v6910_v28 = vpop.f32.mrb[87].mxu1 }
 0x81b   : > { %v7105_v44 = vadd.f32 %v6909_v39, %v4787_v16  ;;  %v4796_v39 = vld [vmem:[%s8938_s30 + $0x290] sm:$0xff] }
 0x81d   : > { %7203 = vst [vmem:[%s8938_s30 + $0x248] sm:$0xff] %v7105_v44 }
 0x820   : > { %v6913_v26 = vpop.f32.mrb[88].mxu1 }
 0x821   : > { %v6914_v47 = vadd.f32 %v6913_v26, %v15381_v52  ;;  %v6915_v40 = vpop.f32.mrb[89].mxu1  ;;  %v4797_v26 = vld [vmem:[%s8938_s30 + $0x298] sm:$0xff] }
 0x823   : > { %v7106_v2 = vadd.f32 %v6914_v47, %v4788_v15 }
 0x824   : > { %v6918_v41 = vpop.f32.mrb[90].mxu1 }
 0x825   : > { %7204 = vst [vmem:[%s8938_s30 + $0x250] sm:$0xff] %v7106_v2  ;;  %v6919_v33 = vadd.f32 %v6918_v41, %v15382_v6  ;;  %v6920_v48 = vpop.f32.mrb[91].mxu1  ;;  %v4798_v2 = vld [vmem:[%s8938_s30 + $0x2a0] sm:$0xff] }
 0x827   : > { %v7107_v25 = vadd.f32 %v6919_v33, %v4789_v0  ;;  %v4799_v33 = vld [vmem:[%s8938_s30 + $0x2a8] sm:$0xff] }
 0x829   : > { %7205 = vst [vmem:[%s8938_s30 + $0x258] sm:$0xff] %v7107_v25 }
 0x82a   : > { %v6923_v53 = vpop.f32.mrb[92].mxu1 }
 0x82b   : > { %v6924_v59 = vadd.f32 %v6923_v53, %v15383_v31  ;;  %v6925_v10 = vpop.f32.mrb[93].mxu1  ;;  %v4800_v53 = vld [vmem:[%s8938_s30 + $0x2b0] sm:$0xff] }
 0x82d   : > { %v7108_v62 = vadd.f32 %v6924_v59, %v4790_v3 }
 0x82f   : > { %7206 = vst [vmem:[%s8938_s30 + $0x260] sm:$0xff] %v7108_v62  ;;  %v4801_v62 = vld [vmem:[%s8938_s30 + $0x2b8] sm:$0xff] }
 0x832   : > { %v6928_v9 = vpop.f32.mrb[94].mxu1 }
 0x833   : > { %v6929_v24 = vadd.f32 %v6928_v9, %v15384_v22  ;;  %v6930_v27 = vpop.f32.mrb[95].mxu1 }
 0x835   : > { %v7109_v8 = vadd.f32 %v6929_v24, %v4791_v50  ;;  %v4802_v24 = vld [vmem:[%s8938_s30 + $0x2c0] sm:$0xff] }
 0x836   : > { %v6933_v45 = vpop.f32.mrb[96].mxu1 }
 0x837   : > { %7207 = vst [vmem:[%s8938_s30 + $0x268] sm:$0xff] %v7109_v8  ;;  %v6934_v17 = vadd.f32 %v6933_v45, %v13714_v58  ;;  %v6935_v30 = vpop.f32.mrb[97].mxu1  ;;  %v4803_v45 = vld [vmem:[%s8938_s30 + $0x2c8] sm:$0xff] }
 0x839   : > { %v7110_v12 = vadd.f32 %v6934_v17, %v4792_v13 }
 0x83b   : > { %7208 = vst [vmem:[%s8938_s30 + $0x270] sm:$0xff] %v7110_v12 }
 0x83c   : > { %v6938_v11 = vpop.f32.mrb[98].mxu1 }
 0x83d   : > { %v6939_v51 = vadd.f32 %v6938_v11, %v13721_v29  ;;  %v6940_v60 = vpop.f32.mrb[99].mxu1 }
 0x83f   : > { %v7111_v32 = vadd.f32 %v6939_v51, %v4793_v36  ;;  %v4804_v36 = vld [vmem:[%s8938_s30 + $0x2d0] sm:$0xff] }
 0x841   : > { %7209 = vst [vmem:[%s8938_s30 + $0x278] sm:$0xff] %v7111_v32  ;;  %v4805_v32 = vld [vmem:[%s8938_s30 + $0x2d8] sm:$0xff] }
 0x844   : > { %v6943_v20 = vpop.f32.mrb[100].mxu1 }
 0x845   : > { %v6944_v42 = vadd.f32 %v6943_v20, %v13730_v54  ;;  %v6945_v58 = vpop.f32.mrb[101].mxu1 }
 0x846   : > { %v4806_v58 = vld [vmem:[%s8938_s30 + $0x2e0] sm:$0xff] }
 0x847   : > { %v7112_v14 = vadd.f32 %v6944_v42, %v4794_v56 }
 0x848   : > { %v6948_v16 = vpop.f32.mrb[102].mxu1 }
 0x849   : > { %7210 = vst [vmem:[%s8938_s30 + $0x280] sm:$0xff] %v7112_v14  ;;  %v6949_v35 = vadd.f32 %v6948_v16, %v13738_v38  ;;  %v6950_v37 = vpop.f32.mrb[103].mxu1 }
 0x84b   : > { %v7113_v29 = vadd.f32 %v6949_v35, %v4795_v4  ;;  %v4807_v35 = vld [vmem:[%s8938_s30 + $0x2e8] sm:$0xff] }
 0x84d   : > { %7211 = vst [vmem:[%s8938_s30 + $0x288] sm:$0xff] %v7113_v29 }
 0x84e   : > { %v6953_v28 = vpop.f32.mrb[104].mxu1 }
 0x84f   : > { %v6954_v44 = vadd.f32 %v6953_v28, %v13747_v57  ;;  %v6955_v54 = vpop.f32.mrb[105].mxu1  ;;  %v4808_v28 = vld [vmem:[%s8938_s30 + $0x2f0] sm:$0xff] }
 0x850   : > { %v15385_v54 = vld [vmem:[#allocation99_spill] sm:$0xff] }
 0x851   : > { %v7114_v15 = vadd.f32 %v6954_v44, %v4796_v39 }
 0x853   : > { %7212 = vst [vmem:[%s8938_s30 + $0x290] sm:$0xff] %v7114_v15 }
 0x856   : > { %v6958_v52 = vpop.f32.mrb[106].mxu1 }
 0x857   : > { %v6959_v47 = vadd.f32 %v6958_v52, %v13754_v19  ;;  %v6960_v38 = vpop.f32.mrb[107].mxu1  ;;  %v4809_v52 = vld [vmem:[%s8938_s30 + $0x2f8] sm:$0xff] }
 0x859   : > { %v7115_v40 = vadd.f32 %v6959_v47, %v4797_v26 }
 0x85a   : > { %v6963_v0 = vpop.f32.mrb[108].mxu1 }
 0x85b   : > { %7213 = vst [vmem:[%s8938_s30 + $0x298] sm:$0xff] %v7115_v40  ;;  %v6964_v41 = vadd.f32 %v6963_v0, %v13762_v1  ;;  %v6965_v6 = vpop.f32.mrb[109].mxu1 }
 0x85d   : > { %v7116_v57 = vadd.f32 %v6964_v41, %v4798_v2  ;;  %v4810_v2 = vld [vmem:[%s8938_s30 + $0x300] sm:$0xff] }
 0x85f   : > { %7214 = vst [vmem:[%s8938_s30 + $0x2a0] sm:$0xff] %v7116_v57 }
 0x860   : > { %v6968_v48 = vpop.f32.mrb[110].mxu1 }
 0x861   : > { %v6969_v25 = vadd.f32 %v6968_v48, %v13770_v49  ;;  %v6970_v19 = vpop.f32.mrb[111].mxu1 }
 0x863   : > { %v7117_v3 = vadd.f32 %v6969_v25, %v4799_v33  ;;  %v4811_v33 = vld [vmem:[%s8938_s30 + $0x308] sm:$0xff] }
 0x865   : > { %7215 = vst [vmem:[%s8938_s30 + $0x2a8] sm:$0xff] %v7117_v3 }
 0x868   : > { %v6973_v31 = vpop.f32.mrb[112].mxu1 }
 0x869   : > { %v6974_v59 = vadd.f32 %v6973_v31, %v13778_v46  ;;  %v6975_v1 = vpop.f32.mrb[113].mxu1 }
 0x86b   : > { %v7118_v10 = vadd.f32 %v6974_v59, %v4800_v53 }
 0x86c   : > { %v6978_v50 = vpop.f32.mrb[114].mxu1 }
 0x86d   : > { %7216 = vst [vmem:[%s8938_s30 + $0x2b0] sm:$0xff] %v7118_v10  ;;  %v6979_v9 = vadd.f32 %v6978_v50, %v13787_v55  ;;  %v6980_v22 = vpop.f32.mrb[115].mxu1 }
 0x86f   : > { %v7119_v49 = vadd.f32 %v6979_v9, %v4801_v62 }
 0x871   : > { %7217 = vst [vmem:[%s8938_s30 + $0x2b8] sm:$0xff] %v7119_v49 }
 0x872   : > { %v6983_v27 = vpop.f32.mrb[116].mxu1 }
 0x873   : > { %v6984_v8 = vadd.f32 %v6983_v27, %v13794_v21  ;;  %v6985_v46 = vpop.f32.mrb[117].mxu1 }
 0x875   : > { %v7120_v13 = vadd.f32 %v6984_v8, %v4802_v24 }
 0x877   : > { %7218 = vst [vmem:[%s8938_s30 + $0x2c0] sm:$0xff] %v7120_v13 }
 0x87a   : > { %v6988_v17 = vpop.f32.mrb[118].mxu1 }
 0x87b   : > { %v6989_v30 = vadd.f32 %v6988_v17, %v13803_v63  ;;  %v6990_v55 = vpop.f32.mrb[119].mxu1 }
 0x87d   : > { %v7121_v12 = vadd.f32 %v6989_v30, %v4803_v45 }
 0x87e   : > { %v6993_v11 = vpop.f32.mrb[120].mxu1 }
 0x87f   : > { %7219 = vst [vmem:[%s8938_s30 + $0x2c8] sm:$0xff] %v7121_v12  ;;  %v6994_v51 = vadd.f32 %v6993_v11, %v13811_v18  ;;  %v6995_v60 = vpop.f32.mrb[121].mxu1 }
 0x881   : > { %v7122_v21 = vadd.f32 %v6994_v51, %v4804_v36 }
 0x883   : > { %7220 = vst [vmem:[%s8938_s30 + $0x2d0] sm:$0xff] %v7122_v21 }
 0x884   : > { %v6998_v56 = vpop.f32.mrb[122].mxu1 }
 0x885   : > { %v6999_v20 = vadd.f32 %v6998_v56, %v13820_v61  ;;  %v7000_v63 = vpop.f32.mrb[123].mxu1 }
 0x887   : > { %v7123_v42 = vadd.f32 %v6999_v20, %v4805_v32 }
 0x889   : > { %7221 = vst [vmem:[%s8938_s30 + $0x2d8] sm:$0xff] %v7123_v42 }
 0x88c   : > { %v7003_v14 = vpop.f32.mrb[124].mxu1 }
 0x88d   : > { %v7004_v4 = vadd.f32 %v7003_v14, %v13827_v23  ;;  %v7005_v18 = vpop.f32.mrb[125].mxu1 }
 0x88f   : > { %v7124_v16 = vadd.f32 %v7004_v4, %v4806_v58 }
 0x890   : > { %v7008_v37 = vpop.f32.mrb[126].mxu1 }
 0x891   : > { %7222 = vst [vmem:[%s8938_s30 + $0x2e0] sm:$0xff] %v7124_v16  ;;  %v7009_v29 = vadd.f32 %v7008_v37, %v13835_v43  ;;  %v7010_v39 = vpop.f32.mrb[127].mxu1 }
 0x893   : > { %v7125_v61 = vadd.f32 %v7009_v29, %v4807_v35 }
 0x895   : > { %7223 = vst [vmem:[%s8938_s30 + $0x2e8] sm:$0xff] %v7125_v61 }
 0x896   : > { %v7013_v44 = vpop.f32.mrb[128].mxu1 }
 0x897   : > { %v7014_v15 = vadd.f32 %v7013_v44, %v15385_v54  ;;  %v7015_v23 = vpop.f32.mrb[129].mxu1 }
 0x899   : > { %v7126_v26 = vadd.f32 %v7014_v15, %v4808_v28 }
 0x89b   : > { %7224 = vst [vmem:[%s8938_s30 + $0x2f0] sm:$0xff] %v7126_v26 }
 0x89e   : > { %v7018_v47 = vpop.f32.mrb[130].mxu1 }
 0x89f   : > { %v7019_v38 = vadd.f32 %v7018_v47, %v13851_v34  ;;  %v7020_v43 = vpop.f32.mrb[131].mxu1 }
 0x8a1   : > { %v7127_v40 = vadd.f32 %v7019_v38, %v4809_v52 }
 0x8a2   : > { %v7023_v0 = vpop.f32.mrb[132].mxu1 }
 0x8a3   : > { %7225 = vst [vmem:[%s8938_s30 + $0x2f8] sm:$0xff] %v7127_v40  ;;  %v7024_v41 = vadd.f32 %v7023_v0, %v13858_v7  ;;  %v7025_v6 = vpop.f32.mrb[133].mxu1 }
 0x8a5   : > { %v7128_v57 = vadd.f32 %v7024_v41, %v4810_v2 }
 0x8a7   : > { %7226 = vst [vmem:[%s8938_s30 + $0x300] sm:$0xff] %v7128_v57 }
 0x8a8   : > { %v7028_v48 = vpop.f32.mrb[134].mxu1 }
 0x8a9   : > { %v7029_v25 = vadd.f32 %v7028_v48, %v13865_v5  ;;  %v7030_v34 = vpop.f32.mrb[135].mxu1 }
 0x8ab   : > { %v7129_v7 = vadd.f32 %v7029_v25, %v4811_v33 }
 0x8ad   : > { %7227 = vst [vmem:[%s8938_s30 + $0x308] sm:$0xff] %v7129_v7 }
 0x8ae   : > { %8595 = shalt.err (!%p8592_p3)
}
 0x8af   : > { %s8596_s11 = scalar_lea.hbm %s14091_s22, 12544  ;;  %s8600_s24 = scalar_lea.hbm %s14163_s4, 25088 }
 0x8b0   : > { %p8597_p5 = scmp.ne.s32.totalorder %s14091_s22, %s8596_s11  ;;  %p8601_p0 = scmp.lt.u32.totalorder %s14091_s22, %s14163_s4 }
 0x8b1   : > { %p8602_p2 = scmp.lt.u32.totalorder %s8600_s24, %s8596_s11  ;;  %p8604_p4 = scmp.lt.u32.totalorder %s8596_s11, %s14091_s22 }
 0x8b2   : > { %p8598_p6 = pnand %p8597_p5, %p15386_p12 }
 0x8b3   : > { %p8603_p8 = por %p8602_p2, %p8601_p0 }
 0x8b4   : > { %p8599_p9 = pneg %p8598_p6 }
 0x8b5   : > { %p8605_p1 = por %p8604_p4, %p8603_p8 }
 0x8b7   : > { %p8606_p10 = pnand %p8605_p1, %p8599_p9 }
 0x8b9   : > { %8609 = shalt.err (!%p8606_p10)
}
 0x8ba   : > { %s8723_s10 = smov 128   ;;  %s8724_s17 = smov 8  }
 0x8bb   : > { %7581 = dma.vmem_to_hbm [thread:$0]  (%p15386_p12), %s14093_s7, 12544, %s14091_s22, %s14098_s5, %s8723_s10, %s8723_s10, %s8724_s17  }
 0x8bc PF: > { %p7594_p11 = scmp.ge.s32.totalorder %s8706_s8, 2  ;;  %s7257_s30 = sand.u32 1, %s8666_s25  }
 0x8bd   : > { %p15387_p7 = scmp.ne.s32.totalorder %s14249_s23, 0  ;;  %s7258_s0 = scalar_lea.sflag [#allocation6], %s7257_s30 }
 0x8bf   : > { %p7590_p13 = pnand %p7594_p11, %p15387_p7 }
 0x8c1   : > { %8661 = dma.done.wait (!%p7590_p13), %s7258_s0, 12544  }
 0x8c2   : > { %8663 = vsyncadd (!%p7590_p13), %s7258_s0, 4294954752  ;;  %s24_s8 = sadd.s32 1, %s8706_s8   ;;  %s15388_s19 = sld [smem:[#allocation17_spill]] }
 0x8c3   : > { %p21_p3 = scmp.ge.s32.totalorder %s24_s8, 6   ;;  %s15389_s20 = sld [smem:[#allocation13_spill]] }
 0x8c4   : > { %s15390_s30 = sld [smem:[#allocation18_spill]]  ;;  %s15391_s5 = sld [smem:[#allocation14_spill]] }
 0x8c5   : > { %s15392_s7 = sld [smem:[#allocation15_spill]]  ;;  %s15393_s12 = sld [smem:[#allocation16_spill]] }
 0x8c6   : > { %s15394_s25 = smov %s8670_s26  ;;  %s15395_s26 = smov %s8674_s27 }
 0x8c7   : > { %s15397_s28 = smov %s8682_s29  ;;  %s15399_s0 = smov %s8698_s6 }
 0x8c8   : > { %s15396_s27 = smov %s15388_s19  ;;  %23 = sbr.rel (!%p21_p3) target bundleno = 21 (0x15), region = 87 }
 0x8c9   : > { %s15398_s29 = smov %s15389_s20 }
 0x8cb   : > { %s15400_s6 = smov %s15392_s7  ;;  %s15401_s7 = smov %s15393_s12 }
 0x8cf   :  { %7263 = vsyncpa [#allocation5], 1 }
 0x8d0   :  { %7265 = vsyncpa [#allocation5 + $0x1], 1 }
 0x8d1   :  { %7266 = vsyncpa [#allocation6], 1 }
 0x8d2   :  { %7268 = vsyncpa [#allocation6 + $0x1], 1 }

</bundles_post_ra>
